<compile_context>
chip_gen: v6e
topology: v6e:2x2x1
jax: 0.10.0
libtpu: 0.0.40
codegen_flags: <defaults>
</compile_context>

<pallas_src>
import functools

import numpy as np
import jax
import jax.numpy as jnp
from jax.experimental import pallas as pl
from jax.experimental.pallas import tpu as pltpu


_BN_EPS = 1e-5


# ----------------------------------------------------------------------------
# Pallas kernels (one fused kernel per layer)
# ----------------------------------------------------------------------------
def _convt_bn_relu_kernel(x_ref, w_ref, g_ref, b_ref, o_ref, *, nph, cp):
    """Fused ConvTranspose (ONE stacked matmul) + BatchNorm(batch stats) + ReLU.

    x_ref : (K, M)          stacked-shift input  (K = shifts*Cin, M = N*H*W)
    w_ref : (nph*cp, K)     phase-stacked weight (rows p*cp..(p+1)*cp = phase p)
    g_ref : (cp, 1)         BN gamma (padded rows = 1)
    b_ref : (cp, 1)         BN beta  (padded rows = 0)
    o_ref : (nph, cp, M)    per-phase output, bf16
    """
    x = x_ref[...]                                    # bf16
    w = w_ref[...]                                    # bf16
    # Single wide MXU matmul, f32 accumulation.
    y = jnp.dot(w, x, preferred_element_type=jnp.float32)   # (nph*cp, M)

    m = y.shape[-1]
    inv_count = 1.0 / float(nph * m)                  # full N*Ho*Wo pixel count

    # Single-pass batch statistics per channel, reduced over phases + lanes.
    s = jnp.zeros((cp, 1), jnp.float32)
    ss = jnp.zeros((cp, 1), jnp.float32)
    for p in range(nph):
        yp = y[p * cp:(p + 1) * cp, :]
        s = s + yp.sum(axis=-1, keepdims=True)
        ss = ss + (yp * yp).sum(axis=-1, keepdims=True)
    mean = s * inv_count
    var = ss * inv_count - mean * mean                # biased var (PyTorch BN)

    scale = jax.lax.rsqrt(var + _BN_EPS) * g_ref[...]
    shift = b_ref[...] - mean * scale
    for p in range(nph):
        yp = y[p * cp:(p + 1) * cp, :]
        o_ref[p] = jnp.maximum(yp * scale + shift, 0.0).astype(o_ref.dtype)


def _convt_tanh_kernel(x_ref, w_ref, o_ref, *, nph, cp, cout):
    """Fused ConvTranspose (ONE stacked matmul) + Tanh; stores only real rows."""
    x = x_ref[...]
    w = w_ref[...]
    y = jnp.dot(w, x, preferred_element_type=jnp.float32)   # (nph*cp, M)
    for p in range(nph):
        o_ref[p] = jnp.tanh(y[p * cp:p * cp + cout, :])


# ----------------------------------------------------------------------------
# pallas_call wrappers
# ----------------------------------------------------------------------------
def _round_up(v, m):
    return ((v + m - 1) // m) * m


def _full_spec(shape):
    nd = len(shape)
    return pl.BlockSpec(shape, lambda i: (0,) * nd)


def _call_convt_bn_relu(x, w_stk, gamma, beta, *, nph, cp):
    k, m = x.shape
    kernel = functools.partial(_convt_bn_relu_kernel, nph=nph, cp=cp)
    return pl.pallas_call(
        kernel,
        out_shape=jax.ShapeDtypeStruct((nph, cp, m), jnp.bfloat16),
        grid=(1,),
        in_specs=[
            _full_spec((k, m)),
            _full_spec((nph * cp, k)),
            _full_spec((cp, 1)),
            _full_spec((cp, 1)),
        ],
        out_specs=_full_spec((nph, cp, m)),
        compiler_params=pltpu.CompilerParams(
            dimension_semantics=("arbitrary",)),
    )(x, w_stk, gamma, beta)


def _call_convt_tanh(x, w_stk, *, nph, cp, cout):
    k, m = x.shape
    kernel = functools.partial(_convt_tanh_kernel, nph=nph, cp=cp, cout=cout)
    return pl.pallas_call(
        kernel,
        out_shape=jax.ShapeDtypeStruct((nph, cout, m), jnp.float32),
        grid=(1,),
        in_specs=[_full_spec((k, m)), _full_spec((nph * cp, k))],
        out_specs=_full_spec((nph, cout, m)),
        compiler_params=pltpu.CompilerParams(
            dimension_semantics=("arbitrary",)),
    )(x, w_stk)


# ----------------------------------------------------------------------------
# Thin XLA glue (channel-major activations (C, N, H, W), bf16)
# ----------------------------------------------------------------------------
_SHIFTS = [(dy, dx) for dy in (-1, 0, 1) for dx in (-1, 0, 1)]


def _build_shift_stack(x):
    """x: (Cin, N, H, W) -> bf16 (9*Cin, N*H*W) of 1-padded shifted views."""
    cin, n, h, w = x.shape
    xp = jnp.pad(x, ((0, 0), (0, 0), (1, 1), (1, 1)))
    views = [xp[:, :, 1 + dy:1 + dy + h, 1 + dx:1 + dx + w]
             for (dy, dx) in _SHIFTS]
    return (jnp.stack(views, axis=0)
            .reshape(9 * cin, n * h * w)
            .astype(jnp.bfloat16))


def _interleave_phases(y, cout, n, h, w):
    """(4, Cp, N*H*W) phase-stacked -> channel-major (Cout, N, 2H, 2W)."""
    y = y[:, :cout, :]
    y = y.reshape(2, 2, cout, n, h, w)           # (py, px, o, n, I, J)
    y = jnp.transpose(y, (2, 3, 4, 0, 5, 1))     # (o, n, I, py, J, px)
    return y.reshape(cout, n, 2 * h, 2 * w)


# ----------------------------------------------------------------------------
# One-time parameter preprocessing (pure numpy -> zero per-call XLA ops)
# ----------------------------------------------------------------------------
def _build_phase_weights_np(w):
    """PyTorch ConvTranspose2d weight (Cin, Cout, 4, 4), stride 2, pad 1
    -> sub-pixel phase weights (4, Cout, 9*Cin) matching `_build_shift_stack`."""
    cin, cout = w.shape[0], w.shape[1]
    w_eff = np.zeros((4, cout, 9, cin), np.float32)
    for py in range(2):
        for px in range(2):
            p = py * 2 + px
            for ky in range(4):
                if (ky + py + 1) % 2:
                    continue
                dy = (py + 1 - ky) // 2
                for kx in range(4):
                    if (kx + px + 1) % 2:
                        continue
                    dx = (px + 1 - kx) // 2
                    s = (dy + 1) * 3 + (dx + 1)
                    w_eff[p, :, s, :] = w[:, :, ky, kx].T
    return w_eff.reshape(4, cout, 9 * cin)


def _pad_vec(v, cp, pad_value):
    v = np.asarray(v, np.float32).reshape(-1)
    out = np.full((cp, 1), pad_value, np.float32)
    out[:v.shape[0], 0] = v
    return out


def _prepare_params(params):
    prep = []

    # layer 1: ConvT(nz, ngf*8, 4, 1, 0) on 1x1 -> 16 tap "phases"
    w = np.asarray(params[0]["w"], np.float32)           # (nz, cout, 4, 4)
    nz_, cout = w.shape[0], w.shape[1]
    cp = _round_up(cout, 8)
    w_taps = np.transpose(w, (2, 3, 1, 0)).reshape(16, cout, nz_)
    if cp != cout:
        w_taps = np.pad(w_taps, ((0, 0), (0, cp - cout), (0, 0)))
    prep.append(dict(
        w=jnp.asarray(w_taps.reshape(16 * cp, nz_), dtype=jnp.bfloat16),
        gamma=jnp.asarray(_pad_vec(params[0]["gamma"], cp, 1.0)),
        beta=jnp.asarray(_pad_vec(params[0]["beta"], cp, 0.0)),
        cp=cp, cout=cout))

    # layers 2-4: ConvT(k=4, s=2, p=1) + BN + ReLU
    for i in (1, 2, 3):
        w = np.asarray(params[i]["w"], np.float32)
        cout = w.shape[1]
        cp = _round_up(cout, 8)
        w_ph = _build_phase_weights_np(w)                 # (4, cout, 9*cin)
        if cp != cout:
            w_ph = np.pad(w_ph, ((0, 0), (0, cp - cout), (0, 0)))
        prep.append(dict(
            w=jnp.asarray(w_ph.reshape(4 * cp, -1), dtype=jnp.bfloat16),
            gamma=jnp.asarray(_pad_vec(params[i]["gamma"], cp, 1.0)),
            beta=jnp.asarray(_pad_vec(params[i]["beta"], cp, 0.0)),
            cp=cp, cout=cout))

    # layer 5: ConvT(ngf, nc, 4, 2, 1) + Tanh (no BN)
    w = np.asarray(params[4]["w"], np.float32)
    cout = w.shape[1]
    cp = _round_up(cout, 8)
    w_ph = _build_phase_weights_np(w)
    if cp != cout:
        w_ph = np.pad(w_ph, ((0, 0), (0, cp - cout), (0, 0)))
    prep.append(dict(
        w=jnp.asarray(w_ph.reshape(4 * cp, -1), dtype=jnp.bfloat16),
        cp=cp, cout=cout))
    return prep


# ----------------------------------------------------------------------------
# Generator
# ----------------------------------------------------------------------------
def init_generator_params(key, nz=16, ngf=8, nc=3):
    """Deterministic synthetic parameters (DCGAN-style N(0, 0.02) weights)."""
    chans = [nz, ngf * 8, ngf * 4, ngf * 2, ngf, nc]
    params = []
    for i in range(5):
        key, kw = jax.random.split(key)
        w = 0.02 * jax.random.normal(kw, (chans[i], chans[i + 1], 4, 4),
                                     dtype=jnp.float32)
        layer = {"w": w}
        if i < 4:  # BN after every ConvT except the last
            c = chans[i + 1]
            layer["gamma"] = jnp.ones((c,), jnp.float32)
            layer["beta"] = jnp.zeros((c,), jnp.float32)
        params.append(layer)
    return params


def make_generator_forward(params):
    """Returns a jitted forward closure over one-time-prepared weights."""
    prep = _prepare_params(params)

    @jax.jit
    def forward(z_nchw):
        n, nz = z_nchw.shape[0], z_nchw.shape[1]
        x = jnp.transpose(z_nchw.reshape(n, nz), (1, 0)).astype(jnp.bfloat16)

        # layer 1: ConvT(nz, ngf*8, 4, 1, 0) + BN + ReLU -> 4x4
        l1 = prep[0]
        y = _call_convt_bn_relu(x, l1["w"], l1["gamma"], l1["beta"],
                                nph=16, cp=l1["cp"])        # (16, cp, N) bf16
        a = jnp.transpose(y[:, :l1["cout"], :], (1, 2, 0))
        a = a.reshape(l1["cout"], n, 4, 4)                   # (C, N, 4, 4)

        # layers 2-4: ConvT(k=4, s=2, p=1) + BN + ReLU -> 8, 16, 32
        for li in (1, 2, 3):
            lyr = prep[li]
            _, _, h, w = a.shape
            stk = _build_shift_stack(a)
            yp = _call_convt_bn_relu(stk, lyr["w"], lyr["gamma"], lyr["beta"],
                                     nph=4, cp=lyr["cp"])
            a = _interleave_phases(yp, lyr["cout"], n, h, w)

        # layer 5: ConvT(ngf, nc, 4, 2, 1) + Tanh -> 64
        lyr = prep[4]
        _, _, h, w = a.shape
        stk = _build_shift_stack(a)
        yt = _call_convt_tanh(stk, lyr["w"],
                              nph=4, cp=lyr["cp"], cout=lyr["cout"])
        out = _interleave_phases(yt, lyr["cout"], n, h, w)   # (nc, N, 64, 64)
        return jnp.transpose(out, (1, 0, 2, 3)).astype(jnp.float32)

    return forward


# ----------------------------------------------------------------------------
# Pure-JAX reference (dilate + flip + correlate) for a correctness self-check
# ----------------------------------------------------------------------------
def _reference_conv_transpose2d(x, w, stride, pad):
    n, cin, h, wd = x.shape
    _, cout, kh, kw = w.shape
    hd, wdd = (h - 1) * stride + 1, (wd - 1) * stride + 1
    xd = jnp.zeros((n, cin, hd, wdd), x.dtype)
    xd = xd.at[:, :, ::stride, ::stride].set(x)
    pe = kh - 1 - pad
    xp = jnp.pad(xd, ((0, 0), (0, 0), (pe, pe), (pe, pe)))
    ho, wo = hd + 2 * pe - kh + 1, wdd + 2 * pe - kw + 1
    wf = jnp.flip(w, (2, 3))
    out = jnp.zeros((n, cout, ho, wo), jnp.float32)
    for ky in range(kh):
        for kx in range(kw):
            patch = xp[:, :, ky:ky + ho, kx:kx + wo]
            out = out + jnp.einsum("nchw,co->nohw", patch, wf[:, :, ky, kx])
    return out


def _reference_bn_relu(x, gamma, beta):
    mean = jnp.mean(x, axis=(0, 2, 3), keepdims=True)
    var = jnp.mean((x - mean) ** 2, axis=(0, 2, 3), keepdims=True)
    y = (x - mean) * jax.lax.rsqrt(var + _BN_EPS)
    y = y * gamma.reshape(1, -1, 1, 1) + beta.reshape(1, -1, 1, 1)
    return jnp.maximum(y, 0.0)


@jax.jit
def _reference_generator(z, params):
    x = z.astype(jnp.float32)
    x = _reference_bn_relu(_reference_conv_transpose2d(x, params[0]["w"], 1, 0),
                           params[0]["gamma"], params[0]["beta"])
    for i in (1, 2, 3):
        x = _reference_bn_relu(
            _reference_conv_transpose2d(x, params[i]["w"], 2, 1),
            params[i]["gamma"], params[i]["beta"])
    return jnp.tanh(_reference_conv_transpose2d(x, params[4]["w"], 2, 1))


if __name__ == "__main__":
    key = jax.random.PRNGKey(0)
    k_param, k_input = jax.random.split(key)

    # Small-but-consistent shapes: batch=2, nz=16, ngf=8, nc=3.
    NZ, NGF, NC, BATCH = 16, 8, 3, 2
    params = init_generator_params(k_param, nz=NZ, ngf=NGF, nc=NC)

    # Latent noise, PyTorch-style NCHW: (N, nz, 1, 1)
    z = jax.random.normal(k_input, (BATCH, NZ, 1, 1), dtype=jnp.float32)

    generator_forward = make_generator_forward(params)
    out = jax.block_until_ready(generator_forward(z))

    assert out.shape == (BATCH, NC, 64, 64), out.shape
    assert bool(jnp.all(jnp.isfinite(out)))
    assert bool(jnp.all(jnp.abs(out) <= 1.0 + 1e-6))  # tanh range

    # Sanity check against the pure-JAX (f32) reference; the Pallas path uses
    # bf16 MXU inputs + bf16 intermediate activations, so allow a loose
    # tolerance (structural bugs give O(1) errors).
    ref = jax.block_until_ready(_reference_generator(z, params))
    max_err = float(jnp.max(jnp.abs(out - ref)))
    assert max_err < 0.1, f"mismatch vs pure-JAX reference: {max_err}"

    print("KERNEL_OK")
</pallas_src>

<mosaic_0001>
module attributes {stable_mosaic.version = 11 : i64} {
  func.func @_convt_bn_relu_kernel(%arg0: i32, %arg1: memref<16x2xbf16, #tpu.memory_space<vmem>>, %arg2: memref<1024x16xbf16, #tpu.memory_space<vmem>>, %arg3: memref<64x1xf32, #tpu.memory_space<vmem>>, %arg4: memref<64x1xf32, #tpu.memory_space<vmem>>, %arg5: memref<16x64x2xbf16, #tpu.memory_space<vmem>>) attributes {dimension_semantics = [#tpu.dimension_semantics<arbitrary>], iteration_bounds = array<i64: 1>, scalar_prefetch = 0 : i64, scratch_operands = 0 : i64, tpu.core_type = #tpu.core_type<tc>, window_params = [{pipeline_mode = #tpu.pipeline_mode<synchronous>, transform_indices = @transform_0, window_bounds = array<i64: 16, 2>}, {pipeline_mode = #tpu.pipeline_mode<synchronous>, transform_indices = @transform_1, window_bounds = array<i64: 1024, 16>}, {pipeline_mode = #tpu.pipeline_mode<synchronous>, transform_indices = @transform_2, window_bounds = array<i64: 64, 1>}, {pipeline_mode = #tpu.pipeline_mode<synchronous>, transform_indices = @transform_3, window_bounds = array<i64: 64, 1>}, {pipeline_mode = #tpu.pipeline_mode<synchronous>, transform_indices = @transform_4, window_bounds = array<i64: 16, 64, 2>}]} {
    %c0 = arith.constant 0 : index
    %c0_0 = arith.constant 0 : index
    %0 = vector.load %arg1[%c0, %c0_0] : memref<16x2xbf16, #tpu.memory_space<vmem>>, vector<16x2xbf16>
    %c0_1 = arith.constant 0 : index
    %c0_2 = arith.constant 0 : index
    %1 = vector.load %arg2[%c0_1, %c0_2] : memref<1024x16xbf16, #tpu.memory_space<vmem>>, vector<1024x16xbf16>
    %cst = arith.constant dense<0.000000e+00> : vector<1024x2xf32>
    %2 = tpu.matmul %1, %0, %cst {dimension_numbers = #tpu.dot_dimension_numbers<[1], [0], [0], [1], [0, 0, 1, 1], [], []>} : vector<1024x16xbf16>, vector<16x2xbf16>, vector<1024x2xf32> -> vector<1024x2xf32>
    %cst_3 = arith.constant 0.000000e+00 : f32
    %3 = vector.broadcast %cst_3 : f32 to vector<64x1xf32>
    %cst_4 = arith.constant 0.000000e+00 : f32
    %4 = vector.broadcast %cst_4 : f32 to vector<64x1xf32>
    %5 = vector.extract_strided_slice %2 {offsets = [0, 0], sizes = [64, 2], strides = [1, 1]} : vector<1024x2xf32> to vector<64x2xf32>
    %cst_5 = arith.constant dense<0.000000e+00> : vector<64xf32>
    %6 = vector.multi_reduction <add>, %5, %cst_5 [1] : vector<64x2xf32> to vector<64xf32>
    %7 = vector.shape_cast %6 : vector<64xf32> to vector<64x1xf32>
    %8 = arith.addf %3, %7 : vector<64x1xf32>
    %9 = arith.mulf %5, %5 : vector<64x2xf32>
    %cst_6 = arith.constant dense<0.000000e+00> : vector<64xf32>
    %10 = vector.multi_reduction <add>, %9, %cst_6 [1] : vector<64x2xf32> to vector<64xf32>
    %11 = vector.shape_cast %10 : vector<64xf32> to vector<64x1xf32>
    %12 = arith.addf %4, %11 : vector<64x1xf32>
    %13 = vector.extract_strided_slice %2 {offsets = [64, 0], sizes = [64, 2], strides = [1, 1]} : vector<1024x2xf32> to vector<64x2xf32>
    %cst_7 = arith.constant dense<0.000000e+00> : vector<64xf32>
    %14 = vector.multi_reduction <add>, %13, %cst_7 [1] : vector<64x2xf32> to vector<64xf32>
    %15 = vector.shape_cast %14 : vector<64xf32> to vector<64x1xf32>
    %16 = arith.addf %8, %15 : vector<64x1xf32>
    %17 = arith.mulf %13, %13 : vector<64x2xf32>
    %cst_8 = arith.constant dense<0.000000e+00> : vector<64xf32>
    %18 = vector.multi_reduction <add>, %17, %cst_8 [1] : vector<64x2xf32> to vector<64xf32>
    %19 = vector.shape_cast %18 : vector<64xf32> to vector<64x1xf32>
    %20 = arith.addf %12, %19 : vector<64x1xf32>
    %21 = vector.extract_strided_slice %2 {offsets = [128, 0], sizes = [64, 2], strides = [1, 1]} : vector<1024x2xf32> to vector<64x2xf32>
    %cst_9 = arith.constant dense<0.000000e+00> : vector<64xf32>
    %22 = vector.multi_reduction <add>, %21, %cst_9 [1] : vector<64x2xf32> to vector<64xf32>
    %23 = vector.shape_cast %22 : vector<64xf32> to vector<64x1xf32>
    %24 = arith.addf %16, %23 : vector<64x1xf32>
    %25 = arith.mulf %21, %21 : vector<64x2xf32>
    %cst_10 = arith.constant dense<0.000000e+00> : vector<64xf32>
    %26 = vector.multi_reduction <add>, %25, %cst_10 [1] : vector<64x2xf32> to vector<64xf32>
    %27 = vector.shape_cast %26 : vector<64xf32> to vector<64x1xf32>
    %28 = arith.addf %20, %27 : vector<64x1xf32>
    %29 = vector.extract_strided_slice %2 {offsets = [192, 0], sizes = [64, 2], strides = [1, 1]} : vector<1024x2xf32> to vector<64x2xf32>
    %cst_11 = arith.constant dense<0.000000e+00> : vector<64xf32>
    %30 = vector.multi_reduction <add>, %29, %cst_11 [1] : vector<64x2xf32> to vector<64xf32>
    %31 = vector.shape_cast %30 : vector<64xf32> to vector<64x1xf32>
    %32 = arith.addf %24, %31 : vector<64x1xf32>
    %33 = arith.mulf %29, %29 : vector<64x2xf32>
    %cst_12 = arith.constant dense<0.000000e+00> : vector<64xf32>
    %34 = vector.multi_reduction <add>, %33, %cst_12 [1] : vector<64x2xf32> to vector<64xf32>
    %35 = vector.shape_cast %34 : vector<64xf32> to vector<64x1xf32>
    %36 = arith.addf %28, %35 : vector<64x1xf32>
    %37 = vector.extract_strided_slice %2 {offsets = [256, 0], sizes = [64, 2], strides = [1, 1]} : vector<1024x2xf32> to vector<64x2xf32>
    %cst_13 = arith.constant dense<0.000000e+00> : vector<64xf32>
    %38 = vector.multi_reduction <add>, %37, %cst_13 [1] : vector<64x2xf32> to vector<64xf32>
    %39 = vector.shape_cast %38 : vector<64xf32> to vector<64x1xf32>
    %40 = arith.addf %32, %39 : vector<64x1xf32>
    %41 = arith.mulf %37, %37 : vector<64x2xf32>
    %cst_14 = arith.constant dense<0.000000e+00> : vector<64xf32>
    %42 = vector.multi_reduction <add>, %41, %cst_14 [1] : vector<64x2xf32> to vector<64xf32>
    %43 = vector.shape_cast %42 : vector<64xf32> to vector<64x1xf32>
    %44 = arith.addf %36, %43 : vector<64x1xf32>
    %45 = vector.extract_strided_slice %2 {offsets = [320, 0], sizes = [64, 2], strides = [1, 1]} : vector<1024x2xf32> to vector<64x2xf32>
    %cst_15 = arith.constant dense<0.000000e+00> : vector<64xf32>
    %46 = vector.multi_reduction <add>, %45, %cst_15 [1] : vector<64x2xf32> to vector<64xf32>
    %47 = vector.shape_cast %46 : vector<64xf32> to vector<64x1xf32>
    %48 = arith.addf %40, %47 : vector<64x1xf32>
    %49 = arith.mulf %45, %45 : vector<64x2xf32>
    %cst_16 = arith.constant dense<0.000000e+00> : vector<64xf32>
    %50 = vector.multi_reduction <add>, %49, %cst_16 [1] : vector<64x2xf32> to vector<64xf32>
    %51 = vector.shape_cast %50 : vector<64xf32> to vector<64x1xf32>
    %52 = arith.addf %44, %51 : vector<64x1xf32>
    %53 = vector.extract_strided_slice %2 {offsets = [384, 0], sizes = [64, 2], strides = [1, 1]} : vector<1024x2xf32> to vector<64x2xf32>
    %cst_17 = arith.constant dense<0.000000e+00> : vector<64xf32>
    %54 = vector.multi_reduction <add>, %53, %cst_17 [1] : vector<64x2xf32> to vector<64xf32>
    %55 = vector.shape_cast %54 : vector<64xf32> to vector<64x1xf32>
    %56 = arith.addf %48, %55 : vector<64x1xf32>
    %57 = arith.mulf %53, %53 : vector<64x2xf32>
    %cst_18 = arith.constant dense<0.000000e+00> : vector<64xf32>
    %58 = vector.multi_reduction <add>, %57, %cst_18 [1] : vector<64x2xf32> to vector<64xf32>
    %59 = vector.shape_cast %58 : vector<64xf32> to vector<64x1xf32>
    %60 = arith.addf %52, %59 : vector<64x1xf32>
    %61 = vector.extract_strided_slice %2 {offsets = [448, 0], sizes = [64, 2], strides = [1, 1]} : vector<1024x2xf32> to vector<64x2xf32>
    %cst_19 = arith.constant dense<0.000000e+00> : vector<64xf32>
    %62 = vector.multi_reduction <add>, %61, %cst_19 [1] : vector<64x2xf32> to vector<64xf32>
    %63 = vector.shape_cast %62 : vector<64xf32> to vector<64x1xf32>
    %64 = arith.addf %56, %63 : vector<64x1xf32>
    %65 = arith.mulf %61, %61 : vector<64x2xf32>
    %cst_20 = arith.constant dense<0.000000e+00> : vector<64xf32>
    %66 = vector.multi_reduction <add>, %65, %cst_20 [1] : vector<64x2xf32> to vector<64xf32>
    %67 = vector.shape_cast %66 : vector<64xf32> to vector<64x1xf32>
    %68 = arith.addf %60, %67 : vector<64x1xf32>
    %69 = vector.extract_strided_slice %2 {offsets = [512, 0], sizes = [64, 2], strides = [1, 1]} : vector<1024x2xf32> to vector<64x2xf32>
    %cst_21 = arith.constant dense<0.000000e+00> : vector<64xf32>
    %70 = vector.multi_reduction <add>, %69, %cst_21 [1] : vector<64x2xf32> to vector<64xf32>
    %71 = vector.shape_cast %70 : vector<64xf32> to vector<64x1xf32>
    %72 = arith.addf %64, %71 : vector<64x1xf32>
    %73 = arith.mulf %69, %69 : vector<64x2xf32>
    %cst_22 = arith.constant dense<0.000000e+00> : vector<64xf32>
    %74 = vector.multi_reduction <add>, %73, %cst_22 [1] : vector<64x2xf32> to vector<64xf32>
    %75 = vector.shape_cast %74 : vector<64xf32> to vector<64x1xf32>
    %76 = arith.addf %68, %75 : vector<64x1xf32>
    %77 = vector.extract_strided_slice %2 {offsets = [576, 0], sizes = [64, 2], strides = [1, 1]} : vector<1024x2xf32> to vector<64x2xf32>
    %cst_23 = arith.constant dense<0.000000e+00> : vector<64xf32>
    %78 = vector.multi_reduction <add>, %77, %cst_23 [1] : vector<64x2xf32> to vector<64xf32>
    %79 = vector.shape_cast %78 : vector<64xf32> to vector<64x1xf32>
    %80 = arith.addf %72, %79 : vector<64x1xf32>
    %81 = arith.mulf %77, %77 : vector<64x2xf32>
    %cst_24 = arith.constant dense<0.000000e+00> : vector<64xf32>
    %82 = vector.multi_reduction <add>, %81, %cst_24 [1] : vector<64x2xf32> to vector<64xf32>
    %83 = vector.shape_cast %82 : vector<64xf32> to vector<64x1xf32>
    %84 = arith.addf %76, %83 : vector<64x1xf32>
    %85 = vector.extract_strided_slice %2 {offsets = [640, 0], sizes = [64, 2], strides = [1, 1]} : vector<1024x2xf32> to vector<64x2xf32>
    %cst_25 = arith.constant dense<0.000000e+00> : vector<64xf32>
    %86 = vector.multi_reduction <add>, %85, %cst_25 [1] : vector<64x2xf32> to vector<64xf32>
    %87 = vector.shape_cast %86 : vector<64xf32> to vector<64x1xf32>
    %88 = arith.addf %80, %87 : vector<64x1xf32>
    %89 = arith.mulf %85, %85 : vector<64x2xf32>
    %cst_26 = arith.constant dense<0.000000e+00> : vector<64xf32>
    %90 = vector.multi_reduction <add>, %89, %cst_26 [1] : vector<64x2xf32> to vector<64xf32>
    %91 = vector.shape_cast %90 : vector<64xf32> to vector<64x1xf32>
    %92 = arith.addf %84, %91 : vector<64x1xf32>
    %93 = vector.extract_strided_slice %2 {offsets = [704, 0], sizes = [64, 2], strides = [1, 1]} : vector<1024x2xf32> to vector<64x2xf32>
    %cst_27 = arith.constant dense<0.000000e+00> : vector<64xf32>
    %94 = vector.multi_reduction <add>, %93, %cst_27 [1] : vector<64x2xf32> to vector<64xf32>
    %95 = vector.shape_cast %94 : vector<64xf32> to vector<64x1xf32>
    %96 = arith.addf %88, %95 : vector<64x1xf32>
    %97 = arith.mulf %93, %93 : vector<64x2xf32>
    %cst_28 = arith.constant dense<0.000000e+00> : vector<64xf32>
    %98 = vector.multi_reduction <add>, %97, %cst_28 [1] : vector<64x2xf32> to vector<64xf32>
    %99 = vector.shape_cast %98 : vector<64xf32> to vector<64x1xf32>
    %100 = arith.addf %92, %99 : vector<64x1xf32>
    %101 = vector.extract_strided_slice %2 {offsets = [768, 0], sizes = [64, 2], strides = [1, 1]} : vector<1024x2xf32> to vector<64x2xf32>
    %cst_29 = arith.constant dense<0.000000e+00> : vector<64xf32>
    %102 = vector.multi_reduction <add>, %101, %cst_29 [1] : vector<64x2xf32> to vector<64xf32>
    %103 = vector.shape_cast %102 : vector<64xf32> to vector<64x1xf32>
    %104 = arith.addf %96, %103 : vector<64x1xf32>
    %105 = arith.mulf %101, %101 : vector<64x2xf32>
    %cst_30 = arith.constant dense<0.000000e+00> : vector<64xf32>
    %106 = vector.multi_reduction <add>, %105, %cst_30 [1] : vector<64x2xf32> to vector<64xf32>
    %107 = vector.shape_cast %106 : vector<64xf32> to vector<64x1xf32>
    %108 = arith.addf %100, %107 : vector<64x1xf32>
    %109 = vector.extract_strided_slice %2 {offsets = [832, 0], sizes = [64, 2], strides = [1, 1]} : vector<1024x2xf32> to vector<64x2xf32>
    %cst_31 = arith.constant dense<0.000000e+00> : vector<64xf32>
    %110 = vector.multi_reduction <add>, %109, %cst_31 [1] : vector<64x2xf32> to vector<64xf32>
    %111 = vector.shape_cast %110 : vector<64xf32> to vector<64x1xf32>
    %112 = arith.addf %104, %111 : vector<64x1xf32>
    %113 = arith.mulf %109, %109 : vector<64x2xf32>
    %cst_32 = arith.constant dense<0.000000e+00> : vector<64xf32>
    %114 = vector.multi_reduction <add>, %113, %cst_32 [1] : vector<64x2xf32> to vector<64xf32>
    %115 = vector.shape_cast %114 : vector<64xf32> to vector<64x1xf32>
    %116 = arith.addf %108, %115 : vector<64x1xf32>
    %117 = vector.extract_strided_slice %2 {offsets = [896, 0], sizes = [64, 2], strides = [1, 1]} : vector<1024x2xf32> to vector<64x2xf32>
    %cst_33 = arith.constant dense<0.000000e+00> : vector<64xf32>
    %118 = vector.multi_reduction <add>, %117, %cst_33 [1] : vector<64x2xf32> to vector<64xf32>
    %119 = vector.shape_cast %118 : vector<64xf32> to vector<64x1xf32>
    %120 = arith.addf %112, %119 : vector<64x1xf32>
    %121 = arith.mulf %117, %117 : vector<64x2xf32>
    %cst_34 = arith.constant dense<0.000000e+00> : vector<64xf32>
    %122 = vector.multi_reduction <add>, %121, %cst_34 [1] : vector<64x2xf32> to vector<64xf32>
    %123 = vector.shape_cast %122 : vector<64xf32> to vector<64x1xf32>
    %124 = arith.addf %116, %123 : vector<64x1xf32>
    %125 = vector.extract_strided_slice %2 {offsets = [960, 0], sizes = [64, 2], strides = [1, 1]} : vector<1024x2xf32> to vector<64x2xf32>
    %cst_35 = arith.constant dense<0.000000e+00> : vector<64xf32>
    %126 = vector.multi_reduction <add>, %125, %cst_35 [1] : vector<64x2xf32> to vector<64xf32>
    %127 = vector.shape_cast %126 : vector<64xf32> to vector<64x1xf32>
    %128 = arith.addf %120, %127 : vector<64x1xf32>
    %129 = arith.mulf %125, %125 : vector<64x2xf32>
    %cst_36 = arith.constant dense<0.000000e+00> : vector<64xf32>
    %130 = vector.multi_reduction <add>, %129, %cst_36 [1] : vector<64x2xf32> to vector<64xf32>
    %131 = vector.shape_cast %130 : vector<64xf32> to vector<64x1xf32>
    %132 = arith.addf %124, %131 : vector<64x1xf32>
    %cst_37 = arith.constant 3.125000e-02 : f32
    %133 = vector.broadcast %cst_37 : f32 to vector<64x1xf32>
    %134 = arith.mulf %128, %133 : vector<64x1xf32>
    %cst_38 = arith.constant 3.125000e-02 : f32
    %135 = vector.broadcast %cst_38 : f32 to vector<64x1xf32>
    %136 = arith.mulf %132, %135 : vector<64x1xf32>
    %137 = arith.mulf %134, %134 : vector<64x1xf32>
    %138 = arith.subf %136, %137 : vector<64x1xf32>
    %cst_39 = arith.constant 9.99999974E-6 : f32
    %139 = vector.broadcast %cst_39 : f32 to vector<64x1xf32>
    %140 = arith.addf %138, %139 : vector<64x1xf32>
    %141 = math.rsqrt %140 : vector<64x1xf32>
    %c0_40 = arith.constant 0 : index
    %c0_41 = arith.constant 0 : index
    %142 = vector.load %arg3[%c0_40, %c0_41] : memref<64x1xf32, #tpu.memory_space<vmem>>, vector<64x1xf32>
    %143 = arith.mulf %141, %142 : vector<64x1xf32>
    %c0_42 = arith.constant 0 : index
    %c0_43 = arith.constant 0 : index
    %144 = vector.load %arg4[%c0_42, %c0_43] : memref<64x1xf32, #tpu.memory_space<vmem>>, vector<64x1xf32>
    %145 = arith.mulf %134, %143 : vector<64x1xf32>
    %146 = arith.subf %144, %145 : vector<64x1xf32>
    %147 = vector.extract_strided_slice %2 {offsets = [0, 0], sizes = [64, 2], strides = [1, 1]} : vector<1024x2xf32> to vector<64x2xf32>
    %148 = vector.broadcast %143 : vector<64x1xf32> to vector<64x2xf32>
    %149 = arith.mulf %147, %148 : vector<64x2xf32>
    %150 = vector.broadcast %146 : vector<64x1xf32> to vector<64x2xf32>
    %151 = arith.addf %149, %150 : vector<64x2xf32>
    %cst_44 = arith.constant 0.000000e+00 : f32
    %152 = vector.broadcast %cst_44 : f32 to vector<64x2xf32>
    %153 = arith.maximumf %151, %152 : vector<64x2xf32>
    %154 = arith.truncf %153 : vector<64x2xf32> to vector<64x2xbf16>
    %c0_45 = arith.constant 0 : index
    %c0_46 = arith.constant 0 : index
    %c0_47 = arith.constant 0 : index
    %155 = vector.load %arg5[%c0_45, %c0_46, %c0_47] : memref<16x64x2xbf16, #tpu.memory_space<vmem>>, vector<1x64x2xbf16>
    %156 = vector.shape_cast %155 : vector<1x64x2xbf16> to vector<64x2xbf16>
    %157 = vector.shape_cast %154 : vector<64x2xbf16> to vector<1x64x2xbf16>
    tpu.vector_store %arg5[%c0_45, %c0_46, %c0_47], %157 {strides = array<i32>} : memref<16x64x2xbf16, #tpu.memory_space<vmem>>, vector<1x64x2xbf16>,
    %158 = vector.extract_strided_slice %2 {offsets = [64, 0], sizes = [64, 2], strides = [1, 1]} : vector<1024x2xf32> to vector<64x2xf32>
    %159 = vector.broadcast %143 : vector<64x1xf32> to vector<64x2xf32>
    %160 = arith.mulf %158, %159 : vector<64x2xf32>
    %161 = vector.broadcast %146 : vector<64x1xf32> to vector<64x2xf32>
    %162 = arith.addf %160, %161 : vector<64x2xf32>
    %cst_48 = arith.constant 0.000000e+00 : f32
    %163 = vector.broadcast %cst_48 : f32 to vector<64x2xf32>
    %164 = arith.maximumf %162, %163 : vector<64x2xf32>
    %165 = arith.truncf %164 : vector<64x2xf32> to vector<64x2xbf16>
    %c1 = arith.constant 1 : index
    %c0_49 = arith.constant 0 : index
    %c0_50 = arith.constant 0 : index
    %166 = vector.load %arg5[%c1, %c0_49, %c0_50] : memref<16x64x2xbf16, #tpu.memory_space<vmem>>, vector<1x64x2xbf16>
    %167 = vector.shape_cast %166 : vector<1x64x2xbf16> to vector<64x2xbf16>
    %168 = vector.shape_cast %165 : vector<64x2xbf16> to vector<1x64x2xbf16>
    tpu.vector_store %arg5[%c1, %c0_49, %c0_50], %168 {strides = array<i32>} : memref<16x64x2xbf16, #tpu.memory_space<vmem>>, vector<1x64x2xbf16>,
    %169 = vector.extract_strided_slice %2 {offsets = [128, 0], sizes = [64, 2], strides = [1, 1]} : vector<1024x2xf32> to vector<64x2xf32>
    %170 = vector.broadcast %143 : vector<64x1xf32> to vector<64x2xf32>
    %171 = arith.mulf %169, %170 : vector<64x2xf32>
    %172 = vector.broadcast %146 : vector<64x1xf32> to vector<64x2xf32>
    %173 = arith.addf %171, %172 : vector<64x2xf32>
    %cst_51 = arith.constant 0.000000e+00 : f32
    %174 = vector.broadcast %cst_51 : f32 to vector<64x2xf32>
    %175 = arith.maximumf %173, %174 : vector<64x2xf32>
    %176 = arith.truncf %175 : vector<64x2xf32> to vector<64x2xbf16>
    %c2 = arith.constant 2 : index
    %c0_52 = arith.constant 0 : index
    %c0_53 = arith.constant 0 : index
    %177 = vector.load %arg5[%c2, %c0_52, %c0_53] : memref<16x64x2xbf16, #tpu.memory_space<vmem>>, vector<1x64x2xbf16>
    %178 = vector.shape_cast %177 : vector<1x64x2xbf16> to vector<64x2xbf16>
    %179 = vector.shape_cast %176 : vector<64x2xbf16> to vector<1x64x2xbf16>
    tpu.vector_store %arg5[%c2, %c0_52, %c0_53], %179 {strides = array<i32>} : memref<16x64x2xbf16, #tpu.memory_space<vmem>>, vector<1x64x2xbf16>,
    %180 = vector.extract_strided_slice %2 {offsets = [192, 0], sizes = [64, 2], strides = [1, 1]} : vector<1024x2xf32> to vector<64x2xf32>
    %181 = vector.broadcast %143 : vector<64x1xf32> to vector<64x2xf32>
    %182 = arith.mulf %180, %181 : vector<64x2xf32>
    %183 = vector.broadcast %146 : vector<64x1xf32> to vector<64x2xf32>
    %184 = arith.addf %182, %183 : vector<64x2xf32>
    %cst_54 = arith.constant 0.000000e+00 : f32
    %185 = vector.broadcast %cst_54 : f32 to vector<64x2xf32>
    %186 = arith.maximumf %184, %185 : vector<64x2xf32>
    %187 = arith.truncf %186 : vector<64x2xf32> to vector<64x2xbf16>
    %c3 = arith.constant 3 : index
    %c0_55 = arith.constant 0 : index
    %c0_56 = arith.constant 0 : index
    %188 = vector.load %arg5[%c3, %c0_55, %c0_56] : memref<16x64x2xbf16, #tpu.memory_space<vmem>>, vector<1x64x2xbf16>
    %189 = vector.shape_cast %188 : vector<1x64x2xbf16> to vector<64x2xbf16>
    %190 = vector.shape_cast %187 : vector<64x2xbf16> to vector<1x64x2xbf16>
    tpu.vector_store %arg5[%c3, %c0_55, %c0_56], %190 {strides = array<i32>} : memref<16x64x2xbf16, #tpu.memory_space<vmem>>, vector<1x64x2xbf16>,
    %191 = vector.extract_strided_slice %2 {offsets = [256, 0], sizes = [64, 2], strides = [1, 1]} : vector<1024x2xf32> to vector<64x2xf32>
    %192 = vector.broadcast %143 : vector<64x1xf32> to vector<64x2xf32>
    %193 = arith.mulf %191, %192 : vector<64x2xf32>
    %194 = vector.broadcast %146 : vector<64x1xf32> to vector<64x2xf32>
    %195 = arith.addf %193, %194 : vector<64x2xf32>
    %cst_57 = arith.constant 0.000000e+00 : f32
    %196 = vector.broadcast %cst_57 : f32 to vector<64x2xf32>
    %197 = arith.maximumf %195, %196 : vector<64x2xf32>
    %198 = arith.truncf %197 : vector<64x2xf32> to vector<64x2xbf16>
    %c4 = arith.constant 4 : index
    %c0_58 = arith.constant 0 : index
    %c0_59 = arith.constant 0 : index
    %199 = vector.load %arg5[%c4, %c0_58, %c0_59] : memref<16x64x2xbf16, #tpu.memory_space<vmem>>, vector<1x64x2xbf16>
    %200 = vector.shape_cast %199 : vector<1x64x2xbf16> to vector<64x2xbf16>
    %201 = vector.shape_cast %198 : vector<64x2xbf16> to vector<1x64x2xbf16>
    tpu.vector_store %arg5[%c4, %c0_58, %c0_59], %201 {strides = array<i32>} : memref<16x64x2xbf16, #tpu.memory_space<vmem>>, vector<1x64x2xbf16>,
    %202 = vector.extract_strided_slice %2 {offsets = [320, 0], sizes = [64, 2], strides = [1, 1]} : vector<1024x2xf32> to vector<64x2xf32>
    %203 = vector.broadcast %143 : vector<64x1xf32> to vector<64x2xf32>
    %204 = arith.mulf %202, %203 : vector<64x2xf32>
    %205 = vector.broadcast %146 : vector<64x1xf32> to vector<64x2xf32>
    %206 = arith.addf %204, %205 : vector<64x2xf32>
    %cst_60 = arith.constant 0.000000e+00 : f32
    %207 = vector.broadcast %cst_60 : f32 to vector<64x2xf32>
    %208 = arith.maximumf %206, %207 : vector<64x2xf32>
    %209 = arith.truncf %208 : vector<64x2xf32> to vector<64x2xbf16>
    %c5 = arith.constant 5 : index
    %c0_61 = arith.constant 0 : index
    %c0_62 = arith.constant 0 : index
    %210 = vector.load %arg5[%c5, %c0_61, %c0_62] : memref<16x64x2xbf16, #tpu.memory_space<vmem>>, vector<1x64x2xbf16>
    %211 = vector.shape_cast %210 : vector<1x64x2xbf16> to vector<64x2xbf16>
    %212 = vector.shape_cast %209 : vector<64x2xbf16> to vector<1x64x2xbf16>
    tpu.vector_store %arg5[%c5, %c0_61, %c0_62], %212 {strides = array<i32>} : memref<16x64x2xbf16, #tpu.memory_space<vmem>>, vector<1x64x2xbf16>,
    %213 = vector.extract_strided_slice %2 {offsets = [384, 0], sizes = [64, 2], strides = [1, 1]} : vector<1024x2xf32> to vector<64x2xf32>
    %214 = vector.broadcast %143 : vector<64x1xf32> to vector<64x2xf32>
    %215 = arith.mulf %213, %214 : vector<64x2xf32>
    %216 = vector.broadcast %146 : vector<64x1xf32> to vector<64x2xf32>
    %217 = arith.addf %215, %216 : vector<64x2xf32>
    %cst_63 = arith.constant 0.000000e+00 : f32
    %218 = vector.broadcast %cst_63 : f32 to vector<64x2xf32>
    %219 = arith.maximumf %217, %218 : vector<64x2xf32>
    %220 = arith.truncf %219 : vector<64x2xf32> to vector<64x2xbf16>
    %c6 = arith.constant 6 : index
    %c0_64 = arith.constant 0 : index
    %c0_65 = arith.constant 0 : index
    %221 = vector.load %arg5[%c6, %c0_64, %c0_65] : memref<16x64x2xbf16, #tpu.memory_space<vmem>>, vector<1x64x2xbf16>
    %222 = vector.shape_cast %221 : vector<1x64x2xbf16> to vector<64x2xbf16>
    %223 = vector.shape_cast %220 : vector<64x2xbf16> to vector<1x64x2xbf16>
    tpu.vector_store %arg5[%c6, %c0_64, %c0_65], %223 {strides = array<i32>} : memref<16x64x2xbf16, #tpu.memory_space<vmem>>, vector<1x64x2xbf16>,
    %224 = vector.extract_strided_slice %2 {offsets = [448, 0], sizes = [64, 2], strides = [1, 1]} : vector<1024x2xf32> to vector<64x2xf32>
    %225 = vector.broadcast %143 : vector<64x1xf32> to vector<64x2xf32>
    %226 = arith.mulf %224, %225 : vector<64x2xf32>
    %227 = vector.broadcast %146 : vector<64x1xf32> to vector<64x2xf32>
    %228 = arith.addf %226, %227 : vector<64x2xf32>
    %cst_66 = arith.constant 0.000000e+00 : f32
    %229 = vector.broadcast %cst_66 : f32 to vector<64x2xf32>
    %230 = arith.maximumf %228, %229 : vector<64x2xf32>
    %231 = arith.truncf %230 : vector<64x2xf32> to vector<64x2xbf16>
    %c7 = arith.constant 7 : index
    %c0_67 = arith.constant 0 : index
    %c0_68 = arith.constant 0 : index
    %232 = vector.load %arg5[%c7, %c0_67, %c0_68] : memref<16x64x2xbf16, #tpu.memory_space<vmem>>, vector<1x64x2xbf16>
    %233 = vector.shape_cast %232 : vector<1x64x2xbf16> to vector<64x2xbf16>
    %234 = vector.shape_cast %231 : vector<64x2xbf16> to vector<1x64x2xbf16>
    tpu.vector_store %arg5[%c7, %c0_67, %c0_68], %234 {strides = array<i32>} : memref<16x64x2xbf16, #tpu.memory_space<vmem>>, vector<1x64x2xbf16>,
    %235 = vector.extract_strided_slice %2 {offsets = [512, 0], sizes = [64, 2], strides = [1, 1]} : vector<1024x2xf32> to vector<64x2xf32>
    %236 = vector.broadcast %143 : vector<64x1xf32> to vector<64x2xf32>
    %237 = arith.mulf %235, %236 : vector<64x2xf32>
    %238 = vector.broadcast %146 : vector<64x1xf32> to vector<64x2xf32>
    %239 = arith.addf %237, %238 : vector<64x2xf32>
    %cst_69 = arith.constant 0.000000e+00 : f32
    %240 = vector.broadcast %cst_69 : f32 to vector<64x2xf32>
    %241 = arith.maximumf %239, %240 : vector<64x2xf32>
    %242 = arith.truncf %241 : vector<64x2xf32> to vector<64x2xbf16>
    %c8 = arith.constant 8 : index
    %c0_70 = arith.constant 0 : index
    %c0_71 = arith.constant 0 : index
    %243 = vector.load %arg5[%c8, %c0_70, %c0_71] : memref<16x64x2xbf16, #tpu.memory_space<vmem>>, vector<1x64x2xbf16>
    %244 = vector.shape_cast %243 : vector<1x64x2xbf16> to vector<64x2xbf16>
    %245 = vector.shape_cast %242 : vector<64x2xbf16> to vector<1x64x2xbf16>
    tpu.vector_store %arg5[%c8, %c0_70, %c0_71], %245 {strides = array<i32>} : memref<16x64x2xbf16, #tpu.memory_space<vmem>>, vector<1x64x2xbf16>,
    %246 = vector.extract_strided_slice %2 {offsets = [576, 0], sizes = [64, 2], strides = [1, 1]} : vector<1024x2xf32> to vector<64x2xf32>
    %247 = vector.broadcast %143 : vector<64x1xf32> to vector<64x2xf32>
    %248 = arith.mulf %246, %247 : vector<64x2xf32>
    %249 = vector.broadcast %146 : vector<64x1xf32> to vector<64x2xf32>
    %250 = arith.addf %248, %249 : vector<64x2xf32>
    %cst_72 = arith.constant 0.000000e+00 : f32
    %251 = vector.broadcast %cst_72 : f32 to vector<64x2xf32>
    %252 = arith.maximumf %250, %251 : vector<64x2xf32>
    %253 = arith.truncf %252 : vector<64x2xf32> to vector<64x2xbf16>
    %c9 = arith.constant 9 : index
    %c0_73 = arith.constant 0 : index
    %c0_74 = arith.constant 0 : index
    %254 = vector.load %arg5[%c9, %c0_73, %c0_74] : memref<16x64x2xbf16, #tpu.memory_space<vmem>>, vector<1x64x2xbf16>
    %255 = vector.shape_cast %254 : vector<1x64x2xbf16> to vector<64x2xbf16>
    %256 = vector.shape_cast %253 : vector<64x2xbf16> to vector<1x64x2xbf16>
    tpu.vector_store %arg5[%c9, %c0_73, %c0_74], %256 {strides = array<i32>} : memref<16x64x2xbf16, #tpu.memory_space<vmem>>, vector<1x64x2xbf16>,
    %257 = vector.extract_strided_slice %2 {offsets = [640, 0], sizes = [64, 2], strides = [1, 1]} : vector<1024x2xf32> to vector<64x2xf32>
    %258 = vector.broadcast %143 : vector<64x1xf32> to vector<64x2xf32>
    %259 = arith.mulf %257, %258 : vector<64x2xf32>
    %260 = vector.broadcast %146 : vector<64x1xf32> to vector<64x2xf32>
    %261 = arith.addf %259, %260 : vector<64x2xf32>
    %cst_75 = arith.constant 0.000000e+00 : f32
    %262 = vector.broadcast %cst_75 : f32 to vector<64x2xf32>
    %263 = arith.maximumf %261, %262 : vector<64x2xf32>
    %264 = arith.truncf %263 : vector<64x2xf32> to vector<64x2xbf16>
    %c10 = arith.constant 10 : index
    %c0_76 = arith.constant 0 : index
    %c0_77 = arith.constant 0 : index
    %265 = vector.load %arg5[%c10, %c0_76, %c0_77] : memref<16x64x2xbf16, #tpu.memory_space<vmem>>, vector<1x64x2xbf16>
    %266 = vector.shape_cast %265 : vector<1x64x2xbf16> to vector<64x2xbf16>
    %267 = vector.shape_cast %264 : vector<64x2xbf16> to vector<1x64x2xbf16>
    tpu.vector_store %arg5[%c10, %c0_76, %c0_77], %267 {strides = array<i32>} : memref<16x64x2xbf16, #tpu.memory_space<vmem>>, vector<1x64x2xbf16>,
    %268 = vector.extract_strided_slice %2 {offsets = [704, 0], sizes = [64, 2], strides = [1, 1]} : vector<1024x2xf32> to vector<64x2xf32>
    %269 = vector.broadcast %143 : vector<64x1xf32> to vector<64x2xf32>
    %270 = arith.mulf %268, %269 : vector<64x2xf32>
    %271 = vector.broadcast %146 : vector<64x1xf32> to vector<64x2xf32>
    %272 = arith.addf %270, %271 : vector<64x2xf32>
    %cst_78 = arith.constant 0.000000e+00 : f32
    %273 = vector.broadcast %cst_78 : f32 to vector<64x2xf32>
    %274 = arith.maximumf %272, %273 : vector<64x2xf32>
    %275 = arith.truncf %274 : vector<64x2xf32> to vector<64x2xbf16>
    %c11 = arith.constant 11 : index
    %c0_79 = arith.constant 0 : index
    %c0_80 = arith.constant 0 : index
    %276 = vector.load %arg5[%c11, %c0_79, %c0_80] : memref<16x64x2xbf16, #tpu.memory_space<vmem>>, vector<1x64x2xbf16>
    %277 = vector.shape_cast %276 : vector<1x64x2xbf16> to vector<64x2xbf16>
    %278 = vector.shape_cast %275 : vector<64x2xbf16> to vector<1x64x2xbf16>
    tpu.vector_store %arg5[%c11, %c0_79, %c0_80], %278 {strides = array<i32>} : memref<16x64x2xbf16, #tpu.memory_space<vmem>>, vector<1x64x2xbf16>,
    %279 = vector.extract_strided_slice %2 {offsets = [768, 0], sizes = [64, 2], strides = [1, 1]} : vector<1024x2xf32> to vector<64x2xf32>
    %280 = vector.broadcast %143 : vector<64x1xf32> to vector<64x2xf32>
    %281 = arith.mulf %279, %280 : vector<64x2xf32>
    %282 = vector.broadcast %146 : vector<64x1xf32> to vector<64x2xf32>
    %283 = arith.addf %281, %282 : vector<64x2xf32>
    %cst_81 = arith.constant 0.000000e+00 : f32
    %284 = vector.broadcast %cst_81 : f32 to vector<64x2xf32>
    %285 = arith.maximumf %283, %284 : vector<64x2xf32>
    %286 = arith.truncf %285 : vector<64x2xf32> to vector<64x2xbf16>
    %c12 = arith.constant 12 : index
    %c0_82 = arith.constant 0 : index
    %c0_83 = arith.constant 0 : index
    %287 = vector.load %arg5[%c12, %c0_82, %c0_83] : memref<16x64x2xbf16, #tpu.memory_space<vmem>>, vector<1x64x2xbf16>
    %288 = vector.shape_cast %287 : vector<1x64x2xbf16> to vector<64x2xbf16>
    %289 = vector.shape_cast %286 : vector<64x2xbf16> to vector<1x64x2xbf16>
    tpu.vector_store %arg5[%c12, %c0_82, %c0_83], %289 {strides = array<i32>} : memref<16x64x2xbf16, #tpu.memory_space<vmem>>, vector<1x64x2xbf16>,
    %290 = vector.extract_strided_slice %2 {offsets = [832, 0], sizes = [64, 2], strides = [1, 1]} : vector<1024x2xf32> to vector<64x2xf32>
    %291 = vector.broadcast %143 : vector<64x1xf32> to vector<64x2xf32>
    %292 = arith.mulf %290, %291 : vector<64x2xf32>
    %293 = vector.broadcast %146 : vector<64x1xf32> to vector<64x2xf32>
    %294 = arith.addf %292, %293 : vector<64x2xf32>
    %cst_84 = arith.constant 0.000000e+00 : f32
    %295 = vector.broadcast %cst_84 : f32 to vector<64x2xf32>
    %296 = arith.maximumf %294, %295 : vector<64x2xf32>
    %297 = arith.truncf %296 : vector<64x2xf32> to vector<64x2xbf16>
    %c13 = arith.constant 13 : index
    %c0_85 = arith.constant 0 : index
    %c0_86 = arith.constant 0 : index
    %298 = vector.load %arg5[%c13, %c0_85, %c0_86] : memref<16x64x2xbf16, #tpu.memory_space<vmem>>, vector<1x64x2xbf16>
    %299 = vector.shape_cast %298 : vector<1x64x2xbf16> to vector<64x2xbf16>
    %300 = vector.shape_cast %297 : vector<64x2xbf16> to vector<1x64x2xbf16>
    tpu.vector_store %arg5[%c13, %c0_85, %c0_86], %300 {strides = array<i32>} : memref<16x64x2xbf16, #tpu.memory_space<vmem>>, vector<1x64x2xbf16>,
    %301 = vector.extract_strided_slice %2 {offsets = [896, 0], sizes = [64, 2], strides = [1, 1]} : vector<1024x2xf32> to vector<64x2xf32>
    %302 = vector.broadcast %143 : vector<64x1xf32> to vector<64x2xf32>
    %303 = arith.mulf %301, %302 : vector<64x2xf32>
    %304 = vector.broadcast %146 : vector<64x1xf32> to vector<64x2xf32>
    %305 = arith.addf %303, %304 : vector<64x2xf32>
    %cst_87 = arith.constant 0.000000e+00 : f32
    %306 = vector.broadcast %cst_87 : f32 to vector<64x2xf32>
    %307 = arith.maximumf %305, %306 : vector<64x2xf32>
    %308 = arith.truncf %307 : vector<64x2xf32> to vector<64x2xbf16>
    %c14 = arith.constant 14 : index
    %c0_88 = arith.constant 0 : index
    %c0_89 = arith.constant 0 : index
    %309 = vector.load %arg5[%c14, %c0_88, %c0_89] : memref<16x64x2xbf16, #tpu.memory_space<vmem>>, vector<1x64x2xbf16>
    %310 = vector.shape_cast %309 : vector<1x64x2xbf16> to vector<64x2xbf16>
    %311 = vector.shape_cast %308 : vector<64x2xbf16> to vector<1x64x2xbf16>
    tpu.vector_store %arg5[%c14, %c0_88, %c0_89], %311 {strides = array<i32>} : memref<16x64x2xbf16, #tpu.memory_space<vmem>>, vector<1x64x2xbf16>,
    %312 = vector.extract_strided_slice %2 {offsets = [960, 0], sizes = [64, 2], strides = [1, 1]} : vector<1024x2xf32> to vector<64x2xf32>
    %313 = vector.broadcast %143 : vector<64x1xf32> to vector<64x2xf32>
    %314 = arith.mulf %312, %313 : vector<64x2xf32>
    %315 = vector.broadcast %146 : vector<64x1xf32> to vector<64x2xf32>
    %316 = arith.addf %314, %315 : vector<64x2xf32>
    %cst_90 = arith.constant 0.000000e+00 : f32
    %317 = vector.broadcast %cst_90 : f32 to vector<64x2xf32>
    %318 = arith.maximumf %316, %317 : vector<64x2xf32>
    %319 = arith.truncf %318 : vector<64x2xf32> to vector<64x2xbf16>
    %c15 = arith.constant 15 : index
    %c0_91 = arith.constant 0 : index
    %c0_92 = arith.constant 0 : index
    %320 = vector.load %arg5[%c15, %c0_91, %c0_92] : memref<16x64x2xbf16, #tpu.memory_space<vmem>>, vector<1x64x2xbf16>
    %321 = vector.shape_cast %320 : vector<1x64x2xbf16> to vector<64x2xbf16>
    %322 = vector.shape_cast %319 : vector<64x2xbf16> to vector<1x64x2xbf16>
    tpu.vector_store %arg5[%c15, %c0_91, %c0_92], %322 {strides = array<i32>} : memref<16x64x2xbf16, #tpu.memory_space<vmem>>, vector<1x64x2xbf16>,
    return
  }
  func.func @transform_0(%arg0: i32) -> (i32, i32) {
    %c0_i32 = arith.constant 0 : i32
    %c0_i32_0 = arith.constant 0 : i32
    %c0_i32_1 = arith.constant 0 : i32
    return %c0_i32, %c0_i32_0 : i32, i32
  }
  func.func @transform_1(%arg0: i32) -> (i32, i32) {
    %c0_i32 = arith.constant 0 : i32
    %c0_i32_0 = arith.constant 0 : i32
    %c0_i32_1 = arith.constant 0 : i32
    return %c0_i32, %c0_i32_0 : i32, i32
  }
  func.func @transform_2(%arg0: i32) -> (i32, i32) {
    %c0_i32 = arith.constant 0 : i32
    %c0_i32_0 = arith.constant 0 : i32
    %c0_i32_1 = arith.constant 0 : i32
    return %c0_i32, %c0_i32_0 : i32, i32
  }
  func.func @transform_3(%arg0: i32) -> (i32, i32) {
    %c0_i32 = arith.constant 0 : i32
    %c0_i32_0 = arith.constant 0 : i32
    %c0_i32_1 = arith.constant 0 : i32
    return %c0_i32, %c0_i32_0 : i32, i32
  }
  func.func @transform_4(%arg0: i32) -> (i32, i32, i32) {
    %c0_i32 = arith.constant 0 : i32
    %c0_i32_0 = arith.constant 0 : i32
    %c0_i32_1 = arith.constant 0 : i32
    %c0_i32_2 = arith.constant 0 : i32
    return %c0_i32, %c0_i32_0, %c0_i32_1 : i32, i32, i32
  }
}

module attributes {stable_mosaic.version = 11 : i64} {
  func.func @_convt_bn_relu_kernel(%arg0: i32, %arg1: memref<576x32xbf16, #tpu.memory_space<vmem>>, %arg2: memref<128x576xbf16, #tpu.memory_space<vmem>>, %arg3: memref<32x1xf32, #tpu.memory_space<vmem>>, %arg4: memref<32x1xf32, #tpu.memory_space<vmem>>, %arg5: memref<4x32x32xbf16, #tpu.memory_space<vmem>>) attributes {dimension_semantics = [#tpu.dimension_semantics<arbitrary>], iteration_bounds = array<i64: 1>, scalar_prefetch = 0 : i64, scratch_operands = 0 : i64, tpu.core_type = #tpu.core_type<tc>, window_params = [{pipeline_mode = #tpu.pipeline_mode<synchronous>, transform_indices = @transform_0, window_bounds = array<i64: 576, 32>}, {pipeline_mode = #tpu.pipeline_mode<synchronous>, transform_indices = @transform_1, window_bounds = array<i64: 128, 576>}, {pipeline_mode = #tpu.pipeline_mode<synchronous>, transform_indices = @transform_2, window_bounds = array<i64: 32, 1>}, {pipeline_mode = #tpu.pipeline_mode<synchronous>, transform_indices = @transform_3, window_bounds = array<i64: 32, 1>}, {pipeline_mode = #tpu.pipeline_mode<synchronous>, transform_indices = @transform_4, window_bounds = array<i64: 4, 32, 32>}]} {
    %c0 = arith.constant 0 : index
    %c0_0 = arith.constant 0 : index
    %0 = vector.load %arg1[%c0, %c0_0] : memref<576x32xbf16, #tpu.memory_space<vmem>>, vector<576x32xbf16>
    %c0_1 = arith.constant 0 : index
    %c0_2 = arith.constant 0 : index
    %1 = vector.load %arg2[%c0_1, %c0_2] : memref<128x576xbf16, #tpu.memory_space<vmem>>, vector<128x576xbf16>
    %cst = arith.constant dense<0.000000e+00> : vector<128x32xf32>
    %2 = tpu.matmul %1, %0, %cst {dimension_numbers = #tpu.dot_dimension_numbers<[1], [0], [0], [1], [0, 0, 1, 1], [], []>} : vector<128x576xbf16>, vector<576x32xbf16>, vector<128x32xf32> -> vector<128x32xf32>
    %cst_3 = arith.constant 0.000000e+00 : f32
    %3 = vector.broadcast %cst_3 : f32 to vector<32x1xf32>
    %cst_4 = arith.constant 0.000000e+00 : f32
    %4 = vector.broadcast %cst_4 : f32 to vector<32x1xf32>
    %5 = vector.extract_strided_slice %2 {offsets = [0, 0], sizes = [32, 32], strides = [1, 1]} : vector<128x32xf32> to vector<32x32xf32>
    %cst_5 = arith.constant dense<0.000000e+00> : vector<32xf32>
    %6 = vector.multi_reduction <add>, %5, %cst_5 [1] : vector<32x32xf32> to vector<32xf32>
    %7 = vector.shape_cast %6 : vector<32xf32> to vector<32x1xf32>
    %8 = arith.addf %3, %7 : vector<32x1xf32>
    %9 = arith.mulf %5, %5 : vector<32x32xf32>
    %cst_6 = arith.constant dense<0.000000e+00> : vector<32xf32>
    %10 = vector.multi_reduction <add>, %9, %cst_6 [1] : vector<32x32xf32> to vector<32xf32>
    %11 = vector.shape_cast %10 : vector<32xf32> to vector<32x1xf32>
    %12 = arith.addf %4, %11 : vector<32x1xf32>
    %13 = vector.extract_strided_slice %2 {offsets = [32, 0], sizes = [32, 32], strides = [1, 1]} : vector<128x32xf32> to vector<32x32xf32>
    %cst_7 = arith.constant dense<0.000000e+00> : vector<32xf32>
    %14 = vector.multi_reduction <add>, %13, %cst_7 [1] : vector<32x32xf32> to vector<32xf32>
    %15 = vector.shape_cast %14 : vector<32xf32> to vector<32x1xf32>
    %16 = arith.addf %8, %15 : vector<32x1xf32>
    %17 = arith.mulf %13, %13 : vector<32x32xf32>
    %cst_8 = arith.constant dense<0.000000e+00> : vector<32xf32>
    %18 = vector.multi_reduction <add>, %17, %cst_8 [1] : vector<32x32xf32> to vector<32xf32>
    %19 = vector.shape_cast %18 : vector<32xf32> to vector<32x1xf32>
    %20 = arith.addf %12, %19 : vector<32x1xf32>
    %21 = vector.extract_strided_slice %2 {offsets = [64, 0], sizes = [32, 32], strides = [1, 1]} : vector<128x32xf32> to vector<32x32xf32>
    %cst_9 = arith.constant dense<0.000000e+00> : vector<32xf32>
    %22 = vector.multi_reduction <add>, %21, %cst_9 [1] : vector<32x32xf32> to vector<32xf32>
    %23 = vector.shape_cast %22 : vector<32xf32> to vector<32x1xf32>
    %24 = arith.addf %16, %23 : vector<32x1xf32>
    %25 = arith.mulf %21, %21 : vector<32x32xf32>
    %cst_10 = arith.constant dense<0.000000e+00> : vector<32xf32>
    %26 = vector.multi_reduction <add>, %25, %cst_10 [1] : vector<32x32xf32> to vector<32xf32>
    %27 = vector.shape_cast %26 : vector<32xf32> to vector<32x1xf32>
    %28 = arith.addf %20, %27 : vector<32x1xf32>
    %29 = vector.extract_strided_slice %2 {offsets = [96, 0], sizes = [32, 32], strides = [1, 1]} : vector<128x32xf32> to vector<32x32xf32>
    %cst_11 = arith.constant dense<0.000000e+00> : vector<32xf32>
    %30 = vector.multi_reduction <add>, %29, %cst_11 [1] : vector<32x32xf32> to vector<32xf32>
    %31 = vector.shape_cast %30 : vector<32xf32> to vector<32x1xf32>
    %32 = arith.addf %24, %31 : vector<32x1xf32>
    %33 = arith.mulf %29, %29 : vector<32x32xf32>
    %cst_12 = arith.constant dense<0.000000e+00> : vector<32xf32>
    %34 = vector.multi_reduction <add>, %33, %cst_12 [1] : vector<32x32xf32> to vector<32xf32>
    %35 = vector.shape_cast %34 : vector<32xf32> to vector<32x1xf32>
    %36 = arith.addf %28, %35 : vector<32x1xf32>
    %cst_13 = arith.constant 7.812500e-03 : f32
    %37 = vector.broadcast %cst_13 : f32 to vector<32x1xf32>
    %38 = arith.mulf %32, %37 : vector<32x1xf32>
    %cst_14 = arith.constant 7.812500e-03 : f32
    %39 = vector.broadcast %cst_14 : f32 to vector<32x1xf32>
    %40 = arith.mulf %36, %39 : vector<32x1xf32>
    %41 = arith.mulf %38, %38 : vector<32x1xf32>
    %42 = arith.subf %40, %41 : vector<32x1xf32>
    %cst_15 = arith.constant 9.99999974E-6 : f32
    %43 = vector.broadcast %cst_15 : f32 to vector<32x1xf32>
    %44 = arith.addf %42, %43 : vector<32x1xf32>
    %45 = math.rsqrt %44 : vector<32x1xf32>
    %c0_16 = arith.constant 0 : index
    %c0_17 = arith.constant 0 : index
    %46 = vector.load %arg3[%c0_16, %c0_17] : memref<32x1xf32, #tpu.memory_space<vmem>>, vector<32x1xf32>
    %47 = arith.mulf %45, %46 : vector<32x1xf32>
    %c0_18 = arith.constant 0 : index
    %c0_19 = arith.constant 0 : index
    %48 = vector.load %arg4[%c0_18, %c0_19] : memref<32x1xf32, #tpu.memory_space<vmem>>, vector<32x1xf32>
    %49 = arith.mulf %38, %47 : vector<32x1xf32>
    %50 = arith.subf %48, %49 : vector<32x1xf32>
    %51 = vector.extract_strided_slice %2 {offsets = [0, 0], sizes = [32, 32], strides = [1, 1]} : vector<128x32xf32> to vector<32x32xf32>
    %52 = vector.broadcast %47 : vector<32x1xf32> to vector<32x32xf32>
    %53 = arith.mulf %51, %52 : vector<32x32xf32>
    %54 = vector.broadcast %50 : vector<32x1xf32> to vector<32x32xf32>
    %55 = arith.addf %53, %54 : vector<32x32xf32>
    %cst_20 = arith.constant 0.000000e+00 : f32
    %56 = vector.broadcast %cst_20 : f32 to vector<32x32xf32>
    %57 = arith.maximumf %55, %56 : vector<32x32xf32>
    %58 = arith.truncf %57 : vector<32x32xf32> to vector<32x32xbf16>
    %c0_21 = arith.constant 0 : index
    %c0_22 = arith.constant 0 : index
    %c0_23 = arith.constant 0 : index
    %59 = vector.load %arg5[%c0_21, %c0_22, %c0_23] : memref<4x32x32xbf16, #tpu.memory_space<vmem>>, vector<1x32x32xbf16>
    %60 = vector.shape_cast %59 : vector<1x32x32xbf16> to vector<32x32xbf16>
    %61 = vector.shape_cast %58 : vector<32x32xbf16> to vector<1x32x32xbf16>
    tpu.vector_store %arg5[%c0_21, %c0_22, %c0_23], %61 {strides = array<i32>} : memref<4x32x32xbf16, #tpu.memory_space<vmem>>, vector<1x32x32xbf16>,
    %62 = vector.extract_strided_slice %2 {offsets = [32, 0], sizes = [32, 32], strides = [1, 1]} : vector<128x32xf32> to vector<32x32xf32>
    %63 = vector.broadcast %47 : vector<32x1xf32> to vector<32x32xf32>
    %64 = arith.mulf %62, %63 : vector<32x32xf32>
    %65 = vector.broadcast %50 : vector<32x1xf32> to vector<32x32xf32>
    %66 = arith.addf %64, %65 : vector<32x32xf32>
    %cst_24 = arith.constant 0.000000e+00 : f32
    %67 = vector.broadcast %cst_24 : f32 to vector<32x32xf32>
    %68 = arith.maximumf %66, %67 : vector<32x32xf32>
    %69 = arith.truncf %68 : vector<32x32xf32> to vector<32x32xbf16>
    %c1 = arith.constant 1 : index
    %c0_25 = arith.constant 0 : index
    %c0_26 = arith.constant 0 : index
    %70 = vector.load %arg5[%c1, %c0_25, %c0_26] : memref<4x32x32xbf16, #tpu.memory_space<vmem>>, vector<1x32x32xbf16>
    %71 = vector.shape_cast %70 : vector<1x32x32xbf16> to vector<32x32xbf16>
    %72 = vector.shape_cast %69 : vector<32x32xbf16> to vector<1x32x32xbf16>
    tpu.vector_store %arg5[%c1, %c0_25, %c0_26], %72 {strides = array<i32>} : memref<4x32x32xbf16, #tpu.memory_space<vmem>>, vector<1x32x32xbf16>,
    %73 = vector.extract_strided_slice %2 {offsets = [64, 0], sizes = [32, 32], strides = [1, 1]} : vector<128x32xf32> to vector<32x32xf32>
    %74 = vector.broadcast %47 : vector<32x1xf32> to vector<32x32xf32>
    %75 = arith.mulf %73, %74 : vector<32x32xf32>
    %76 = vector.broadcast %50 : vector<32x1xf32> to vector<32x32xf32>
    %77 = arith.addf %75, %76 : vector<32x32xf32>
    %cst_27 = arith.constant 0.000000e+00 : f32
    %78 = vector.broadcast %cst_27 : f32 to vector<32x32xf32>
    %79 = arith.maximumf %77, %78 : vector<32x32xf32>
    %80 = arith.truncf %79 : vector<32x32xf32> to vector<32x32xbf16>
    %c2 = arith.constant 2 : index
    %c0_28 = arith.constant 0 : index
    %c0_29 = arith.constant 0 : index
    %81 = vector.load %arg5[%c2, %c0_28, %c0_29] : memref<4x32x32xbf16, #tpu.memory_space<vmem>>, vector<1x32x32xbf16>
    %82 = vector.shape_cast %81 : vector<1x32x32xbf16> to vector<32x32xbf16>
    %83 = vector.shape_cast %80 : vector<32x32xbf16> to vector<1x32x32xbf16>
    tpu.vector_store %arg5[%c2, %c0_28, %c0_29], %83 {strides = array<i32>} : memref<4x32x32xbf16, #tpu.memory_space<vmem>>, vector<1x32x32xbf16>,
    %84 = vector.extract_strided_slice %2 {offsets = [96, 0], sizes = [32, 32], strides = [1, 1]} : vector<128x32xf32> to vector<32x32xf32>
    %85 = vector.broadcast %47 : vector<32x1xf32> to vector<32x32xf32>
    %86 = arith.mulf %84, %85 : vector<32x32xf32>
    %87 = vector.broadcast %50 : vector<32x1xf32> to vector<32x32xf32>
    %88 = arith.addf %86, %87 : vector<32x32xf32>
    %cst_30 = arith.constant 0.000000e+00 : f32
    %89 = vector.broadcast %cst_30 : f32 to vector<32x32xf32>
    %90 = arith.maximumf %88, %89 : vector<32x32xf32>
    %91 = arith.truncf %90 : vector<32x32xf32> to vector<32x32xbf16>
    %c3 = arith.constant 3 : index
    %c0_31 = arith.constant 0 : index
    %c0_32 = arith.constant 0 : index
    %92 = vector.load %arg5[%c3, %c0_31, %c0_32] : memref<4x32x32xbf16, #tpu.memory_space<vmem>>, vector<1x32x32xbf16>
    %93 = vector.shape_cast %92 : vector<1x32x32xbf16> to vector<32x32xbf16>
    %94 = vector.shape_cast %91 : vector<32x32xbf16> to vector<1x32x32xbf16>
    tpu.vector_store %arg5[%c3, %c0_31, %c0_32], %94 {strides = array<i32>} : memref<4x32x32xbf16, #tpu.memory_space<vmem>>, vector<1x32x32xbf16>,
    return
  }
  func.func @transform_0(%arg0: i32) -> (i32, i32) {
    %c0_i32 = arith.constant 0 : i32
    %c0_i32_0 = arith.constant 0 : i32
    %c0_i32_1 = arith.constant 0 : i32
    return %c0_i32, %c0_i32_0 : i32, i32
  }
  func.func @transform_1(%arg0: i32) -> (i32, i32) {
    %c0_i32 = arith.constant 0 : i32
    %c0_i32_0 = arith.constant 0 : i32
    %c0_i32_1 = arith.constant 0 : i32
    return %c0_i32, %c0_i32_0 : i32, i32
  }
  func.func @transform_2(%arg0: i32) -> (i32, i32) {
    %c0_i32 = arith.constant 0 : i32
    %c0_i32_0 = arith.constant 0 : i32
    %c0_i32_1 = arith.constant 0 : i32
    return %c0_i32, %c0_i32_0 : i32, i32
  }
  func.func @transform_3(%arg0: i32) -> (i32, i32) {
    %c0_i32 = arith.constant 0 : i32
    %c0_i32_0 = arith.constant 0 : i32
    %c0_i32_1 = arith.constant 0 : i32
    return %c0_i32, %c0_i32_0 : i32, i32
  }
  func.func @transform_4(%arg0: i32) -> (i32, i32, i32) {
    %c0_i32 = arith.constant 0 : i32
    %c0_i32_0 = arith.constant 0 : i32
    %c0_i32_1 = arith.constant 0 : i32
    %c0_i32_2 = arith.constant 0 : i32
    return %c0_i32, %c0_i32_0, %c0_i32_1 : i32, i32, i32
  }
}

module attributes {stable_mosaic.version = 11 : i64} {
  func.func @_convt_bn_relu_kernel(%arg0: i32, %arg1: memref<288x128xbf16, #tpu.memory_space<vmem>>, %arg2: memref<64x288xbf16, #tpu.memory_space<vmem>>, %arg3: memref<16x1xf32, #tpu.memory_space<vmem>>, %arg4: memref<16x1xf32, #tpu.memory_space<vmem>>, %arg5: memref<4x16x128xbf16, #tpu.memory_space<vmem>>) attributes {dimension_semantics = [#tpu.dimension_semantics<arbitrary>], iteration_bounds = array<i64: 1>, scalar_prefetch = 0 : i64, scratch_operands = 0 : i64, tpu.core_type = #tpu.core_type<tc>, window_params = [{pipeline_mode = #tpu.pipeline_mode<synchronous>, transform_indices = @transform_0, window_bounds = array<i64: 288, 128>}, {pipeline_mode = #tpu.pipeline_mode<synchronous>, transform_indices = @transform_1, window_bounds = array<i64: 64, 288>}, {pipeline_mode = #tpu.pipeline_mode<synchronous>, transform_indices = @transform_2, window_bounds = array<i64: 16, 1>}, {pipeline_mode = #tpu.pipeline_mode<synchronous>, transform_indices = @transform_3, window_bounds = array<i64: 16, 1>}, {pipeline_mode = #tpu.pipeline_mode<synchronous>, transform_indices = @transform_4, window_bounds = array<i64: 4, 16, 128>}]} {
    %c0 = arith.constant 0 : index
    %c0_0 = arith.constant 0 : index
    %0 = vector.load %arg1[%c0, %c0_0] : memref<288x128xbf16, #tpu.memory_space<vmem>>, vector<288x128xbf16>
    %c0_1 = arith.constant 0 : index
    %c0_2 = arith.constant 0 : index
    %1 = vector.load %arg2[%c0_1, %c0_2] : memref<64x288xbf16, #tpu.memory_space<vmem>>, vector<64x288xbf16>
    %cst = arith.constant dense<0.000000e+00> : vector<64x128xf32>
    %2 = tpu.matmul %1, %0, %cst {dimension_numbers = #tpu.dot_dimension_numbers<[1], [0], [0], [1], [0, 0, 1, 1], [], []>} : vector<64x288xbf16>, vector<288x128xbf16>, vector<64x128xf32> -> vector<64x128xf32>
    %cst_3 = arith.constant 0.000000e+00 : f32
    %3 = vector.broadcast %cst_3 : f32 to vector<16x1xf32>
    %cst_4 = arith.constant 0.000000e+00 : f32
    %4 = vector.broadcast %cst_4 : f32 to vector<16x1xf32>
    %5 = vector.extract_strided_slice %2 {offsets = [0, 0], sizes = [16, 128], strides = [1, 1]} : vector<64x128xf32> to vector<16x128xf32>
    %cst_5 = arith.constant dense<0.000000e+00> : vector<16xf32>
    %6 = vector.multi_reduction <add>, %5, %cst_5 [1] : vector<16x128xf32> to vector<16xf32>
    %7 = vector.shape_cast %6 : vector<16xf32> to vector<16x1xf32>
    %8 = arith.addf %3, %7 : vector<16x1xf32>
    %9 = arith.mulf %5, %5 : vector<16x128xf32>
    %cst_6 = arith.constant dense<0.000000e+00> : vector<16xf32>
    %10 = vector.multi_reduction <add>, %9, %cst_6 [1] : vector<16x128xf32> to vector<16xf32>
    %11 = vector.shape_cast %10 : vector<16xf32> to vector<16x1xf32>
    %12 = arith.addf %4, %11 : vector<16x1xf32>
    %13 = vector.extract_strided_slice %2 {offsets = [16, 0], sizes = [16, 128], strides = [1, 1]} : vector<64x128xf32> to vector<16x128xf32>
    %cst_7 = arith.constant dense<0.000000e+00> : vector<16xf32>
    %14 = vector.multi_reduction <add>, %13, %cst_7 [1] : vector<16x128xf32> to vector<16xf32>
    %15 = vector.shape_cast %14 : vector<16xf32> to vector<16x1xf32>
    %16 = arith.addf %8, %15 : vector<16x1xf32>
    %17 = arith.mulf %13, %13 : vector<16x128xf32>
    %cst_8 = arith.constant dense<0.000000e+00> : vector<16xf32>
    %18 = vector.multi_reduction <add>, %17, %cst_8 [1] : vector<16x128xf32> to vector<16xf32>
    %19 = vector.shape_cast %18 : vector<16xf32> to vector<16x1xf32>
    %20 = arith.addf %12, %19 : vector<16x1xf32>
    %21 = vector.extract_strided_slice %2 {offsets = [32, 0], sizes = [16, 128], strides = [1, 1]} : vector<64x128xf32> to vector<16x128xf32>
    %cst_9 = arith.constant dense<0.000000e+00> : vector<16xf32>
    %22 = vector.multi_reduction <add>, %21, %cst_9 [1] : vector<16x128xf32> to vector<16xf32>
    %23 = vector.shape_cast %22 : vector<16xf32> to vector<16x1xf32>
    %24 = arith.addf %16, %23 : vector<16x1xf32>
    %25 = arith.mulf %21, %21 : vector<16x128xf32>
    %cst_10 = arith.constant dense<0.000000e+00> : vector<16xf32>
    %26 = vector.multi_reduction <add>, %25, %cst_10 [1] : vector<16x128xf32> to vector<16xf32>
    %27 = vector.shape_cast %26 : vector<16xf32> to vector<16x1xf32>
    %28 = arith.addf %20, %27 : vector<16x1xf32>
    %29 = vector.extract_strided_slice %2 {offsets = [48, 0], sizes = [16, 128], strides = [1, 1]} : vector<64x128xf32> to vector<16x128xf32>
    %cst_11 = arith.constant dense<0.000000e+00> : vector<16xf32>
    %30 = vector.multi_reduction <add>, %29, %cst_11 [1] : vector<16x128xf32> to vector<16xf32>
    %31 = vector.shape_cast %30 : vector<16xf32> to vector<16x1xf32>
    %32 = arith.addf %24, %31 : vector<16x1xf32>
    %33 = arith.mulf %29, %29 : vector<16x128xf32>
    %cst_12 = arith.constant dense<0.000000e+00> : vector<16xf32>
    %34 = vector.multi_reduction <add>, %33, %cst_12 [1] : vector<16x128xf32> to vector<16xf32>
    %35 = vector.shape_cast %34 : vector<16xf32> to vector<16x1xf32>
    %36 = arith.addf %28, %35 : vector<16x1xf32>
    %cst_13 = arith.constant 0.001953125 : f32
    %37 = vector.broadcast %cst_13 : f32 to vector<16x1xf32>
    %38 = arith.mulf %32, %37 : vector<16x1xf32>
    %cst_14 = arith.constant 0.001953125 : f32
    %39 = vector.broadcast %cst_14 : f32 to vector<16x1xf32>
    %40 = arith.mulf %36, %39 : vector<16x1xf32>
    %41 = arith.mulf %38, %38 : vector<16x1xf32>
    %42 = arith.subf %40, %41 : vector<16x1xf32>
    %cst_15 = arith.constant 9.99999974E-6 : f32
    %43 = vector.broadcast %cst_15 : f32 to vector<16x1xf32>
    %44 = arith.addf %42, %43 : vector<16x1xf32>
    %45 = math.rsqrt %44 : vector<16x1xf32>
    %c0_16 = arith.constant 0 : index
    %c0_17 = arith.constant 0 : index
    %46 = vector.load %arg3[%c0_16, %c0_17] : memref<16x1xf32, #tpu.memory_space<vmem>>, vector<16x1xf32>
    %47 = arith.mulf %45, %46 : vector<16x1xf32>
    %c0_18 = arith.constant 0 : index
    %c0_19 = arith.constant 0 : index
    %48 = vector.load %arg4[%c0_18, %c0_19] : memref<16x1xf32, #tpu.memory_space<vmem>>, vector<16x1xf32>
    %49 = arith.mulf %38, %47 : vector<16x1xf32>
    %50 = arith.subf %48, %49 : vector<16x1xf32>
    %51 = vector.extract_strided_slice %2 {offsets = [0, 0], sizes = [16, 128], strides = [1, 1]} : vector<64x128xf32> to vector<16x128xf32>
    %52 = vector.broadcast %47 : vector<16x1xf32> to vector<16x128xf32>
    %53 = arith.mulf %51, %52 : vector<16x128xf32>
    %54 = vector.broadcast %50 : vector<16x1xf32> to vector<16x128xf32>
    %55 = arith.addf %53, %54 : vector<16x128xf32>
    %cst_20 = arith.constant 0.000000e+00 : f32
    %56 = vector.broadcast %cst_20 : f32 to vector<16x128xf32>
    %57 = arith.maximumf %55, %56 : vector<16x128xf32>
    %58 = arith.truncf %57 : vector<16x128xf32> to vector<16x128xbf16>
    %c0_21 = arith.constant 0 : index
    %c0_22 = arith.constant 0 : index
    %c0_23 = arith.constant 0 : index
    %59 = vector.load %arg5[%c0_21, %c0_22, %c0_23] : memref<4x16x128xbf16, #tpu.memory_space<vmem>>, vector<1x16x128xbf16>
    %60 = vector.shape_cast %59 : vector<1x16x128xbf16> to vector<16x128xbf16>
    %61 = vector.shape_cast %58 : vector<16x128xbf16> to vector<1x16x128xbf16>
    tpu.vector_store %arg5[%c0_21, %c0_22, %c0_23], %61 {strides = array<i32>} : memref<4x16x128xbf16, #tpu.memory_space<vmem>>, vector<1x16x128xbf16>,
    %62 = vector.extract_strided_slice %2 {offsets = [16, 0], sizes = [16, 128], strides = [1, 1]} : vector<64x128xf32> to vector<16x128xf32>
    %63 = vector.broadcast %47 : vector<16x1xf32> to vector<16x128xf32>
    %64 = arith.mulf %62, %63 : vector<16x128xf32>
    %65 = vector.broadcast %50 : vector<16x1xf32> to vector<16x128xf32>
    %66 = arith.addf %64, %65 : vector<16x128xf32>
    %cst_24 = arith.constant 0.000000e+00 : f32
    %67 = vector.broadcast %cst_24 : f32 to vector<16x128xf32>
    %68 = arith.maximumf %66, %67 : vector<16x128xf32>
    %69 = arith.truncf %68 : vector<16x128xf32> to vector<16x128xbf16>
    %c1 = arith.constant 1 : index
    %c0_25 = arith.constant 0 : index
    %c0_26 = arith.constant 0 : index
    %70 = vector.load %arg5[%c1, %c0_25, %c0_26] : memref<4x16x128xbf16, #tpu.memory_space<vmem>>, vector<1x16x128xbf16>
    %71 = vector.shape_cast %70 : vector<1x16x128xbf16> to vector<16x128xbf16>
    %72 = vector.shape_cast %69 : vector<16x128xbf16> to vector<1x16x128xbf16>
    tpu.vector_store %arg5[%c1, %c0_25, %c0_26], %72 {strides = array<i32>} : memref<4x16x128xbf16, #tpu.memory_space<vmem>>, vector<1x16x128xbf16>,
    %73 = vector.extract_strided_slice %2 {offsets = [32, 0], sizes = [16, 128], strides = [1, 1]} : vector<64x128xf32> to vector<16x128xf32>
    %74 = vector.broadcast %47 : vector<16x1xf32> to vector<16x128xf32>
    %75 = arith.mulf %73, %74 : vector<16x128xf32>
    %76 = vector.broadcast %50 : vector<16x1xf32> to vector<16x128xf32>
    %77 = arith.addf %75, %76 : vector<16x128xf32>
    %cst_27 = arith.constant 0.000000e+00 : f32
    %78 = vector.broadcast %cst_27 : f32 to vector<16x128xf32>
    %79 = arith.maximumf %77, %78 : vector<16x128xf32>
    %80 = arith.truncf %79 : vector<16x128xf32> to vector<16x128xbf16>
    %c2 = arith.constant 2 : index
    %c0_28 = arith.constant 0 : index
    %c0_29 = arith.constant 0 : index
    %81 = vector.load %arg5[%c2, %c0_28, %c0_29] : memref<4x16x128xbf16, #tpu.memory_space<vmem>>, vector<1x16x128xbf16>
    %82 = vector.shape_cast %81 : vector<1x16x128xbf16> to vector<16x128xbf16>
    %83 = vector.shape_cast %80 : vector<16x128xbf16> to vector<1x16x128xbf16>
    tpu.vector_store %arg5[%c2, %c0_28, %c0_29], %83 {strides = array<i32>} : memref<4x16x128xbf16, #tpu.memory_space<vmem>>, vector<1x16x128xbf16>,
    %84 = vector.extract_strided_slice %2 {offsets = [48, 0], sizes = [16, 128], strides = [1, 1]} : vector<64x128xf32> to vector<16x128xf32>
    %85 = vector.broadcast %47 : vector<16x1xf32> to vector<16x128xf32>
    %86 = arith.mulf %84, %85 : vector<16x128xf32>
    %87 = vector.broadcast %50 : vector<16x1xf32> to vector<16x128xf32>
    %88 = arith.addf %86, %87 : vector<16x128xf32>
    %cst_30 = arith.constant 0.000000e+00 : f32
    %89 = vector.broadcast %cst_30 : f32 to vector<16x128xf32>
    %90 = arith.maximumf %88, %89 : vector<16x128xf32>
    %91 = arith.truncf %90 : vector<16x128xf32> to vector<16x128xbf16>
    %c3 = arith.constant 3 : index
    %c0_31 = arith.constant 0 : index
    %c0_32 = arith.constant 0 : index
    %92 = vector.load %arg5[%c3, %c0_31, %c0_32] : memref<4x16x128xbf16, #tpu.memory_space<vmem>>, vector<1x16x128xbf16>
    %93 = vector.shape_cast %92 : vector<1x16x128xbf16> to vector<16x128xbf16>
    %94 = vector.shape_cast %91 : vector<16x128xbf16> to vector<1x16x128xbf16>
    tpu.vector_store %arg5[%c3, %c0_31, %c0_32], %94 {strides = array<i32>} : memref<4x16x128xbf16, #tpu.memory_space<vmem>>, vector<1x16x128xbf16>,
    return
  }
  func.func @transform_0(%arg0: i32) -> (i32, i32) {
    %c0_i32 = arith.constant 0 : i32
    %c0_i32_0 = arith.constant 0 : i32
    %c0_i32_1 = arith.constant 0 : i32
    return %c0_i32, %c0_i32_0 : i32, i32
  }
  func.func @transform_1(%arg0: i32) -> (i32, i32) {
    %c0_i32 = arith.constant 0 : i32
    %c0_i32_0 = arith.constant 0 : i32
    %c0_i32_1 = arith.constant 0 : i32
    return %c0_i32, %c0_i32_0 : i32, i32
  }
  func.func @transform_2(%arg0: i32) -> (i32, i32) {
    %c0_i32 = arith.constant 0 : i32
    %c0_i32_0 = arith.constant 0 : i32
    %c0_i32_1 = arith.constant 0 : i32
    return %c0_i32, %c0_i32_0 : i32, i32
  }
  func.func @transform_3(%arg0: i32) -> (i32, i32) {
    %c0_i32 = arith.constant 0 : i32
    %c0_i32_0 = arith.constant 0 : i32
    %c0_i32_1 = arith.constant 0 : i32
    return %c0_i32, %c0_i32_0 : i32, i32
  }
  func.func @transform_4(%arg0: i32) -> (i32, i32, i32) {
    %c0_i32 = arith.constant 0 : i32
    %c0_i32_0 = arith.constant 0 : i32
    %c0_i32_1 = arith.constant 0 : i32
    %c0_i32_2 = arith.constant 0 : i32
    return %c0_i32, %c0_i32_0, %c0_i32_1 : i32, i32, i32
  }
}

module attributes {stable_mosaic.version = 11 : i64} {
  func.func @_convt_bn_relu_kernel(%arg0: i32, %arg1: memref<144x512xbf16, #tpu.memory_space<vmem>>, %arg2: memref<32x144xbf16, #tpu.memory_space<vmem>>, %arg3: memref<8x1xf32, #tpu.memory_space<vmem>>, %arg4: memref<8x1xf32, #tpu.memory_space<vmem>>, %arg5: memref<4x8x512xbf16, #tpu.memory_space<vmem>>) attributes {dimension_semantics = [#tpu.dimension_semantics<arbitrary>], iteration_bounds = array<i64: 1>, scalar_prefetch = 0 : i64, scratch_operands = 0 : i64, tpu.core_type = #tpu.core_type<tc>, window_params = [{pipeline_mode = #tpu.pipeline_mode<synchronous>, transform_indices = @transform_0, window_bounds = array<i64: 144, 512>}, {pipeline_mode = #tpu.pipeline_mode<synchronous>, transform_indices = @transform_1, window_bounds = array<i64: 32, 144>}, {pipeline_mode = #tpu.pipeline_mode<synchronous>, transform_indices = @transform_2, window_bounds = array<i64: 8, 1>}, {pipeline_mode = #tpu.pipeline_mode<synchronous>, transform_indices = @transform_3, window_bounds = array<i64: 8, 1>}, {pipeline_mode = #tpu.pipeline_mode<synchronous>, transform_indices = @transform_4, window_bounds = array<i64: 4, 8, 512>}]} {
    %c0 = arith.constant 0 : index
    %c0_0 = arith.constant 0 : index
    %0 = vector.load %arg1[%c0, %c0_0] : memref<144x512xbf16, #tpu.memory_space<vmem>>, vector<144x512xbf16>
    %c0_1 = arith.constant 0 : index
    %c0_2 = arith.constant 0 : index
    %1 = vector.load %arg2[%c0_1, %c0_2] : memref<32x144xbf16, #tpu.memory_space<vmem>>, vector<32x144xbf16>
    %cst = arith.constant dense<0.000000e+00> : vector<32x512xf32>
    %2 = tpu.matmul %1, %0, %cst {dimension_numbers = #tpu.dot_dimension_numbers<[1], [0], [0], [1], [0, 0, 1, 1], [], []>} : vector<32x144xbf16>, vector<144x512xbf16>, vector<32x512xf32> -> vector<32x512xf32>
    %cst_3 = arith.constant 0.000000e+00 : f32
    %3 = vector.broadcast %cst_3 : f32 to vector<8x1xf32>
    %cst_4 = arith.constant 0.000000e+00 : f32
    %4 = vector.broadcast %cst_4 : f32 to vector<8x1xf32>
    %5 = vector.extract_strided_slice %2 {offsets = [0, 0], sizes = [8, 512], strides = [1, 1]} : vector<32x512xf32> to vector<8x512xf32>
    %cst_5 = arith.constant dense<0.000000e+00> : vector<8xf32>
    %6 = vector.multi_reduction <add>, %5, %cst_5 [1] : vector<8x512xf32> to vector<8xf32>
    %7 = vector.shape_cast %6 : vector<8xf32> to vector<8x1xf32>
    %8 = arith.addf %3, %7 : vector<8x1xf32>
    %9 = arith.mulf %5, %5 : vector<8x512xf32>
    %cst_6 = arith.constant dense<0.000000e+00> : vector<8xf32>
    %10 = vector.multi_reduction <add>, %9, %cst_6 [1] : vector<8x512xf32> to vector<8xf32>
    %11 = vector.shape_cast %10 : vector<8xf32> to vector<8x1xf32>
    %12 = arith.addf %4, %11 : vector<8x1xf32>
    %13 = vector.extract_strided_slice %2 {offsets = [8, 0], sizes = [8, 512], strides = [1, 1]} : vector<32x512xf32> to vector<8x512xf32>
    %cst_7 = arith.constant dense<0.000000e+00> : vector<8xf32>
    %14 = vector.multi_reduction <add>, %13, %cst_7 [1] : vector<8x512xf32> to vector<8xf32>
    %15 = vector.shape_cast %14 : vector<8xf32> to vector<8x1xf32>
    %16 = arith.addf %8, %15 : vector<8x1xf32>
    %17 = arith.mulf %13, %13 : vector<8x512xf32>
    %cst_8 = arith.constant dense<0.000000e+00> : vector<8xf32>
    %18 = vector.multi_reduction <add>, %17, %cst_8 [1] : vector<8x512xf32> to vector<8xf32>
    %19 = vector.shape_cast %18 : vector<8xf32> to vector<8x1xf32>
    %20 = arith.addf %12, %19 : vector<8x1xf32>
    %21 = vector.extract_strided_slice %2 {offsets = [16, 0], sizes = [8, 512], strides = [1, 1]} : vector<32x512xf32> to vector<8x512xf32>
    %cst_9 = arith.constant dense<0.000000e+00> : vector<8xf32>
    %22 = vector.multi_reduction <add>, %21, %cst_9 [1] : vector<8x512xf32> to vector<8xf32>
    %23 = vector.shape_cast %22 : vector<8xf32> to vector<8x1xf32>
    %24 = arith.addf %16, %23 : vector<8x1xf32>
    %25 = arith.mulf %21, %21 : vector<8x512xf32>
    %cst_10 = arith.constant dense<0.000000e+00> : vector<8xf32>
    %26 = vector.multi_reduction <add>, %25, %cst_10 [1] : vector<8x512xf32> to vector<8xf32>
    %27 = vector.shape_cast %26 : vector<8xf32> to vector<8x1xf32>
    %28 = arith.addf %20, %27 : vector<8x1xf32>
    %29 = vector.extract_strided_slice %2 {offsets = [24, 0], sizes = [8, 512], strides = [1, 1]} : vector<32x512xf32> to vector<8x512xf32>
    %cst_11 = arith.constant dense<0.000000e+00> : vector<8xf32>
    %30 = vector.multi_reduction <add>, %29, %cst_11 [1] : vector<8x512xf32> to vector<8xf32>
    %31 = vector.shape_cast %30 : vector<8xf32> to vector<8x1xf32>
    %32 = arith.addf %24, %31 : vector<8x1xf32>
    %33 = arith.mulf %29, %29 : vector<8x512xf32>
    %cst_12 = arith.constant dense<0.000000e+00> : vector<8xf32>
    %34 = vector.multi_reduction <add>, %33, %cst_12 [1] : vector<8x512xf32> to vector<8xf32>
    %35 = vector.shape_cast %34 : vector<8xf32> to vector<8x1xf32>
    %36 = arith.addf %28, %35 : vector<8x1xf32>
    %cst_13 = arith.constant 4.8828125E-4 : f32
    %37 = vector.broadcast %cst_13 : f32 to vector<8x1xf32>
    %38 = arith.mulf %32, %37 : vector<8x1xf32>
    %cst_14 = arith.constant 4.8828125E-4 : f32
    %39 = vector.broadcast %cst_14 : f32 to vector<8x1xf32>
    %40 = arith.mulf %36, %39 : vector<8x1xf32>
    %41 = arith.mulf %38, %38 : vector<8x1xf32>
    %42 = arith.subf %40, %41 : vector<8x1xf32>
    %cst_15 = arith.constant 9.99999974E-6 : f32
    %43 = vector.broadcast %cst_15 : f32 to vector<8x1xf32>
    %44 = arith.addf %42, %43 : vector<8x1xf32>
    %45 = math.rsqrt %44 : vector<8x1xf32>
    %c0_16 = arith.constant 0 : index
    %c0_17 = arith.constant 0 : index
    %46 = vector.load %arg3[%c0_16, %c0_17] : memref<8x1xf32, #tpu.memory_space<vmem>>, vector<8x1xf32>
    %47 = arith.mulf %45, %46 : vector<8x1xf32>
    %c0_18 = arith.constant 0 : index
    %c0_19 = arith.constant 0 : index
    %48 = vector.load %arg4[%c0_18, %c0_19] : memref<8x1xf32, #tpu.memory_space<vmem>>, vector<8x1xf32>
    %49 = arith.mulf %38, %47 : vector<8x1xf32>
    %50 = arith.subf %48, %49 : vector<8x1xf32>
    %51 = vector.extract_strided_slice %2 {offsets = [0, 0], sizes = [8, 512], strides = [1, 1]} : vector<32x512xf32> to vector<8x512xf32>
    %52 = vector.broadcast %47 : vector<8x1xf32> to vector<8x512xf32>
    %53 = arith.mulf %51, %52 : vector<8x512xf32>
    %54 = vector.broadcast %50 : vector<8x1xf32> to vector<8x512xf32>
    %55 = arith.addf %53, %54 : vector<8x512xf32>
    %cst_20 = arith.constant 0.000000e+00 : f32
    %56 = vector.broadcast %cst_20 : f32 to vector<8x512xf32>
    %57 = arith.maximumf %55, %56 : vector<8x512xf32>
    %58 = arith.truncf %57 : vector<8x512xf32> to vector<8x512xbf16>
    %c0_21 = arith.constant 0 : index
    %c0_22 = arith.constant 0 : index
    %c0_23 = arith.constant 0 : index
    %59 = vector.load %arg5[%c0_21, %c0_22, %c0_23] : memref<4x8x512xbf16, #tpu.memory_space<vmem>>, vector<1x8x512xbf16>
    %60 = vector.shape_cast %59 : vector<1x8x512xbf16> to vector<8x512xbf16>
    %61 = vector.shape_cast %58 : vector<8x512xbf16> to vector<1x8x512xbf16>
    tpu.vector_store %arg5[%c0_21, %c0_22, %c0_23], %61 {strides = array<i32>} : memref<4x8x512xbf16, #tpu.memory_space<vmem>>, vector<1x8x512xbf16>,
    %62 = vector.extract_strided_slice %2 {offsets = [8, 0], sizes = [8, 512], strides = [1, 1]} : vector<32x512xf32> to vector<8x512xf32>
    %63 = vector.broadcast %47 : vector<8x1xf32> to vector<8x512xf32>
    %64 = arith.mulf %62, %63 : vector<8x512xf32>
    %65 = vector.broadcast %50 : vector<8x1xf32> to vector<8x512xf32>
    %66 = arith.addf %64, %65 : vector<8x512xf32>
    %cst_24 = arith.constant 0.000000e+00 : f32
    %67 = vector.broadcast %cst_24 : f32 to vector<8x512xf32>
    %68 = arith.maximumf %66, %67 : vector<8x512xf32>
    %69 = arith.truncf %68 : vector<8x512xf32> to vector<8x512xbf16>
    %c1 = arith.constant 1 : index
    %c0_25 = arith.constant 0 : index
    %c0_26 = arith.constant 0 : index
    %70 = vector.load %arg5[%c1, %c0_25, %c0_26] : memref<4x8x512xbf16, #tpu.memory_space<vmem>>, vector<1x8x512xbf16>
    %71 = vector.shape_cast %70 : vector<1x8x512xbf16> to vector<8x512xbf16>
    %72 = vector.shape_cast %69 : vector<8x512xbf16> to vector<1x8x512xbf16>
    tpu.vector_store %arg5[%c1, %c0_25, %c0_26], %72 {strides = array<i32>} : memref<4x8x512xbf16, #tpu.memory_space<vmem>>, vector<1x8x512xbf16>,
    %73 = vector.extract_strided_slice %2 {offsets = [16, 0], sizes = [8, 512], strides = [1, 1]} : vector<32x512xf32> to vector<8x512xf32>
    %74 = vector.broadcast %47 : vector<8x1xf32> to vector<8x512xf32>
    %75 = arith.mulf %73, %74 : vector<8x512xf32>
    %76 = vector.broadcast %50 : vector<8x1xf32> to vector<8x512xf32>
    %77 = arith.addf %75, %76 : vector<8x512xf32>
    %cst_27 = arith.constant 0.000000e+00 : f32
    %78 = vector.broadcast %cst_27 : f32 to vector<8x512xf32>
    %79 = arith.maximumf %77, %78 : vector<8x512xf32>
    %80 = arith.truncf %79 : vector<8x512xf32> to vector<8x512xbf16>
    %c2 = arith.constant 2 : index
    %c0_28 = arith.constant 0 : index
    %c0_29 = arith.constant 0 : index
    %81 = vector.load %arg5[%c2, %c0_28, %c0_29] : memref<4x8x512xbf16, #tpu.memory_space<vmem>>, vector<1x8x512xbf16>
    %82 = vector.shape_cast %81 : vector<1x8x512xbf16> to vector<8x512xbf16>
    %83 = vector.shape_cast %80 : vector<8x512xbf16> to vector<1x8x512xbf16>
    tpu.vector_store %arg5[%c2, %c0_28, %c0_29], %83 {strides = array<i32>} : memref<4x8x512xbf16, #tpu.memory_space<vmem>>, vector<1x8x512xbf16>,
    %84 = vector.extract_strided_slice %2 {offsets = [24, 0], sizes = [8, 512], strides = [1, 1]} : vector<32x512xf32> to vector<8x512xf32>
    %85 = vector.broadcast %47 : vector<8x1xf32> to vector<8x512xf32>
    %86 = arith.mulf %84, %85 : vector<8x512xf32>
    %87 = vector.broadcast %50 : vector<8x1xf32> to vector<8x512xf32>
    %88 = arith.addf %86, %87 : vector<8x512xf32>
    %cst_30 = arith.constant 0.000000e+00 : f32
    %89 = vector.broadcast %cst_30 : f32 to vector<8x512xf32>
    %90 = arith.maximumf %88, %89 : vector<8x512xf32>
    %91 = arith.truncf %90 : vector<8x512xf32> to vector<8x512xbf16>
    %c3 = arith.constant 3 : index
    %c0_31 = arith.constant 0 : index
    %c0_32 = arith.constant 0 : index
    %92 = vector.load %arg5[%c3, %c0_31, %c0_32] : memref<4x8x512xbf16, #tpu.memory_space<vmem>>, vector<1x8x512xbf16>
    %93 = vector.shape_cast %92 : vector<1x8x512xbf16> to vector<8x512xbf16>
    %94 = vector.shape_cast %91 : vector<8x512xbf16> to vector<1x8x512xbf16>
    tpu.vector_store %arg5[%c3, %c0_31, %c0_32], %94 {strides = array<i32>} : memref<4x8x512xbf16, #tpu.memory_space<vmem>>, vector<1x8x512xbf16>,
    return
  }
  func.func @transform_0(%arg0: i32) -> (i32, i32) {
    %c0_i32 = arith.constant 0 : i32
    %c0_i32_0 = arith.constant 0 : i32
    %c0_i32_1 = arith.constant 0 : i32
    return %c0_i32, %c0_i32_0 : i32, i32
  }
  func.func @transform_1(%arg0: i32) -> (i32, i32) {
    %c0_i32 = arith.constant 0 : i32
    %c0_i32_0 = arith.constant 0 : i32
    %c0_i32_1 = arith.constant 0 : i32
    return %c0_i32, %c0_i32_0 : i32, i32
  }
  func.func @transform_2(%arg0: i32) -> (i32, i32) {
    %c0_i32 = arith.constant 0 : i32
    %c0_i32_0 = arith.constant 0 : i32
    %c0_i32_1 = arith.constant 0 : i32
    return %c0_i32, %c0_i32_0 : i32, i32
  }
  func.func @transform_3(%arg0: i32) -> (i32, i32) {
    %c0_i32 = arith.constant 0 : i32
    %c0_i32_0 = arith.constant 0 : i32
    %c0_i32_1 = arith.constant 0 : i32
    return %c0_i32, %c0_i32_0 : i32, i32
  }
  func.func @transform_4(%arg0: i32) -> (i32, i32, i32) {
    %c0_i32 = arith.constant 0 : i32
    %c0_i32_0 = arith.constant 0 : i32
    %c0_i32_1 = arith.constant 0 : i32
    %c0_i32_2 = arith.constant 0 : i32
    return %c0_i32, %c0_i32_0, %c0_i32_1 : i32, i32, i32
  }
}

module attributes {stable_mosaic.version = 11 : i64} {
  func.func @_convt_tanh_kernel(%arg0: i32, %arg1: memref<72x2048xbf16, #tpu.memory_space<vmem>>, %arg2: memref<32x72xbf16, #tpu.memory_space<vmem>>, %arg3: memref<4x3x2048xf32, #tpu.memory_space<vmem>>) attributes {dimension_semantics = [#tpu.dimension_semantics<arbitrary>], iteration_bounds = array<i64: 1>, scalar_prefetch = 0 : i64, scratch_operands = 0 : i64, tpu.core_type = #tpu.core_type<tc>, window_params = [{pipeline_mode = #tpu.pipeline_mode<synchronous>, transform_indices = @transform_0, window_bounds = array<i64: 72, 2048>}, {pipeline_mode = #tpu.pipeline_mode<synchronous>, transform_indices = @transform_1, window_bounds = array<i64: 32, 72>}, {pipeline_mode = #tpu.pipeline_mode<synchronous>, transform_indices = @transform_2, window_bounds = array<i64: 4, 3, 2048>}]} {
    %c0 = arith.constant 0 : index
    %c0_0 = arith.constant 0 : index
    %0 = vector.load %arg1[%c0, %c0_0] : memref<72x2048xbf16, #tpu.memory_space<vmem>>, vector<72x2048xbf16>
    %c0_1 = arith.constant 0 : index
    %c0_2 = arith.constant 0 : index
    %1 = vector.load %arg2[%c0_1, %c0_2] : memref<32x72xbf16, #tpu.memory_space<vmem>>, vector<32x72xbf16>
    %cst = arith.constant dense<0.000000e+00> : vector<32x2048xf32>
    %2 = tpu.matmul %1, %0, %cst {dimension_numbers = #tpu.dot_dimension_numbers<[1], [0], [0], [1], [0, 0, 1, 1], [], []>} : vector<32x72xbf16>, vector<72x2048xbf16>, vector<32x2048xf32> -> vector<32x2048xf32>
    %3 = vector.extract_strided_slice %2 {offsets = [0, 0], sizes = [3, 2048], strides = [1, 1]} : vector<32x2048xf32> to vector<3x2048xf32>
    %4 = math.tanh %3 : vector<3x2048xf32>
    %c0_3 = arith.constant 0 : index
    %c0_4 = arith.constant 0 : index
    %c0_5 = arith.constant 0 : index
    %5 = vector.load %arg3[%c0_3, %c0_4, %c0_5] : memref<4x3x2048xf32, #tpu.memory_space<vmem>>, vector<1x3x2048xf32>
    %6 = vector.shape_cast %5 : vector<1x3x2048xf32> to vector<3x2048xf32>
    %7 = vector.shape_cast %4 : vector<3x2048xf32> to vector<1x3x2048xf32>
    tpu.vector_store %arg3[%c0_3, %c0_4, %c0_5], %7 {strides = array<i32>} : memref<4x3x2048xf32, #tpu.memory_space<vmem>>, vector<1x3x2048xf32>,
    %8 = vector.extract_strided_slice %2 {offsets = [8, 0], sizes = [3, 2048], strides = [1, 1]} : vector<32x2048xf32> to vector<3x2048xf32>
    %9 = math.tanh %8 : vector<3x2048xf32>
    %c1 = arith.constant 1 : index
    %c0_6 = arith.constant 0 : index
    %c0_7 = arith.constant 0 : index
    %10 = vector.load %arg3[%c1, %c0_6, %c0_7] : memref<4x3x2048xf32, #tpu.memory_space<vmem>>, vector<1x3x2048xf32>
    %11 = vector.shape_cast %10 : vector<1x3x2048xf32> to vector<3x2048xf32>
    %12 = vector.shape_cast %9 : vector<3x2048xf32> to vector<1x3x2048xf32>
    tpu.vector_store %arg3[%c1, %c0_6, %c0_7], %12 {strides = array<i32>} : memref<4x3x2048xf32, #tpu.memory_space<vmem>>, vector<1x3x2048xf32>,
    %13 = vector.extract_strided_slice %2 {offsets = [16, 0], sizes = [3, 2048], strides = [1, 1]} : vector<32x2048xf32> to vector<3x2048xf32>
    %14 = math.tanh %13 : vector<3x2048xf32>
    %c2 = arith.constant 2 : index
    %c0_8 = arith.constant 0 : index
    %c0_9 = arith.constant 0 : index
    %15 = vector.load %arg3[%c2, %c0_8, %c0_9] : memref<4x3x2048xf32, #tpu.memory_space<vmem>>, vector<1x3x2048xf32>
    %16 = vector.shape_cast %15 : vector<1x3x2048xf32> to vector<3x2048xf32>
    %17 = vector.shape_cast %14 : vector<3x2048xf32> to vector<1x3x2048xf32>
    tpu.vector_store %arg3[%c2, %c0_8, %c0_9], %17 {strides = array<i32>} : memref<4x3x2048xf32, #tpu.memory_space<vmem>>, vector<1x3x2048xf32>,
    %18 = vector.extract_strided_slice %2 {offsets = [24, 0], sizes = [3, 2048], strides = [1, 1]} : vector<32x2048xf32> to vector<3x2048xf32>
    %19 = math.tanh %18 : vector<3x2048xf32>
    %c3 = arith.constant 3 : index
    %c0_10 = arith.constant 0 : index
    %c0_11 = arith.constant 0 : index
    %20 = vector.load %arg3[%c3, %c0_10, %c0_11] : memref<4x3x2048xf32, #tpu.memory_space<vmem>>, vector<1x3x2048xf32>
    %21 = vector.shape_cast %20 : vector<1x3x2048xf32> to vector<3x2048xf32>
    %22 = vector.shape_cast %19 : vector<3x2048xf32> to vector<1x3x2048xf32>
    tpu.vector_store %arg3[%c3, %c0_10, %c0_11], %22 {strides = array<i32>} : memref<4x3x2048xf32, #tpu.memory_space<vmem>>, vector<1x3x2048xf32>,
    return
  }
  func.func @transform_0(%arg0: i32) -> (i32, i32) {
    %c0_i32 = arith.constant 0 : i32
    %c0_i32_0 = arith.constant 0 : i32
    %c0_i32_1 = arith.constant 0 : i32
    return %c0_i32, %c0_i32_0 : i32, i32
  }
  func.func @transform_1(%arg0: i32) -> (i32, i32) {
    %c0_i32 = arith.constant 0 : i32
    %c0_i32_0 = arith.constant 0 : i32
    %c0_i32_1 = arith.constant 0 : i32
    return %c0_i32, %c0_i32_0 : i32, i32
  }
  func.func @transform_2(%arg0: i32) -> (i32, i32, i32) {
    %c0_i32 = arith.constant 0 : i32
    %c0_i32_0 = arith.constant 0 : i32
    %c0_i32_1 = arith.constant 0 : i32
    %c0_i32_2 = arith.constant 0 : i32
    return %c0_i32, %c0_i32_0, %c0_i32_1 : i32, i32, i32
  }
}

</mosaic_0001>

<bundles_post_ra>
// kernel: forward.6
= control target key start
LH: loop header
LB: loop body
LE: loop exit
PB: predicated region body
PF: predicated region fallthrough
CT: control target
= control target key end

     0   :  { %vm554_vm0 = vcmask 523264   ;;  %vm870_vm1 = vcmask 261120   ;;  %vm1127_vm2 = vcmask 257024   ;;  %s2197_s0 = inlined_call_operand.vmem [shape: bf16[576,32], index: 0, kind: input, shape index: {}]   ;;  %s2198_s1 = inlined_call_operand.vmem [shape: bf16[128,576], index: 1, kind: input, shape index: {}]   ;;  %s2199_s2 = inlined_call_operand.vmem [shape: f32[32,1], index: 2, kind: input, shape index: {}]   ;;  %s2200_s3 = inlined_call_operand.vmem [shape: f32[32,1], index: 3, kind: input, shape index: {}]   ;;  %s2201_s4 = inlined_call_operand.vmem [shape: bf16[4,32,32], index: 4, kind: output, shape index: {}]  }
   0x1   :  { %v1538_v0 = vld [vmem:[%s2197_s0 + $0x78] sm:$0xff]   ;;  %v1542_v4 = vld [vmem:[%s2197_s0 + $0x70] sm:$0xff]   ;;  %v1546_v8 = vld [vmem:[%s2197_s0 + $0x68] sm:$0xff]  }
   0x2   :  { %v1539_v1 = vld [vmem:[%s2197_s0 + $0xf8] sm:$0xff]   ;;  %1363 = vmatprep.subr.bf16.mxu0 %v1538_v0  ;;  %v1543_v5 = vld [vmem:[%s2197_s0 + $0xf0] sm:$0xff]   ;;  %v1547_v9 = vld [vmem:[%s2197_s0 + $0xe8] sm:$0xff]  }
   0x3   :  { %v1540_v2 = vld [vmem:[%s2197_s0 + $0x38] sm:$0xff]   ;;  %1427 = vmatprep.subr.bf16.mxu1 %v1539_v1  ;;  %v1544_v6 = vld [vmem:[%s2197_s0 + $0x30] sm:$0xff]   ;;  %v1548_v10 = vld [vmem:[%s2197_s0 + $0x28] sm:$0xff]  }
   0x4   :  { %v1541_v3 = vld [vmem:[%s2197_s0 + $0xb8] sm:$0xff]   ;;  %1364 = vmatpush3.bf16.msra.mxu0 %v1540_v2  ;;  %v1545_v7 = vld [vmem:[%s2197_s0 + $0xb0] sm:$0xff]   ;;  %v1549_v11 = vld [vmem:[%s2197_s0 + $0xa8] sm:$0xff]  }
   0x5   :  { %1428 = vmatpush3.bf16.msra.mxu1 %v1541_v3  ;;  %1365 = vmatprep.subr.bf16.mxu0 %v1542_v4  ;;  %v1550_v12 = vld [vmem:[%s2197_s0 + $0x60] sm:$0xff]   ;;  %v1554_v16 = vld [vmem:[%s2197_s0 + $0x58] sm:$0xff]   ;;  %v1558_v20 = vld [vmem:[%s2197_s0 + $0x50] sm:$0xff]  }
   0x6   :  { %1429 = vmatprep.subr.bf16.mxu1 %v1543_v5  ;;  %v1551_v13 = vld [vmem:[%s2197_s0 + $0xe0] sm:$0xff]   ;;  %v1555_v17 = vld [vmem:[%s2197_s0 + $0xd8] sm:$0xff]   ;;  %v1559_v21 = vld [vmem:[%s2197_s0 + $0xd0] sm:$0xff]  }
   0x7   :  { %v1552_v14 = vld [vmem:[%s2197_s0 + $0x20] sm:$0xff]   ;;  %v1556_v18 = vld [vmem:[%s2197_s0 + $0x18] sm:$0xff]   ;;  %v1560_v22 = vld [vmem:[%s2197_s0 + $0x10] sm:$0xff]  }
   0x8   :  { %1366 = vmatpush3.bf16.msra.mxu0 %v1544_v6  ;;  %v1553_v15 = vld [vmem:[%s2197_s0 + $0xa0] sm:$0xff]   ;;  %v1557_v19 = vld [vmem:[%s2197_s0 + $0x98] sm:$0xff]   ;;  %v1561_v23 = vld [vmem:[%s2197_s0 + $0x90] sm:$0xff]  }
   0x9   :  { %1430 = vmatpush3.bf16.msra.mxu1 %v1545_v7  ;;  %1367 = vmatprep.subr.bf16.mxu0 %v1546_v8  ;;  %v1562_v24 = vld [vmem:[%s2197_s0 + $0x48] sm:$0xff]   ;;  %v1566_v28 = vld [vmem:[%s2197_s0 + $0x40] sm:$0xff]   ;;  %v1576_v36 = vld [vmem:[%s2197_s0 + $0x118] sm:$0xff]  }
   0xa   :  { %1431 = vmatprep.subr.bf16.mxu1 %v1547_v9  ;;  %v1563_v25 = vld [vmem:[%s2197_s0 + $0xc8] sm:$0xff]   ;;  %v1567_v29 = vld [vmem:[%s2197_s0 + $0xc0] sm:$0xff]   ;;  %v1589_v42 = vld [vmem:[%s2197_s0 + $0x110] sm:$0xff]  }
   0xb   :  { %v1564_v26 = vld [vmem:[%s2197_s0 + $0x8] sm:$0xff]   ;;  %v1568_v30 = vld [vmem:[%s2197_s0] sm:$0xff]   ;;  %v1585_v43 = vld [vmem:[%s2198_s1 + $0x5c] ss:$20 sps:$4 sm:$0xff]  }
   0xc   :  { %1368 = vmatpush3.bf16.msra.mxu0 %v1548_v10  ;;  %v1565_v27 = vld [vmem:[%s2197_s0 + $0x88] sm:$0xff]   ;;  %v1569_v31 = vld [vmem:[%s2197_s0 + $0x80] sm:$0xff]   ;;  %v1590_v47 = vld [vmem:[%s2198_s1 + $0x7c] ss:$20 sps:$4 sm:$0xff]  }
   0xd   :  { %1432 = vmatpush3.bf16.msra.mxu1 %v1549_v11  ;;  %1369 = vmatprep.subr.bf16.mxu0 %v1550_v12  ;;  %v1570_v32 = vld [vmem:[%s2198_s1] ss:$20 sps:$4 sm:$0xff]   ;;  %v1572_v33 = vld [vmem:[%s2198_s1 + $0x4] ss:$20 sps:$4 sm:$0xff]   ;;  %v1573_v34 = vld [vmem:[%s2198_s1 + $0x8] ss:$20 sps:$4 sm:$0xff]  }
   0xe   :  { %1433 = vmatprep.subr.bf16.mxu1 %v1551_v13  ;;  %v1575_v35 = vld [vmem:[%s2198_s1 + $0xc] ss:$20 sps:$4 sm:$0xff]   ;;  %611 = vmatprep.mubr.bf16.mxu0 %v1572_v33  ;;  %v1579_v38 = vld [vmem:[%s2198_s1 + $0x34] ss:$20 sps:$4 sm:$0xff]   ;;  %v1582_v40 = vld [vmem:[%s2198_s1 + $0x30] ss:$20 sps:$4 sm:$0xff]  }
   0xf   :  { %708 = vmatprep.mubr.bf16.mxu1 %v1575_v35  ;;  %v1577_v37 = vld [vmem:[%s2198_s1 + $0x2c] ss:$20 sps:$4 sm:$0xff]   ;;  %v1581_v39 = vld [vmem:[%s2198_s1 + $0x28] ss:$20 sps:$4 sm:$0xff]   ;;  %v1587_v44 = vld [vmem:[%s2198_s1 + $0x50] ss:$20 sps:$4 sm:$0xff]  }
  0x10   :  { %1370 = vmatpush3.bf16.msra.mxu0 %v1552_v14  ;;  %v1583_v41 = vld [vmem:[%s2198_s1 + $0x54] ss:$20 sps:$4 sm:$0xff]   ;;  %v1588_v45 = vld [vmem:[%s2198_s1 + $0x58] ss:$20 sps:$4 sm:$0xff]   ;;  %v1615_v49 = vld [vmem:[%s2197_s0 + $0x100] sm:$0xff]  }
  0x11   :  { %1434 = vmatpush3.bf16.msra.mxu1 %v1553_v15  ;;  %1371 = vmatprep.subr.bf16.mxu0 %v1554_v16  ;;  %v1602_v46 = vld [vmem:[%s2197_s0 + $0x108] sm:$0xff]   ;;  %v1592_v48 = vld [vmem:[%s2198_s1 + $0x84] ss:$20 sps:$4 sm:$0xff]   ;;  %v1595_v51 = vld [vmem:[%s2198_s1 + $0x80] ss:$20 sps:$4 sm:$0xff]  }
  0x12   :  { %1435 = vmatprep.subr.bf16.mxu1 %v1555_v17  ;;  %v1594_v50 = vld [vmem:[%s2198_s1 + $0x78] ss:$20 sps:$4 sm:$0xff]   ;;  %v1600_v54 = vld [vmem:[%s2198_s1 + $0xa0] ss:$20 sps:$4 sm:$0xff]   ;;  %v1601_v55 = vld [vmem:[%s2198_s1 + $0xa8] ss:$20 sps:$4 sm:$0xff]  }
  0x13   :  { %v1596_v52 = vld [vmem:[%s2198_s1 + $0xa4] ss:$20 sps:$4 sm:$0xff]   ;;  %v1598_v53 = vld [vmem:[%s2198_s1 + $0xac] ss:$20 sps:$4 sm:$0xff]   ;;  %v1605_v57 = vld [vmem:[%s2198_s1 + $0xd4] ss:$20 sps:$4 sm:$0xff]  }
  0x14   :  { %1372 = vmatpush3.bf16.msra.mxu0 %v1556_v18  ;;  %v1603_v56 = vld [vmem:[%s2198_s1 + $0xcc] ss:$20 sps:$4 sm:$0xff]   ;;  %v1607_v58 = vld [vmem:[%s2198_s1 + $0xc8] ss:$20 sps:$4 sm:$0xff]   ;;  %v1608_v59 = vld [vmem:[%s2198_s1 + $0xd0] ss:$20 sps:$4 sm:$0xff]  }
  0x15   :  { %1436 = vmatpush3.bf16.msra.mxu1 %v1557_v19  ;;  %1373 = vmatprep.subr.bf16.mxu0 %v1558_v20  ;;  %v1609_v60 = vld [vmem:[%s2198_s1 + $0xf4] ss:$20 sps:$4 sm:$0xff]   ;;  %v1611_v61 = vld [vmem:[%s2198_s1 + $0xfc] ss:$20 sps:$4 sm:$0xff]   ;;  %v1614_v63 = vld [vmem:[%s2198_s1 + $0xf8] ss:$20 sps:$4 sm:$0xff]  }
  0x16   :  { %1437 = vmatprep.subr.bf16.mxu1 %v1559_v21  ;;  %v1613_v62 = vld [vmem:[%s2198_s1 + $0xf0] ss:$20 sps:$4 sm:$0xff]   ;;  %v1620_v2 = vld [vmem:[%s2198_s1 + $0x118] ss:$20 sps:$4 sm:$0xff]   ;;  %v1621_v3 = vld [vmem:[%s2198_s1 + $0x120] ss:$20 sps:$4 sm:$0xff]  }
  0x17   :  { %v1616_v0 = vld [vmem:[%s2198_s1 + $0x11c] ss:$20 sps:$4 sm:$0xff]   ;;  %v1618_v1 = vld [vmem:[%s2198_s1 + $0x124] ss:$20 sps:$4 sm:$0xff]   ;;  %v1626_v8 = vld [vmem:[%s2198_s1 + $0x60] ss:$20 sps:$4 sm:$0xff]  }
  0x18   :  { %1374 = vmatpush3.bf16.msra.mxu0 %v1560_v22  ;;  %v1622_v4 = vld [vmem:[%s2198_s1 + $0x10] ss:$20 sps:$4 sm:$0xff]   ;;  %v1624_v6 = vld [vmem:[%s2198_s1 + $0x38] ss:$20 sps:$4 sm:$0xff]   ;;  %v1627_v9 = vld [vmem:[%s2198_s1 + $0x100] ss:$20 sps:$4 sm:$0xff]  }
  0x19   :  { %1438 = vmatpush3.bf16.msra.mxu1 %v1561_v23  ;;  %1375 = vmatprep.subr.bf16.mxu0 %v1562_v24  ;;  %v1623_v5 = vld [vmem:[%s2198_s1 + $0xb0] ss:$20 sps:$4 sm:$0xff]   ;;  %v1625_v7 = vld [vmem:[%s2198_s1 + $0xd8] ss:$20 sps:$4 sm:$0xff]   ;;  %v1628_v10 = vld [vmem:[%s2198_s1 + $0x88] ss:$20 sps:$4 sm:$0xff]  }
  0x1a   :  { %1439 = vmatprep.subr.bf16.mxu1 %v1563_v25  ;;  %v1629_v11 = vld [vmem:[%s2198_s1 + $0x128] ss:$20 sps:$4 sm:$0xff]  }
  0x1c   :  { %1376 = vmatpush3.bf16.msra.mxu0 %v1564_v26 }
  0x1d   :  { %1440 = vmatpush3.bf16.msra.mxu1 %v1565_v27  ;;  %1377 = vmatprep.subr.bf16.mxu0 %v1566_v28 }
  0x1e   :  { %1441 = vmatprep.subr.bf16.mxu1 %v1567_v29 }
  0x20   :  { %1378 = vmatpush3.bf16.msra.mxu0 %v1568_v30 }
  0x21   :  { %1442 = vmatpush3.bf16.msra.mxu1 %v1569_v31  ;;  %1503 = vmatprep.subr.bf16.mxu0 %v1576_v36 }
  0x22   :  { %1527 = vmatprep.subr.bf16.mxu1 %v1576_v36 }
  0x23   :  { %612 = vmatmul.mubr.bf16.vlgmr.msra.gmra.mxu0 %v1570_v32 }
  0x24   :  { %709 = vmatmul.mubr.bf16.vlgmr.msra.gmra.mxu1 %v1573_v34  ;;  %1504 = vmatpush3.bf16.msra.mxu0 %v1576_v36 }
  0x25   :  { %1531 = vmatpush3.bf16.msra.mxu1 %v1576_v36  ;;  %619 = vmatprep.mubr.bf16.mxu0 %v1577_v37 }
  0x26   :  { %716 = vmatprep.mubr.bf16.mxu1 %v1579_v38  ;;  %1528 = vmatprep.subr.bf16.mxu1 %v1589_v42 }
  0x27   :  { %1505 = vmatprep.subr.bf16.mxu0 %v1589_v42 }
  0x28   :  { %1506 = vmatpush3.bf16.msra.mxu0 %v1589_v42 }
  0x29   :  { %1532 = vmatpush3.bf16.msra.mxu1 %v1589_v42  ;;  %1507 = vmatprep.subr.bf16.mxu0 %v1602_v46 }
  0x2a   :  { %1529 = vmatprep.subr.bf16.mxu1 %v1602_v46 }
  0x2b   :  { %620 = vmatmul.mubr.bf16.gmra.mxu0 %v1581_v39 }
  0x2c   :  { %717 = vmatmul.mubr.bf16.gmra.mxu1 %v1582_v40  ;;  %627 = vmatprep.mubr.bf16.mxu0 %v1583_v41 }
  0x2d   :  { %724 = vmatprep.mubr.bf16.mxu1 %v1585_v43  ;;  %1533 = vmatpush3.bf16.msra.mxu1 %v1602_v46 }
  0x2e   :  { %1508 = vmatpush3.bf16.msra.mxu0 %v1602_v46  ;;  %1530 = vmatprep.subr.bf16.mxu1 %v1615_v49 }
  0x2f   :  { %1509 = vmatprep.subr.bf16.mxu0 %v1615_v49 }
  0x31   :  { %1534 = vmatpush3.bf16.msra.mxu1 %v1615_v49 }
  0x32   :  { %1510 = vmatpush3.bf16.msra.mxu0 %v1615_v49 }
  0x33   :  { %628 = vmatmul.mubr.bf16.gmra.mxu0 %v1587_v44 }
  0x34   :  { %725 = vmatmul.mubr.bf16.gmra.mxu1 %v1588_v45  ;;  %635 = vmatprep.mubr.bf16.mxu0 %v1590_v47 }
  0x35   :  { %732 = vmatprep.mubr.bf16.mxu1 %v1592_v48 }
  0x3b   :  { %636 = vmatmul.mubr.bf16.gmra.mxu0 %v1594_v50 }
  0x3c   :  { %733 = vmatmul.mubr.bf16.gmra.mxu1 %v1595_v51  ;;  %643 = vmatprep.mubr.bf16.mxu0 %v1596_v52 }
  0x3d   :  { %740 = vmatprep.mubr.bf16.mxu1 %v1598_v53 }
  0x43   :  { %644 = vmatmul.mubr.bf16.gmra.mxu0 %v1600_v54 }
  0x44   :  { %741 = vmatmul.mubr.bf16.gmra.mxu1 %v1601_v55  ;;  %651 = vmatprep.mubr.bf16.mxu0 %v1603_v56 }
  0x45   :  { %748 = vmatprep.mubr.bf16.mxu1 %v1605_v57 }
  0x4b   :  { %652 = vmatmul.mubr.bf16.gmra.mxu0 %v1607_v58 }
  0x4c   :  { %749 = vmatmul.mubr.bf16.gmra.mxu1 %v1608_v59  ;;  %659 = vmatprep.mubr.bf16.mxu0 %v1609_v60 }
  0x4d   :  { %756 = vmatprep.mubr.bf16.mxu1 %v1611_v61 }
  0x53   :  { %660 = vmatmul.mubr.bf16.gmra.mxu0 %v1613_v62 }
  0x54   :  { %757 = vmatmul.mubr.bf16.gmra.mxu1 %v1614_v63  ;;  %667 = vmatprep.mubr.bf16.mxu0 %v1616_v0 }
  0x55   :  { %764 = vmatprep.mubr.bf16.mxu1 %v1618_v1 }
  0x5b   :  { %668 = vmatmul.mubr.bf16.gmra.mxu0 %v1620_v2 }
  0x5c   :  { %765 = vmatmul.mubr.bf16.gmra.mxu1 %v1621_v3  ;;  %1511 = vmatprep.mubr.msk.bf16.mxu0 %vm554_vm0, %v1622_v4 }
  0x5d   :  { %1519 = vmatprep.mubr.msk.bf16.mxu1 %vm554_vm0, %v1623_v5 }
  0x63   :  { %1512 = vmatmul.mubr.msk.bf16.vlgmr.msra.gmra.mxu0 %vm554_vm0, %v1624_v6 }
  0x64   :  { %1520 = vmatmul.mubr.msk.bf16.vlgmr.msra.gmra.mxu1 %vm554_vm0, %v1625_v7  ;;  %1515 = vmatprep.mubr.msk.bf16.mxu0 %vm554_vm0, %v1626_v8 }
  0x65   :  { %1523 = vmatprep.mubr.msk.bf16.mxu1 %vm554_vm0, %v1627_v9 }
  0x6b   :  { %1516 = vmatmul.mubr.msk.bf16.gmra.mxu0 %vm554_vm0, %v1628_v10 }
  0x6c   :  { %1524 = vmatmul.mubr.msk.bf16.gmra.mxu1 %vm554_vm0, %v1629_v11 }
  0xe3   :  { %v1379_v12 = vpop.f32.mrf.mxu0 }
  0xe4   :  { %v1443_v13 = vpop.f32.mrf.mxu1 }
  0xe5   :  { %v1380_v14 = vpop.f32.mrf.mxu0 }
  0xe6   :  { %v1381_v15 = vadd.f32 %v1380_v14, %v1379_v12  ;;  %v1444_v16 = vpop.f32.mrf.mxu1 }
  0xe7   :  { %v1445_v17 = vadd.f32 %v1444_v16, %v1443_v13  ;;  %v1382_v18 = vpop.f32.mrf.mxu0 }
  0xe8   :  { %v1446_v19 = vpop.f32.mrf.mxu1 }
  0xe9   :  { %v1383_v20 = vpop.f32.mrf.mxu0  ;;  %v1900_v21 = vadd.f32 %v1445_v17, %v1381_v15 }
  0xea   :  { %v1384_v22 = vadd.f32 %v1383_v20, %v1382_v18  ;;  %v1447_v23 = vpop.f32.mrf.mxu1 }
  0xeb   :  { %v1448_v24 = vadd.f32 %v1447_v23, %v1446_v19  ;;  %v1385_v25 = vpop.f32.mrf.mxu0 }
  0xec   :  { %v1449_v26 = vpop.f32.mrf.mxu1 }
  0xed   :  { %v1386_v27 = vpop.f32.mrf.mxu0  ;;  %v1902_v28 = vadd.f32 %v1448_v24, %v1384_v22 }
  0xee   :  { %v1450_v29 = vpop.f32.mrf.mxu1  ;;  %v1387_v23 = vadd.f32 %v1386_v27, %v1385_v25 }
  0xef   :  { %v1904_v30 = vpop.f32.mrf.mxu0  ;;  %v1451_v24 = vadd.f32 %v1450_v29, %v1449_v26 }
  0xf0   :  { %v1906_v31 = vpop.f32.mrf.mxu1 }
  0xf1   :  { %v1389_v32 = vpop.f32.mrf.mxu0 }
  0xf2   :  { %v1453_v33 = vpop.f32.mrf.mxu1 }
  0xf3   :  { %v1391_v34 = vpop.f32.mrf.mxu0 }
  0xf4   :  { %v1455_v35 = vpop.f32.mrf.mxu1 }
  0xf5   :  { %v1392_v36 = vpop.f32.mrf.mxu0 }
  0xf6   :  { %v1393_v37 = vadd.f32 %v1392_v36, %v1391_v34  ;;  %v1456_v38 = vpop.f32.mrf.mxu1 }
  0xf7   :  { %v1457_v39 = vadd.f32 %v1456_v38, %v1455_v35  ;;  %v1394_v40 = vpop.f32.mrf.mxu0 }
  0xf8   :  { %v1458_v41 = vpop.f32.mrf.mxu1 }
  0xf9   :  { %v1395_v42 = vpop.f32.mrf.mxu0  ;;  %v1908_v43 = vadd.f32 %v1457_v39, %v1393_v37 }
  0xfa   :  { %v1396_v44 = vadd.f32 %v1395_v42, %v1394_v40  ;;  %v1459_v45 = vpop.f32.mrf.mxu1  ;;  %v1390_v40 = vadd.f32 %v1389_v32, %v1904_v30 }
  0xfb   :  { %v1460_v46 = vadd.f32 %v1459_v45, %v1458_v41  ;;  %v1397_v47 = vpop.f32.mrf.mxu0  ;;  %v1454_v41 = vadd.f32 %v1453_v33, %v1906_v31 }
  0xfc   :  { %v1461_v48 = vpop.f32.mrf.mxu1 }
  0xfd   :  { %v1398_v49 = vpop.f32.mrf.mxu0  ;;  %v1910_v50 = vadd.f32 %v1460_v46, %v1396_v44  ;;  %v719_v44 = vadd.f32 %v1451_v24, %v1387_v23 }
  0xfe   :  { %v1399_v51 = vadd.f32 %v1398_v49, %v1397_v47  ;;  %v1462_v52 = vpop.f32.mrf.mxu1 }
  0xff   :  { %v1463_v53 = vadd.f32 %v1462_v52, %v1461_v48  ;;  %v1912_v54 = vpop.f32.mrf.mxu0 }
 0x100   :  { %v1914_v55 = vpop.f32.mrf.mxu1 }
 0x101   :  { %v1916_v56 = vpop.f32.mrf.mxu0  ;;  %v1918_v57 = vadd.f32 %v1463_v53, %v1399_v51  ;;  %v722_v51 = vadd.f32 %v1454_v41, %v1390_v40 }
 0x102   :  { %v1920_v58 = vpop.f32.mrf.mxu1 }
 0x103   :  { %v1403_v59 = vpop.f32.mrf.mxu0 }
 0x104   :  { %v1467_v60 = vpop.f32.mrf.mxu1 }
 0x105   :  { %v1404_v61 = vpop.f32.mrf.mxu0 }
 0x106   :  { %v1468_v62 = vpop.f32.mrf.mxu1 }
 0x107   :  { %v1406_v63 = vpop.f32.mrf.mxu0 }
 0x108   :  { %v1470_v0 = vpop.f32.mrf.mxu1 }
 0x109   :  { %v1407_v1 = vpop.f32.mrf.mxu0 }
 0x10a   :  { %v1471_v2 = vpop.f32.mrf.mxu1 }
 0x10b   :  { %v1409_v3 = vpop.f32.mrf.mxu0 }
 0x10c   :  { %v1473_v4 = vpop.f32.mrf.mxu1 }
 0x10d   :  { %v1410_v5 = vpop.f32.mrf.mxu0 }
 0x10e   :  { %v1474_v6 = vpop.f32.mrf.mxu1  ;;  %v1411_v35 = vadd.f32 %v1410_v5, %v1409_v3  ;;  %v1469_v5 = vadd.f32 %v1468_v62, %v1467_v60 }
 0x10f   :  { %v1412_v7 = vpop.f32.mrf.mxu0  ;;  %v1475_v36 = vadd.f32 %v1474_v6, %v1473_v4  ;;  %v1405_v4 = vadd.f32 %v1404_v61, %v1403_v59 }
 0x110   :  { %v1476_v8 = vpop.f32.mrf.mxu1 }
 0x111   :  { %v1413_v9 = vpop.f32.mrf.mxu0  ;;  %v751_v25 = vadd.f32 %v1475_v36, %v1411_v35  ;;  %v743_v23 = vadd.f32 %v1469_v5, %v1405_v4 }
 0x112   :  { %v1477_v10 = vpop.f32.mrf.mxu1  ;;  %v1414_v26 = vadd.f32 %v1413_v9, %v1412_v7  ;;  %v1408_v9 = vadd.f32 %v1407_v1, %v1406_v63 }
 0x113   :  { %v1922_v11 = vpop.f32.mrf.mxu0  ;;  %v1478_v27 = vadd.f32 %v1477_v10, %v1476_v8  ;;  %v1472_v10 = vadd.f32 %v1471_v2, %v1470_v0 }
 0x114   :  { %v1924_v12 = vpop.f32.mrf.mxu1 }
 0x115   :  { %v1926_v13 = vpop.f32.mrf.mxu0  ;;  %v754_v53 = vadd.f32 %v1478_v27, %v1414_v26  ;;  %v746_v35 = vadd.f32 %v1472_v10, %v1408_v9 }
 0x116   :  { %v1928_v14 = vpop.f32.mrf.mxu1 }
 0x117   :  { %v1930_v15 = vpop.f32.mrf.mxu0 }
 0x118   :  { %v1932_v16 = vpop.f32.mrf.mxu1 }
 0x119   :  { %v1934_v17 = vpop.f32.mrf.mxu0 }
 0x11a   :  { %v1936_v18 = vpop.f32.mrf.mxu1 }
 0x11b   :  { %v1938_v19 = vpop.f32.mrf.mxu0 }
 0x11c   :  { %v1940_v20 = vpop.f32.mrf.mxu1 }
 0x11d   :  { %v1942_v22 = vpop.f32.mrf.mxu0 }
 0x11e   :  { %v1944_v34 = vpop.f32.mrf.mxu1 }
 0x11f   :  { %v1946_v37 = vpop.f32.mrf.mxu0 }
 0x120   :  { %v1948_v38 = vpop.f32.mrf.mxu1 }
 0x121   :  { %v1950_v39 = vpop.f32.mrf.mxu0 }
 0x122   :  { %v1954_v42 = vpop.f32.mrf.mxu1 }
 0x123   :  { %v1513_v45 = vpop.f32.mrf.mxu0 }
 0x124   :  { %v1956_v29 = vadd.f32 %v1513_v45, %v719_v44  ;;  %v1521_v46 = vpop.f32.mrf.mxu1 }
 0x125   :  { %v1958_v47 = vadd.f32 %v1521_v46, %v751_v25  ;;  %v807_v48 = vpop.f32.mrf.mxu0 }
 0x126   :  { %v839_v49 = vpop.f32.mrf.mxu1  ;;  %v877_v30 = vsel %vm870_vm1, %v1956_v29, 0.0  ;;  %v1963_v31 = vadd.f32 %v807_v48, %v1900_v21  ;;  %v889_v8 = vmul.f32 %v1956_v29, %v1956_v29 }
 0x127   :  { %v1514_v32 = vpop.f32.mrf.mxu0  ;;  %v949_v33 = vsel %vm870_vm1, %v1958_v47, 0.0  ;;  %878 = vadd.xlane.f32.xlu1 %v877_v30  ;;  %v1981_v61 = vadd.f32 %v839_v49, %v743_v23  ;;  %v961_v2 = vmul.f32 %v1958_v47, %v1958_v47  ;;  %v1402_v30 = vadd.f32 %v1916_v56, %v1912_v54 }
 0x128   :  { %v1967_v52 = vadd.f32 %v1514_v32, %v722_v51  ;;  %v1522_v3 = vpop.f32.mrf.mxu1  ;;  %950 = vadd.xlane.f32.xlu0 %v949_v33  ;;  %v871_v21 = vsel %vm870_vm1, %v1963_v31, 0.0  ;;  %v897_v24 = vsel %vm870_vm1, %v889_v8, 0.0  ;;  %v887_v26 = vmul.f32 %v1963_v31, %v1963_v31 }
 0x129   :  { %v1969_v6 = vadd.f32 %v1522_v3, %v754_v53  ;;  %v810_v0 = vpop.f32.mrf.mxu0  ;;  %v943_v1 = vsel %vm870_vm1, %v1981_v61, 0.0  ;;  %v969_v25 = vsel %vm870_vm1, %v961_v2, 0.0  ;;  %v959_v51 = vmul.f32 %v1981_v61, %v1981_v61 }
 0x12a   :  { %v880_v7 = vsel %vm870_vm1, %v1967_v52, 0.0  ;;  %v890_v60 = vmul.f32 %v1967_v52, %v1967_v52  ;;  %v842_v62 = vpop.f32.mrf.mxu1  ;;  %v1992_v40 = vadd.f32 %v810_v0, %v1902_v28  ;;  %v891_v49 = vsel %vm870_vm1, %v887_v26, 0.0 }
 0x12b   :  { %881 = vadd.xlane.f32.xlu1 %v880_v7  ;;  %v952_v59 = vsel %vm870_vm1, %v1969_v6, 0.0  ;;  %v1984_v36 = vadd.f32 %v842_v62, %v746_v35  ;;  %v962_v44 = vmul.f32 %v1969_v6, %v1969_v6  ;;  %v1517_v45 = vpop.f32.mrf.mxu0  ;;  %v1466_v32 = vadd.f32 %v1920_v58, %v1914_v55 }
 0x12c   :  { %872 = vadd.xlane.f32.xlu0 %v871_v21  ;;  %v900_v63 = vsel %vm870_vm1, %v890_v60, 0.0  ;;  %v888_v28 = vmul.f32 %v1992_v40, %v1992_v40  ;;  %v1525_v46 = vpop.f32.mrf.mxu1  ;;  %v963_v5 = vsel %vm870_vm1, %v959_v51, 0.0  ;;  %v1426_v7 = vadd.f32 %v1950_v39, %v1946_v37 }
 0x12d   :  { %v946_v41 = vsel %vm870_vm1, %v1984_v36, 0.0  ;;  %v972_v27 = vsel %vm870_vm1, %v962_v44, 0.0  ;;  %v823_v48 = vpop.f32.mrf.mxu0  ;;  %v960_v53 = vmul.f32 %v1984_v36, %v1984_v36  ;;  %v1490_v54 = vadd.f32 %v1954_v42, %v1948_v38 }
 0x12e   :  { %v894_v33 = vsel %vm870_vm1, %v888_v28, 0.0  ;;  %v855_v3 = vpop.f32.mrf.mxu1  ;;  %v738_v56 = vadd.f32 %v1466_v32, %v1402_v30  ;;  %v1423_v55 = vadd.f32 %v1942_v22, %v1938_v19  ;;  %v1487_v58 = vadd.f32 %v1944_v34, %v1940_v20 }
 0x12f   :  { %953 = vadd.xlane.f32.xlu1 %v952_v59  ;;  %v1518_v4 = vpop.f32.mrf.mxu0  ;;  %v966_v8 = vsel %vm870_vm1, %v960_v53, 0.0  ;;  %v2027_v9 = vadd.f32 %v1517_v45, %v1918_v57  ;;  %v874_v37 = vsel %vm870_vm1, %v1992_v40, 0.0  ;;  %v770_v38 = vadd.f32 %v1490_v54, %v1426_v7 }
 0x130   :  { %898 = vadd.xlane.f32.xlu0 %v897_v24  ;;  %v2023_v21 = vadd.f32 %v1518_v4, %v738_v56  ;;  %v1526_v10 = vpop.f32.mrf.mxu1  ;;  %v767_v39 = vadd.f32 %v1487_v58, %v1423_v55  ;;  %v2045_v59 = vadd.f32 %v823_v48, %v1908_v43  ;;  %v1420_v62 = vadd.f32 %v1934_v17, %v1930_v15 }
 0x131   :  { %v2031_v42 = vadd.f32 %v1526_v10, %v770_v38  ;;  %v826_v22 = vpop.f32.mrf.mxu0  ;;  %v913_v57 = vsel %vm870_vm1, %v2027_v9, 0.0  ;;  %v1484_v24 = vadd.f32 %v1936_v18, %v1932_v16  ;;  %v1481_v35 = vadd.f32 %v1928_v14, %v1924_v12 }
 0x132   :  { %v916_v19 = vsel %vm870_vm1, %v2023_v21, 0.0  ;;  %v2035_v20 = vadd.f32 %v1525_v46, %v767_v39  ;;  %v2040_v34 = vadd.f32 %v826_v22, %v1910_v50  ;;  %v1417_v50 = vadd.f32 %v1926_v13, %v1922_v11  ;;  %v858_v0 = vpop.f32.mrf.mxu1 }
 0x133   :  { %901 = vadd.xlane.f32.xlu1 %v900_v63  ;;  %v988_v23 = vsel %vm870_vm1, %v2031_v42, 0.0  ;;  %v926_v63 = vmul.f32 %v2023_v21, %v2023_v21  ;;  %v907_v15 = vsel %vm870_vm1, %v2045_v59, 0.0  ;;  %v925_v16 = vmul.f32 %v2027_v9, %v2027_v9 }
 0x134   :  { %944 = vadd.xlane.f32.xlu0 %v943_v1  ;;  %v985_v60 = vsel %vm870_vm1, %v2035_v20, 0.0  ;;  %v910_v43 = vsel %vm870_vm1, %v2040_v34, 0.0  ;;  %v762_v17 = vadd.f32 %v1484_v24, %v1420_v62  ;;  %v759_v11 = vadd.f32 %v1481_v35, %v1417_v50 }
 0x135   :  { %v936_v12 = vsel %vm870_vm1, %v926_v63, 0.0  ;;  %v933_v18 = vsel %vm870_vm1, %v925_v16, 0.0  ;;  %v924_v2 = vmul.f32 %v2040_v34, %v2040_v34  ;;  %v923_v44 = vmul.f32 %v2045_v59, %v2045_v59 }
 0x136   :  { %v2065_v13 = vadd.f32 %v858_v0, %v762_v17  ;;  %v2068_v14 = vadd.f32 %v855_v3, %v759_v11  ;;  %v998_v46 = vmul.f32 %v2031_v42, %v2031_v42  ;;  %v1638_v32 = vmov 0  }
 0x137   :  { %947 = vadd.xlane.f32.xlu1 %v946_v41  ;;  %v930_v45 = vsel %vm870_vm1, %v924_v2, 0.0  ;;  %v927_v26 = vsel %vm870_vm1, %v923_v44, 0.0  ;;  %1536 = vset.pattern.permute.xlu0 %v1638_v32 }
 0x138   :  { %970 = vadd.xlane.f32.xlu0 %v969_v25  ;;  %v982_v1 = vsel %vm870_vm1, %v2065_v13, 0.0  ;;  %v979_v41 = vsel %vm870_vm1, %v2068_v14, 0.0  ;;  %v996_v25 = vmul.f32 %v2065_v13, %v2065_v13  ;;  %v1008_v51 = vsel %vm870_vm1, %v998_v46, 0.0  ;;  %1537 = vset.pattern.permute.xlu1 %v1638_v32 }
 0x13a   :  { %v1002_v28 = vsel %vm870_vm1, %v996_v25, 0.0 }
 0x13b   :  { %973 = vadd.xlane.f32.xlu1 %v972_v27  ;;  %v995_v27 = vmul.f32 %v2068_v14, %v2068_v14 }
 0x13c   :  { %892 = vadd.xlane.f32.xlu0 %v891_v49  ;;  %v997_v49 = vmul.f32 %v2035_v20, %v2035_v20 }
 0x13d   :  { %v999_v48 = vsel %vm870_vm1, %v995_v27, 0.0 }
 0x13e   :  { %v1005_v30 = vsel %vm870_vm1, %v997_v49, 0.0 }
 0x13f   :  { %895 = vadd.xlane.f32.xlu1 %v894_v33 }
 0x140   :  { %964 = vadd.xlane.f32.xlu0 %v963_v5 }
 0x143   :  { %967 = vadd.xlane.f32.xlu1 %v966_v8 }
 0x144   :  { %875 = vadd.xlane.f32.xlu0 %v874_v37 }
 0x147   :  { %917 = vadd.xlane.f32.xlu1 %v916_v19 }
 0x148   :  { %914 = vadd.xlane.f32.xlu0 %v913_v57 }
 0x14b   :  { %989 = vadd.xlane.f32.xlu1 %v988_v23 }
 0x14c   :  { %986 = vadd.xlane.f32.xlu0 %v985_v60 }
 0x14f   :  { %911 = vadd.xlane.f32.xlu1 %v910_v43 }
 0x150   :  { %908 = vadd.xlane.f32.xlu0 %v907_v15 }
 0x153   :  { %937 = vadd.xlane.f32.xlu1 %v936_v12 }
 0x154   :  { %934 = vadd.xlane.f32.xlu0 %v933_v18 }
 0x157   :  { %983 = vadd.xlane.f32.xlu1 %v982_v1 }
 0x158   :  { %980 = vadd.xlane.f32.xlu0 %v979_v41 }
 0x15b   :  { %931 = vadd.xlane.f32.xlu1 %v930_v45 }
 0x15c   :  { %928 = vadd.xlane.f32.xlu0 %v927_v26 }
 0x15f   :  { %1003 = vadd.xlane.f32.xlu1 %v1002_v28 }
 0x160   :  { %1000 = vadd.xlane.f32.xlu0 %v999_v48 }
 0x163   :  { %1009 = vadd.xlane.f32.xlu1 %v1008_v51 }
 0x164   :  { %1006 = vadd.xlane.f32.xlu0 %v1005_v30 }
 0x1b0   :  { %v879_v33 = vpop.xlane.xlu1 %878 }
 0x1b1   :  { %v951_v53 = vpop.xlane.xlu0 %950 }
 0x1b4   :  { %v882_v3 = vpop.xlane.xlu1 %881 }
 0x1b5   :  { %v873_v4 = vpop.xlane.xlu0 %872 }
 0x1b8   :  { %v954_v5 = vpop.xlane.xlu1 %953 }
 0x1b9   :  { %v899_v7 = vpop.xlane.xlu0 %898 }
 0x1bc   :  { %v902_v54 = vpop.xlane.xlu1 %901 }
 0x1bd   :  { %v945_v56 = vpop.xlane.xlu0 %944 }
 0x1c0   :  { %v948_v55 = vpop.xlane.xlu1 %947 }
 0x1c1   :  { %v971_v58 = vpop.xlane.xlu0 %970 }
 0x1c4   :  { %v974_v8 = vpop.xlane.xlu1 %973 }
 0x1c5   :  { %v893_v10 = vpop.xlane.xlu0 %892 }
 0x1c8   :  { %v896_v37 = vpop.xlane.xlu1 %895 }
 0x1c9   :  { %v965_v38 = vpop.xlane.xlu0 %964 }
 0x1cc   :  { %v968_v39 = vpop.xlane.xlu1 %967 }
 0x1cd   :  { %v876_v19 = vpop.xlane.xlu0 %875 }
 0x1d0   :  { %v918_v22 = vpop.xlane.xlu1 %917 }
 0x1d1   :  { %v915_v57 = vpop.xlane.xlu0 %914  ;;  %v922_v63 = vadd.f32 %v918_v22, %v882_v3 }
 0x1d2   :  { %v921_v0 = vadd.f32 %v915_v57, %v879_v33 }
 0x1d3   :  { %v958_v11 = vadd.f32 %v954_v5, %v922_v63 }
 0x1d4   :  { %v990_v23 = vpop.xlane.xlu1 %989  ;;  %v957_v12 = vadd.f32 %v951_v53, %v921_v0 }
 0x1d5   :  { %v987_v60 = vpop.xlane.xlu0 %986  ;;  %v994_v44 = vadd.f32 %v990_v23, %v958_v11 }
 0x1d6   :  { %v993_v45 = vadd.f32 %v987_v60, %v957_v12  ;;  %v1041_v12 = vld [vmem:[%s2199_s2 + $0x10] sm:$0xff] }
 0x1d7   :  { %v1018_v32 = vmul.f32 0.0078125, %v994_v44 }
 0x1d8   :  { %v912_v62 = vpop.xlane.xlu1 %911  ;;  %v1017_v33 = vmul.f32 0.0078125, %v993_v45 }
 0x1d9   :  { %v909_v24 = vpop.xlane.xlu0 %908  ;;  %v920_v25 = vadd.f32 %v912_v62, %v876_v19  ;;  %v1026_v60 = vmul.f32 %v1018_v32, %v1018_v32 }
 0x1da   :  { %v919_v43 = vadd.f32 %v909_v24, %v873_v4  ;;  %v1025_v62 = vmul.f32 %v1017_v33, %v1017_v33 }
 0x1db   :  { %v956_v3 = vadd.f32 %v948_v55, %v920_v25  ;;  %v1049_v25 = vld [vmem:[%s2200_s3 + $0x10] sm:$0xff] }
 0x1dc   :  { %v938_v50 = vpop.xlane.xlu1 %937  ;;  %v955_v17 = vadd.f32 %v945_v56, %v919_v43 }
 0x1dd   :  { %v935_v35 = vpop.xlane.xlu0 %934  ;;  %v942_v26 = vadd.f32 %v938_v50, %v902_v54 }
 0x1de   :  { %v941_v27 = vadd.f32 %v935_v35, %v899_v7 }
 0x1df   :  { %v978_v4 = vadd.f32 %v974_v8, %v942_v26 }
 0x1e0   :  { %v984_v15 = vpop.xlane.xlu1 %983 }
 0x1e1   :  { %v981_v16 = vpop.xlane.xlu0 %980  ;;  %v992_v19 = vadd.f32 %v984_v15, %v956_v3  ;;  %v1048_v3 = vld [vmem:[%s2200_s3 + $0x8] sm:$0xff] }
 0x1e2   :  { %v991_v18 = vadd.f32 %v981_v16, %v955_v17  ;;  %v1039_v16 = vld [vmem:[%s2199_s2] sm:$0xff] }
 0x1e3   :  { %v1016_v43 = vmul.f32 0.0078125, %v992_v19 }
 0x1e4   :  { %v932_v1 = vpop.xlane.xlu1 %931  ;;  %v1015_v28 = vmul.f32 0.0078125, %v991_v18 }
 0x1e5   :  { %v929_v2 = vpop.xlane.xlu0 %928  ;;  %v940_v46 = vadd.f32 %v932_v1, %v896_v37  ;;  %v1024_v0 = vmul.f32 %v1016_v43, %v1016_v43 }
 0x1e6   :  { %v939_v41 = vadd.f32 %v929_v2, %v893_v10  ;;  %v1023_v53 = vmul.f32 %v1015_v28, %v1015_v28  ;;  %v977_v10 = vadd.f32 %v971_v58, %v941_v27 }
 0x1e7   :  { %v976_v5 = vadd.f32 %v968_v39, %v940_v46  ;;  %v1040_v46 = vld [vmem:[%s2199_s2 + $0x8] sm:$0xff] }
 0x1e8   :  { %v1004_v48 = vpop.xlane.xlu1 %1003  ;;  %v975_v49 = vadd.f32 %v965_v38, %v939_v41  ;;  %v1042_v41 = vld [vmem:[%s2199_s2 + $0x18] sm:$0xff] }
 0x1e9   :  { %v1001_v51 = vpop.xlane.xlu0 %1000  ;;  %v1012_v38 = vadd.f32 %v1004_v48, %v976_v5  ;;  %v1050_v5 = vld [vmem:[%s2200_s3 + $0x18] sm:$0xff] }
 0x1ea   :  { %v1011_v30 = vadd.f32 %v1001_v51, %v975_v49  ;;  %v1047_v51 = vld [vmem:[%s2200_s3] sm:$0xff] }
 0x1eb   :  { %v1020_v8 = vmul.f32 0.0078125, %v1012_v38 }
 0x1ec   :  { %v1019_v56 = vmul.f32 0.0078125, %v1011_v30  ;;  %v1010_v22 = vpop.xlane.xlu1 %1009 }
 0x1ed   :  { %v1014_v57 = vadd.f32 %v1010_v22, %v978_v4  ;;  %v1007_v23 = vpop.xlane.xlu0 %1006  ;;  %v1028_v58 = vsub.f32 %v1020_v8, %v1024_v0 }
 0x1ee   :  { %v1027_v54 = vsub.f32 %v1019_v56, %v1023_v53  ;;  %v1013_v7 = vadd.f32 %v1007_v23, %v977_v10 }
 0x1ef   :  { %v1022_v37 = vmul.f32 0.0078125, %v1014_v57  ;;  %v1032_v15 = vadd.f32 1e-05, %v1028_v58 }
 0x1f0   :  { %v1031_v24 = vadd.f32 1e-05, %v1027_v54  ;;  %v1021_v50 = vmul.f32 0.0078125, %v1013_v7 }
 0x1f1   :  { %v1030_v35 = vsub.f32 %v1022_v37, %v1026_v60 }
 0x1f2   :  { %1630 = vrsqrt.f32 %v1031_v24  ;;  %v1029_v55 = vsub.f32 %v1021_v50, %v1025_v62 }
 0x1f3   :  { %v1034_v39 = vadd.f32 1e-05, %v1030_v35 }
 0x1f4   :  { %v1033_v63 = vadd.f32 1e-05, %v1029_v55 }
 0x1f6   :  { %1632 = vrsqrt.f32 %v1033_v63 }
 0x1f7   :  { %1634 = vrsqrt.f32 %v1034_v39 }
 0x1f8   :  { %1636 = vrsqrt.f32 %v1032_v15 }
 0x1ff   :  { %v1631_v17 = vpop.eup %1630 }
 0x200   :  { %v1043_v11 = vmul.f32 %v1631_v17, %v1039_v16 }
 0x202   :  { %1061 = vperm.xlu0 %1536, %v1043_v11   ;;  %v1051_v49 = vmul.f32 %v1043_v11, %v1015_v28 }
 0x203   :  { %v1633_v18 = vpop.eup %1632 }
 0x204   :  { %v1045_v1 = vmul.f32 %v1633_v18, %v1041_v12  ;;  %v1635_v2 = vpop.eup %1634  ;;  %v1055_v30 = vsub.f32 %v1047_v51, %v1051_v49 }
 0x205   :  { %v1046_v44 = vmul.f32 %v1635_v2, %v1042_v41  ;;  %v1637_v27 = vpop.eup %1636 }
 0x206   :  { %1071 = vperm.xlu1 %1537, %v1045_v1   ;;  %v1053_v45 = vmul.f32 %v1045_v1, %v1017_v33  ;;  %v1044_v48 = vmul.f32 %v1637_v27, %v1040_v46 }
 0x207   :  { %v1054_v53 = vmul.f32 %v1046_v44, %v1018_v32 }
 0x208   :  { %v1057_v26 = vsub.f32 %v1049_v25, %v1053_v45  ;;  %v1052_v33 = vmul.f32 %v1044_v48, %v1016_v43 }
 0x209   :  { %v1058_v28 = vsub.f32 %v1050_v5, %v1054_v53 }
 0x20a   :  { %1076 = vperm.xlu1 %1537, %v1046_v44   ;;  %v1056_v4 = vsub.f32 %v1048_v3, %v1052_v33 }
 0x20e   :  { %1095 = vperm.xlu1 %1537, %v1057_v26  }
 0x212   :  { %1066 = vperm.xlu1 %1537, %v1044_v48  }
 0x216   :  { %1085 = vperm.xlu1 %1537, %v1055_v30  }
 0x21a   :  { %1090 = vperm.xlu1 %1537, %v1056_v4  }
 0x21e   :  { %1100 = vperm.xlu1 %1537, %v1058_v28  }
 0x27d   :  { %v1062_v35 = vpop.permute.xlu0 %1061 }
 0x27e   :  { %v1165_v39 = vmul.f32 %v1062_v35, %v1981_v61  ;;  %v1198_v63 = vmul.f32 %v1062_v35, %v2068_v14 }
 0x281   :  { %v1072_v56 = vpop.permute.xlu1 %1071 }
 0x282   :  { %v1081_v10 = vmul.f32 %v1072_v56, %v1956_v29  ;;  %v1134_v57 = vmul.f32 %v1072_v56, %v2027_v9  ;;  %v1167_v23 = vmul.f32 %v1072_v56, %v1958_v47  ;;  %v1200_v19 = vmul.f32 %v1072_v56, %v2035_v20 }
 0x283   :  { %v1079_v47 = vmul.f32 %v1062_v35, %v1963_v31  ;;  %v1132_v20 = vmul.f32 %v1062_v35, %v2045_v59 }
 0x285   :  { %v1077_v22 = vpop.permute.xlu1 %1076 }
 0x289   :  { %v1096_v54 = vpop.permute.xlu1 %1095 }
 0x28a   :  { %v1105_v7 = vadd.f32 %v1096_v54, %v1081_v10  ;;  %v1138_v32 = vadd.f32 %v1134_v57, %v1096_v54  ;;  %v1171_v60 = vadd.f32 %v1167_v23, %v1096_v54  ;;  %v1204_v37 = vadd.f32 %v1200_v19, %v1096_v54 }
 0x28c   :  { %v1109_v62 = vmax.f32 %v1105_v7, 0.0  ;;  %v1142_v38 = vmax.f32 %v1138_v32, 0.0  ;;  %v1175_v24 = vmax.f32 %v1171_v60, 0.0  ;;  %v1208_v50 = vmax.f32 %v1204_v37, 0.0 }
 0x28d   :  { %v1067_v43 = vpop.permute.xlu1 %1066 }
 0x28e   :  { %v1349_v55 = vpack.c.bf16 %v1109_v62, %v1109_v62  ;;  %v1353_v29 = vpack.c.bf16 %v1142_v38, %v1142_v38  ;;  %v1357_v8 = vpack.c.bf16 %v1175_v24, %v1175_v24  ;;  %v1361_v9 = vpack.c.bf16 %v1208_v50, %v1208_v50 }
 0x28f   :  { %v1080_v11 = vmul.f32 %v1067_v43, %v1992_v40  ;;  %v1133_v12 = vmul.f32 %v1067_v43, %v2040_v34  ;;  %v1166_v18 = vmul.f32 %v1067_v43, %v1984_v36  ;;  %v1199_v1 = vmul.f32 %v1067_v43, %v2065_v13 }
 0x290   :  { %1130 = vst.msk [vmem:[%s2201_s4 + $0x8] sm:$0xf] %vm1127_vm2, %v1349_v55  ;;  %1329 = vst.msk [vmem:[%s2201_s4 + $0x18] sm:$0xf] %vm1127_vm2, %v1353_v29  ;;  %v1082_v36 = vmul.f32 %v1077_v22, %v1967_v52  ;;  %v1135_v40 = vmul.f32 %v1077_v22, %v2023_v21  ;;  %v1168_v34 = vmul.f32 %v1077_v22, %v1969_v6 }
 0x291   :  { %1337 = vst.msk [vmem:[%s2201_s4 + $0x28] sm:$0xf] %vm1127_vm2, %v1357_v8  ;;  %1345 = vst.msk [vmem:[%s2201_s4 + $0x38] sm:$0xf] %vm1127_vm2, %v1361_v9  ;;  %v1086_v31 = vpop.permute.xlu1 %1085  ;;  %v1201_v13 = vmul.f32 %v1077_v22, %v2031_v42 }
 0x292   :  { %v1103_v61 = vadd.f32 %v1086_v31, %v1079_v47  ;;  %v1136_v59 = vadd.f32 %v1132_v20, %v1086_v31  ;;  %v1169_v14 = vadd.f32 %v1165_v39, %v1086_v31  ;;  %v1202_v0 = vadd.f32 %v1198_v63, %v1086_v31 }
 0x294   :  { %v1107_v58 = vmax.f32 %v1103_v61, 0.0  ;;  %v1140_v15 = vmax.f32 %v1136_v59, 0.0  ;;  %v1173_v16 = vmax.f32 %v1169_v14, 0.0  ;;  %v1206_v17 = vmax.f32 %v1202_v0, 0.0 }
 0x295   :  { %v1091_v2 = vpop.permute.xlu1 %1090 }
 0x296   :  { %v1347_v41 = vpack.c.bf16 %v1107_v58, %v1107_v58  ;;  %v1351_v44 = vpack.c.bf16 %v1140_v15, %v1140_v15  ;;  %v1355_v45 = vpack.c.bf16 %v1173_v16, %v1173_v16  ;;  %v1359_v25 = vpack.c.bf16 %v1206_v17, %v1206_v17 }
 0x297   :  { %v1104_v26 = vadd.f32 %v1091_v2, %v1080_v11  ;;  %v1137_v27 = vadd.f32 %v1133_v12, %v1091_v2  ;;  %v1170_v46 = vadd.f32 %v1166_v18, %v1091_v2  ;;  %v1203_v48 = vadd.f32 %v1199_v1, %v1091_v2 }
 0x298   :  { %1128 = vst.msk [vmem:[%s2201_s4] sm:$0xf] %vm1127_vm2, %v1347_v41  ;;  %1327 = vst.msk [vmem:[%s2201_s4 + $0x10] sm:$0xf] %vm1127_vm2, %v1351_v44 }
 0x299   :  { %1335 = vst.msk [vmem:[%s2201_s4 + $0x20] sm:$0xf] %vm1127_vm2, %v1355_v45  ;;  %1343 = vst.msk [vmem:[%s2201_s4 + $0x30] sm:$0xf] %vm1127_vm2, %v1359_v25  ;;  %v1108_v49 = vmax.f32 %v1104_v26, 0.0  ;;  %v1141_v51 = vmax.f32 %v1137_v27, 0.0  ;;  %v1101_v3 = vpop.permute.xlu1 %1100 }
 0x29a   :  { %v1174_v30 = vmax.f32 %v1170_v46, 0.0  ;;  %v1207_v33 = vmax.f32 %v1203_v48, 0.0  ;;  %v1106_v4 = vadd.f32 %v1101_v3, %v1082_v36  ;;  %v1139_v53 = vadd.f32 %v1135_v40, %v1101_v3 }
 0x29b   :  { %v1172_v5 = vadd.f32 %v1168_v34, %v1101_v3  ;;  %v1205_v28 = vadd.f32 %v1201_v13, %v1101_v3  ;;  %v1348_v56 = vpack.c.bf16 %v1108_v49, %v1108_v49  ;;  %v1352_v10 = vpack.c.bf16 %v1141_v51, %v1141_v51 }
 0x29c   :  { %v1356_v57 = vpack.c.bf16 %v1174_v30, %v1174_v30  ;;  %v1360_v23 = vpack.c.bf16 %v1207_v33, %v1207_v33  ;;  %v1110_v52 = vmax.f32 %v1106_v4, 0.0  ;;  %v1143_v19 = vmax.f32 %v1139_v53, 0.0 }
 0x29d   :  { %v1176_v21 = vmax.f32 %v1172_v5, 0.0  ;;  %v1209_v54 = vmax.f32 %v1205_v28, 0.0  ;;  %1129 = vst.msk [vmem:[%s2201_s4 + $0x4] sm:$0xf] %vm1127_vm2, %v1348_v56  ;;  %1328 = vst.msk [vmem:[%s2201_s4 + $0x14] sm:$0xf] %vm1127_vm2, %v1352_v10 }
 0x29e   :  { %1336 = vst.msk [vmem:[%s2201_s4 + $0x24] sm:$0xf] %vm1127_vm2, %v1356_v57  ;;  %1344 = vst.msk [vmem:[%s2201_s4 + $0x34] sm:$0xf] %vm1127_vm2, %v1360_v23  ;;  %v1350_v6 = vpack.c.bf16 %v1110_v52, %v1110_v52  ;;  %v1354_v42 = vpack.c.bf16 %v1143_v19, %v1143_v19 }
 0x29f   :  { %v1358_v22 = vpack.c.bf16 %v1176_v21, %v1176_v21  ;;  %v1362_v7 = vpack.c.bf16 %v1209_v54, %v1209_v54 }
 0x2a0   :  { %1131 = vst.msk [vmem:[%s2201_s4 + $0xc] sm:$0xf] %vm1127_vm2, %v1350_v6  ;;  %1330 = vst.msk [vmem:[%s2201_s4 + $0x1c] sm:$0xf] %vm1127_vm2, %v1354_v42 }
 0x2a1   :  { %1338 = vst.msk [vmem:[%s2201_s4 + $0x2c] sm:$0xf] %vm1127_vm2, %v1358_v22  ;;  %1346 = vst.msk [vmem:[%s2201_s4 + $0x3c] sm:$0xf] %vm1127_vm2, %v1362_v7 }

// kernel: forward.5
= control target key start
LH: loop header
LB: loop body
LE: loop exit
PB: predicated region body
PF: predicated region fallthrough
CT: control target
= control target key end

     0   :  { %9 = vsyncpa [#allocation3], 0  ;;  %s4403_s15 = smov [#allocation2]   ;;  %s6876_s0 = inlined_call_operand.vmem [shape: bf16[16,2], index: 0, kind: input, shape index: {}]   ;;  %s6877_s1 = inlined_call_operand.hbm [shape: bf16[1024,16], index: 1, kind: input, shape index: {}]   ;;  %s6878_s2 = inlined_call_operand.vmem [shape: f32[64,1], index: 2, kind: input, shape index: {}]   ;;  %s6879_s3 = inlined_call_operand.vmem [shape: f32[64,1], index: 3, kind: input, shape index: {}]   ;;  %s6880_s4 = inlined_call_operand.vmem [shape: bf16[16,64,2], index: 4, kind: output, shape index: {}]  }
   0x1   :  { %s17_s16 = sshll.u32 %s4403_s15, 4  ;;  %s18_s16 = int_to_ptr.vmem [resolvable:$true] %s17_s16 }
   0x2   :  { %s4389_s17 = scalar_lea.vmem %s18_s16, 8192  ;;  %p4394_p1 = scmp.lt.s32.totalorder %s18_s16, %s18_s16 }
   0x3   :  { %p4390_p0 = scmp.ne.s32.totalorder %s18_s16, %s4389_s17  ;;  %p4395_p2 = scmp.lt.s32.totalorder %s4389_s17, %s4389_s17 }
   0x5   :  { %p4396_p3 = por %p4395_p2, %p4394_p1 }
   0x7   :  { %p4397_p4 = pnand %p4396_p3, %p4390_p0 }
   0x9   :  { %4400 = shalt.err (!%p4397_p4)
}
   0xa   :  { %s4404_s18 = smov 64   ;;  %s4405_s19 = smov 4  }
   0xb   :  { %23 = dma.hbm_to_vmem [thread:$0]  %s6877_s1, 8192, %s18_s16, [#allocation3], %s4404_s18, %s4404_s18, %s4405_s19  }
   0xc   :  { %4401 = dma.done.wait [#allocation3], 8192  }
   0xd   :  { %4402 = vsyncadd [#allocation3], 4294959104  ;;  %v4300_v0 = vld [vmem:[%s6876_s0] sm:$0xff]   ;;  %vm488_vm0 = vcmask 130048   ;;  %v4303_v3 = vld [vmem:[#allocation2 + $0x8] sm:$0xff]   ;;  %vm1226_vm1 = vcmask 15360  }
   0xe   :  { %v4301_v1 = vld [vmem:[#allocation2] sm:$0xff]   ;;  %4162 = vmatprep.subr.bf16.mxu0 %v4300_v0  ;;  %4292 = vmatprep.subr.bf16.mxu1 %v4300_v0  ;;  %v4304_v4 = vld [vmem:[#allocation2 + $0x108] sm:$0xff]   ;;  %v4305_v5 = vld [vmem:[#allocation2 + $0x10] sm:$0xff]   ;;  %vm2603_vm2 = vcmask 11264  }
   0xf   :  { %v4302_v2 = vld [vmem:[#allocation2 + $0x100] sm:$0xff]   ;;  %4163 = vmatpush3.bf16.msra.mxu0 %v4300_v0  ;;  %4293 = vmatpush3.bf16.msra.mxu1 %v4300_v0  ;;  %v4307_v6 = vld [vmem:[#allocation2 + $0x110] sm:$0xff]   ;;  %v4306_v7 = vld [vmem:[#allocation2 + $0x18] sm:$0xff]  }
  0x10   :  { %4164 = vmatprep.mubr.msk.bf16.mxu0 %vm488_vm0, %v4301_v1  ;;  %4228 = vmatprep.mubr.msk.bf16.mxu1 %vm488_vm0, %v4302_v2  ;;  %v4308_v8 = vld [vmem:[#allocation2 + $0x118] sm:$0xff]   ;;  %v4309_v9 = vld [vmem:[#allocation2 + $0x20] sm:$0xff]   ;;  %v4310_v11 = vld [vmem:[#allocation2 + $0x28] sm:$0xff]  }
  0x11   :  { %v4311_v10 = vld [vmem:[#allocation2 + $0x120] sm:$0xff]   ;;  %v4312_v12 = vld [vmem:[#allocation2 + $0x128] sm:$0xff]   ;;  %v4313_v13 = vld [vmem:[#allocation2 + $0x30] sm:$0xff]  }
  0x12   :  { %4165 = vmatmul.mubr.msk.bf16.vlgmr.msra.gmra.mxu0 %vm488_vm0, %v4303_v3  ;;  %4229 = vmatmul.mubr.msk.bf16.vlgmr.msra.gmra.mxu1 %vm488_vm0, %v4304_v4  ;;  %v4315_v14 = vld [vmem:[#allocation2 + $0x130] sm:$0xff]   ;;  %v4314_v15 = vld [vmem:[#allocation2 + $0x38] sm:$0xff]   ;;  %v4317_v17 = vld [vmem:[#allocation2 + $0x40] sm:$0xff]  }
  0x13   :  { %4168 = vmatprep.mubr.msk.bf16.mxu0 %vm488_vm0, %v4305_v5  ;;  %4232 = vmatprep.mubr.msk.bf16.mxu1 %vm488_vm0, %v4307_v6  ;;  %v4316_v16 = vld [vmem:[#allocation2 + $0x138] sm:$0xff]   ;;  %v4319_v18 = vld [vmem:[#allocation2 + $0x140] sm:$0xff]   ;;  %v4318_v19 = vld [vmem:[#allocation2 + $0x48] sm:$0xff]  }
  0x14   :  { %v4320_v20 = vld [vmem:[#allocation2 + $0x148] sm:$0xff]   ;;  %v4321_v21 = vld [vmem:[#allocation2 + $0x50] sm:$0xff]   ;;  %v4322_v23 = vld [vmem:[#allocation2 + $0x58] sm:$0xff]  }
  0x15   :  { %v4323_v22 = vld [vmem:[#allocation2 + $0x150] sm:$0xff]   ;;  %v4324_v24 = vld [vmem:[#allocation2 + $0x158] sm:$0xff]   ;;  %v4325_v25 = vld [vmem:[#allocation2 + $0x60] sm:$0xff]  }
  0x16   :  { %v4326_v26 = vld [vmem:[#allocation2 + $0x68] sm:$0xff]   ;;  %v4327_v27 = vld [vmem:[#allocation2 + $0x70] sm:$0xff]   ;;  %v4328_v28 = vld [vmem:[#allocation2 + $0x78] sm:$0xff]  }
  0x17   :  { %v4329_v29 = vld [vmem:[#allocation2 + $0x80] sm:$0xff]   ;;  %v4330_v30 = vld [vmem:[#allocation2 + $0x88] sm:$0xff]   ;;  %v4331_v31 = vld [vmem:[#allocation2 + $0x90] sm:$0xff]  }
  0x18   :  { %v4332_v32 = vld [vmem:[#allocation2 + $0x98] sm:$0xff]   ;;  %v4333_v33 = vld [vmem:[#allocation2 + $0xa0] sm:$0xff]   ;;  %v4334_v34 = vld [vmem:[#allocation2 + $0xa8] sm:$0xff]  }
  0x19   :  { %v4335_v35 = vld [vmem:[#allocation2 + $0xb0] sm:$0xff]   ;;  %v4336_v36 = vld [vmem:[#allocation2 + $0xb8] sm:$0xff]   ;;  %v4337_v37 = vld [vmem:[#allocation2 + $0xc0] sm:$0xff]  }
  0x1a   :  { %4169 = vmatmul.mubr.msk.bf16.gmra.mxu0 %vm488_vm0, %v4306_v7  ;;  %4233 = vmatmul.mubr.msk.bf16.gmra.mxu1 %vm488_vm0, %v4308_v8  ;;  %v4338_v38 = vld [vmem:[#allocation2 + $0xc8] sm:$0xff]   ;;  %v4339_v39 = vld [vmem:[#allocation2 + $0xd0] sm:$0xff]   ;;  %v4340_v40 = vld [vmem:[#allocation2 + $0xd8] sm:$0xff]  }
  0x1b   :  { %4172 = vmatprep.mubr.msk.bf16.mxu0 %vm488_vm0, %v4309_v9  ;;  %4236 = vmatprep.mubr.msk.bf16.mxu1 %vm488_vm0, %v4311_v10  ;;  %v4341_v41 = vld [vmem:[#allocation2 + $0xe0] sm:$0xff]   ;;  %v4342_v42 = vld [vmem:[#allocation2 + $0xe8] sm:$0xff]   ;;  %v4343_v43 = vld [vmem:[#allocation2 + $0xf0] sm:$0xff]  }
  0x1c   :  { %v4344_v44 = vld [vmem:[#allocation2 + $0xf8] sm:$0xff]   ;;  %v4345_v4 = vld [vmem:[#allocation2 + $0x160] sm:$0xff]   ;;  %v4346_v5 = vld [vmem:[#allocation2 + $0x168] sm:$0xff]  }
  0x22   :  { %4173 = vmatmul.mubr.msk.bf16.gmra.mxu0 %vm488_vm0, %v4310_v11  ;;  %4237 = vmatmul.mubr.msk.bf16.gmra.mxu1 %vm488_vm0, %v4312_v12 }
  0x23   :  { %4176 = vmatprep.mubr.msk.bf16.mxu0 %vm488_vm0, %v4313_v13  ;;  %4240 = vmatprep.mubr.msk.bf16.mxu1 %vm488_vm0, %v4315_v14  ;;  %v4347_v14 = vld [vmem:[#allocation2 + $0x170] sm:$0xff]  }
  0x2a   :  { %4177 = vmatmul.mubr.msk.bf16.gmra.mxu0 %vm488_vm0, %v4314_v15  ;;  %4241 = vmatmul.mubr.msk.bf16.gmra.mxu1 %vm488_vm0, %v4316_v16  ;;  %v4348_v15 = vld [vmem:[#allocation2 + $0x178] sm:$0xff]  }
  0x2b   :  { %4180 = vmatprep.mubr.msk.bf16.mxu0 %vm488_vm0, %v4317_v17  ;;  %4244 = vmatprep.mubr.msk.bf16.mxu1 %vm488_vm0, %v4319_v18 }
  0x32   :  { %4181 = vmatmul.mubr.msk.bf16.gmra.mxu0 %vm488_vm0, %v4318_v19  ;;  %4245 = vmatmul.mubr.msk.bf16.gmra.mxu1 %vm488_vm0, %v4320_v20 }
  0x33   :  { %4184 = vmatprep.mubr.msk.bf16.mxu0 %vm488_vm0, %v4321_v21  ;;  %4248 = vmatprep.mubr.msk.bf16.mxu1 %vm488_vm0, %v4323_v22 }
  0x3a   :  { %4185 = vmatmul.mubr.msk.bf16.gmra.mxu0 %vm488_vm0, %v4322_v23  ;;  %4249 = vmatmul.mubr.msk.bf16.gmra.mxu1 %vm488_vm0, %v4324_v24 }
  0x3b   :  { %4188 = vmatprep.mubr.msk.bf16.mxu0 %vm488_vm0, %v4325_v25  ;;  %4252 = vmatprep.mubr.msk.bf16.mxu1 %vm488_vm0, %v4345_v4 }
  0x42   :  { %4189 = vmatmul.mubr.msk.bf16.gmra.mxu0 %vm488_vm0, %v4326_v26  ;;  %4253 = vmatmul.mubr.msk.bf16.gmra.mxu1 %vm488_vm0, %v4346_v5 }
  0x43   :  { %4192 = vmatprep.mubr.msk.bf16.mxu0 %vm488_vm0, %v4327_v27  ;;  %4256 = vmatprep.mubr.msk.bf16.mxu1 %vm488_vm0, %v4347_v14 }
  0x4a   :  { %4193 = vmatmul.mubr.msk.bf16.gmra.mxu0 %vm488_vm0, %v4328_v28  ;;  %4257 = vmatmul.mubr.msk.bf16.gmra.mxu1 %vm488_vm0, %v4348_v15 }
  0x4b   :  { %4196 = vmatprep.mubr.msk.bf16.mxu0 %vm488_vm0, %v4329_v29 }
  0x52   :  { %4197 = vmatmul.mubr.msk.bf16.gmra.mxu0 %vm488_vm0, %v4330_v30 }
  0x53   :  { %4200 = vmatprep.mubr.msk.bf16.mxu0 %vm488_vm0, %v4331_v31 }
  0x5a   :  { %4201 = vmatmul.mubr.msk.bf16.gmra.mxu0 %vm488_vm0, %v4332_v32 }
  0x5b   :  { %4204 = vmatprep.mubr.msk.bf16.mxu0 %vm488_vm0, %v4333_v33 }
  0x62   :  { %4205 = vmatmul.mubr.msk.bf16.gmra.mxu0 %vm488_vm0, %v4334_v34 }
  0x63   :  { %4208 = vmatprep.mubr.msk.bf16.mxu0 %vm488_vm0, %v4335_v35 }
  0x6a   :  { %4209 = vmatmul.mubr.msk.bf16.gmra.mxu0 %vm488_vm0, %v4336_v36 }
  0x6b   :  { %4212 = vmatprep.mubr.msk.bf16.mxu0 %vm488_vm0, %v4337_v37 }
  0x72   :  { %4213 = vmatmul.mubr.msk.bf16.gmra.mxu0 %vm488_vm0, %v4338_v38 }
  0x73   :  { %4216 = vmatprep.mubr.msk.bf16.mxu0 %vm488_vm0, %v4339_v39  ;;  %v4349_v39 = vld [vmem:[#allocation2 + $0x180] sm:$0xff]  }
  0x74   :  { %4260 = vmatprep.mubr.msk.bf16.mxu1 %vm488_vm0, %v4349_v39  ;;  %v4356_v39 = vld [vmem:[#allocation2 + $0x1b8] sm:$0xff]  }
  0x7a   :  { %4217 = vmatmul.mubr.msk.bf16.gmra.mxu0 %vm488_vm0, %v4340_v40  ;;  %v4350_v40 = vld [vmem:[#allocation2 + $0x188] sm:$0xff]  }
  0x7b   :  { %4220 = vmatprep.mubr.msk.bf16.mxu0 %vm488_vm0, %v4341_v41  ;;  %4261 = vmatmul.mubr.msk.bf16.gmra.mxu1 %vm488_vm0, %v4350_v40 }
  0x82   :  { %4221 = vmatmul.mubr.msk.bf16.gmra.mxu0 %vm488_vm0, %v4342_v42 }
  0x83   :  { %4224 = vmatprep.mubr.msk.bf16.mxu0 %vm488_vm0, %v4343_v43 }
  0x8a   :  { %4225 = vmatmul.mubr.msk.bf16.gmra.mxu0 %vm488_vm0, %v4344_v44 }
  0xd2   :  { %v4482_v45 = vpop.f32.mrf.mxu0  ;;  %v4484_v46 = vpop.f32.mrf.mxu1 }
  0xd3   :  { %7006 = vst [vmem:[#allocation5_spill] sm:$0xff] %v4482_v45  ;;  %7007 = vst [vmem:[#allocation6_spill] sm:$0xff] %v4484_v46  ;;  %v1809_v47 = vsel %vm1226_vm1, %v4484_v46, 0.0  ;;  %v1233_v48 = vsel %vm1226_vm1, %v4482_v45, 0.0  ;;  %v1261_v54 = vmul.f32 %v4482_v45, %v4482_v45  ;;  %v1837_v61 = vmul.f32 %v4484_v46, %v4484_v46 }
  0xd4   :  { %1810 = vadd.xlane.f32.xlu0 %v1809_v47  ;;  %v4490_v49 = vpop.f32.mrf.mxu1  ;;  %1234 = vadd.xlane.f32.xlu1 %v1233_v48  ;;  %v4492_v50 = vpop.f32.mrf.mxu0 }
  0xd5   :  { %7008 = vst [vmem:[#allocation7_spill] sm:$0xff] %v4490_v49  ;;  %7009 = vst [vmem:[#allocation8_spill] sm:$0xff] %v4492_v50  ;;  %v1227_v52 = vsel %vm1226_vm1, %v4492_v50, 0.0  ;;  %v1273_v56 = vsel %vm1226_vm1, %v1261_v54, 0.0  ;;  %v1803_v59 = vsel %vm1226_vm1, %v4490_v49, 0.0  ;;  %v1849_v63 = vsel %vm1226_vm1, %v1837_v61, 0.0 }
  0xd6   :  { %v4494_v51 = vpop.f32.mrf.mxu0  ;;  %v4502_v55 = vpop.f32.mrf.mxu1  ;;  %v1259_v1 = vmul.f32 %v4492_v50, %v4492_v50  ;;  %v1835_v8 = vmul.f32 %v4490_v49, %v4490_v49 }
  0xd7   :  { %7010 = vst [vmem:[#allocation9_spill] sm:$0xff] %v4494_v51  ;;  %v1236_v53 = vsel %vm1226_vm1, %v4494_v51, 0.0  ;;  %7011 = vst [vmem:[#allocation10_spill] sm:$0xff] %v4502_v55  ;;  %v1812_v57 = vsel %vm1226_vm1, %v4502_v55, 0.0  ;;  %v1262_v58 = vmul.f32 %v4494_v51, %v4494_v51  ;;  %v1838_v2 = vmul.f32 %v4502_v55, %v4502_v55 }
  0xd8   :  { %1228 = vadd.xlane.f32.xlu0 %v1227_v52  ;;  %1237 = vadd.xlane.f32.xlu1 %v1236_v53  ;;  %v4514_v62 = vpop.f32.mrf.mxu1  ;;  %v4523_v3 = vpop.f32.mrf.mxu0  ;;  %v1267_v6 = vsel %vm1226_vm1, %v1259_v1, 0.0  ;;  %v1843_v11 = vsel %vm1226_vm1, %v1835_v8, 0.0 }
  0xd9   :  { %v1276_v60 = vsel %vm1226_vm1, %v1262_v58, 0.0  ;;  %7012 = vst [vmem:[#allocation11_spill] sm:$0xff] %v4514_v62  ;;  %v1806_v0 = vsel %vm1226_vm1, %v4514_v62, 0.0  ;;  %7013 = vst [vmem:[#allocation12_spill] sm:$0xff] %v4523_v3  ;;  %v1852_v7 = vsel %vm1226_vm1, %v1838_v2, 0.0  ;;  %v1260_v9 = vmul.f32 %v4523_v3, %v4523_v3 }
  0xda   :  { %v4533_v10 = vpop.f32.mrf.mxu0  ;;  %v1836_v13 = vmul.f32 %v4514_v62, %v4514_v62  ;;  %v4541_v17 = vpop.f32.mrf.mxu1  ;;  %v1230_v19 = vsel %vm1226_vm1, %v4523_v3, 0.0 }
  0xdb   :  { %7014 = vst [vmem:[#allocation13_spill] sm:$0xff] %v4533_v10  ;;  %v1270_v12 = vsel %vm1226_vm1, %v1260_v9, 0.0  ;;  %7016 = vst [vmem:[#allocation15_spill] sm:$0xff] %v4541_v17  ;;  %v1245_v22 = vsel %vm1226_vm1, %v4533_v10, 0.0  ;;  %v1821_v25 = vsel %vm1226_vm1, %v4541_v17, 0.0  ;;  %v1265_v30 = vmul.f32 %v4533_v10, %v4533_v10 }
  0xdc   :  { %1274 = vadd.xlane.f32.xlu0 %v1273_v56  ;;  %1813 = vadd.xlane.f32.xlu1 %v1812_v57  ;;  %v4539_v16 = vpop.f32.mrf.mxu0  ;;  %v1846_v18 = vsel %vm1226_vm1, %v1836_v13, 0.0  ;;  %v4550_v21 = vpop.f32.mrf.mxu1  ;;  %v1841_v37 = vmul.f32 %v4541_v17, %v4541_v17  ;;  %v4351_v56 = vld [vmem:[#allocation2 + $0x190] sm:$0xff]   ;;  %v4352_v57 = vld [vmem:[#allocation2 + $0x198] sm:$0xff]  }
  0xdd   :  { %7015 = vst [vmem:[#allocation14_spill] sm:$0xff] %v4539_v16  ;;  %7018 = vst [vmem:[#allocation17_spill] sm:$0xff] %v4550_v21  ;;  %v1239_v28 = vsel %vm1226_vm1, %v4539_v16, 0.0  ;;  %v1285_v32 = vsel %vm1226_vm1, %v1265_v30, 0.0  ;;  %v1815_v35 = vsel %vm1226_vm1, %v4550_v21, 0.0  ;;  %v1263_v43 = vmul.f32 %v4539_v16, %v4539_v16  ;;  %4264 = vmatprep.mubr.msk.bf16.mxu1 %vm488_vm0, %v4351_v56 }
  0xde   :  { %v4548_v20 = vpop.f32.mrf.mxu0  ;;  %v4556_v24 = vpop.f32.mrf.mxu1  ;;  %v1861_v41 = vsel %vm1226_vm1, %v1841_v37, 0.0  ;;  %v1839_v53 = vmul.f32 %v4550_v21, %v4550_v21  ;;  %4265 = vmatmul.mubr.msk.bf16.gmra.mxu1 %vm488_vm0, %v4352_v57 }
  0xdf   :  { %7017 = vst [vmem:[#allocation16_spill] sm:$0xff] %v4548_v20  ;;  %v1248_v23 = vsel %vm1226_vm1, %v4548_v20, 0.0  ;;  %7019 = vst [vmem:[#allocation18_spill] sm:$0xff] %v4556_v24  ;;  %v1824_v26 = vsel %vm1226_vm1, %v4556_v24, 0.0  ;;  %v1266_v31 = vmul.f32 %v4548_v20, %v4548_v20  ;;  %v1842_v38 = vmul.f32 %v4556_v24, %v4556_v24 }
  0xe0   :  { %1804 = vadd.xlane.f32.xlu0 %v1803_v59  ;;  %1277 = vadd.xlane.f32.xlu1 %v1276_v60  ;;  %v4562_v27 = vpop.f32.mrf.mxu0  ;;  %v4574_v34 = vpop.f32.mrf.mxu1  ;;  %v1279_v48 = vsel %vm1226_vm1, %v1263_v43, 0.0  ;;  %v1855_v60 = vsel %vm1226_vm1, %v1839_v53, 0.0 }
  0xe1   :  { %7020 = vst [vmem:[#allocation19_spill] sm:$0xff] %v4562_v27  ;;  %v1242_v29 = vsel %vm1226_vm1, %v4562_v27, 0.0  ;;  %v1288_v33 = vsel %vm1226_vm1, %v1266_v31, 0.0  ;;  %7021 = vst [vmem:[#allocation20_spill] sm:$0xff] %v4574_v34  ;;  %v1818_v36 = vsel %vm1226_vm1, %v4574_v34, 0.0  ;;  %v1864_v42 = vsel %vm1226_vm1, %v1842_v38, 0.0 }
  0xe2   :  { %v1264_v44 = vmul.f32 %v4562_v27, %v4562_v27  ;;  %v4592_v47 = vpop.f32.mrf.mxu0  ;;  %v1840_v54 = vmul.f32 %v4574_v34, %v4574_v34  ;;  %v4602_v59 = vpop.f32.mrf.mxu1  ;;  %v4355_v38 = vld [vmem:[#allocation2 + $0x1b0] sm:$0xff]  }
  0xe3   :  { %7022 = vst [vmem:[#allocation21_spill] sm:$0xff] %v4592_v47  ;;  %7024 = vst [vmem:[#allocation23_spill] sm:$0xff] %v4602_v59  ;;  %v1305_v1 = vsel %vm1226_vm1, %v4592_v47, 0.0  ;;  %v1881_v5 = vsel %vm1226_vm1, %v4602_v59, 0.0 }
  0xe4   :  { %1850 = vadd.xlane.f32.xlu0 %v1849_v63  ;;  %1807 = vadd.xlane.f32.xlu1 %v1806_v0  ;;  %v1282_v52 = vsel %vm1226_vm1, %v1264_v44, 0.0  ;;  %v4600_v58 = vpop.f32.mrf.mxu0  ;;  %v1858_v61 = vsel %vm1226_vm1, %v1840_v54, 0.0  ;;  %v4610_v0 = vpop.f32.mrf.mxu1 }
  0xe5   :  { %7023 = vst [vmem:[#allocation22_spill] sm:$0xff] %v4600_v58  ;;  %7026 = vst [vmem:[#allocation25_spill] sm:$0xff] %v4610_v0  ;;  %v1299_v8 = vsel %vm1226_vm1, %v4600_v58, 0.0  ;;  %v1331_v30 = vmul.f32 %v4600_v58, %v4600_v58 }
  0xe6   :  { %v4608_v63 = vpop.f32.mrf.mxu0  ;;  %v4616_v4 = vpop.f32.mrf.mxu1 }
  0xe7   :  { %7025 = vst [vmem:[#allocation24_spill] sm:$0xff] %v4608_v63  ;;  %v1308_v2 = vsel %vm1226_vm1, %v4608_v63, 0.0  ;;  %7027 = vst [vmem:[#allocation26_spill] sm:$0xff] %v4616_v4 }
  0xe8   :  { %1268 = vadd.xlane.f32.xlu0 %v1267_v6  ;;  %1853 = vadd.xlane.f32.xlu1 %v1852_v7  ;;  %v1884_v6 = vsel %vm1226_vm1, %v4616_v4, 0.0  ;;  %v4622_v7 = vpop.f32.mrf.mxu0  ;;  %v4634_v15 = vpop.f32.mrf.mxu1 }
  0xe9   :  { %7028 = vst [vmem:[#allocation27_spill] sm:$0xff] %v4622_v7  ;;  %v1302_v9 = vsel %vm1226_vm1, %v4622_v7, 0.0  ;;  %7029 = vst [vmem:[#allocation28_spill] sm:$0xff] %v4634_v15  ;;  %v1332_v31 = vmul.f32 %v4622_v7, %v4622_v7  ;;  %v1908_v37 = vmul.f32 %v4634_v15, %v4634_v15 }
  0xeb   :  { %v1918_v43 = vsel %vm1226_vm1, %v1908_v37, 0.0 }
  0xec   :  { %1844 = vadd.xlane.f32.xlu0 %v1843_v11  ;;  %1271 = vadd.xlane.f32.xlu1 %v1270_v12  ;;  %v1333_v11 = vmul.f32 %v4592_v47, %v4592_v47  ;;  %v1334_v12 = vmul.f32 %v4608_v63, %v4608_v63 }
  0xee   :  { %v1345_v13 = vsel %vm1226_vm1, %v1333_v11, 0.0  ;;  %v1348_v14 = vsel %vm1226_vm1, %v1334_v12, 0.0 }
  0xf0   :  { %1847 = vadd.xlane.f32.xlu1 %v1846_v18  ;;  %1231 = vadd.xlane.f32.xlu0 %v1230_v19  ;;  %v1875_v18 = vsel %vm1226_vm1, %v4610_v0, 0.0  ;;  %v1878_v19 = vsel %vm1226_vm1, %v4634_v15, 0.0 }
  0xf4   :  { %1246 = vadd.xlane.f32.xlu0 %v1245_v22  ;;  %1249 = vadd.xlane.f32.xlu1 %v1248_v23  ;;  %v1909_v22 = vmul.f32 %v4602_v59, %v4602_v59  ;;  %v1910_v23 = vmul.f32 %v4616_v4, %v4616_v4 }
  0xf8   :  { %1822 = vadd.xlane.f32.xlu0 %v1821_v25  ;;  %1825 = vadd.xlane.f32.xlu1 %v1824_v26  ;;  %v4353_v25 = vld [vmem:[#allocation2 + $0x1a0] sm:$0xff]   ;;  %v4354_v26 = vld [vmem:[#allocation2 + $0x1a8] sm:$0xff]  }
  0xf9   :  { %4268 = vmatprep.mubr.msk.bf16.mxu1 %vm488_vm0, %v4353_v25 }
  0xfa   :  { %4269 = vmatmul.mubr.msk.bf16.gmra.mxu1 %vm488_vm0, %v4354_v26 }
  0xfb   :  { %4272 = vmatprep.mubr.msk.bf16.mxu1 %vm488_vm0, %v4355_v38 }
  0xfc   :  { %1240 = vadd.xlane.f32.xlu0 %v1239_v28  ;;  %1243 = vadd.xlane.f32.xlu1 %v1242_v29  ;;  %v1921_v28 = vsel %vm1226_vm1, %v1909_v22, 0.0  ;;  %v1924_v29 = vsel %vm1226_vm1, %v1910_v23, 0.0 }
 0x100   :  { %1286 = vadd.xlane.f32.xlu0 %v1285_v32  ;;  %1289 = vadd.xlane.f32.xlu1 %v1288_v33  ;;  %v4652_v32 = vpop.f32.mrf.mxu0  ;;  %v1339_v33 = vsel %vm1226_vm1, %v1331_v30, 0.0 }
 0x101   :  { %7030 = vst [vmem:[#allocation29_spill] sm:$0xff] %v4652_v32 }
 0x102   :  { %v4660_v40 = vpop.f32.mrf.mxu0  ;;  %4273 = vmatmul.mubr.msk.bf16.gmra.mxu1 %vm488_vm0, %v4356_v39 }
 0x103   :  { %7031 = vst [vmem:[#allocation30_spill] sm:$0xff] %v4660_v40  ;;  %v1335_v25 = vmul.f32 %v4660_v40, %v4660_v40 }
 0x104   :  { %1816 = vadd.xlane.f32.xlu0 %v1815_v35  ;;  %1819 = vadd.xlane.f32.xlu1 %v1818_v36  ;;  %v1342_v35 = vsel %vm1226_vm1, %v1332_v31, 0.0  ;;  %v1907_v36 = vmul.f32 %v4610_v0, %v4610_v0  ;;  %v4668_v44 = vpop.f32.mrf.mxu0 }
 0x105   :  { %7033 = vst [vmem:[#allocation32_spill] sm:$0xff] %v4668_v44  ;;  %v1320_v53 = vsel %vm1226_vm1, %v4668_v44, 0.0 }
 0x108   :  { %1862 = vadd.xlane.f32.xlu0 %v1861_v41  ;;  %1865 = vadd.xlane.f32.xlu1 %v1864_v42  ;;  %v4662_v41 = vpop.f32.mrf.mxu1  ;;  %v1915_v42 = vsel %vm1226_vm1, %v1907_v36, 0.0  ;;  %v4360_v36 = vld [vmem:[#allocation2 + $0x1d8] sm:$0xff]  }
 0x109   :  { %7032 = vst [vmem:[#allocation31_spill] sm:$0xff] %v4662_v41  ;;  %v1893_v56 = vsel %vm1226_vm1, %v4662_v41, 0.0 }
 0x10c   :  { %1280 = vadd.xlane.f32.xlu0 %v1279_v48  ;;  %1283 = vadd.xlane.f32.xlu1 %v1282_v52  ;;  %v4670_v48 = vpop.f32.mrf.mxu1  ;;  %v1317_v52 = vsel %vm1226_vm1, %v4652_v32, 0.0 }
 0x10d   :  { %7034 = vst [vmem:[#allocation33_spill] sm:$0xff] %v4670_v48  ;;  %v1887_v11 = vsel %vm1226_vm1, %v4670_v48, 0.0  ;;  %v1911_v31 = vmul.f32 %v4670_v48, %v4670_v48 }
 0x10e   :  { %v4676_v54 = vpop.f32.mrf.mxu1 }
 0x10f   :  { %7035 = vst [vmem:[#allocation34_spill] sm:$0xff] %v4676_v54  ;;  %v1896_v57 = vsel %vm1226_vm1, %v4676_v54, 0.0  ;;  %v1927_v39 = vsel %vm1226_vm1, %v1911_v31, 0.0 }
 0x110   :  { %1856 = vadd.xlane.f32.xlu0 %v1855_v60  ;;  %1859 = vadd.xlane.f32.xlu1 %v1858_v61  ;;  %v4682_v60 = vpop.f32.mrf.mxu0  ;;  %v1311_v61 = vsel %vm1226_vm1, %v4660_v40, 0.0 }
 0x111   :  { %7036 = vst [vmem:[#allocation35_spill] sm:$0xff] %v4682_v60  ;;  %v1336_v26 = vmul.f32 %v4682_v60, %v4682_v60 }
 0x113   :  { %v1354_v30 = vsel %vm1226_vm1, %v1336_v26, 0.0 }
 0x114   :  { %1306 = vadd.xlane.f32.xlu0 %v1305_v1  ;;  %1309 = vadd.xlane.f32.xlu1 %v1308_v2  ;;  %v1314_v1 = vsel %vm1226_vm1, %v4682_v60, 0.0  ;;  %v1337_v2 = vmul.f32 %v4652_v32, %v4652_v32 }
 0x118   :  { %1882 = vadd.xlane.f32.xlu0 %v1881_v5  ;;  %1885 = vadd.xlane.f32.xlu1 %v1884_v6  ;;  %v1338_v5 = vmul.f32 %v4668_v44, %v4668_v44  ;;  %v1357_v6 = vsel %vm1226_vm1, %v1337_v2, 0.0 }
 0x11c   :  { %1300 = vadd.xlane.f32.xlu0 %v1299_v8  ;;  %1303 = vadd.xlane.f32.xlu1 %v1302_v9  ;;  %v1360_v8 = vsel %vm1226_vm1, %v1338_v5, 0.0  ;;  %v4694_v9 = vpop.f32.mrf.mxu1 }
 0x11d   :  { %7037 = vst [vmem:[#allocation36_spill] sm:$0xff] %v4694_v9  ;;  %v1890_v12 = vsel %vm1226_vm1, %v4694_v9, 0.0 }
 0x11e   :  { %v4722_v38 = vpop.f32.mrf.mxu1 }
 0x11f   :  { %7040 = vst [vmem:[#allocation39_spill] sm:$0xff] %v4722_v38 }
 0x120   :  { %1346 = vadd.xlane.f32.xlu0 %v1345_v13  ;;  %1349 = vadd.xlane.f32.xlu1 %v1348_v14  ;;  %v1913_v13 = vmul.f32 %v4662_v41, %v4662_v41  ;;  %v1914_v14 = vmul.f32 %v4676_v54, %v4676_v54 }
 0x122   :  { %v1933_v22 = vsel %vm1226_vm1, %v1913_v13, 0.0  ;;  %v1936_v23 = vsel %vm1226_vm1, %v1914_v14, 0.0 }
 0x124   :  { %1876 = vadd.xlane.f32.xlu0 %v1875_v18  ;;  %1879 = vadd.xlane.f32.xlu1 %v1878_v19  ;;  %v4357_v18 = vld [vmem:[#allocation2 + $0x1c0] sm:$0xff]   ;;  %v4358_v19 = vld [vmem:[#allocation2 + $0x1c8] sm:$0xff]  }
 0x125   :  { %4276 = vmatprep.mubr.msk.bf16.mxu1 %vm488_vm0, %v4357_v18 }
 0x126   :  { %4277 = vmatmul.mubr.msk.bf16.gmra.mxu1 %vm488_vm0, %v4358_v19 }
 0x128   :  { %1922 = vadd.xlane.f32.xlu0 %v1921_v28  ;;  %1925 = vadd.xlane.f32.xlu1 %v1924_v29  ;;  %v4712_v28 = vpop.f32.mrf.mxu0  ;;  %v1351_v29 = vsel %vm1226_vm1, %v1335_v25, 0.0 }
 0x129   :  { %7038 = vst [vmem:[#allocation37_spill] sm:$0xff] %v4712_v28 }
 0x12a   :  { %v4720_v37 = vpop.f32.mrf.mxu0 }
 0x12b   :  { %7039 = vst [vmem:[#allocation38_spill] sm:$0xff] %v4720_v37  ;;  %v1371_v5 = vsel %vm1226_vm1, %v4720_v37, 0.0 }
 0x12c   :  { %1340 = vadd.xlane.f32.xlu0 %v1339_v33  ;;  %1343 = vadd.xlane.f32.xlu1 %v1342_v35  ;;  %v1912_v33 = vmul.f32 %v4694_v9, %v4694_v9  ;;  %v4359_v35 = vld [vmem:[#allocation2 + $0x1d0] sm:$0xff]  }
 0x12d   :  { %4280 = vmatprep.mubr.msk.bf16.mxu1 %vm488_vm0, %v4359_v35 }
 0x12e   :  { %4281 = vmatmul.mubr.msk.bf16.gmra.mxu1 %vm488_vm0, %v4360_v36 }
 0x130   :  { %1916 = vadd.xlane.f32.xlu0 %v1915_v42  ;;  %1919 = vadd.xlane.f32.xlu1 %v1918_v43  ;;  %v1930_v42 = vsel %vm1226_vm1, %v1912_v33, 0.0  ;;  %v4728_v43 = vpop.f32.mrf.mxu0  ;;  %v4361_v33 = vld [vmem:[#allocation2 + $0x1e0] sm:$0xff]  }
 0x131   :  { %7041 = vst [vmem:[#allocation40_spill] sm:$0xff] %v4728_v43  ;;  %4284 = vmatprep.mubr.msk.bf16.mxu1 %vm488_vm0, %v4361_v33 }
 0x132   :  { %v4742_v2 = vpop.f32.mrf.mxu0 }
 0x133   :  { %7044 = vst [vmem:[#allocation43_spill] sm:$0xff] %v4742_v2  ;;  %v1404_v31 = vmul.f32 %v4742_v2, %v4742_v2 }
 0x134   :  { %1318 = vadd.xlane.f32.xlu0 %v1317_v52  ;;  %1321 = vadd.xlane.f32.xlu1 %v1320_v53  ;;  %v4730_v52 = vpop.f32.mrf.mxu1  ;;  %v1377_v53 = vsel %vm1226_vm1, %v4712_v28, 0.0  ;;  %v4764_v25 = vpop.f32.mrf.mxu0 }
 0x135   :  { %7042 = vst [vmem:[#allocation41_spill] sm:$0xff] %v4730_v52  ;;  %7046 = vst [vmem:[#allocation45_spill] sm:$0xff] %v4764_v25  ;;  %v1947_v26 = vsel %vm1226_vm1, %v4730_v52, 0.0  ;;  %v1409_v41 = vmul.f32 %v4764_v25, %v4764_v25 }
 0x137   :  { %v1429_v17 = vsel %vm1226_vm1, %v1409_v41, 0.0 }
 0x138   :  { %1894 = vadd.xlane.f32.xlu0 %v1893_v56  ;;  %1897 = vadd.xlane.f32.xlu1 %v1896_v57  ;;  %v1380_v56 = vsel %vm1226_vm1, %v4728_v43, 0.0  ;;  %v4736_v57 = vpop.f32.mrf.mxu1 }
 0x139   :  { %7043 = vst [vmem:[#allocation42_spill] sm:$0xff] %v4736_v57 }
 0x13a   :  { %v4758_v19 = vpop.f32.mrf.mxu1 }
 0x13b   :  { %7045 = vst [vmem:[#allocation44_spill] sm:$0xff] %v4758_v19 }
 0x13c   :  { %1312 = vadd.xlane.f32.xlu0 %v1311_v61  ;;  %1315 = vadd.xlane.f32.xlu1 %v1314_v1  ;;  %v1953_v61 = vsel %vm1226_vm1, %v4722_v38, 0.0  ;;  %v1956_v1 = vsel %vm1226_vm1, %v4736_v57, 0.0 }
 0x140   :  { %1358 = vadd.xlane.f32.xlu0 %v1357_v6  ;;  %1361 = vadd.xlane.f32.xlu1 %v1360_v8  ;;  %v1374_v6 = vsel %vm1226_vm1, %v4742_v2, 0.0  ;;  %v1405_v8 = vmul.f32 %v4712_v28, %v4712_v28 }
 0x142   :  { %v1417_v14 = vsel %vm1226_vm1, %v1405_v8, 0.0 }
 0x144   :  { %1888 = vadd.xlane.f32.xlu0 %v1887_v11  ;;  %1891 = vadd.xlane.f32.xlu1 %v1890_v12  ;;  %v1406_v11 = vmul.f32 %v4728_v43, %v4728_v43 }
 0x146   :  { %v1420_v18 = vsel %vm1226_vm1, %v1406_v11, 0.0  ;;  %v1389_v11 = vsel %vm1226_vm1, %v4764_v25, 0.0 }
 0x148   :  { %1934 = vadd.xlane.f32.xlu0 %v1933_v22  ;;  %1937 = vadd.xlane.f32.xlu1 %v1936_v23 }
 0x14c   :  { %1352 = vadd.xlane.f32.xlu0 %v1351_v29  ;;  %1355 = vadd.xlane.f32.xlu1 %v1354_v30  ;;  %v1950_v29 = vsel %vm1226_vm1, %v4758_v19, 0.0  ;;  %v1403_v30 = vmul.f32 %v4720_v37, %v4720_v37 }
 0x150   :  { %1928 = vadd.xlane.f32.xlu0 %v1927_v39  ;;  %1931 = vadd.xlane.f32.xlu1 %v1930_v42  ;;  %v4362_v39 = vld [vmem:[#allocation2 + $0x1e8] sm:$0xff]   ;;  %v4778_v42 = vpop.f32.mrf.mxu0 }
 0x151   :  { %7048 = vst [vmem:[#allocation47_spill] sm:$0xff] %v4778_v42  ;;  %4285 = vmatmul.mubr.msk.bf16.gmra.mxu1 %vm488_vm0, %v4362_v39  ;;  %v1407_v41 = vmul.f32 %v4778_v42, %v4778_v42 }
 0x153   :  { %v1423_v44 = vsel %vm1226_vm1, %v1407_v41, 0.0 }
 0x154   :  { %1378 = vadd.xlane.f32.xlu0 %v1377_v53  ;;  %1381 = vadd.xlane.f32.xlu1 %v1380_v56  ;;  %v4780_v53 = vpop.f32.mrf.mxu1  ;;  %v1411_v56 = vsel %vm1226_vm1, %v1403_v30, 0.0  ;;  %v4364_v30 = vld [vmem:[#allocation2 + $0x1f8] sm:$0xff]  }
 0x155   :  { %7049 = vst [vmem:[#allocation48_spill] sm:$0xff] %v4780_v53  ;;  %v1965_v33 = vsel %vm1226_vm1, %v4780_v53, 0.0 }
 0x156   :  { %v4792_v8 = vpop.f32.mrf.mxu1 }
 0x157   :  { %7051 = vst [vmem:[#allocation50_spill] sm:$0xff] %v4792_v8 }
 0x158   :  { %1954 = vadd.xlane.f32.xlu0 %v1953_v61  ;;  %1957 = vadd.xlane.f32.xlu1 %v1956_v1  ;;  %v1414_v61 = vsel %vm1226_vm1, %v1404_v31, 0.0  ;;  %v4802_v31 = vpop.f32.mrf.mxu1 }
 0x159   :  { %7053 = vst [vmem:[#allocation52_spill] sm:$0xff] %v4802_v31  ;;  %v1968_v39 = vsel %vm1226_vm1, %v4802_v31, 0.0 }
 0x15a   :  { %v4830_v10 = vpop.f32.mrf.mxu1 }
 0x15b   :  { %7056 = vst [vmem:[#allocation55_spill] sm:$0xff] %v4830_v10 }
 0x15c   :  { %1372 = vadd.xlane.f32.xlu0 %v1371_v5  ;;  %1375 = vadd.xlane.f32.xlu1 %v1374_v6  ;;  %v4790_v6 = vpop.f32.mrf.mxu0 }
 0x15d   :  { %v4752_v12 = vpop.xlane.xlu0 %1810  ;;  %v4754_v13 = vpop.xlane.xlu1 %1234  ;;  %7050 = vst [vmem:[#allocation49_spill] sm:$0xff] %v4790_v6 }
 0x160   :  { %1418 = vadd.xlane.f32.xlu0 %v1417_v14  ;;  %1421 = vadd.xlane.f32.xlu1 %v1420_v18  ;;  %v1392_v14 = vsel %vm1226_vm1, %v4790_v6, 0.0  ;;  %v4363_v18 = vld [vmem:[#allocation2 + $0x1f0] sm:$0xff]  }
 0x161   :  { %v4760_v22 = vpop.xlane.xlu0 %1228  ;;  %v4762_v23 = vpop.xlane.xlu1 %1237  ;;  %4288 = vmatprep.mubr.msk.bf16.mxu1 %vm488_vm0, %v4363_v18 }
 0x162   :  { %4289 = vmatmul.mubr.msk.bf16.gmra.mxu1 %vm488_vm0, %v4364_v30  ;;  %v1410_v30 = vmul.f32 %v4790_v6, %v4790_v6 }
 0x164   :  { %1948 = vadd.xlane.f32.xlu0 %v1947_v26  ;;  %1951 = vadd.xlane.f32.xlu1 %v1950_v29  ;;  %v1432_v32 = vsel %vm1226_vm1, %v1410_v30, 0.0 }
 0x165   :  { %v4774_v35 = vpop.xlane.xlu0 %1274  ;;  %v4776_v36 = vpop.xlane.xlu1 %1813 }
 0x166   :  { %7047 = vst [vmem:[#allocation46_spill] sm:$0xff] %v4776_v36 }
 0x168   :  { %1412 = vadd.xlane.f32.xlu0 %v1411_v56  ;;  %1415 = vadd.xlane.f32.xlu1 %v1414_v61  ;;  %v4810_v56 = vpop.f32.mrf.mxu0 }
 0x169   :  { %v4786_v1 = vpop.xlane.xlu0 %1804  ;;  %v4788_v5 = vpop.xlane.xlu1 %1277  ;;  %7054 = vst [vmem:[#allocation53_spill] sm:$0xff] %v4810_v56  ;;  %v1386_v18 = vsel %vm1226_vm1, %v4810_v56, 0.0  ;;  %v1408_v30 = vmul.f32 %v4810_v56, %v4810_v56 }
 0x16a   :  { %v4832_v54 = vpop.f32.mrf.mxu0 }
 0x16b   :  { %7057 = vst [vmem:[#allocation56_spill] sm:$0xff] %v4832_v54  ;;  %v1426_v20 = vsel %vm1226_vm1, %v1408_v30, 0.0  ;;  %v1477_v27 = vmul.f32 %v4832_v54, %v4832_v54 }
 0x16c   :  { %1390 = vadd.xlane.f32.xlu0 %v1389_v11  ;;  %1393 = vadd.xlane.f32.xlu1 %v1392_v14  ;;  %v1383_v14 = vsel %vm1226_vm1, %v4778_v42, 0.0 }
 0x16d   :  { %v4798_v26 = vpop.xlane.xlu0 %1850  ;;  %v4800_v29 = vpop.xlane.xlu1 %1807  ;;  %v1489_v42 = vsel %vm1226_vm1, %v1477_v27, 0.0 }
 0x16e   :  { %7052 = vst [vmem:[#allocation51_spill] sm:$0xff] %v4800_v29 }
 0x170   :  { %1966 = vadd.xlane.f32.xlu0 %v1965_v33  ;;  %1969 = vadd.xlane.f32.xlu1 %v1968_v39 }
 0x171   :  { %v4812_v61 = vpop.xlane.xlu0 %1268  ;;  %v4814_v11 = vpop.xlane.xlu1 %1853 }
 0x172   :  { %7055 = vst [vmem:[#allocation54_spill] sm:$0xff] %v4814_v11 }
 0x174   :  { %1384 = vadd.xlane.f32.xlu0 %v1383_v14  ;;  %1387 = vadd.xlane.f32.xlu1 %v1386_v18  ;;  %v1959_v14 = vsel %vm1226_vm1, %v4792_v8, 0.0  ;;  %v1962_v18 = vsel %vm1226_vm1, %v4830_v10, 0.0 }
 0x175   :  { %v4824_v33 = vpop.xlane.xlu0 %1844  ;;  %v4826_v39 = vpop.xlane.xlu1 %1271 }
 0x178   :  { %1430 = vadd.xlane.f32.xlu0 %v1429_v17  ;;  %1433 = vadd.xlane.f32.xlu1 %v1432_v32  ;;  %v4846_v17 = vpop.f32.mrf.mxu0 }
 0x179   :  { %v4834_v25 = vpop.xlane.xlu1 %1847  ;;  %v4836_v24 = vpop.xlane.xlu0 %1231  ;;  %7059 = vst [vmem:[#allocation58_spill] sm:$0xff] %v4846_v17  ;;  %v1475_v16 = vmul.f32 %v4846_v17, %v4846_v17 }
 0x17a   :  { %7058 = vst [vmem:[#allocation57_spill] sm:$0xff] %v4834_v25  ;;  %v4854_v9 = vpop.f32.mrf.mxu0 }
 0x17b   :  { %7060 = vst [vmem:[#allocation59_spill] sm:$0xff] %v4854_v9  ;;  %v1478_v48 = vmul.f32 %v4854_v9, %v4854_v9 }
 0x17c   :  { %1960 = vadd.xlane.f32.xlu0 %v1959_v14  ;;  %1963 = vadd.xlane.f32.xlu1 %v1962_v18  ;;  %v1449_v14 = vsel %vm1226_vm1, %v4832_v54, 0.0  ;;  %v1452_v18 = vsel %vm1226_vm1, %v4854_v9, 0.0  ;;  %v4864_v56 = vpop.f32.mrf.mxu0  ;;  %v1483_v9 = vsel %vm1226_vm1, %v1475_v16, 0.0 }
 0x17d   :  { %v4848_v32 = vpop.xlane.xlu0 %1246  ;;  %v4850_v6 = vpop.xlane.xlu1 %1249  ;;  %7061 = vst [vmem:[#allocation60_spill] sm:$0xff] %v4864_v56  ;;  %v1492_v40 = vsel %vm1226_vm1, %v1478_v48, 0.0  ;;  %v1476_v4 = vmul.f32 %v4864_v56, %v4864_v56 }
 0x17f   :  { %v1486_v27 = vsel %vm1226_vm1, %v1476_v4, 0.0 }
 0x180   :  { %1424 = vadd.xlane.f32.xlu0 %v1423_v44  ;;  %1427 = vadd.xlane.f32.xlu1 %v1426_v20  ;;  %v1443_v20 = vsel %vm1226_vm1, %v4846_v17, 0.0  ;;  %v1446_v44 = vsel %vm1226_vm1, %v4864_v56, 0.0 }
 0x181   :  { %v4856_v34 = vpop.xlane.xlu0 %1822  ;;  %v4858_v60 = vpop.xlane.xlu1 %1825 }
 0x184   :  { %1450 = vadd.xlane.f32.xlu0 %v1449_v14  ;;  %1453 = vadd.xlane.f32.xlu1 %v1452_v18  ;;  %v4878_v14 = vpop.f32.mrf.mxu0 }
 0x185   :  { %v4866_v41 = vpop.xlane.xlu0 %1240  ;;  %v4868_v30 = vpop.xlane.xlu1 %1243  ;;  %7062 = vst [vmem:[#allocation61_spill] sm:$0xff] %v4878_v14 }
 0x186   :  { %v4890_v55 = vpop.f32.mrf.mxu0 }
 0x187   :  { %7063 = vst [vmem:[#allocation62_spill] sm:$0xff] %v4890_v55  ;;  %v1455_v59 = vsel %vm1226_vm1, %v4890_v55, 0.0 }
 0x188   :  { %1444 = vadd.xlane.f32.xlu0 %v1443_v20  ;;  %1447 = vadd.xlane.f32.xlu1 %v1446_v44  ;;  %v4898_v43 = vpop.f32.mrf.mxu0 }
 0x189   :  { %v4880_v18 = vpop.xlane.xlu0 %1286  ;;  %v4882_v21 = vpop.xlane.xlu1 %1289  ;;  %7064 = vst [vmem:[#allocation63_spill] sm:$0xff] %v4898_v43 }
 0x18a   :  { %v4908_v51 = vpop.f32.mrf.mxu0 }
 0x18b   :  { %7066 = vst [vmem:[#allocation65_spill] sm:$0xff] %v4908_v51  ;;  %v1458_v46 = vsel %vm1226_vm1, %v4908_v51, 0.0 }
 0x18c   :  { %1490 = vadd.xlane.f32.xlu0 %v1489_v42  ;;  %1493 = vadd.xlane.f32.xlu1 %v1492_v40  ;;  %v1461_v42 = vsel %vm1226_vm1, %v4878_v14, 0.0  ;;  %v1464_v40 = vsel %vm1226_vm1, %v4898_v43, 0.0 }
 0x18d   :  { %v4892_v20 = vpop.xlane.xlu0 %1816  ;;  %v4894_v44 = vpop.xlane.xlu1 %1819 }
 0x190   :  { %1484 = vadd.xlane.f32.xlu0 %v1483_v9  ;;  %1487 = vadd.xlane.f32.xlu1 %v1486_v27  ;;  %v1481_v9 = vmul.f32 %v4878_v14, %v4878_v14  ;;  %v1482_v27 = vmul.f32 %v4898_v43, %v4898_v43  ;;  %v1479_v14 = vmul.f32 %v4890_v55, %v4890_v55 }
 0x191   :  { %v4900_v48 = vpop.xlane.xlu0 %1862  ;;  %v4902_v63 = vpop.xlane.xlu1 %1865  ;;  %v1480_v43 = vmul.f32 %v4908_v51, %v4908_v51 }
 0x192   :  { %7065 = vst [vmem:[#allocation64_spill] sm:$0xff] %v4902_v63  ;;  %v1501_v28 = vsel %vm1226_vm1, %v1481_v9, 0.0  ;;  %v1504_v47 = vsel %vm1226_vm1, %v1482_v27, 0.0  ;;  %v1495_v55 = vsel %vm1226_vm1, %v1479_v14, 0.0 }
 0x193   :  { %v1498_v51 = vsel %vm1226_vm1, %v1480_v43, 0.0 }
 0x194   :  { %1462 = vadd.xlane.f32.xlu0 %v1461_v42  ;;  %1465 = vadd.xlane.f32.xlu1 %v1464_v40  ;;  %v4922_v42 = vpop.f32.mrf.mxu0 }
 0x195   :  { %v4910_v16 = vpop.xlane.xlu0 %1280  ;;  %v4912_v4 = vpop.xlane.xlu1 %1283  ;;  %7067 = vst [vmem:[#allocation66_spill] sm:$0xff] %v4922_v42 }
 0x196   :  { %v4934_v45 = vpop.f32.mrf.mxu0 }
 0x197   :  { %7069 = vst [vmem:[#allocation68_spill] sm:$0xff] %v4934_v45 }
 0x198   :  { %1456 = vadd.xlane.f32.xlu0 %v1455_v59  ;;  %1459 = vadd.xlane.f32.xlu1 %v1458_v46  ;;  %v4944_v56 = vpop.f32.mrf.mxu0 }
 0x199   :  { %v4924_v40 = vpop.xlane.xlu0 %1856  ;;  %v4926_v54 = vpop.xlane.xlu1 %1859  ;;  %7070 = vst [vmem:[#allocation69_spill] sm:$0xff] %v4944_v56  ;;  %v1550_v27 = vmul.f32 %v4944_v56, %v4944_v56 }
 0x19a   :  { %7068 = vst [vmem:[#allocation67_spill] sm:$0xff] %v4926_v54 }
 0x19b   :  { %v1564_v7 = vsel %vm1226_vm1, %v1550_v27, 0.0 }
 0x19c   :  { %1502 = vadd.xlane.f32.xlu0 %v1501_v28  ;;  %1505 = vadd.xlane.f32.xlu1 %v1504_v47  ;;  %v1521_v47 = vsel %vm1226_vm1, %v4922_v42, 0.0 }
 0x19d   :  { %v1307_v46 = vpop.xlane.xlu0 %1306  ;;  %v1310_v59 = vpop.xlane.xlu1 %1309 }
 0x19e   :  { %v4937_v15 = vadd.f32 %v1307_v46, %v4754_v13  ;;  %v4940_v62 = vadd.f32 %v1310_v59, %v4762_v23  ;;  %v1524_v13 = vsel %vm1226_vm1, %v4944_v56, 0.0  ;;  %v4954_v23 = vpop.f32.mrf.mxu0  ;;  %v1515_v46 = vsel %vm1226_vm1, %v4934_v45, 0.0 }
 0x19f   :  { %7072 = vst [vmem:[#allocation71_spill] sm:$0xff] %v4954_v23  ;;  %v1518_v59 = vsel %vm1226_vm1, %v4954_v23, 0.0  ;;  %v1548_v56 = vmul.f32 %v4954_v23, %v4954_v23 }
 0x1a0   :  { %1496 = vadd.xlane.f32.xlu0 %v1495_v55  ;;  %1499 = vadd.xlane.f32.xlu1 %v1498_v51  ;;  %v1549_v51 = vmul.f32 %v4922_v42, %v4922_v42  ;;  %v1547_v42 = vmul.f32 %v4934_v45, %v4934_v45 }
 0x1a1   :  { %v4946_v9 = vpop.xlane.xlu0 %1882  ;;  %v4948_v28 = vpop.xlane.xlu1 %1885 }
 0x1a2   :  { %7071 = vst [vmem:[#allocation70_spill] sm:$0xff] %v4948_v28  ;;  %v1561_v2 = vsel %vm1226_vm1, %v1549_v51, 0.0 }
 0x1a4   :  { %1522 = vadd.xlane.f32.xlu0 %v1521_v47  ;;  %1525 = vadd.xlane.f32.xlu1 %v1524_v13  ;;  %v4969_v47 = vpop.f32.mrf.mxu0 }
 0x1a5   :  { %v4956_v14 = vpop.xlane.xlu0 %1300  ;;  %v1304_v43 = vpop.xlane.xlu1 %1303  ;;  %7073 = vst [vmem:[#allocation72_spill] sm:$0xff] %v4969_v47 }
 0x1a6   :  { %v4959_v55 = vadd.f32 %v1304_v43, %v4836_v24 }
 0x1a8   :  { %1516 = vadd.xlane.f32.xlu0 %v1515_v46  ;;  %1519 = vadd.xlane.f32.xlu1 %v1518_v59  ;;  %v4982_v46 = vpop.f32.mrf.mxu0 }
 0x1a9   :  { %v4971_v13 = vpop.xlane.xlu0 %1346  ;;  %v1350_v24 = vpop.xlane.xlu1 %1349  ;;  %7074 = vst [vmem:[#allocation73_spill] sm:$0xff] %v4982_v46  ;;  %v1527_v45 = vsel %vm1226_vm1, %v4982_v46, 0.0 }
 0x1aa   :  { %v4974_v43 = vadd.f32 %v1350_v24, %v4788_v5  ;;  %v1555_v5 = vsel %vm1226_vm1, %v1547_v42, 0.0  ;;  %v1558_v24 = vsel %vm1226_vm1, %v1548_v56, 0.0  ;;  %v4990_v0 = vpop.f32.mrf.mxu0 }
 0x1ab   :  { %7076 = vst [vmem:[#allocation75_spill] sm:$0xff] %v4990_v0  ;;  %v1554_v49 = vmul.f32 %v4990_v0, %v4990_v0 }
 0x1ac   :  { %1562 = vadd.xlane.f32.xlu0 %v1561_v2  ;;  %1565 = vadd.xlane.f32.xlu1 %v1564_v7  ;;  %v1533_v2 = vsel %vm1226_vm1, %v4969_v47, 0.0  ;;  %v1536_v7 = vsel %vm1226_vm1, %v4990_v0, 0.0  ;;  %v5000_v27 = vpop.f32.mrf.mxu0 }
 0x1ad   :  { %v4984_v59 = vpop.xlane.xlu0 %1876  ;;  %v4986_v3 = vpop.xlane.xlu1 %1879  ;;  %7078 = vst [vmem:[#allocation77_spill] sm:$0xff] %v5000_v27  ;;  %v1530_v17 = vsel %vm1226_vm1, %v5000_v27, 0.0  ;;  %v1576_v37 = vsel %vm1226_vm1, %v1554_v49, 0.0 }
 0x1ae   :  { %7075 = vst [vmem:[#allocation74_spill] sm:$0xff] %v4986_v3 }
 0x1b0   :  { %1556 = vadd.xlane.f32.xlu0 %v1555_v5  ;;  %1559 = vadd.xlane.f32.xlu1 %v1558_v24  ;;  %v1553_v24 = vmul.f32 %v4969_v47, %v4969_v47  ;;  %v1552_v47 = vmul.f32 %v5000_v27, %v5000_v27 }
 0x1b1   :  { %v4992_v23 = vpop.xlane.xlu0 %1922  ;;  %v4994_v51 = vpop.xlane.xlu1 %1925 }
 0x1b2   :  { %7077 = vst [vmem:[#allocation76_spill] sm:$0xff] %v4994_v51  ;;  %v1573_v0 = vsel %vm1226_vm1, %v1553_v24, 0.0  ;;  %v1570_v27 = vsel %vm1226_vm1, %v1552_v47, 0.0 }
 0x1b4   :  { %1534 = vadd.xlane.f32.xlu0 %v1533_v2  ;;  %1537 = vadd.xlane.f32.xlu1 %v1536_v7  ;;  %v5015_v2 = vpop.f32.mrf.mxu0 }
 0x1b5   :  { %v5002_v42 = vpop.xlane.xlu0 %1340  ;;  %v1344_v56 = vpop.xlane.xlu1 %1343  ;;  %7079 = vst [vmem:[#allocation78_spill] sm:$0xff] %v5015_v2 }
 0x1b6   :  { %v5005_v5 = vadd.f32 %v1344_v56, %v4826_v39  ;;  %v1551_v56 = vmul.f32 %v4982_v46, %v4982_v46  ;;  %v5027_v58 = vpop.f32.mrf.mxu0 }
 0x1b7   :  { %7081 = vst [vmem:[#allocation80_spill] sm:$0xff] %v5027_v58 }
 0x1b8   :  { %1528 = vadd.xlane.f32.xlu0 %v1527_v45  ;;  %1531 = vadd.xlane.f32.xlu1 %v1530_v17  ;;  %v1567_v46 = vsel %vm1226_vm1, %v1551_v56, 0.0  ;;  %v5037_v3 = vpop.f32.mrf.mxu0 }
 0x1b9   :  { %v5017_v7 = vpop.xlane.xlu0 %1916  ;;  %v5019_v39 = vpop.xlane.xlu1 %1919  ;;  %7082 = vst [vmem:[#allocation81_spill] sm:$0xff] %v5037_v3 }
 0x1ba   :  { %7080 = vst [vmem:[#allocation79_spill] sm:$0xff] %v5019_v39 }
 0x1bc   :  { %1574 = vadd.xlane.f32.xlu0 %v1573_v0  ;;  %1577 = vadd.xlane.f32.xlu1 %v1576_v37  ;;  %v1593_v37 = vsel %vm1226_vm1, %v5015_v2, 0.0 }
 0x1bd   :  { %v1319_v45 = vpop.xlane.xlu0 %1318  ;;  %v1322_v17 = vpop.xlane.xlu1 %1321 }
 0x1be   :  { %v5030_v50 = vadd.f32 %v1319_v45, %v4848_v32  ;;  %v5033_v28 = vadd.f32 %v1322_v17, %v4850_v6  ;;  %v1596_v32 = vsel %vm1226_vm1, %v5037_v3, 0.0  ;;  %v5047_v6 = vpop.f32.mrf.mxu0  ;;  %v1622_v45 = vmul.f32 %v5037_v3, %v5037_v3 }
 0x1bf   :  { %7083 = vst [vmem:[#allocation82_spill] sm:$0xff] %v5047_v6  ;;  %v1587_v17 = vsel %vm1226_vm1, %v5027_v58, 0.0  ;;  %v1619_v3 = vmul.f32 %v5027_v58, %v5027_v58 }
 0x1c0   :  { %1568 = vadd.xlane.f32.xlu0 %v1567_v46  ;;  %1571 = vadd.xlane.f32.xlu1 %v1570_v27  ;;  %v1621_v27 = vmul.f32 %v5015_v2, %v5015_v2  ;;  %v1620_v2 = vmul.f32 %v5047_v6, %v5047_v6 }
 0x1c1   :  { %v5039_v49 = vpop.xlane.xlu0 %1894  ;;  %v5041_v0 = vpop.xlane.xlu1 %1897 }
 0x1c2   :  { %v1633_v36 = vsel %vm1226_vm1, %v1621_v27, 0.0 }
 0x1c4   :  { %1594 = vadd.xlane.f32.xlu0 %v1593_v37  ;;  %1597 = vadd.xlane.f32.xlu1 %v1596_v32  ;;  %v1590_v37 = vsel %vm1226_vm1, %v5047_v6, 0.0  ;;  %v5063_v32 = vpop.f32.mrf.mxu0 }
 0x1c5   :  { %v1313_v24 = vpop.xlane.xlu0 %1312  ;;  %v1316_v47 = vpop.xlane.xlu1 %1315  ;;  %7084 = vst [vmem:[#allocation83_spill] sm:$0xff] %v5063_v32 }
 0x1c6   :  { %v5050_v56 = vadd.f32 %v1313_v24, %v4866_v41  ;;  %v5053_v46 = vadd.f32 %v1316_v47, %v4868_v30 }
 0x1c8   :  { %1588 = vadd.xlane.f32.xlu0 %v1587_v17  ;;  %1591 = vadd.xlane.f32.xlu1 %v1590_v37  ;;  %v1636_v17 = vsel %vm1226_vm1, %v1622_v45, 0.0  ;;  %v5077_v37 = vpop.f32.mrf.mxu0 }
 0x1c9   :  { %v1359_v41 = vpop.xlane.xlu0 %1358  ;;  %v1362_v24 = vpop.xlane.xlu1 %1361  ;;  %7085 = vst [vmem:[#allocation84_spill] sm:$0xff] %v5077_v37  ;;  %v1599_v29 = vsel %vm1226_vm1, %v5077_v37, 0.0 }
 0x1ca   :  { %v5066_v30 = vadd.f32 %v1359_v41, %v4880_v18  ;;  %v5069_v47 = vadd.f32 %v1362_v24, %v4882_v21  ;;  %v1627_v21 = vsel %vm1226_vm1, %v1619_v3, 0.0  ;;  %v1630_v41 = vsel %vm1226_vm1, %v1620_v2, 0.0  ;;  %v5085_v24 = vpop.f32.mrf.mxu0 }
 0x1cb   :  { %7086 = vst [vmem:[#allocation85_spill] sm:$0xff] %v5085_v24  ;;  %v1608_v45 = vsel %vm1226_vm1, %v5085_v24, 0.0 }
 0x1cc   :  { %1634 = vadd.xlane.f32.xlu0 %v1633_v36  ;;  %1637 = vadd.xlane.f32.xlu1 %v1636_v17  ;;  %v1605_v36 = vsel %vm1226_vm1, %v5063_v32, 0.0  ;;  %v5095_v17 = vpop.f32.mrf.mxu0 }
 0x1cd   :  { %v5079_v63 = vpop.xlane.xlu0 %1888  ;;  %v5081_v18 = vpop.xlane.xlu1 %1891  ;;  %7088 = vst [vmem:[#allocation87_spill] sm:$0xff] %v5095_v17 }
 0x1d0   :  { %1628 = vadd.xlane.f32.xlu0 %v1627_v21  ;;  %1631 = vadd.xlane.f32.xlu1 %v1630_v41  ;;  %v1625_v41 = vmul.f32 %v5063_v32, %v5063_v32 }
 0x1d1   :  { %v5087_v6 = vpop.xlane.xlu0 %1934  ;;  %v5089_v27 = vpop.xlane.xlu1 %1937 }
 0x1d2   :  { %7087 = vst [vmem:[#allocation86_spill] sm:$0xff] %v5089_v27  ;;  %v1626_v27 = vmul.f32 %v5085_v24, %v5085_v24  ;;  %v1645_v32 = vsel %vm1226_vm1, %v1625_v41, 0.0 }
 0x1d4   :  { %1606 = vadd.xlane.f32.xlu0 %v1605_v36  ;;  %1609 = vadd.xlane.f32.xlu1 %v1608_v45  ;;  %v1602_v36 = vsel %vm1226_vm1, %v5095_v17, 0.0  ;;  %v5111_v45 = vpop.f32.mrf.mxu0  ;;  %v1648_v24 = vsel %vm1226_vm1, %v1626_v27, 0.0 }
 0x1d5   :  { %v1353_v3 = vpop.xlane.xlu0 %1352  ;;  %v1356_v2 = vpop.xlane.xlu1 %1355  ;;  %7089 = vst [vmem:[#allocation88_spill] sm:$0xff] %v5111_v45 }
 0x1d6   :  { %v5098_v58 = vadd.f32 %v1353_v3, %v4910_v16  ;;  %v5101_v21 = vadd.f32 %v1356_v2, %v4912_v4  ;;  %v1623_v3 = vmul.f32 %v5077_v37, %v5077_v37  ;;  %v1624_v2 = vmul.f32 %v5095_v17, %v5095_v17  ;;  %v5123_v54 = vpop.f32.mrf.mxu0 }
 0x1d7   :  { %7091 = vst [vmem:[#allocation90_spill] sm:$0xff] %v5123_v54 }
 0x1d8   :  { %1600 = vadd.xlane.f32.xlu0 %v1599_v29  ;;  %1603 = vadd.xlane.f32.xlu1 %v1602_v36  ;;  %v1639_v37 = vsel %vm1226_vm1, %v1623_v3, 0.0  ;;  %v1642_v17 = vsel %vm1226_vm1, %v1624_v2, 0.0  ;;  %v5133_v39 = vpop.f32.mrf.mxu0 }
 0x1d9   :  { %v5113_v16 = vpop.xlane.xlu0 %1928  ;;  %v5115_v4 = vpop.xlane.xlu1 %1931  ;;  %7092 = vst [vmem:[#allocation91_spill] sm:$0xff] %v5133_v39 }
 0x1da   :  { %7090 = vst [vmem:[#allocation89_spill] sm:$0xff] %v5115_v4  ;;  %v5145_v41 = vpop.f32.mrf.mxu0 }
 0x1db   :  { %7094 = vst [vmem:[#allocation93_spill] sm:$0xff] %v5145_v41 }
 0x1dc   :  { %1646 = vadd.xlane.f32.xlu0 %v1645_v32  ;;  %1649 = vadd.xlane.f32.xlu1 %v1648_v24  ;;  %v1665_v24 = vsel %vm1226_vm1, %v5111_v45, 0.0 }
 0x1dd   :  { %v1379_v29 = vpop.xlane.xlu0 %1378  ;;  %v1382_v36 = vpop.xlane.xlu1 %1381 }
 0x1de   :  { %v5126_v51 = vadd.f32 %v1379_v29, %v4937_v15  ;;  %v5129_v4 = vadd.f32 %v1382_v36, %v4940_v62  ;;  %v1668_v15 = vsel %vm1226_vm1, %v5133_v39, 0.0  ;;  %v1323_v62 = vadd.f32 %v4956_v14, %v4760_v22 }
 0x1df   :  { %v1693_v29 = vmul.f32 %v5111_v45, %v5111_v45  ;;  %v1694_v36 = vmul.f32 %v5133_v39, %v5133_v39  ;;  %v1659_v22 = vsel %vm1226_vm1, %v5123_v54, 0.0  ;;  %v1662_v14 = vsel %vm1226_vm1, %v5145_v41, 0.0 }
 0x1e0   :  { %1640 = vadd.xlane.f32.xlu0 %v1639_v37  ;;  %1643 = vadd.xlane.f32.xlu1 %v1642_v17  ;;  %v1691_v39 = vmul.f32 %v5123_v54, %v5123_v54  ;;  %v1692_v45 = vmul.f32 %v5145_v41, %v5145_v41 }
 0x1e1   :  { %v5135_v27 = vpop.xlane.xlu0 %1954  ;;  %v5137_v32 = vpop.xlane.xlu1 %1957 }
 0x1e2   :  { %7093 = vst [vmem:[#allocation92_spill] sm:$0xff] %v5137_v32  ;;  %v1705_v32 = vsel %vm1226_vm1, %v1693_v29, 0.0 }
 0x1e4   :  { %1666 = vadd.xlane.f32.xlu0 %v1665_v24  ;;  %1669 = vadd.xlane.f32.xlu1 %v1668_v15  ;;  %v1365_v24 = vadd.f32 %v4971_v13, %v4774_v35  ;;  %v5162_v15 = vpop.f32.mrf.mxu0  ;;  %v1708_v35 = vsel %vm1226_vm1, %v1694_v36, 0.0 }
 0x1e5   :  { %v1373_v3 = vpop.xlane.xlu0 %1372  ;;  %v1376_v37 = vpop.xlane.xlu1 %1375  ;;  %7095 = vst [vmem:[#allocation94_spill] sm:$0xff] %v5162_v15 }
 0x1e6   :  { %v5147_v17 = vadd.f32 %v1373_v3, %v1323_v62  ;;  %v5150_v2 = vadd.f32 %v1376_v37, %v4959_v55  ;;  %v5175_v13 = vpop.f32.mrf.mxu0 }
 0x1e7   :  { %7096 = vst [vmem:[#allocation95_spill] sm:$0xff] %v5175_v13 }
 0x1e8   :  { %1660 = vadd.xlane.f32.xlu0 %v1659_v22  ;;  %1663 = vadd.xlane.f32.xlu1 %v1662_v14 }
 0x1e9   :  { %v1419_v55 = vpop.xlane.xlu0 %1418  ;;  %v1422_v62 = vpop.xlane.xlu1 %1421 }
 0x1ea   :  { %v5164_v3 = vadd.f32 %v1419_v55, %v1365_v24  ;;  %v5167_v37 = vadd.f32 %v1422_v62, %v4974_v43  ;;  %v1699_v43 = vsel %vm1226_vm1, %v1691_v39, 0.0  ;;  %v1702_v24 = vsel %vm1226_vm1, %v1692_v45, 0.0  ;;  %v5185_v62 = vpop.f32.mrf.mxu0 }
 0x1eb   :  { %v1363_v55 = vadd.f32 %v5002_v42, %v4812_v61  ;;  %7098 = vst [vmem:[#allocation97_spill] sm:$0xff] %v5185_v62  ;;  %v1680_v39 = vsel %vm1226_vm1, %v5185_v62, 0.0 }
 0x1ec   :  { %1706 = vadd.xlane.f32.xlu0 %v1705_v32  ;;  %1709 = vadd.xlane.f32.xlu1 %v1708_v35  ;;  %v1677_v35 = vsel %vm1226_vm1, %v5162_v15, 0.0  ;;  %v5196_v45 = vpop.f32.mrf.mxu0 }
 0x1ed   :  { %v5177_v22 = vpop.xlane.xlu0 %1948  ;;  %v5179_v14 = vpop.xlane.xlu1 %1951  ;;  %7099 = vst [vmem:[#allocation98_spill] sm:$0xff] %v5196_v45 }
 0x1ee   :  { %7097 = vst [vmem:[#allocation96_spill] sm:$0xff] %v5179_v14 }
 0x1f0   :  { %1700 = vadd.xlane.f32.xlu0 %v1699_v43  ;;  %1703 = vadd.xlane.f32.xlu1 %v1702_v24 }
 0x1f1   :  { %v1413_v29 = vpop.xlane.xlu0 %1412  ;;  %v1416_v36 = vpop.xlane.xlu1 %1415 }
 0x1f2   :  { %v5187_v41 = vadd.f32 %v1413_v29, %v1363_v55  ;;  %v5190_v32 = vadd.f32 %v1416_v36, %v5005_v5  ;;  %v1697_v5 = vmul.f32 %v5162_v15, %v5162_v15  ;;  %v1698_v55 = vmul.f32 %v5185_v62, %v5185_v62 }
 0x1f3   :  { %v1671_v29 = vsel %vm1226_vm1, %v5175_v13, 0.0  ;;  %v1674_v36 = vsel %vm1226_vm1, %v5196_v45, 0.0 }
 0x1f4   :  { %1678 = vadd.xlane.f32.xlu0 %v1677_v35  ;;  %1681 = vadd.xlane.f32.xlu1 %v1680_v39  ;;  %v5212_v35 = vpop.f32.mrf.mxu0  ;;  %v1695_v39 = vmul.f32 %v5175_v13, %v5175_v13  ;;  %v1720_v15 = vsel %vm1226_vm1, %v1698_v55, 0.0 }
 0x1f5   :  { %v1391_v61 = vpop.xlane.xlu0 %1390  ;;  %v1394_v42 = vpop.xlane.xlu1 %1393  ;;  %7100 = vst [vmem:[#allocation99_spill] sm:$0xff] %v5212_v35 }
 0x1f6   :  { %v5199_v43 = vadd.f32 %v1391_v61, %v5030_v50  ;;  %v5202_v24 = vadd.f32 %v1394_v42, %v5033_v28  ;;  %v1696_v61 = vmul.f32 %v5196_v45, %v5196_v45  ;;  %v1717_v42 = vsel %vm1226_vm1, %v1697_v5, 0.0  ;;  %v5224_v62 = vpop.f32.mrf.mxu0 }
 0x1f7   :  { %7103 = vst [vmem:[#allocation102_spill] sm:$0xff] %v5224_v62  ;;  %v1711_v13 = vsel %vm1226_vm1, %v1695_v39, 0.0 }
 0x1f8   :  { %1672 = vadd.xlane.f32.xlu0 %v1671_v29  ;;  %1675 = vadd.xlane.f32.xlu1 %v1674_v36  ;;  %v1714_v45 = vsel %vm1226_vm1, %v1696_v61, 0.0  ;;  %v5234_v11 = vpop.f32.mrf.mxu0  ;;  %v1731_v61 = vsel %vm1226_vm1, %v5224_v62, 0.0 }
 0x1f9   :  { %v5214_v50 = vpop.xlane.xlu0 %1966  ;;  %v5216_v28 = vpop.xlane.xlu1 %1969  ;;  %7104 = vst [vmem:[#allocation103_spill] sm:$0xff] %v5234_v11 }
 0x1fa   :  { %7101 = vst [vmem:[#allocation100_spill] sm:$0xff] %v5214_v50  ;;  %7102 = vst [vmem:[#allocation101_spill] sm:$0xff] %v5216_v28  ;;  %v5246_v39 = vpop.f32.mrf.mxu0 }
 0x1fb   :  { %7105 = vst [vmem:[#allocation104_spill] sm:$0xff] %v5246_v39 }
 0x1fc   :  { %1718 = vadd.xlane.f32.xlu0 %v1717_v42  ;;  %1721 = vadd.xlane.f32.xlu1 %v1720_v15 }
 0x1fd   :  { %v1385_v29 = vpop.xlane.xlu0 %1384  ;;  %v1388_v36 = vpop.xlane.xlu1 %1387 }
 0x1fe   :  { %v5227_v54 = vadd.f32 %v1385_v29, %v5050_v56  ;;  %v5230_v14 = vadd.f32 %v1388_v36, %v5053_v46  ;;  %v1737_v56 = vsel %vm1226_vm1, %v5212_v35, 0.0  ;;  %v1740_v46 = vsel %vm1226_vm1, %v5234_v11, 0.0 }
 0x1ff   :  { %v1734_v29 = vsel %vm1226_vm1, %v5246_v39, 0.0 }
 0x200   :  { %1712 = vadd.xlane.f32.xlu0 %v1711_v13  ;;  %1715 = vadd.xlane.f32.xlu1 %v1714_v45 }
 0x201   :  { %v1431_v5 = vpop.xlane.xlu0 %1430  ;;  %v1434_v55 = vpop.xlane.xlu1 %1433 }
 0x202   :  { %v5237_v15 = vadd.f32 %v1431_v5, %v5066_v30  ;;  %v5240_v42 = vadd.f32 %v1434_v55, %v5069_v47  ;;  %v1765_v30 = vmul.f32 %v5212_v35, %v5212_v35  ;;  %v1766_v47 = vmul.f32 %v5234_v11, %v5234_v11  ;;  %v5260_v55 = vpop.f32.mrf.mxu0 }
 0x203   :  { %7106 = vst [vmem:[#allocation105_spill] sm:$0xff] %v5260_v55  ;;  %v1763_v11 = vmul.f32 %v5224_v62, %v5224_v62  ;;  %v1764_v35 = vmul.f32 %v5246_v39, %v5246_v39 }
 0x204   :  { %1738 = vadd.xlane.f32.xlu0 %v1737_v56  ;;  %1741 = vadd.xlane.f32.xlu1 %v1740_v46  ;;  %v1777_v28 = vsel %vm1226_vm1, %v1765_v30, 0.0  ;;  %v5274_v25 = vpop.f32.mrf.mxu0 }
 0x205   :  { %v5248_v13 = vpop.xlane.xlu0 %1960  ;;  %v5250_v45 = vpop.xlane.xlu1 %1963  ;;  %7107 = vst [vmem:[#allocation106_spill] sm:$0xff] %v5274_v25 }
 0x208   :  { %1732 = vadd.xlane.f32.xlu0 %v1731_v61  ;;  %1735 = vadd.xlane.f32.xlu1 %v1734_v29  ;;  %v1780_v61 = vsel %vm1226_vm1, %v1766_v47, 0.0 }
 0x209   :  { %v1425_v36 = vpop.xlane.xlu0 %1424  ;;  %v1428_v5 = vpop.xlane.xlu1 %1427 }
 0x20a   :  { %v5263_v56 = vadd.f32 %v1425_v36, %v5098_v58  ;;  %v5266_v46 = vadd.f32 %v1428_v5, %v5101_v21  ;;  %v1771_v36 = vsel %vm1226_vm1, %v1763_v11, 0.0  ;;  %v1774_v5 = vsel %vm1226_vm1, %v1764_v35, 0.0 }
 0x20b   :  { %v1749_v11 = vsel %vm1226_vm1, %v5260_v55, 0.0 }
 0x20c   :  { %1778 = vadd.xlane.f32.xlu0 %v1777_v28  ;;  %1781 = vadd.xlane.f32.xlu1 %v1780_v61  ;;  %v5284_v28 = vpop.f32.mrf.mxu0 }
 0x20d   :  { %v1451_v29 = vpop.xlane.xlu0 %1450  ;;  %v1454_v50 = vpop.xlane.xlu1 %1453  ;;  %7108 = vst [vmem:[#allocation107_spill] sm:$0xff] %v5284_v28 }
 0x20e   :  { %v5277_v58 = vadd.f32 %v1451_v29, %v5126_v51  ;;  %v5280_v21 = vadd.f32 %v1454_v50, %v5129_v4  ;;  %v1980_v51 = vmul.f32 %v4758_v19, %v4758_v19  ;;  %v1752_v4 = vsel %vm1226_vm1, %v5284_v28, 0.0 }
 0x210   :  { %1772 = vadd.xlane.f32.xlu0 %v1771_v36  ;;  %1775 = vadd.xlane.f32.xlu1 %v1774_v5  ;;  %v1743_v36 = vsel %vm1226_vm1, %v5274_v25, 0.0  ;;  %v1990_v5 = vsel %vm1226_vm1, %v1980_v51, 0.0 }
 0x211   :  { %v1445_v30 = vpop.xlane.xlu0 %1444  ;;  %v1448_v47 = vpop.xlane.xlu1 %1447 }
 0x212   :  { %v5287_v61 = vadd.f32 %v1445_v30, %v5147_v17  ;;  %v5290_v39 = vadd.f32 %v1448_v47, %v5150_v2  ;;  %v1769_v2 = vmul.f32 %v5260_v55, %v5260_v55  ;;  %v5309_v30 = vpop.f32.mrf.mxu0 }
 0x213   :  { %7109 = vst [vmem:[#allocation108_spill] sm:$0xff] %v5309_v30 }
 0x214   :  { %1750 = vadd.xlane.f32.xlu0 %v1749_v11  ;;  %1753 = vadd.xlane.f32.xlu1 %v1752_v4  ;;  %v1767_v4 = vmul.f32 %v5274_v25, %v5274_v25  ;;  %v1789_v51 = vsel %vm1226_vm1, %v1769_v2, 0.0  ;;  %v1768_v2 = vmul.f32 %v5309_v30, %v5309_v30 }
 0x215   :  { %v1491_v35 = vpop.xlane.xlu0 %1490  ;;  %v1494_v50 = vpop.xlane.xlu1 %1493 }
 0x216   :  { %v5299_v29 = vadd.f32 %v1491_v35, %v5164_v3  ;;  %v5302_v17 = vadd.f32 %v1494_v50, %v5167_v37  ;;  %v1770_v35 = vmul.f32 %v5284_v28, %v5284_v28  ;;  %v1746_v50 = vsel %vm1226_vm1, %v5309_v30, 0.0 }
 0x217   :  { %v1783_v55 = vsel %vm1226_vm1, %v1767_v4, 0.0  ;;  %v1982_v4 = vmul.f32 %v4736_v57, %v4736_v57 }
 0x218   :  { %1744 = vadd.xlane.f32.xlu0 %v1743_v36  ;;  %1991 = vadd.xlane.f32.xlu1 %v1990_v5  ;;  %v5324_v36 = vpop.f32.mrf.mxu1 }
 0x219   :  { %v1485_v47 = vpop.xlane.xlu0 %1484  ;;  %v1488_v11 = vpop.xlane.xlu1 %1487  ;;  %7110 = vst [vmem:[#allocation109_spill] sm:$0xff] %v5324_v36 }
 0x21a   :  { %v5312_v3 = vadd.f32 %v1485_v47, %v5187_v41  ;;  %v5315_v37 = vadd.f32 %v1488_v11, %v5190_v32  ;;  %v1979_v11 = vmul.f32 %v4730_v52, %v4730_v52 }
 0x21c   :  { %1790 = vadd.xlane.f32.xlu0 %v1789_v51  ;;  %1747 = vadd.xlane.f32.xlu1 %v1746_v50  ;;  %v1792_v51 = vsel %vm1226_vm1, %v1770_v35, 0.0  ;;  %v5338_v50 = vpop.f32.mrf.mxu1  ;;  %v1987_v35 = vsel %vm1226_vm1, %v1979_v11, 0.0  ;;  %v1984_v11 = vmul.f32 %v4830_v10, %v4830_v10 }
 0x21d   :  { %v1463_v41 = vpop.xlane.xlu0 %1462  ;;  %v1466_v5 = vpop.xlane.xlu1 %1465  ;;  %7111 = vst [vmem:[#allocation110_spill] sm:$0xff] %v5338_v50 }
 0x21e   :  { %v5327_v32 = vadd.f32 %v1463_v41, %v5199_v43  ;;  %v5330_v47 = vadd.f32 %v1466_v5, %v5202_v24  ;;  %v1981_v5 = vmul.f32 %v4722_v38, %v4722_v38 }
 0x220   :  { %1784 = vadd.xlane.f32.xlu0 %v1783_v55  ;;  %1793 = vadd.xlane.f32.xlu1 %v1792_v51  ;;  %v1786_v55 = vsel %vm1226_vm1, %v1768_v2, 0.0  ;;  %v5352_v51 = vpop.f32.mrf.mxu1  ;;  %v1993_v2 = vsel %vm1226_vm1, %v1981_v5, 0.0  ;;  %v1986_v5 = vmul.f32 %v4802_v31, %v4802_v31 }
 0x221   :  { %v1457_v28 = vpop.xlane.xlu0 %1456  ;;  %v1460_v43 = vpop.xlane.xlu1 %1459  ;;  %7112 = vst [vmem:[#allocation111_spill] sm:$0xff] %v5352_v51  ;;  %v2054_v57 = vmul.f32 %v5352_v51, %v5352_v51 }
 0x222   :  { %v5341_v41 = vadd.f32 %v1457_v28, %v5227_v54  ;;  %v5344_v24 = vadd.f32 %v1460_v43, %v5230_v14  ;;  %v1983_v43 = vmul.f32 %v4792_v8, %v4792_v8  ;;  %v2053_v8 = vmul.f32 %v5324_v36, %v5324_v36 }
 0x224   :  { %1988 = vadd.xlane.f32.xlu0 %v1987_v35  ;;  %1787 = vadd.xlane.f32.xlu1 %v1786_v55  ;;  %v1996_v35 = vsel %vm1226_vm1, %v1982_v4, 0.0  ;;  %v5366_v55 = vpop.f32.mrf.mxu1  ;;  %v1999_v4 = vsel %vm1226_vm1, %v1983_v43, 0.0 }
 0x225   :  { %v1503_v30 = vpop.xlane.xlu0 %1502  ;;  %v1506_v54 = vpop.xlane.xlu1 %1505  ;;  %7113 = vst [vmem:[#allocation112_spill] sm:$0xff] %v5366_v55 }
 0x226   :  { %v5355_v28 = vadd.f32 %v1503_v30, %v5237_v15  ;;  %v5358_v14 = vadd.f32 %v1506_v54, %v5240_v42  ;;  %v1985_v54 = vmul.f32 %v4780_v53, %v4780_v53  ;;  %v2008_v53 = vsel %vm1226_vm1, %v1986_v5, 0.0 }
 0x228   :  { %1994 = vadd.xlane.f32.xlu0 %v1993_v2  ;;  %1997 = vadd.xlane.f32.xlu1 %v1996_v35  ;;  %v2002_v2 = vsel %vm1226_vm1, %v1984_v11, 0.0  ;;  %v5380_v35 = vpop.f32.mrf.mxu1 }
 0x229   :  { %v1497_v25 = vpop.xlane.xlu0 %1496  ;;  %v1500_v15 = vpop.xlane.xlu1 %1499  ;;  %7114 = vst [vmem:[#allocation113_spill] sm:$0xff] %v5380_v35 }
 0x22a   :  { %v5369_v30 = vadd.f32 %v1497_v25, %v5263_v56  ;;  %v5372_v42 = vadd.f32 %v1500_v15, %v5266_v46  ;;  %v2005_v15 = vsel %vm1226_vm1, %v1985_v54, 0.0  ;;  %v5390_v31 = vpop.f32.mrf.mxu1 }
 0x22b   :  { %7115 = vst [vmem:[#allocation114_spill] sm:$0xff] %v5390_v31 }
 0x22c   :  { %2000 = vadd.xlane.f32.xlu0 %v1999_v4  ;;  %2003 = vadd.xlane.f32.xlu1 %v2002_v2 }
 0x22d   :  { %v1523_v10 = vpop.xlane.xlu0 %1522  ;;  %v1526_v25 = vpop.xlane.xlu1 %1525 }
 0x22e   :  { %v5383_v56 = vadd.f32 %v1523_v10, %v5277_v58  ;;  %v5386_v46 = vadd.f32 %v1526_v25, %v5280_v21  ;;  %v2019_v10 = vsel %vm1226_vm1, %v5338_v50, 0.0  ;;  %v2022_v58 = vsel %vm1226_vm1, %v5366_v55, 0.0  ;;  %v5402_v21 = vpop.f32.mrf.mxu1 }
 0x22f   :  { %7116 = vst [vmem:[#allocation115_spill] sm:$0xff] %v5402_v21  ;;  %v2028_v25 = vsel %vm1226_vm1, %v5352_v51, 0.0 }
 0x230   :  { %2006 = vadd.xlane.f32.xlu0 %v2005_v15  ;;  %2009 = vadd.xlane.f32.xlu1 %v2008_v53  ;;  %v5414_v15 = vpop.f32.mrf.mxu1 }
 0x231   :  { %v1517_v43 = vpop.xlane.xlu0 %1516  ;;  %v1520_v11 = vpop.xlane.xlu1 %1519  ;;  %7117 = vst [vmem:[#allocation116_spill] sm:$0xff] %v5414_v15 }
 0x232   :  { %v5393_v4 = vadd.f32 %v1517_v43, %v5287_v61  ;;  %v5396_v2 = vadd.f32 %v1520_v11, %v5290_v39  ;;  %v2025_v39 = vsel %vm1226_vm1, %v5324_v36, 0.0 }
 0x234   :  { %2020 = vadd.xlane.f32.xlu0 %v2019_v10  ;;  %2023 = vadd.xlane.f32.xlu1 %v2022_v58  ;;  %v2034_v58 = vsel %vm1226_vm1, %v5414_v15, 0.0 }
 0x235   :  { %v1563_v54 = vpop.xlane.xlu0 %1562  ;;  %v1566_v53 = vpop.xlane.xlu1 %1565 }
 0x236   :  { %v5405_v5 = vadd.f32 %v1563_v54, %v5299_v29  ;;  %v5408_v61 = vadd.f32 %v1566_v53, %v5302_v17  ;;  %v2031_v17 = vsel %vm1226_vm1, %v5390_v31, 0.0  ;;  %v5426_v54 = vpop.f32.mrf.mxu1 }
 0x237   :  { %7118 = vst [vmem:[#allocation117_spill] sm:$0xff] %v5426_v54 }
 0x238   :  { %2026 = vadd.xlane.f32.xlu0 %v2025_v39  ;;  %2029 = vadd.xlane.f32.xlu1 %v2028_v25 }
 0x239   :  { %v1557_v43 = vpop.xlane.xlu0 %1556  ;;  %v1560_v11 = vpop.xlane.xlu1 %1559 }
 0x23a   :  { %v5417_v10 = vadd.f32 %v1557_v43, %v5312_v3  ;;  %v5420_v29 = vadd.f32 %v1560_v11, %v5315_v37  ;;  %v2051_v37 = vmul.f32 %v5338_v50, %v5338_v50  ;;  %v2052_v43 = vmul.f32 %v5366_v55, %v5366_v55 }
 0x23b   :  { %v2037_v11 = vsel %vm1226_vm1, %v5380_v35, 0.0 }
 0x23c   :  { %2032 = vadd.xlane.f32.xlu0 %v2031_v17  ;;  %2035 = vadd.xlane.f32.xlu1 %v2034_v58  ;;  %v2040_v17 = vsel %vm1226_vm1, %v5402_v21, 0.0  ;;  %v5442_v58 = vpop.f32.mrf.mxu1  ;;  %v2059_v38 = vsel %vm1226_vm1, %v2051_v37, 0.0  ;;  %v2056_v37 = vmul.f32 %v5414_v15, %v5414_v15 }
 0x23d   :  { %v1535_v53 = vpop.xlane.xlu0 %1534  ;;  %v1538_v39 = vpop.xlane.xlu1 %1537  ;;  %7119 = vst [vmem:[#allocation118_spill] sm:$0xff] %v5442_v58 }
 0x23e   :  { %v5429_v25 = vadd.f32 %v1535_v53, %v5327_v32  ;;  %v5432_v3 = vadd.f32 %v1538_v39, %v5330_v47 }
 0x240   :  { %2038 = vadd.xlane.f32.xlu0 %v2037_v11  ;;  %2041 = vadd.xlane.f32.xlu1 %v2040_v17  ;;  %v2062_v11 = vsel %vm1226_vm1, %v2052_v43, 0.0  ;;  %v5456_v17 = vpop.f32.mrf.mxu1  ;;  %v2065_v43 = vsel %vm1226_vm1, %v2053_v8, 0.0  ;;  %v2058_v8 = vmul.f32 %v5402_v21, %v5402_v21 }
 0x241   :  { %v1529_v32 = vpop.xlane.xlu0 %1528  ;;  %v1532_v53 = vpop.xlane.xlu1 %1531  ;;  %7120 = vst [vmem:[#allocation119_spill] sm:$0xff] %v5456_v17  ;;  %v2126_v36 = vmul.f32 %v5456_v17, %v5456_v17 }
 0x242   :  { %v5445_v47 = vadd.f32 %v1529_v32, %v5341_v41  ;;  %v5448_v39 = vadd.f32 %v1532_v53, %v5344_v24  ;;  %v2055_v53 = vmul.f32 %v5390_v31, %v5390_v31  ;;  %v2125_v31 = vmul.f32 %v5426_v54, %v5426_v54 }
 0x244   :  { %2060 = vadd.xlane.f32.xlu0 %v2059_v38  ;;  %2063 = vadd.xlane.f32.xlu1 %v2062_v11  ;;  %v2068_v38 = vsel %vm1226_vm1, %v2054_v57, 0.0  ;;  %v5470_v11 = vpop.f32.mrf.mxu1  ;;  %v2071_v57 = vsel %vm1226_vm1, %v2055_v53, 0.0 }
 0x245   :  { %v1575_v55 = vpop.xlane.xlu0 %1574  ;;  %v1578_v41 = vpop.xlane.xlu1 %1577  ;;  %7121 = vst [vmem:[#allocation120_spill] sm:$0xff] %v5470_v11 }
 0x246   :  { %v5459_v32 = vadd.f32 %v1575_v55, %v5355_v28  ;;  %v5462_v24 = vadd.f32 %v1578_v41, %v5358_v14  ;;  %v2057_v41 = vmul.f32 %v5380_v35, %v5380_v35  ;;  %v2080_v35 = vsel %vm1226_vm1, %v2058_v8, 0.0 }
 0x248   :  { %2066 = vadd.xlane.f32.xlu0 %v2065_v43  ;;  %2069 = vadd.xlane.f32.xlu1 %v2068_v38  ;;  %v2074_v43 = vsel %vm1226_vm1, %v2056_v37, 0.0  ;;  %v5484_v38 = vpop.f32.mrf.mxu1 }
 0x249   :  { %v1569_v51 = vpop.xlane.xlu0 %1568  ;;  %v1572_v28 = vpop.xlane.xlu1 %1571  ;;  %7122 = vst [vmem:[#allocation121_spill] sm:$0xff] %v5484_v38 }
 0x24a   :  { %v5473_v55 = vadd.f32 %v1569_v51, %v5369_v30  ;;  %v5476_v14 = vadd.f32 %v1572_v28, %v5372_v42  ;;  %v2077_v28 = vsel %vm1226_vm1, %v2057_v41, 0.0  ;;  %v5494_v21 = vpop.f32.mrf.mxu1 }
 0x24b   :  { %7123 = vst [vmem:[#allocation122_spill] sm:$0xff] %v5494_v21 }
 0x24c   :  { %2072 = vadd.xlane.f32.xlu0 %v2071_v57  ;;  %2075 = vadd.xlane.f32.xlu1 %v2074_v43 }
 0x24d   :  { %v1595_v15 = vpop.xlane.xlu0 %1594  ;;  %v1598_v51 = vpop.xlane.xlu1 %1597 }
 0x24e   :  { %v5487_v30 = vadd.f32 %v1595_v15, %v5383_v56  ;;  %v5490_v42 = vadd.f32 %v1598_v51, %v5386_v46  ;;  %v2091_v56 = vsel %vm1226_vm1, %v5442_v58, 0.0  ;;  %v2094_v46 = vsel %vm1226_vm1, %v5470_v11, 0.0  ;;  %v5506_v15 = vpop.f32.mrf.mxu1 }
 0x24f   :  { %7124 = vst [vmem:[#allocation123_spill] sm:$0xff] %v5506_v15  ;;  %v2100_v51 = vsel %vm1226_vm1, %v5456_v17, 0.0 }
 0x250   :  { %2078 = vadd.xlane.f32.xlu0 %v2077_v28  ;;  %2081 = vadd.xlane.f32.xlu1 %v2080_v35  ;;  %v5518_v28 = vpop.f32.mrf.mxu1 }
 0x251   :  { %v1589_v53 = vpop.xlane.xlu0 %1588  ;;  %v1592_v37 = vpop.xlane.xlu1 %1591  ;;  %7125 = vst [vmem:[#allocation124_spill] sm:$0xff] %v5518_v28 }
 0x252   :  { %v5497_v57 = vadd.f32 %v1589_v53, %v5393_v4  ;;  %v5500_v43 = vadd.f32 %v1592_v37, %v5396_v2  ;;  %v2097_v2 = vsel %vm1226_vm1, %v5426_v54, 0.0 }
 0x254   :  { %2092 = vadd.xlane.f32.xlu0 %v2091_v56  ;;  %2095 = vadd.xlane.f32.xlu1 %v2094_v46  ;;  %v2106_v46 = vsel %vm1226_vm1, %v5518_v28, 0.0 }
 0x255   :  { %v1635_v41 = vpop.xlane.xlu0 %1634  ;;  %v1638_v35 = vpop.xlane.xlu1 %1637 }
 0x256   :  { %v5509_v8 = vadd.f32 %v1635_v41, %v5405_v5  ;;  %v5512_v4 = vadd.f32 %v1638_v35, %v5408_v61  ;;  %v2103_v61 = vsel %vm1226_vm1, %v5494_v21, 0.0  ;;  %v5530_v41 = vpop.f32.mrf.mxu1 }
 0x257   :  { %7126 = vst [vmem:[#allocation125_spill] sm:$0xff] %v5530_v41 }
 0x258   :  { %2098 = vadd.xlane.f32.xlu0 %v2097_v2  ;;  %2101 = vadd.xlane.f32.xlu1 %v2100_v51 }
 0x259   :  { %v1629_v53 = vpop.xlane.xlu0 %1628  ;;  %v1632_v37 = vpop.xlane.xlu1 %1631 }
 0x25a   :  { %v5521_v56 = vadd.f32 %v1629_v53, %v5417_v10  ;;  %v5524_v5 = vadd.f32 %v1632_v37, %v5420_v29  ;;  %v2123_v29 = vmul.f32 %v5442_v58, %v5442_v58  ;;  %v2124_v53 = vmul.f32 %v5470_v11, %v5470_v11 }
 0x25b   :  { %v2109_v37 = vsel %vm1226_vm1, %v5484_v38, 0.0 }
 0x25c   :  { %2104 = vadd.xlane.f32.xlu0 %v2103_v61  ;;  %2107 = vadd.xlane.f32.xlu1 %v2106_v46  ;;  %v2112_v61 = vsel %vm1226_vm1, %v5506_v15, 0.0  ;;  %v5546_v46 = vpop.f32.mrf.mxu1  ;;  %v2131_v11 = vsel %vm1226_vm1, %v2123_v29, 0.0  ;;  %v2128_v29 = vmul.f32 %v5518_v28, %v5518_v28 }
 0x25d   :  { %v1607_v35 = vpop.xlane.xlu0 %1606  ;;  %v1610_v2 = vpop.xlane.xlu1 %1609  ;;  %7127 = vst [vmem:[#allocation126_spill] sm:$0xff] %v5546_v46 }
 0x25e   :  { %v5533_v51 = vadd.f32 %v1607_v35, %v5429_v25  ;;  %v5536_v10 = vadd.f32 %v1610_v2, %v5432_v3 }
 0x260   :  { %2110 = vadd.xlane.f32.xlu0 %v2109_v37  ;;  %2113 = vadd.xlane.f32.xlu1 %v2112_v61  ;;  %v2134_v37 = vsel %vm1226_vm1, %v2124_v53, 0.0  ;;  %v5560_v61 = vpop.f32.mrf.mxu1  ;;  %v2137_v53 = vsel %vm1226_vm1, %v2125_v31, 0.0  ;;  %v2130_v31 = vmul.f32 %v5506_v15, %v5506_v15 }
 0x261   :  { %v1601_v25 = vpop.xlane.xlu0 %1600  ;;  %v1604_v35 = vpop.xlane.xlu1 %1603  ;;  %7128 = vst [vmem:[#allocation127_spill] sm:$0xff] %v5560_v61  ;;  %v2198_v54 = vmul.f32 %v5560_v61, %v5560_v61 }
 0x262   :  { %v5549_v3 = vadd.f32 %v1601_v25, %v5445_v47  ;;  %v5552_v2 = vadd.f32 %v1604_v35, %v5448_v39  ;;  %v2127_v35 = vmul.f32 %v5494_v21, %v5494_v21  ;;  %v2197_v21 = vmul.f32 %v5530_v41, %v5530_v41 }
 0x264   :  { %2132 = vadd.xlane.f32.xlu0 %v2131_v11  ;;  %2135 = vadd.xlane.f32.xlu1 %v2134_v37  ;;  %v2140_v11 = vsel %vm1226_vm1, %v2126_v36, 0.0  ;;  %v5574_v37 = vpop.f32.mrf.mxu1  ;;  %v2143_v36 = vsel %vm1226_vm1, %v2127_v35, 0.0 }
 0x265   :  { %v1647_v19 = vpop.xlane.xlu0 %1646  ;;  %v1650_v47 = vpop.xlane.xlu1 %1649  ;;  %7129 = vst [vmem:[#allocation128_spill] sm:$0xff] %v5574_v37 }
 0x266   :  { %v5563_v25 = vadd.f32 %v1647_v19, %v5459_v32  ;;  %v5566_v39 = vadd.f32 %v1650_v47, %v5462_v24  ;;  %v2129_v47 = vmul.f32 %v5484_v38, %v5484_v38  ;;  %v2152_v38 = vsel %vm1226_vm1, %v2130_v31, 0.0 }
 0x268   :  { %2138 = vadd.xlane.f32.xlu0 %v2137_v53  ;;  %2141 = vadd.xlane.f32.xlu1 %v2140_v11  ;;  %v2146_v53 = vsel %vm1226_vm1, %v2128_v29, 0.0  ;;  %v5588_v11 = vpop.f32.mrf.mxu1 }
 0x269   :  { %v1641_v17 = vpop.xlane.xlu0 %1640  ;;  %v1644_v19 = vpop.xlane.xlu1 %1643  ;;  %7130 = vst [vmem:[#allocation129_spill] sm:$0xff] %v5588_v11 }
 0x26a   :  { %v5577_v32 = vadd.f32 %v1641_v17, %v5473_v55  ;;  %v5580_v24 = vadd.f32 %v1644_v19, %v5476_v14  ;;  %v2149_v19 = vsel %vm1226_vm1, %v2129_v47, 0.0  ;;  %v5598_v15 = vpop.f32.mrf.mxu1 }
 0x26b   :  { %7131 = vst [vmem:[#allocation130_spill] sm:$0xff] %v5598_v15 }
 0x26c   :  { %2144 = vadd.xlane.f32.xlu0 %v2143_v36  ;;  %2147 = vadd.xlane.f32.xlu1 %v2146_v53 }
 0x26d   :  { %v1667_v28 = vpop.xlane.xlu0 %1666  ;;  %v1670_v17 = vpop.xlane.xlu1 %1669 }
 0x26e   :  { %v5591_v55 = vadd.f32 %v1667_v28, %v5487_v30  ;;  %v5594_v14 = vadd.f32 %v1670_v17, %v5490_v42  ;;  %v2163_v30 = vsel %vm1226_vm1, %v5546_v46, 0.0  ;;  %v2166_v42 = vsel %vm1226_vm1, %v5574_v37, 0.0  ;;  %v5610_v28 = vpop.f32.mrf.mxu1 }
 0x26f   :  { %7132 = vst [vmem:[#allocation131_spill] sm:$0xff] %v5610_v28  ;;  %v2172_v17 = vsel %vm1226_vm1, %v5560_v61, 0.0 }
 0x270   :  { %2150 = vadd.xlane.f32.xlu0 %v2149_v19  ;;  %2153 = vadd.xlane.f32.xlu1 %v2152_v38  ;;  %v5622_v19 = vpop.f32.mrf.mxu1 }
 0x271   :  { %v1661_v35 = vpop.xlane.xlu0 %1660  ;;  %v1664_v29 = vpop.xlane.xlu1 %1663  ;;  %7133 = vst [vmem:[#allocation132_spill] sm:$0xff] %v5622_v19 }
 0x272   :  { %v5601_v36 = vadd.f32 %v1661_v35, %v5497_v57  ;;  %v5604_v53 = vadd.f32 %v1664_v29, %v5500_v43  ;;  %v2169_v43 = vsel %vm1226_vm1, %v5530_v41, 0.0 }
 0x274   :  { %2164 = vadd.xlane.f32.xlu0 %v2163_v30  ;;  %2167 = vadd.xlane.f32.xlu1 %v2166_v42  ;;  %v2178_v42 = vsel %vm1226_vm1, %v5622_v19, 0.0 }
 0x275   :  { %v1707_v47 = vpop.xlane.xlu0 %1706  ;;  %v1710_v38 = vpop.xlane.xlu1 %1709 }
 0x276   :  { %v5613_v31 = vadd.f32 %v1707_v47, %v5509_v8  ;;  %v5616_v57 = vadd.f32 %v1710_v38, %v5512_v4  ;;  %v2175_v4 = vsel %vm1226_vm1, %v5598_v15, 0.0  ;;  %v5634_v47 = vpop.f32.mrf.mxu1 }
 0x277   :  { %7134 = vst [vmem:[#allocation133_spill] sm:$0xff] %v5634_v47  ;;  %v2269_v58 = vmul.f32 %v5634_v47, %v5634_v47 }
 0x278   :  { %2170 = vadd.xlane.f32.xlu0 %v2169_v43  ;;  %2173 = vadd.xlane.f32.xlu1 %v2172_v17 }
 0x279   :  { %v1701_v35 = vpop.xlane.xlu0 %1700  ;;  %v1704_v29 = vpop.xlane.xlu1 %1703 }
 0x27a   :  { %v5625_v30 = vadd.f32 %v1701_v35, %v5521_v56  ;;  %v5628_v8 = vadd.f32 %v1704_v29, %v5524_v5  ;;  %v2195_v5 = vmul.f32 %v5546_v46, %v5546_v46  ;;  %v2196_v35 = vmul.f32 %v5574_v37, %v5574_v37 }
 0x27b   :  { %v2181_v29 = vsel %vm1226_vm1, %v5588_v11, 0.0 }
 0x27c   :  { %2176 = vadd.xlane.f32.xlu0 %v2175_v4  ;;  %2179 = vadd.xlane.f32.xlu1 %v2178_v42  ;;  %v2184_v4 = vsel %vm1226_vm1, %v5610_v28, 0.0  ;;  %v5650_v42 = vpop.f32.mrf.mxu1  ;;  %v2203_v37 = vsel %vm1226_vm1, %v2195_v5, 0.0  ;;  %v2200_v5 = vmul.f32 %v5622_v19, %v5622_v19 }
 0x27d   :  { %v1679_v38 = vpop.xlane.xlu0 %1678  ;;  %v1682_v43 = vpop.xlane.xlu1 %1681  ;;  %7135 = vst [vmem:[#allocation134_spill] sm:$0xff] %v5650_v42 }
 0x27e   :  { %v5637_v17 = vadd.f32 %v1679_v38, %v5533_v51  ;;  %v5640_v56 = vadd.f32 %v1682_v43, %v5536_v10 }
 0x280   :  { %2182 = vadd.xlane.f32.xlu0 %v2181_v29  ;;  %2185 = vadd.xlane.f32.xlu1 %v2184_v4  ;;  %v2206_v29 = vsel %vm1226_vm1, %v2196_v35, 0.0  ;;  %v5664_v4 = vpop.f32.mrf.mxu1  ;;  %v2209_v35 = vsel %vm1226_vm1, %v2197_v21, 0.0  ;;  %v2202_v21 = vmul.f32 %v5610_v28, %v5610_v28 }
 0x281   :  { %v1673_v51 = vpop.xlane.xlu0 %1672  ;;  %v1676_v38 = vpop.xlane.xlu1 %1675  ;;  %7136 = vst [vmem:[#allocation135_spill] sm:$0xff] %v5664_v4 }
 0x282   :  { %v5653_v10 = vadd.f32 %v1673_v51, %v5549_v3  ;;  %v5656_v43 = vadd.f32 %v1676_v38, %v5552_v2  ;;  %v2199_v38 = vmul.f32 %v5598_v15, %v5598_v15 }
 0x284   :  { %2204 = vadd.xlane.f32.xlu0 %v2203_v37  ;;  %2207 = vadd.xlane.f32.xlu1 %v2206_v29  ;;  %v2212_v37 = vsel %vm1226_vm1, %v2198_v54, 0.0  ;;  %v5678_v29 = vpop.f32.mrf.mxu1  ;;  %v2215_v54 = vsel %vm1226_vm1, %v2199_v38, 0.0 }
 0x285   :  { %v1719_v46 = vpop.xlane.xlu0 %1718  ;;  %v1722_v3 = vpop.xlane.xlu1 %1721  ;;  %7137 = vst [vmem:[#allocation136_spill] sm:$0xff] %v5678_v29 }
 0x286   :  { %v5667_v51 = vadd.f32 %v1719_v46, %v5563_v25  ;;  %v5670_v2 = vadd.f32 %v1722_v3, %v5566_v39  ;;  %v2201_v3 = vmul.f32 %v5588_v11, %v5588_v11  ;;  %v2224_v11 = vsel %vm1226_vm1, %v2202_v21, 0.0 }
 0x288   :  { %2210 = vadd.xlane.f32.xlu0 %v2209_v35  ;;  %2213 = vadd.xlane.f32.xlu1 %v2212_v37  ;;  %v2218_v35 = vsel %vm1226_vm1, %v2200_v5, 0.0  ;;  %v5692_v37 = vpop.f32.mrf.mxu1 }
 0x289   :  { %v1713_v61 = vpop.xlane.xlu0 %1712  ;;  %v1716_v46 = vpop.xlane.xlu1 %1715  ;;  %7138 = vst [vmem:[#allocation137_spill] sm:$0xff] %v5692_v37 }
 0x28a   :  { %v5681_v25 = vadd.f32 %v1713_v61, %v5577_v32  ;;  %v5684_v39 = vadd.f32 %v1716_v46, %v5580_v24  ;;  %v2221_v46 = vsel %vm1226_vm1, %v2201_v3, 0.0  ;;  %v5702_v28 = vpop.f32.mrf.mxu1 }
 0x28b   :  { %7140 = vst [vmem:[#allocation139_spill] sm:$0xff] %v5702_v28 }
 0x28c   :  { %2216 = vadd.xlane.f32.xlu0 %v2215_v54  ;;  %2219 = vadd.xlane.f32.xlu1 %v2218_v35 }
 0x28d   :  { %v1739_v19 = vpop.xlane.xlu0 %1738  ;;  %v1742_v61 = vpop.xlane.xlu1 %1741 }
 0x28e   :  { %v5695_v32 = vadd.f32 %v1739_v19, %v5591_v55  ;;  %v5698_v24 = vadd.f32 %v1742_v61, %v5594_v14  ;;  %v2235_v55 = vsel %vm1226_vm1, %v5650_v42, 0.0  ;;  %v2238_v14 = vsel %vm1226_vm1, %v5678_v29, 0.0  ;;  %v5714_v19 = vpop.f32.mrf.mxu1 }
 0x28f   :  { %7142 = vst [vmem:[#allocation141_spill] sm:$0xff] %v5714_v19  ;;  %v2244_v61 = vsel %vm1226_vm1, %v5664_v4, 0.0  ;;  %v2256_v15 = vsel %vm1226_vm1, %v5714_v19, 0.0 }
 0x290   :  { %7139 = vst [vmem:[#allocation138_spill] sm:$0xff] %v5698_v24  ;;  %2222 = vadd.xlane.f32.xlu0 %v2221_v46  ;;  %2225 = vadd.xlane.f32.xlu1 %v2224_v11  ;;  %v5724_v46 = vpop.f32.mrf.mxu1  ;;  %v2271_v24 = vmul.f32 %v5702_v28, %v5702_v28 }
 0x291   :  { %v1733_v38 = vpop.xlane.xlu0 %1732  ;;  %v1736_v5 = vpop.xlane.xlu1 %1735  ;;  %7143 = vst [vmem:[#allocation142_spill] sm:$0xff] %v5724_v46 }
 0x292   :  { %v5705_v54 = vadd.f32 %v1733_v38, %v5601_v36  ;;  %v5708_v35 = vadd.f32 %v1736_v5, %v5604_v53  ;;  %v2241_v53 = vsel %vm1226_vm1, %v5634_v47, 0.0  ;;  %v2272_v47 = vmul.f32 %v5724_v46, %v5724_v46 }
 0x294   :  { %7141 = vst [vmem:[#allocation140_spill] sm:$0xff] %v5708_v35  ;;  %2236 = vadd.xlane.f32.xlu0 %v2235_v55  ;;  %2239 = vadd.xlane.f32.xlu1 %v2238_v14  ;;  %v2247_v55 = vsel %vm1226_vm1, %v5702_v28, 0.0  ;;  %v2274_v28 = vmul.f32 %v5714_v19, %v5714_v19 }
 0x295   :  { %v1779_v3 = vpop.xlane.xlu0 %1778  ;;  %v1782_v11 = vpop.xlane.xlu1 %1781 }
 0x296   :  { %v1797_v21 = vadd.f32 %v1779_v3, %v5613_v31  ;;  %v5718_v36 = vadd.f32 %v1782_v11, %v5616_v57  ;;  %v2250_v31 = vsel %vm1226_vm1, %v5724_v46, 0.0  ;;  %v5732_v57 = vpop.f32.mrf.mxu1  ;;  %v2267_v11 = vmul.f32 %v5650_v42, %v5650_v42 }
 0x297   :  { %v2270_v42 = vmul.f32 %v5664_v4, %v5664_v4  ;;  %v2281_v4 = vsel %vm1226_vm1, %v2269_v58, 0.0  ;;  %v2287_v46 = vsel %vm1226_vm1, %v2271_v24, 0.0  ;;  %v2290_v58 = vsel %vm1226_vm1, %v2272_v47, 0.0 }
 0x298   :  { %2242 = vadd.xlane.f32.xlu0 %v2241_v53  ;;  %2245 = vadd.xlane.f32.xlu1 %v2244_v61  ;;  %v2268_v53 = vmul.f32 %v5678_v29, %v5678_v29  ;;  %v2253_v61 = vsel %vm1226_vm1, %v5692_v37, 0.0  ;;  %v2275_v29 = vsel %vm1226_vm1, %v2267_v11, 0.0  ;;  %v2296_v24 = vsel %vm1226_vm1, %v2274_v28, 0.0 }
 0x299   :  { %v1773_v38 = vpop.xlane.xlu0 %1772  ;;  %v5726_v5 = vpop.xlane.xlu1 %1775  ;;  %v2284_v11 = vsel %vm1226_vm1, %v2270_v42, 0.0  ;;  %v1869_v42 = vadd.f32 %v4798_v26, %v1797_v21 }
 0x29a   :  { %v2278_v50 = vsel %vm1226_vm1, %v2268_v53, 0.0  ;;  %v1795_v52 = vadd.f32 %v1773_v38, %v5625_v30  ;;  %v2273_v38 = vmul.f32 %v5692_v37, %v5692_v37 }
 0x29c   :  { %2248 = vadd.xlane.f32.xlu0 %v2247_v55  ;;  %2251 = vadd.xlane.f32.xlu1 %v2250_v31  ;;  %v5746_v55 = vpop.f32.mrf.mxu1  ;;  %v1867_v53 = vadd.f32 %v4824_v33, %v1795_v52  ;;  %v2293_v19 = vsel %vm1226_vm1, %v2273_v38, 0.0 }
 0x29d   :  { %v5734_v14 = vpop.xlane.xlu0 %1750  ;;  %v5736_v3 = vpop.xlane.xlu1 %1753  ;;  %v2307_v28 = vsel %vm1226_vm1, %v5746_v55, 0.0 }
 0x29e   :  { %v1939_v33 = vadd.f32 %v5017_v7, %v1867_v53  ;;  %v1941_v7 = vadd.f32 %v4992_v23, %v1869_v42 }
 0x2a0   :  { %2254 = vadd.xlane.f32.xlu0 %v2253_v61  ;;  %2257 = vadd.xlane.f32.xlu1 %v2256_v15  ;;  %v5757_v15 = vpop.f32.mrf.mxu1 }
 0x2a1   :  { %v1745_v31 = vpop.xlane.xlu0 %1744  ;;  %v5748_v41 = vpop.xlane.xlu1 %1991 }
 0x2a2   :  { %v5766_v30 = vpop.f32.mrf.mxu1 }
 0x2a4   :  { %2276 = vadd.xlane.f32.xlu0 %v2275_v29  ;;  %2279 = vadd.xlane.f32.xlu1 %v2278_v50 }
 0x2a5   :  { %v1791_v61 = vpop.xlane.xlu0 %1790  ;;  %v1748_v62 = vpop.xlane.xlu1 %1747 }
 0x2a6   :  { %v1801_v47 = vadd.f32 %v1791_v61, %v5667_v51 }
 0x2a8   :  { %2282 = vadd.xlane.f32.xlu0 %v2281_v4  ;;  %2285 = vadd.xlane.f32.xlu1 %v2284_v11  ;;  %v5779_v4 = vpop.f32.mrf.mxu1  ;;  %v1873_v51 = vadd.f32 %v4900_v48, %v1801_v47  ;;  %v2316_v48 = vsel %vm1226_vm1, %v5757_v15, 0.0 }
 0x2a9   :  { %v1785_v50 = vpop.xlane.xlu0 %1784  ;;  %v5768_v29 = vpop.xlane.xlu1 %1793  ;;  %7144 = vst [vmem:[#allocation143_spill] sm:$0xff] %v5779_v4 }
 0x2aa   :  { %v1799_v52 = vadd.f32 %v1785_v50, %v5681_v25  ;;  %v5789_v25 = vpop.f32.mrf.mxu1  ;;  %v1827_v50 = vadd.f32 %v4786_v1, %v5705_v54  ;;  %v1829_v1 = vadd.f32 %v4752_v12, %v5695_v32  ;;  %v2313_v54 = vsel %vm1226_vm1, %v5732_v57, 0.0 }
 0x2ab   :  { %7145 = vst [vmem:[#allocation144_spill] sm:$0xff] %v5789_v25  ;;  %v2319_v47 = vsel %vm1226_vm1, %v5789_v25, 0.0 }
 0x2ac   :  { %2288 = vadd.xlane.f32.xlu0 %v2287_v46  ;;  %2291 = vadd.xlane.f32.xlu1 %v2290_v58  ;;  %v1871_v26 = vadd.f32 %v4924_v40, %v1799_v52  ;;  %v2310_v40 = vsel %vm1226_vm1, %v5766_v30, 0.0  ;;  %v1899_v42 = vadd.f32 %v4984_v59, %v1827_v50  ;;  %v1759_v52 = vadd.f32 %v1745_v31, %v5653_v10 }
 0x2ad   :  { %v1989_v11 = vpop.xlane.xlu0 %1988  ;;  %v5781_v35 = vpop.xlane.xlu1 %1787  ;;  %v1761_v59 = vadd.f32 %v5734_v14, %v5637_v17  ;;  %v2339_v17 = vmul.f32 %v5746_v55, %v5746_v55 }
 0x2ae   :  { %v5783_v37 = vadd.f32 %v1989_v11, %v1939_v33  ;;  %v1943_v23 = vadd.f32 %v5113_v16, %v1871_v26  ;;  %v1760_v16 = vadd.f32 %v1748_v62, %v5656_v43  ;;  %v1945_v11 = vadd.f32 %v5087_v6, %v1873_v51 }
 0x2af   :  { %v1971_v10 = vadd.f32 %v5177_v22, %v1899_v42  ;;  %v1901_v43 = vadd.f32 %v4946_v9, %v1829_v1  ;;  %v1762_v6 = vadd.f32 %v5736_v3, %v5640_v56  ;;  %v1831_v31 = vadd.f32 %v4892_v20, %v1759_v52  ;;  %v7148_v42 = vld [vmem:[#allocation57_spill] sm:$0xff] }
 0x2b0   :  { %2294 = vadd.xlane.f32.xlu0 %v2293_v19  ;;  %2297 = vadd.xlane.f32.xlu1 %v2296_v24  ;;  %v5803_v19 = vpop.f32.mrf.mxu1  ;;  %v1832_v26 = vadd.f32 %v4894_v44, %v1760_v16  ;;  %v2340_v22 = vmul.f32 %v5766_v30, %v5766_v30  ;;  %v1833_v9 = vadd.f32 %v4856_v34, %v1761_v59  ;;  %v2325_v20 = vsel %vm1226_vm1, %v5779_v4, 0.0  ;;  %v7150_v59 = vld [vmem:[#allocation101_spill] sm:$0xff] }
 0x2b1   :  { %v1995_v21 = vpop.xlane.xlu0 %1994  ;;  %v5792_v46 = vpop.xlane.xlu1 %1997  ;;  %7146 = vst [vmem:[#allocation145_spill] sm:$0xff] %v5803_v19  ;;  %v2328_v44 = vsel %vm1226_vm1, %v5803_v19, 0.0  ;;  %v1973_v56 = vadd.f32 %v5135_v27, %v1901_v43  ;;  %v1834_v3 = vadd.f32 %v4858_v60, %v1762_v6  ;;  %v1903_v50 = vadd.f32 %v5079_v63, %v1831_v31 }
 0x2b2   :  { %v5794_v53 = vadd.f32 %v1995_v21, %v1941_v7  ;;  %v5819_v33 = vpop.f32.mrf.mxu1  ;;  %v1796_v34 = vadd.f32 %v5726_v5, %v5628_v8  ;;  %v2342_v60 = vmul.f32 %v5757_v15, %v5757_v15  ;;  %v2347_v27 = vsel %vm1226_vm1, %v2339_v17, 0.0 }
 0x2b3   :  { %7147 = vst [vmem:[#allocation146_spill] sm:$0xff] %v5819_v33  ;;  %v2322_v62 = vsel %vm1226_vm1, %v5819_v33, 0.0  ;;  %v2350_v63 = vsel %vm1226_vm1, %v2340_v22, 0.0  ;;  %v1975_v1 = vadd.f32 %v5248_v13, %v1903_v50  ;;  %v1906_v5 = vadd.f32 %v5041_v0, %v1834_v3  ;;  %v7149_v0 = vld [vmem:[#allocation100_spill] sm:$0xff] }
 0x2b4   :  { %2308 = vadd.xlane.f32.xlu0 %v2307_v28  ;;  %2311 = vadd.xlane.f32.xlu1 %v2310_v40  ;;  %v1904_v28 = vadd.f32 %v5081_v18, %v1832_v26  ;;  %v1905_v18 = vadd.f32 %v5039_v49, %v1833_v9  ;;  %v1868_v52 = vadd.f32 %v7148_v42, %v1796_v34  ;;  %v7152_v26 = vld [vmem:[#allocation79_spill] sm:$0xff]  ;;  %v7153_v50 = vld [vmem:[#allocation76_spill] sm:$0xff] }
 0x2b5   :  { %v2001_v61 = vpop.xlane.xlu0 %2000  ;;  %v5806_v38 = vpop.xlane.xlu1 %2003  ;;  %v2344_v49 = vmul.f32 %v5819_v33, %v5819_v33  ;;  %v1800_v17 = vadd.f32 %v5781_v35, %v5684_v39  ;;  %v7154_v34 = vld [vmem:[#allocation67_spill] sm:$0xff]  ;;  %v7157_v42 = vld [vmem:[#allocation64_spill] sm:$0xff] }
 0x2b6   :  { %v5808_v58 = vadd.f32 %v2001_v61, %v1943_v23  ;;  %v2341_v23 = vmul.f32 %v5732_v57, %v5732_v57  ;;  %v1976_v8 = vadd.f32 %v5250_v45, %v1904_v28  ;;  %v2356_v45 = vsel %vm1226_vm1, %v2342_v60, 0.0 }
 0x2b8   :  { %2314 = vadd.xlane.f32.xlu0 %v2313_v54  ;;  %2317 = vadd.xlane.f32.xlu1 %v2316_v48  ;;  %v2353_v13 = vsel %vm1226_vm1, %v2341_v23, 0.0  ;;  %v1872_v23 = vadd.f32 %v7154_v34, %v1800_v17 }
 0x2b9   :  { %v2007_v24 = vpop.xlane.xlu0 %2006  ;;  %v5822_v12 = vpop.xlane.xlu1 %2009 }
 0x2ba   :  { %v5824_v32 = vadd.f32 %v2007_v24, %v1945_v11  ;;  %v2343_v24 = vmul.f32 %v5789_v25, %v5789_v25 }
 0x2bc   :  { %2320 = vadd.xlane.f32.xlu0 %v2319_v47  ;;  %2323 = vadd.xlane.f32.xlu1 %v2322_v62  ;;  %v1977_v47 = vadd.f32 %v7149_v0, %v1905_v18  ;;  %v1978_v62 = vadd.f32 %v7150_v59, %v1906_v5  ;;  %v7161_v59 = vld [vmem:[#allocation86_spill] sm:$0xff] }
 0x2bd   :  { %v2021_v7 = vpop.xlane.xlu0 %2020  ;;  %v5838_v21 = vpop.xlane.xlu1 %2023 }
 0x2be   :  { %v5844_v14 = vadd.f32 %v2021_v7, %v1971_v10  ;;  %v7151_v10 = vld [vmem:[#allocation54_spill] sm:$0xff]  ;;  %v1940_v7 = vadd.f32 %v7152_v26, %v1868_v52 }
 0x2bf   :  { %v1870_v43 = vadd.f32 %v7151_v10, %v5718_v36  ;;  %v2362_v36 = vsel %vm1226_vm1, %v2344_v49, 0.0  ;;  %v7162_v10 = vld [vmem:[#allocation74_spill] sm:$0xff] }
 0x2c0   :  { %2326 = vadd.xlane.f32.xlu0 %v2325_v20  ;;  %2329 = vadd.xlane.f32.xlu1 %v2328_v44  ;;  %v2345_v20 = vmul.f32 %v5779_v4, %v5779_v4  ;;  %v2346_v44 = vmul.f32 %v5803_v19, %v5803_v19  ;;  %v2012_v3 = vadd.f32 %v5748_v41, %v1940_v7 }
 0x2c1   :  { %v2027_v40 = vpop.xlane.xlu0 %2026  ;;  %v5855_v51 = vpop.xlane.xlu1 %2029  ;;  %v1942_v39 = vadd.f32 %v7153_v50, %v1870_v43 }
 0x2c2   :  { %v5861_v61 = vadd.f32 %v2027_v40, %v1973_v56  ;;  %v2359_v56 = vsel %vm1226_vm1, %v2343_v24, 0.0  ;;  %v1802_v40 = vadd.f32 %v5768_v29, %v5670_v2  ;;  %v2368_v18 = vsel %vm1226_vm1, %v2346_v44, 0.0  ;;  %v7158_v29 = vld [vmem:[#allocation89_spill] sm:$0xff]  ;;  %v7164_v44 = vld [vmem:[#allocation70_spill] sm:$0xff] }
 0x2c3   :  { %v2014_v41 = vadd.f32 %v5792_v46, %v1942_v39  ;;  %v1944_v52 = vadd.f32 %v7158_v29, %v1872_v23 }
 0x2c4   :  { %2348 = vadd.xlane.f32.xlu0 %v2347_v27  ;;  %2351 = vadd.xlane.f32.xlu1 %v2350_v63  ;;  %v2365_v63 = vsel %vm1226_vm1, %v2345_v20, 0.0  ;;  %v1874_v2 = vadd.f32 %v7157_v42, %v1802_v40 }
 0x2c5   :  { %v2033_v54 = vpop.xlane.xlu0 %2032  ;;  %v2036_v48 = vpop.xlane.xlu1 %2035  ;;  %v2016_v49 = vadd.f32 %v5806_v38, %v1944_v52 }
 0x2c6   :  { %v5872_v16 = vadd.f32 %v2033_v54, %v1975_v1  ;;  %v5874_v11 = vadd.f32 %v2036_v48, %v1976_v8  ;;  %v7155_v1 = vld [vmem:[#allocation140_spill] sm:$0xff]  ;;  %v7156_v8 = vld [vmem:[#allocation51_spill] sm:$0xff] }
 0x2c7   :  { %v1828_v5 = vadd.f32 %v7156_v8, %v7155_v1 }
 0x2c8   :  { %2354 = vadd.xlane.f32.xlu0 %v2353_v13  ;;  %2357 = vadd.xlane.f32.xlu1 %v2356_v45  ;;  %v7159_v13 = vld [vmem:[#allocation138_spill] sm:$0xff] }
 0x2c9   :  { %v2039_v6 = vpop.xlane.xlu0 %2038  ;;  %v2042_v31 = vpop.xlane.xlu1 %2041  ;;  %v7160_v45 = vld [vmem:[#allocation46_spill] sm:$0xff]  ;;  %v1900_v43 = vadd.f32 %v7162_v10, %v1828_v5 }
 0x2ca   :  { %v5889_v22 = vadd.f32 %v2039_v6, %v1977_v47  ;;  %v5891_v9 = vadd.f32 %v2042_v31, %v1978_v62  ;;  %v1830_v0 = vadd.f32 %v7160_v45, %v7159_v13  ;;  %v1946_v62 = vadd.f32 %v7161_v59, %v1874_v2 }
 0x2cc   :  { %2360 = vadd.xlane.f32.xlu0 %v2359_v56  ;;  %2363 = vadd.xlane.f32.xlu1 %v2362_v36  ;;  %v2018_v26 = vadd.f32 %v5822_v12, %v1946_v62  ;;  %v1902_v38 = vadd.f32 %v7164_v44, %v1830_v0 }
 0x2cd   :  { %v2061_v35 = vpop.xlane.xlu0 %2060  ;;  %v2064_v28 = vpop.xlane.xlu1 %2063 }
 0x2ce   :  { %v2083_v60 = vadd.f32 %v2061_v35, %v5783_v37  ;;  %v2084_v27 = vadd.f32 %v2064_v28, %v2012_v3  ;;  %v7165_v35 = vld [vmem:[#allocation92_spill] sm:$0xff] }
 0x2cf   :  { %v1974_v28 = vadd.f32 %v7165_v35, %v1902_v38 }
 0x2d0   :  { %2366 = vadd.xlane.f32.xlu0 %v2365_v63  ;;  %2369 = vadd.xlane.f32.xlu1 %v2368_v18 }
 0x2d1   :  { %v2067_v54 = vpop.xlane.xlu0 %2066  ;;  %v2070_v48 = vpop.xlane.xlu1 %2069  ;;  %v2046_v12 = vadd.f32 %v5855_v51, %v1974_v28 }
 0x2d2   :  { %v2085_v37 = vadd.f32 %v2067_v54, %v5794_v53  ;;  %v2086_v24 = vadd.f32 %v2070_v48, %v2014_v41  ;;  %v7163_v53 = vld [vmem:[#allocation96_spill] sm:$0xff]  ;;  %v4406_v41 = vmov 0  }
 0x2d3   :  { %v1972_v20 = vadd.f32 %v7163_v53, %v1900_v43  ;;  %4299 = vset.pattern.permute.xlu1 %v4406_v41  ;;  %4298 = vset.pattern.permute.xlu0 %v4406_v41 }
 0x2d5   :  { %v2073_v46 = vpop.xlane.xlu0 %2072  ;;  %v2076_v47 = vpop.xlane.xlu1 %2075  ;;  %v2044_v3 = vadd.f32 %v5838_v21, %v1972_v20 }
 0x2d6   :  { %v2087_v6 = vadd.f32 %v2073_v46, %v5808_v58  ;;  %v2088_v31 = vadd.f32 %v2076_v47, %v2016_v49 }
 0x2d9   :  { %v2079_v7 = vpop.xlane.xlu0 %2078  ;;  %v2082_v17 = vpop.xlane.xlu1 %2081 }
 0x2da   :  { %v2089_v56 = vadd.f32 %v2079_v7, %v5824_v32  ;;  %v2090_v36 = vadd.f32 %v2082_v17, %v2018_v26 }
 0x2dd   :  { %v2093_v50 = vpop.xlane.xlu0 %2092  ;;  %v2096_v39 = vpop.xlane.xlu1 %2095 }
 0x2de   :  { %v2115_v58 = vadd.f32 %v2093_v50, %v5844_v14  ;;  %v2116_v40 = vadd.f32 %v2096_v39, %v2044_v3 }
 0x2e1   :  { %v2099_v34 = vpop.xlane.xlu0 %2098  ;;  %v2102_v23 = vpop.xlane.xlu1 %2101 }
 0x2e2   :  { %v2117_v63 = vadd.f32 %v2099_v34, %v5861_v61  ;;  %v2118_v18 = vadd.f32 %v2102_v23, %v2046_v12 }
 0x2e5   :  { %v2105_v32 = vpop.xlane.xlu0 %2104  ;;  %v2108_v1 = vpop.xlane.xlu1 %2107 }
 0x2e6   :  { %v2119_v21 = vadd.f32 %v2105_v32, %v5872_v16  ;;  %v2120_v8 = vadd.f32 %v2108_v1, %v5874_v11 }
 0x2e9   :  { %v2111_v5 = vpop.xlane.xlu0 %2110  ;;  %v2114_v54 = vpop.xlane.xlu1 %2113 }
 0x2ea   :  { %v2121_v14 = vadd.f32 %v2111_v5, %v5889_v22  ;;  %v2122_v51 = vadd.f32 %v2114_v54, %v5891_v9 }
 0x2ed   :  { %v2133_v48 = vpop.xlane.xlu0 %2132  ;;  %v2136_v42 = vpop.xlane.xlu1 %2135 }
 0x2ee   :  { %v5932_v2 = vadd.f32 %v2133_v48, %v2083_v60  ;;  %v5934_v61 = vadd.f32 %v2136_v42, %v2084_v27 }
 0x2f1   :  { %v2139_v29 = vpop.xlane.xlu0 %2138  ;;  %v2142_v52 = vpop.xlane.xlu1 %2141 }
 0x2f2   :  { %v5936_v49 = vadd.f32 %v2139_v29, %v2085_v37  ;;  %v5938_v13 = vadd.f32 %v2142_v52, %v2086_v24 }
 0x2f5   :  { %v2145_v16 = vpop.xlane.xlu0 %2144  ;;  %v2148_v11 = vpop.xlane.xlu1 %2147 }
 0x2f6   :  { %v2159_v45 = vadd.f32 %v2145_v16, %v2087_v6  ;;  %v5940_v0 = vadd.f32 %v2148_v11, %v2088_v31 }
 0x2f9   :  { %v2151_v22 = vpop.xlane.xlu0 %2150  ;;  %v2154_v46 = vpop.xlane.xlu1 %2153 }
 0x2fa   :  { %v2161_v9 = vadd.f32 %v2151_v22, %v2089_v56  ;;  %v5942_v47 = vadd.f32 %v2154_v46, %v2090_v36 }
 0x2fd   :  { %v2165_v60 = vpop.xlane.xlu0 %2164  ;;  %v2168_v59 = vpop.xlane.xlu1 %2167 }
 0x2fe   :  { %v2187_v27 = vadd.f32 %v2165_v60, %v2115_v58  ;;  %v2188_v62 = vadd.f32 %v2168_v59, %v2116_v40 }
 0x301   :  { %v2171_v10 = vpop.xlane.xlu0 %2170  ;;  %v2174_v43 = vpop.xlane.xlu1 %2173 }
 0x302   :  { %v2189_v37 = vadd.f32 %v2171_v10, %v2117_v63  ;;  %v2190_v26 = vadd.f32 %v2174_v43, %v2118_v18 }
 0x305   :  { %v2177_v24 = vpop.xlane.xlu0 %2176  ;;  %v2180_v7 = vpop.xlane.xlu1 %2179 }
 0x306   :  { %v2191_v17 = vadd.f32 %v2177_v24, %v2119_v21  ;;  %v2192_v53 = vadd.f32 %v2180_v7, %v2120_v8 }
 0x309   :  { %v2183_v6 = vpop.xlane.xlu0 %2182  ;;  %v2186_v31 = vpop.xlane.xlu1 %2185 }
 0x30a   :  { %v2193_v20 = vadd.f32 %v2183_v6, %v2121_v14  ;;  %v5944_v44 = vadd.f32 %v2186_v31, %v2122_v51 }
 0x30d   :  { %v2205_v38 = vpop.xlane.xlu0 %2204  ;;  %v2208_v56 = vpop.xlane.xlu1 %2207 }
 0x30e   :  { %v2227_v31 = vadd.f32 %v2205_v38, %v5932_v2 }
 0x311   :  { %v2211_v36 = vpop.xlane.xlu0 %2210  ;;  %v2214_v3 = vpop.xlane.xlu1 %2213 }
 0x312   :  { %v2230_v4 = vadd.f32 %v2214_v3, %v5938_v13 }
 0x315   :  { %v2217_v50 = vpop.xlane.xlu0 %2216  ;;  %v2220_v39 = vpop.xlane.xlu1 %2219 }
 0x316   :  { %v5946_v35 = vadd.f32 %v2217_v50, %v2159_v45  ;;  %v2228_v50 = vadd.f32 %v2208_v56, %v5934_v61 }
 0x319   :  { %v2223_v28 = vpop.xlane.xlu0 %2222  ;;  %v2226_v58 = vpop.xlane.xlu1 %2225 }
 0x31a   :  { %v5948_v40 = vadd.f32 %v2223_v28, %v2161_v9  ;;  %v2229_v28 = vadd.f32 %v2211_v36, %v5936_v49 }
 0x31d   :  { %v2237_v12 = vpop.xlane.xlu0 %2236  ;;  %v2240_v34 = vpop.xlane.xlu1 %2239 }
 0x31e   :  { %v2259_v46 = vadd.f32 %v2237_v12, %v2187_v27  ;;  %v2260_v9 = vadd.f32 %v2240_v34, %v2188_v62 }
 0x321   :  { %v2243_v23 = vpop.xlane.xlu0 %2242  ;;  %v2246_v63 = vpop.xlane.xlu1 %2245 }
 0x322   :  { %v2261_v60 = vadd.f32 %v2243_v23, %v2189_v37  ;;  %v2262_v43 = vadd.f32 %v2246_v63, %v2190_v26  ;;  %v2232_v37 = vadd.f32 %v2220_v39, %v5940_v0  ;;  %v2234_v26 = vadd.f32 %v2226_v58, %v5942_v47 }
 0x325   :  { %v2249_v18 = vpop.xlane.xlu0 %2248  ;;  %v2252_v41 = vpop.xlane.xlu1 %2251 }
 0x326   :  { %v2263_v12 = vadd.f32 %v2249_v18, %v2191_v17  ;;  %v2264_v38 = vadd.f32 %v2252_v41, %v2192_v53 }
 0x329   :  { %v2255_v32 = vpop.xlane.xlu0 %2254  ;;  %v2258_v1 = vpop.xlane.xlu1 %2257 }
 0x32a   :  { %v2265_v49 = vadd.f32 %v2255_v32, %v2193_v20  ;;  %v2266_v39 = vadd.f32 %v2258_v1, %v5944_v44 }
 0x32d   :  { %v2277_v21 = vpop.xlane.xlu0 %2276  ;;  %v2280_v8 = vpop.xlane.xlu1 %2279 }
 0x32e   :  { %v2299_v33 = vadd.f32 %v2277_v21, %v2227_v31  ;;  %v2300_v25 = vadd.f32 %v2280_v8, %v2228_v50 }
 0x331   :  { %v2283_v5 = vpop.xlane.xlu0 %2282  ;;  %v2286_v54 = vpop.xlane.xlu1 %2285 }
 0x332   :  { %v2301_v36 = vadd.f32 %v2283_v5, %v2229_v28  ;;  %v2302_v3 = vadd.f32 %v2286_v54, %v2230_v4 }
 0x335   :  { %v2289_v14 = vpop.xlane.xlu0 %2288  ;;  %v5950_v51 = vpop.xlane.xlu1 %2291 }
 0x336   :  { %v2303_v53 = vadd.f32 %v2289_v14, %v5946_v35 }
 0x339   :  { %v5952_v48 = vpop.xlane.xlu0 %2294  ;;  %v5954_v42 = vpop.xlane.xlu1 %2297 }
 0x33d   :  { %v2309_v29 = vpop.xlane.xlu0 %2308  ;;  %v2312_v52 = vpop.xlane.xlu1 %2311 }
 0x33e   :  { %v2331_v59 = vadd.f32 %v2309_v29, %v2259_v46  ;;  %v2332_v10 = vadd.f32 %v2312_v52, %v2260_v9  ;;  %v2304_v29 = vadd.f32 %v5950_v51, %v2232_v37  ;;  %v2305_v52 = vadd.f32 %v5952_v48, %v5948_v40 }
 0x340   :  { %v5960_v27 = vmul.f32 0.03125, %v2331_v59  ;;  %v5962_v62 = vmul.f32 0.03125, %v2332_v10 }
 0x341   :  { %v2315_v16 = vpop.xlane.xlu0 %2314  ;;  %v2318_v11 = vpop.xlane.xlu1 %2317 }
 0x342   :  { %v2333_v24 = vadd.f32 %v2315_v16, %v2261_v60  ;;  %v2334_v19 = vadd.f32 %v2318_v11, %v2262_v43  ;;  %v2395_v21 = vmul.f32 %v5960_v27, %v5960_v27  ;;  %v2396_v0 = vmul.f32 %v5962_v62, %v5962_v62 }
 0x343   :  { %v2306_v16 = vadd.f32 %v5954_v42, %v2234_v26 }
 0x344   :  { %v5966_v34 = vmul.f32 0.03125, %v2333_v24  ;;  %v5968_v23 = vmul.f32 0.03125, %v2334_v19 }
 0x345   :  { %v2321_v45 = vpop.xlane.xlu0 %2320  ;;  %v2324_v22 = vpop.xlane.xlu1 %2323 }
 0x346   :  { %v2335_v63 = vadd.f32 %v2321_v45, %v2263_v12  ;;  %v2398_v32 = vmul.f32 %v5968_v23, %v5968_v23 }
 0x348   :  { %v5980_v8 = vmul.f32 0.03125, %v2335_v63 }
 0x349   :  { %v2327_v7 = vpop.xlane.xlu0 %2326  ;;  %v2330_v6 = vpop.xlane.xlu1 %2329 }
 0x34a   :  { %v2337_v5 = vadd.f32 %v2327_v7, %v2265_v49  ;;  %v2338_v54 = vadd.f32 %v2330_v6, %v2266_v39  ;;  %v2399_v59 = vmul.f32 %v5980_v8, %v5980_v8 }
 0x34c   :  { %v5990_v10 = vmul.f32 0.03125, %v2337_v5  ;;  %v5992_v43 = vmul.f32 0.03125, %v2338_v54  ;;  %v2431_v54 = vld [vmem:[%s6878_s2 + $0x20] sm:$0xff] }
 0x34d   :  { %v2349_v2 = vpop.xlane.xlu0 %2348  ;;  %v2352_v61 = vpop.xlane.xlu1 %2351 }
 0x34e   :  { %v2371_v56 = vadd.f32 %v2349_v2, %v2299_v33  ;;  %v2372_v13 = vadd.f32 %v2352_v61, %v2300_v25  ;;  %v2397_v25 = vmul.f32 %v5966_v34, %v5966_v34  ;;  %v2336_v33 = vadd.f32 %v2324_v22, %v2264_v38 }
 0x34f   :  { %v2401_v26 = vmul.f32 %v5990_v10, %v5990_v10  ;;  %v2402_v2 = vmul.f32 %v5992_v43, %v5992_v43 }
 0x350   :  { %v2387_v47 = vmul.f32 0.03125, %v2371_v56  ;;  %v2388_v17 = vmul.f32 0.03125, %v2372_v13  ;;  %v5986_v11 = vmul.f32 0.03125, %v2336_v33  ;;  %v2444_v33 = vld [vmem:[%s6879_s3 + $0x8] sm:$0xff] }
 0x351   :  { %v2355_v4 = vpop.xlane.xlu0 %2354  ;;  %v2358_v19 = vpop.xlane.xlu1 %2357 }
 0x352   :  { %v2403_v20 = vsub.f32 %v2387_v47, %v2395_v21  ;;  %v2404_v58 = vsub.f32 %v2388_v17, %v2396_v0  ;;  %v2373_v18 = vadd.f32 %v2355_v4, %v2301_v36  ;;  %v2374_v41 = vadd.f32 %v2358_v19, %v2302_v3  ;;  %v2427_v21 = vld [vmem:[%s6878_s2] sm:$0xff]  ;;  %v2428_v0 = vld [vmem:[%s6878_s2 + $0x8] sm:$0xff]  ;;  %v2430_v4 = vld [vmem:[%s6878_s2 + $0x18] sm:$0xff] }
 0x353   :  { %v2400_v24 = vmul.f32 %v5986_v11, %v5986_v11 }
 0x354   :  { %v2411_v44 = vadd.f32 1e-05, %v2403_v20  ;;  %v2412_v1 = vadd.f32 1e-05, %v2404_v58  ;;  %v2389_v35 = vmul.f32 0.03125, %v2373_v18  ;;  %v2390_v14 = vmul.f32 0.03125, %v2374_v41 }
 0x355   :  { %v2361_v45 = vpop.xlane.xlu0 %2360  ;;  %v2364_v22 = vpop.xlane.xlu1 %2363 }
 0x356   :  { %4365 = vrsqrt.f32 %v2411_v44  ;;  %v2405_v46 = vsub.f32 %v2389_v35, %v2397_v25  ;;  %v2406_v9 = vsub.f32 %v2390_v14, %v2398_v32  ;;  %v2375_v60 = vadd.f32 %v2361_v45, %v2303_v53  ;;  %v2429_v25 = vld [vmem:[%s6878_s2 + $0x10] sm:$0xff]  ;;  %v2446_v44 = vld [vmem:[%s6879_s3 + $0x18] sm:$0xff] }
 0x357   :  { %4367 = vrsqrt.f32 %v2412_v1  ;;  %v2376_v51 = vadd.f32 %v2364_v22, %v2304_v29  ;;  %v2433_v45 = vld [vmem:[%s6878_s2 + $0x30] sm:$0xff]  ;;  %v2448_v22 = vld [vmem:[%s6879_s3 + $0x28] sm:$0xff] }
 0x358   :  { %v2413_v40 = vadd.f32 1e-05, %v2405_v46  ;;  %v2414_v48 = vadd.f32 1e-05, %v2406_v9  ;;  %v2391_v42 = vmul.f32 0.03125, %v2375_v60 }
 0x359   :  { %v2392_v7 = vmul.f32 0.03125, %v2376_v51  ;;  %v2367_v6 = vpop.xlane.xlu0 %2366  ;;  %v2370_v31 = vpop.xlane.xlu1 %2369 }
 0x35a   :  { %4369 = vrsqrt.f32 %v2413_v40  ;;  %v2407_v50 = vsub.f32 %v2391_v42, %v2399_v59  ;;  %v2377_v28 = vadd.f32 %v2367_v6, %v2305_v52  ;;  %v2378_v37 = vadd.f32 %v2370_v31, %v2306_v16  ;;  %v2445_v6 = vld [vmem:[%s6879_s3 + $0x10] sm:$0xff] }
 0x35b   :  { %4371 = vrsqrt.f32 %v2414_v48  ;;  %v2408_v12 = vsub.f32 %v2392_v7, %v2400_v24  ;;  %v2450_v48 = vld [vmem:[%s6879_s3 + $0x38] sm:$0xff] }
 0x35c   :  { %v2415_v61 = vadd.f32 1e-05, %v2407_v50  ;;  %v2393_v38 = vmul.f32 0.03125, %v2377_v28  ;;  %v2394_v49 = vmul.f32 0.03125, %v2378_v37  ;;  %v2449_v50 = vld [vmem:[%s6879_s3 + $0x30] sm:$0xff] }
 0x35d   :  { %v2416_v56 = vadd.f32 1e-05, %v2408_v12 }
 0x35e   :  { %4373 = vrsqrt.f32 %v2415_v61  ;;  %v2409_v13 = vsub.f32 %v2393_v38, %v2401_v26  ;;  %v2410_v36 = vsub.f32 %v2394_v49, %v2402_v2  ;;  %v7166_v26 = vld [vmem:[#allocation8_spill] sm:$0xff]  ;;  %v7167_v2 = vld [vmem:[#allocation22_spill] sm:$0xff] }
 0x35f   :  { %4375 = vrsqrt.f32 %v2416_v56  ;;  %v7168_v38 = vld [vmem:[#allocation38_spill] sm:$0xff] }
 0x360   :  { %v2417_v3 = vadd.f32 1e-05, %v2409_v13  ;;  %v2418_v63 = vadd.f32 1e-05, %v2410_v36  ;;  %v7169_v56 = vld [vmem:[#allocation58_spill] sm:$0xff]  ;;  %v7170_v36 = vld [vmem:[#allocation68_spill] sm:$0xff] }
 0x362   :  { %4377 = vrsqrt.f32 %v2417_v3 }
 0x363   :  { %v4366_v47 = vpop.eup %4365  ;;  %4379 = vrsqrt.f32 %v2418_v63  ;;  %v7171_v63 = vld [vmem:[#allocation80_spill] sm:$0xff] }
 0x364   :  { %v4368_v17 = vpop.eup %4367  ;;  %v2435_v39 = vmul.f32 %v4366_v47, %v2427_v21 }
 0x365   :  { %v2436_v53 = vmul.f32 %v4368_v17, %v2428_v0  ;;  %v7172_v0 = vld [vmem:[#allocation90_spill] sm:$0xff] }
 0x366   :  { %2469 = vperm.xlu0 %4298, %v2435_v39   ;;  %v2451_v19 = vmul.f32 %v2435_v39, %v5960_v27  ;;  %v2432_v27 = vld [vmem:[%s6878_s2 + $0x28] sm:$0xff] }
 0x367   :  { %v4370_v20 = vpop.eup %4369  ;;  %2474 = vperm.xlu1 %4299, %v2436_v53   ;;  %v2452_v58 = vmul.f32 %v2436_v53, %v5962_v62  ;;  %v7173_v17 = vld [vmem:[#allocation102_spill] sm:$0xff] }
 0x368   :  { %v4372_v18 = vpop.eup %4371  ;;  %v2437_v41 = vmul.f32 %v4370_v20, %v2429_v25  ;;  %v7174_v25 = vld [vmem:[#allocation7_spill] sm:$0xff]  ;;  %v7176_v20 = vld [vmem:[#allocation41_spill] sm:$0xff] }
 0x369   :  { %v2460_v32 = vsub.f32 %v2444_v33, %v2452_v58  ;;  %v2438_v5 = vmul.f32 %v4372_v18, %v2430_v4  ;;  %v7175_v4 = vld [vmem:[#allocation25_spill] sm:$0xff]  ;;  %v7177_v18 = vld [vmem:[#allocation110_spill] sm:$0xff] }
 0x36a   :  { %v2453_v1 = vmul.f32 %v2437_v41, %v5966_v34  ;;  %v2434_v34 = vld [vmem:[%s6878_s2 + $0x38] sm:$0xff] }
 0x36b   :  { %v4374_v35 = vpop.eup %4373  ;;  %2479 = vperm.xlu1 %4299, %v2437_v41   ;;  %2522 = vperm.xlu0 %4298, %v2460_v32   ;;  %v2454_v62 = vmul.f32 %v2438_v5, %v5968_v23  ;;  %v7178_v32 = vld [vmem:[#allocation118_spill] sm:$0xff] }
 0x36c   :  { %v4376_v14 = vpop.eup %4375  ;;  %v2439_v29 = vmul.f32 %v4374_v35, %v2431_v54  ;;  %v7179_v54 = vld [vmem:[#allocation126_spill] sm:$0xff] }
 0x36d   :  { %v2462_v52 = vsub.f32 %v2446_v44, %v2454_v62  ;;  %v2440_v16 = vmul.f32 %v4376_v14, %v2432_v27  ;;  %v7180_v27 = vld [vmem:[#allocation134_spill] sm:$0xff]  ;;  %v7181_v62 = vld [vmem:[#allocation12_spill] sm:$0xff] }
 0x36e   :  { %v2455_v46 = vmul.f32 %v2439_v29, %v5980_v8 }
 0x36f   :  { %v4378_v9 = vpop.eup %4377  ;;  %2484 = vperm.xlu1 %4299, %v2438_v5   ;;  %2532 = vperm.xlu0 %4298, %v2462_v52   ;;  %v2456_v23 = vmul.f32 %v2440_v16, %v5986_v11  ;;  %v2443_v11 = vld [vmem:[%s6879_s3] sm:$0xff] }
 0x370   :  { %v4380_v60 = vpop.eup %4379  ;;  %v2441_v59 = vmul.f32 %v4378_v9, %v2433_v45  ;;  %v2459_v7 = vsub.f32 %v2443_v11, %v2451_v19 }
 0x371   :  { %v2464_v51 = vsub.f32 %v2448_v22, %v2456_v23  ;;  %v2442_v40 = vmul.f32 %v4380_v60, %v2434_v34  ;;  %v7184_v22 = vld [vmem:[#allocation60_spill] sm:$0xff]  ;;  %v7186_v23 = vld [vmem:[#allocation82_spill] sm:$0xff] }
 0x372   :  { %v2457_v42 = vmul.f32 %v2441_v59, %v5990_v10  ;;  %v2461_v10 = vsub.f32 %v2445_v6, %v2453_v1 }
 0x373   :  { %2489 = vperm.xlu1 %4299, %v2439_v29   ;;  %2542 = vperm.xlu0 %4298, %v2464_v51   ;;  %v2458_v24 = vmul.f32 %v2442_v40, %v5992_v43  ;;  %v2447_v43 = vld [vmem:[%s6879_s3 + $0x20] sm:$0xff]  ;;  %v7182_v29 = vld [vmem:[#allocation27_spill] sm:$0xff] }
 0x374   :  { %v2463_v31 = vsub.f32 %v2447_v43, %v2455_v46  ;;  %v2465_v28 = vsub.f32 %v2449_v50, %v2457_v42  ;;  %v7185_v46 = vld [vmem:[#allocation71_spill] sm:$0xff] }
 0x375   :  { %v2466_v8 = vsub.f32 %v2450_v48, %v2458_v24 }
 0x377   :  { %2494 = vperm.xlu1 %4299, %v2440_v16   ;;  %2552 = vperm.xlu0 %4298, %v2466_v8   ;;  %v7183_v16 = vld [vmem:[#allocation43_spill] sm:$0xff]  ;;  %v7190_v8 = vld [vmem:[#allocation28_spill] sm:$0xff] }
 0x37b   :  { %2499 = vperm.xlu1 %4299, %v2441_v59   ;;  %v7187_v59 = vld [vmem:[#allocation93_spill] sm:$0xff] }
 0x37f   :  { %2504 = vperm.xlu1 %4299, %v2442_v40   ;;  %v7188_v40 = vld [vmem:[#allocation104_spill] sm:$0xff] }
 0x383   :  { %2517 = vperm.xlu1 %4299, %v2459_v7   ;;  %v7191_v7 = vld [vmem:[#allocation44_spill] sm:$0xff] }
 0x387   :  { %2527 = vperm.xlu1 %4299, %v2461_v10   ;;  %v7192_v10 = vld [vmem:[#allocation112_spill] sm:$0xff] }
 0x38b   :  { %2537 = vperm.xlu1 %4299, %v2463_v31   ;;  %v7193_v31 = vld [vmem:[#allocation120_spill] sm:$0xff] }
 0x38f   :  { %2547 = vperm.xlu1 %4299, %v2465_v28   ;;  %v7194_v28 = vld [vmem:[#allocation128_spill] sm:$0xff] }
 0x3e1   :  { %v2470_v37 = vpop.permute.xlu0 %2469 }
 0x3e2   :  { %v6057_v12 = vmul.f32 %v2470_v37, %v7166_v26  ;;  %v6060_v61 = vmul.f32 %v2470_v37, %v7167_v2  ;;  %v6063_v49 = vmul.f32 %v2470_v37, %v7168_v38  ;;  %v6066_v13 = vmul.f32 %v2470_v37, %v7169_v56  ;;  %v2475_v53 = vpop.permute.xlu1 %2474  ;;  %v7195_v26 = vld [vmem:[#allocation136_spill] sm:$0xff] }
 0x3e3   :  { %v6069_v3 = vmul.f32 %v2470_v37, %v7170_v36  ;;  %v6072_v21 = vmul.f32 %v2470_v37, %v7171_v63  ;;  %v6075_v47 = vmul.f32 %v2470_v37, %v7172_v0  ;;  %v6078_v39 = vmul.f32 %v2470_v37, %v7173_v17 }
 0x3e4   :  { %v6081_v33 = vmul.f32 %v2470_v37, %v7174_v25  ;;  %v6084_v19 = vmul.f32 %v2470_v37, %v7175_v4  ;;  %v6087_v58 = vmul.f32 %v2470_v37, %v7176_v20  ;;  %v6090_v41 = vmul.f32 %v2470_v37, %v7177_v18 }
 0x3e5   :  { %v6093_v5 = vmul.f32 %v2470_v37, %v7178_v32  ;;  %v6096_v44 = vmul.f32 %v2470_v37, %v7179_v54  ;;  %v6099_v1 = vmul.f32 %v2470_v37, %v7180_v27  ;;  %v6102_v35 = vmul.f32 %v2470_v37, %v5746_v55  ;;  %v7189_v55 = vld [vmem:[#allocation11_spill] sm:$0xff] }
 0x3e6   :  { %v2508_v14 = vmul.f32 %v2475_v53, %v7181_v62  ;;  %v2613_v52 = vmul.f32 %v2475_v53, %v7182_v29  ;;  %v2678_v45 = vmul.f32 %v2475_v53, %v7183_v16  ;;  %v2743_v34 = vmul.f32 %v2475_v53, %v7184_v22  ;;  %v2523_v42 = vpop.permute.xlu0 %2522 }
 0x3e7   :  { %v2808_v9 = vmul.f32 %v2475_v53, %v7185_v46  ;;  %v2873_v60 = vmul.f32 %v2475_v53, %v7186_v23  ;;  %v2938_v51 = vmul.f32 %v2475_v53, %v7187_v59  ;;  %v3003_v48 = vmul.f32 %v2475_v53, %v7188_v40 }
 0x3e8   :  { %v3068_v24 = vmul.f32 %v2475_v53, %v7189_v55  ;;  %v3133_v11 = vmul.f32 %v2475_v53, %v7190_v8  ;;  %v3198_v6 = vmul.f32 %v2475_v53, %v7191_v7  ;;  %v3263_v43 = vmul.f32 %v2475_v53, %v7192_v10  ;;  %v2480_v8 = vpop.permute.xlu1 %2479 }
 0x3e9   :  { %v3328_v50 = vmul.f32 %v2475_v53, %v7193_v31  ;;  %v3393_v37 = vmul.f32 %v2475_v53, %v7194_v28  ;;  %v3458_v2 = vmul.f32 %v2475_v53, %v7195_v26  ;;  %v3523_v38 = vmul.f32 %v2475_v53, %v5766_v30 }
 0x3ea   :  { %v2556_v56 = vadd.f32 %v2523_v42, %v2508_v14  ;;  %v2621_v36 = vadd.f32 %v2613_v52, %v2523_v42  ;;  %v2686_v63 = vadd.f32 %v2678_v45, %v2523_v42  ;;  %v2751_v0 = vadd.f32 %v2743_v34, %v2523_v42 }
 0x3eb   :  { %v2816_v17 = vadd.f32 %v2808_v9, %v2523_v42  ;;  %v2881_v25 = vadd.f32 %v2873_v60, %v2523_v42  ;;  %v2946_v4 = vadd.f32 %v2938_v51, %v2523_v42  ;;  %v3011_v20 = vadd.f32 %v3003_v48, %v2523_v42 }
 0x3ec   :  { %v2564_v18 = vmax.f32 %v2556_v56, 0.0  ;;  %v2629_v32 = vmax.f32 %v2621_v36, 0.0  ;;  %v2694_v54 = vmax.f32 %v2686_v63, 0.0  ;;  %v2759_v27 = vmax.f32 %v2751_v0, 0.0 }
 0x3ed   :  { %v2824_v62 = vmax.f32 %v2816_v17, 0.0  ;;  %v2889_v29 = vmax.f32 %v2881_v25, 0.0  ;;  %v2954_v16 = vmax.f32 %v2946_v4, 0.0  ;;  %v3019_v22 = vmax.f32 %v3011_v20, 0.0  ;;  %v7198_v20 = vld [vmem:[#allocation37_spill] sm:$0xff] }
 0x3ee   :  { %v3970_v46 = vpack.c.bf16 %v2564_v18, %v2564_v18  ;;  %v3978_v23 = vpack.c.bf16 %v2629_v32, %v2629_v32  ;;  %v3986_v59 = vpack.c.bf16 %v2694_v54, %v2694_v54  ;;  %v3994_v30 = vpack.c.bf16 %v2759_v27, %v2759_v27  ;;  %v7199_v32 = vld [vmem:[#allocation56_spill] sm:$0xff]  ;;  %v7200_v27 = vld [vmem:[#allocation66_spill] sm:$0xff] }
 0x3ef   :  { %v4002_v53 = vpack.c.bf16 %v2824_v62, %v2824_v62  ;;  %v4010_v14 = vpack.c.bf16 %v2889_v29, %v2889_v29  ;;  %v4018_v52 = vpack.c.bf16 %v2954_v16, %v2954_v16  ;;  %v4026_v45 = vpack.c.bf16 %v3019_v22, %v3019_v22  ;;  %v7201_v29 = vld [vmem:[#allocation78_spill] sm:$0xff]  ;;  %v7202_v22 = vld [vmem:[#allocation88_spill] sm:$0xff] }
 0x3f0   :  { %2605 = vst.msk [vmem:[%s6880_s4 + $0x4] sm:$0xf] %vm2603_vm2, %v3970_v46  ;;  %3738 = vst.msk [vmem:[%s6880_s4 + $0x24] sm:$0xf] %vm2603_vm2, %v3978_v23  ;;  %v3076_v34 = vadd.f32 %v3068_v24, %v2523_v42  ;;  %v3141_v9 = vadd.f32 %v3133_v11, %v2523_v42  ;;  %v3206_v60 = vadd.f32 %v3198_v6, %v2523_v42  ;;  %v7203_v23 = vld [vmem:[#allocation99_spill] sm:$0xff] }
 0x3f1   :  { %3754 = vst.msk [vmem:[%s6880_s4 + $0x44] sm:$0xf] %vm2603_vm2, %v3986_v59  ;;  %3770 = vst.msk [vmem:[%s6880_s4 + $0x64] sm:$0xf] %vm2603_vm2, %v3994_v30  ;;  %v3271_v51 = vadd.f32 %v3263_v43, %v2523_v42  ;;  %v3336_v40 = vadd.f32 %v3328_v50, %v2523_v42  ;;  %v3401_v48 = vadd.f32 %v3393_v37, %v2523_v42  ;;  %v2485_v30 = vpop.permute.xlu1 %2484 }
 0x3f2   :  { %3786 = vst.msk [vmem:[%s6880_s4 + $0x84] sm:$0xf] %vm2603_vm2, %v4002_v53  ;;  %3802 = vst.msk [vmem:[%s6880_s4 + $0xa4] sm:$0xf] %vm2603_vm2, %v4010_v14  ;;  %v3466_v55 = vadd.f32 %v3458_v2, %v2523_v42  ;;  %v3531_v24 = vadd.f32 %v3523_v38, %v2523_v42  ;;  %v3084_v11 = vmax.f32 %v3076_v34, 0.0  ;;  %v3149_v7 = vmax.f32 %v3141_v9, 0.0 }
 0x3f3   :  { %3818 = vst.msk [vmem:[%s6880_s4 + $0xc4] sm:$0xf] %vm2603_vm2, %v4018_v52  ;;  %3834 = vst.msk [vmem:[%s6880_s4 + $0xe4] sm:$0xf] %vm2603_vm2, %v4026_v45  ;;  %v3214_v6 = vmax.f32 %v3206_v60, 0.0  ;;  %v3279_v10 = vmax.f32 %v3271_v51, 0.0  ;;  %v6175_v18 = vmul.f32 %v7198_v20, %v2480_v8  ;;  %v6178_v54 = vmul.f32 %v7199_v32, %v2480_v8 }
 0x3f4   :  { %v3344_v43 = vmax.f32 %v3336_v40, 0.0  ;;  %v3409_v31 = vmax.f32 %v3401_v48, 0.0  ;;  %v3474_v28 = vmax.f32 %v3466_v55, 0.0  ;;  %v3539_v26 = vmax.f32 %v3531_v24, 0.0  ;;  %v7196_v42 = vld [vmem:[#allocation5_spill] sm:$0xff]  ;;  %v7204_v53 = vld [vmem:[#allocation6_spill] sm:$0xff] }
 0x3f5   :  { %v4034_v56 = vpack.c.bf16 %v3084_v11, %v3084_v11  ;;  %v4042_v36 = vpack.c.bf16 %v3149_v7, %v3149_v7  ;;  %v4050_v63 = vpack.c.bf16 %v3214_v6, %v3214_v6  ;;  %v4058_v0 = vpack.c.bf16 %v3279_v10, %v3279_v10  ;;  %v7197_v2 = vld [vmem:[#allocation21_spill] sm:$0xff]  ;;  %v7205_v52 = vld [vmem:[#allocation23_spill] sm:$0xff] }
 0x3f6   :  { %v4066_v17 = vpack.c.bf16 %v3344_v43, %v3344_v43  ;;  %v4074_v25 = vpack.c.bf16 %v3409_v31, %v3409_v31  ;;  %v4082_v4 = vpack.c.bf16 %v3474_v28, %v3474_v28  ;;  %v4090_v50 = vpack.c.bf16 %v3539_v26, %v3539_v26  ;;  %v7206_v34 = vld [vmem:[#allocation39_spill] sm:$0xff]  ;;  %v7207_v60 = vld [vmem:[#allocation109_spill] sm:$0xff]  ;;  %v7212_v31 = vld [vmem:[#allocation24_spill] sm:$0xff] }
 0x3f7   :  { %3850 = vst.msk [vmem:[%s6880_s4 + $0x104] sm:$0xf] %vm2603_vm2, %v4034_v56  ;;  %3866 = vst.msk [vmem:[%s6880_s4 + $0x124] sm:$0xf] %vm2603_vm2, %v4042_v36  ;;  %v6169_v37 = vmul.f32 %v7196_v42, %v2480_v8  ;;  %v6172_v38 = vmul.f32 %v7197_v2, %v2480_v8  ;;  %v6197_v62 = vmul.f32 %v7200_v27, %v2480_v8  ;;  %v7208_v40 = vld [vmem:[#allocation117_spill] sm:$0xff]  ;;  %v7213_v26 = vld [vmem:[#allocation40_spill] sm:$0xff] }
 0x3f8   :  { %3882 = vst.msk [vmem:[%s6880_s4 + $0x144] sm:$0xf] %vm2603_vm2, %v4050_v63  ;;  %3898 = vst.msk [vmem:[%s6880_s4 + $0x164] sm:$0xf] %vm2603_vm2, %v4058_v0  ;;  %v6200_v16 = vmul.f32 %v7201_v29, %v2480_v8  ;;  %v6203_v46 = vmul.f32 %v7202_v22, %v2480_v8  ;;  %v6206_v59 = vmul.f32 %v7203_v23, %v2480_v8  ;;  %v7209_v55 = vld [vmem:[#allocation125_spill] sm:$0xff]  ;;  %v7214_v36 = vld [vmem:[#allocation59_spill] sm:$0xff]  ;;  %v2533_v0 = vpop.permute.xlu0 %2532 }
 0x3f9   :  { %3914 = vst.msk [vmem:[%s6880_s4 + $0x184] sm:$0xf] %vm2603_vm2, %v4066_v17  ;;  %3930 = vst.msk [vmem:[%s6880_s4 + $0x1a4] sm:$0xf] %vm2603_vm2, %v4074_v25  ;;  %v6209_v14 = vmul.f32 %v7204_v53, %v2480_v8  ;;  %v6212_v45 = vmul.f32 %v7205_v52, %v2480_v8  ;;  %v6215_v9 = vmul.f32 %v7206_v34, %v2480_v8  ;;  %v7210_v11 = vld [vmem:[#allocation133_spill] sm:$0xff]  ;;  %v7217_v42 = vld [vmem:[#allocation91_spill] sm:$0xff] }
 0x3fa   :  { %3946 = vst.msk [vmem:[%s6880_s4 + $0x1c4] sm:$0xf] %vm2603_vm2, %v4082_v4  ;;  %3962 = vst.msk [vmem:[%s6880_s4 + $0x1e4] sm:$0xf] %vm2603_vm2, %v4090_v50  ;;  %v6218_v51 = vmul.f32 %v7207_v60, %v2480_v8  ;;  %v6221_v48 = vmul.f32 %v7208_v40, %v2480_v8  ;;  %v6224_v24 = vmul.f32 %v7209_v55, %v2480_v8  ;;  %v7211_v10 = vld [vmem:[#allocation9_spill] sm:$0xff]  ;;  %v7218_v20 = vld [vmem:[#allocation103_spill] sm:$0xff] }
 0x3fb   :  { %v6227_v7 = vmul.f32 %v7210_v11, %v2480_v8  ;;  %v6230_v6 = vmul.f32 %v5732_v57, %v2480_v8  ;;  %v2510_v43 = vmul.f32 %v7211_v10, %v2485_v30  ;;  %v2615_v28 = vmul.f32 %v7212_v31, %v2485_v30  ;;  %v7215_v17 = vld [vmem:[#allocation69_spill] sm:$0xff] }
 0x3fc   :  { %v2680_v56 = vmul.f32 %v7213_v26, %v2485_v30  ;;  %v2745_v63 = vmul.f32 %v7214_v36, %v2485_v30  ;;  %v2810_v25 = vmul.f32 %v7215_v17, %v2485_v30  ;;  %v7216_v4 = vld [vmem:[#allocation81_spill] sm:$0xff]  ;;  %v2940_v2 = vmul.f32 %v7217_v42, %v2485_v30 }
 0x3fd   :  { %v2875_v50 = vmul.f32 %v7216_v4, %v2485_v30  ;;  %v3005_v32 = vmul.f32 %v7218_v20, %v2485_v30  ;;  %v2558_v27 = vadd.f32 %v2533_v0, %v2510_v43  ;;  %v2623_v57 = vadd.f32 %v2615_v28, %v2533_v0 }
 0x3fe   :  { %v2688_v8 = vadd.f32 %v2680_v56, %v2533_v0  ;;  %v2753_v29 = vadd.f32 %v2745_v63, %v2533_v0  ;;  %v2818_v22 = vadd.f32 %v2810_v25, %v2533_v0  ;;  %v2948_v53 = vadd.f32 %v2940_v2, %v2533_v0  ;;  %v7219_v25 = vld [vmem:[#allocation10_spill] sm:$0xff] }
 0x3ff   :  { %v2883_v23 = vadd.f32 %v2875_v50, %v2533_v0  ;;  %v3013_v52 = vadd.f32 %v3005_v32, %v2533_v0  ;;  %v2566_v34 = vmax.f32 %v2558_v27, 0.0  ;;  %v2631_v60 = vmax.f32 %v2623_v57, 0.0  ;;  %v7220_v2 = vld [vmem:[#allocation26_spill] sm:$0xff]  ;;  %v7222_v57 = vld [vmem:[#allocation111_spill] sm:$0xff] }
 0x400   :  { %v2696_v40 = vmax.f32 %v2688_v8, 0.0  ;;  %v2761_v55 = vmax.f32 %v2753_v29, 0.0  ;;  %v2826_v11 = vmax.f32 %v2818_v22, 0.0  ;;  %v2956_v31 = vmax.f32 %v2948_v53, 0.0  ;;  %v7221_v32 = vld [vmem:[#allocation42_spill] sm:$0xff]  ;;  %v7223_v29 = vld [vmem:[#allocation119_spill] sm:$0xff] }
 0x401   :  { %v2891_v10 = vmax.f32 %v2883_v23, 0.0  ;;  %v3021_v26 = vmax.f32 %v3013_v52, 0.0  ;;  %v3972_v36 = vpack.c.bf16 %v2566_v34, %v2566_v34  ;;  %v3980_v17 = vpack.c.bf16 %v2631_v60, %v2631_v60  ;;  %v7224_v23 = vld [vmem:[#allocation127_spill] sm:$0xff] }
 0x402   :  { %v3988_v4 = vpack.c.bf16 %v2696_v40, %v2696_v40  ;;  %v3996_v42 = vpack.c.bf16 %v2761_v55, %v2761_v55  ;;  %v4004_v43 = vpack.c.bf16 %v2826_v11, %v2826_v11  ;;  %v4020_v56 = vpack.c.bf16 %v2956_v31, %v2956_v31  ;;  %v7225_v52 = vld [vmem:[#allocation135_spill] sm:$0xff] }
 0x403   :  { %v4012_v28 = vpack.c.bf16 %v2891_v10, %v2891_v10  ;;  %v4028_v63 = vpack.c.bf16 %v3021_v26, %v3021_v26  ;;  %2607 = vst.msk [vmem:[%s6880_s4 + $0xc] sm:$0xf] %vm2603_vm2, %v3972_v36  ;;  %3740 = vst.msk [vmem:[%s6880_s4 + $0x2c] sm:$0xf] %vm2603_vm2, %v3980_v17  ;;  %v3070_v50 = vmul.f32 %v7219_v25, %v2485_v30 }
 0x404   :  { %3756 = vst.msk [vmem:[%s6880_s4 + $0x4c] sm:$0xf] %vm2603_vm2, %v3988_v4  ;;  %3772 = vst.msk [vmem:[%s6880_s4 + $0x6c] sm:$0xf] %vm2603_vm2, %v3996_v42  ;;  %v3135_v20 = vmul.f32 %v7220_v2, %v2485_v30  ;;  %v3200_v27 = vmul.f32 %v7221_v32, %v2485_v30  ;;  %v3265_v8 = vmul.f32 %v7222_v57, %v2485_v30  ;;  %v2490_v4 = vpop.permute.xlu1 %2489 }
 0x405   :  { %3788 = vst.msk [vmem:[%s6880_s4 + $0x8c] sm:$0xf] %vm2603_vm2, %v4004_v43  ;;  %3804 = vst.msk [vmem:[%s6880_s4 + $0xac] sm:$0xf] %vm2603_vm2, %v4012_v28  ;;  %v3330_v22 = vmul.f32 %v7223_v29, %v2485_v30  ;;  %v3395_v53 = vmul.f32 %v7224_v23, %v2485_v30  ;;  %v3460_v34 = vmul.f32 %v7225_v52, %v2485_v30  ;;  %v7227_v23 = vld [vmem:[#allocation30_spill] sm:$0xff]  ;;  %v7228_v52 = vld [vmem:[#allocation47_spill] sm:$0xff] }
 0x406   :  { %3820 = vst.msk [vmem:[%s6880_s4 + $0xcc] sm:$0xf] %vm2603_vm2, %v4020_v56  ;;  %3836 = vst.msk [vmem:[%s6880_s4 + $0xec] sm:$0xf] %vm2603_vm2, %v4028_v63  ;;  %v3525_v60 = vmul.f32 %v5757_v15, %v2485_v30  ;;  %v3078_v40 = vadd.f32 %v3070_v50, %v2533_v0  ;;  %v3143_v55 = vadd.f32 %v3135_v20, %v2533_v0 }
 0x407   :  { %v3208_v11 = vadd.f32 %v3200_v27, %v2533_v0  ;;  %v3273_v10 = vadd.f32 %v3265_v8, %v2533_v0  ;;  %v3338_v31 = vadd.f32 %v3330_v22, %v2533_v0  ;;  %v3403_v26 = vadd.f32 %v3395_v53, %v2533_v0 }
 0x408   :  { %v3468_v36 = vadd.f32 %v3460_v34, %v2533_v0  ;;  %v3533_v17 = vadd.f32 %v3525_v60, %v2533_v0  ;;  %v3086_v42 = vmax.f32 %v3078_v40, 0.0  ;;  %v3151_v43 = vmax.f32 %v3143_v55, 0.0  ;;  %v7226_v0 = vld [vmem:[#allocation14_spill] sm:$0xff]  ;;  %v7232_v55 = vld [vmem:[#allocation73_spill] sm:$0xff] }
 0x409   :  { %v3216_v28 = vmax.f32 %v3208_v11, 0.0  ;;  %v3281_v56 = vmax.f32 %v3273_v10, 0.0  ;;  %v3346_v63 = vmax.f32 %v3338_v31, 0.0  ;;  %v3411_v25 = vmax.f32 %v3403_v26, 0.0  ;;  %v7230_v60 = vld [vmem:[#allocation62_spill] sm:$0xff]  ;;  %v7234_v10 = vld [vmem:[#allocation84_spill] sm:$0xff] }
 0x40a   :  { %v3476_v2 = vmax.f32 %v3468_v36, 0.0  ;;  %v3541_v32 = vmax.f32 %v3533_v17, 0.0  ;;  %v4036_v57 = vpack.c.bf16 %v3086_v42, %v3086_v42  ;;  %v4044_v29 = vpack.c.bf16 %v3151_v43, %v3151_v43  ;;  %v7236_v26 = vld [vmem:[#allocation95_spill] sm:$0xff]  ;;  %v7238_v17 = vld [vmem:[#allocation106_spill] sm:$0xff]  ;;  %v2495_v43 = vpop.permute.xlu1 %2494 }
 0x40b   :  { %v4052_v15 = vpack.c.bf16 %v3216_v28, %v3216_v28  ;;  %v4060_v30 = vpack.c.bf16 %v3281_v56, %v3281_v56  ;;  %v4068_v50 = vpack.c.bf16 %v3346_v63, %v3346_v63  ;;  %v4076_v20 = vpack.c.bf16 %v3411_v25, %v3411_v25  ;;  %v7240_v28 = vld [vmem:[#allocation17_spill] sm:$0xff] }
 0x40c   :  { %v4084_v27 = vpack.c.bf16 %v3476_v2, %v3476_v2  ;;  %v4092_v8 = vpack.c.bf16 %v3541_v32, %v3541_v32  ;;  %3852 = vst.msk [vmem:[%s6880_s4 + $0x10c] sm:$0xf] %vm2603_vm2, %v4036_v57  ;;  %3868 = vst.msk [vmem:[%s6880_s4 + $0x12c] sm:$0xf] %vm2603_vm2, %v4044_v29  ;;  %v6297_v22 = vmul.f32 %v2490_v4, %v7226_v0  ;;  %v7242_v63 = vld [vmem:[#allocation33_spill] sm:$0xff]  ;;  %v7244_v2 = vld [vmem:[#allocation50_spill] sm:$0xff] }
 0x40d   :  { %3884 = vst.msk [vmem:[%s6880_s4 + $0x14c] sm:$0xf] %vm2603_vm2, %v4052_v15  ;;  %3900 = vst.msk [vmem:[%s6880_s4 + $0x16c] sm:$0xf] %vm2603_vm2, %v4060_v30  ;;  %v6300_v53 = vmul.f32 %v2490_v4, %v7227_v23  ;;  %v6303_v34 = vmul.f32 %v2490_v4, %v7228_v52  ;;  %v6306_v40 = vmul.f32 %v2490_v4, %v7230_v60  ;;  %v7246_v57 = vld [vmem:[#allocation114_spill] sm:$0xff]  ;;  %v7254_v0 = vld [vmem:[#allocation144_spill] sm:$0xff] }
 0x40e   :  { %3916 = vst.msk [vmem:[%s6880_s4 + $0x18c] sm:$0xf] %vm2603_vm2, %v4068_v50  ;;  %3932 = vst.msk [vmem:[%s6880_s4 + $0x1ac] sm:$0xf] %vm2603_vm2, %v4076_v20  ;;  %v6325_v11 = vmul.f32 %v2490_v4, %v7232_v55  ;;  %v6328_v31 = vmul.f32 %v2490_v4, %v7234_v10  ;;  %v6331_v36 = vmul.f32 %v2490_v4, %v7236_v26  ;;  %v7248_v15 = vld [vmem:[#allocation122_spill] sm:$0xff]  ;;  %v7256_v52 = vld [vmem:[#allocation19_spill] sm:$0xff] }
 0x40f   :  { %7229 = vst [vmem:[#allocation57_spill] sm:$0xff] %v6303_v34  ;;  %7231 = vst [vmem:[#allocation100_spill] sm:$0xff] %v6306_v40  ;;  %v6334_v42 = vmul.f32 %v2490_v4, %v7238_v17  ;;  %v6337_v56 = vmul.f32 %v2490_v4, %v7240_v28  ;;  %v6340_v25 = vmul.f32 %v2490_v4, %v7242_v63  ;;  %v7250_v50 = vld [vmem:[#allocation130_spill] sm:$0xff]  ;;  %v7257_v55 = vld [vmem:[#allocation35_spill] sm:$0xff] }
 0x410   :  { %3948 = vst.msk [vmem:[%s6880_s4 + $0x1cc] sm:$0xf] %vm2603_vm2, %v4084_v27  ;;  %3964 = vst.msk [vmem:[%s6880_s4 + $0x1ec] sm:$0xf] %vm2603_vm2, %v4092_v8  ;;  %v6343_v32 = vmul.f32 %v2490_v4, %v7244_v2  ;;  %v6346_v29 = vmul.f32 %v2490_v4, %v7246_v57  ;;  %v6349_v30 = vmul.f32 %v2490_v4, %v7248_v15  ;;  %v7252_v27 = vld [vmem:[#allocation139_spill] sm:$0xff]  ;;  %v7258_v26 = vld [vmem:[#allocation53_spill] sm:$0xff]  ;;  %v2543_v2 = vpop.permute.xlu0 %2542 }
 0x411   :  { %7233 = vst [vmem:[#allocation101_spill] sm:$0xff] %v6325_v11  ;;  %7235 = vst [vmem:[#allocation54_spill] sm:$0xff] %v6328_v31  ;;  %v6352_v20 = vmul.f32 %v2490_v4, %v7250_v50  ;;  %v6355_v8 = vmul.f32 %v2490_v4, %v7252_v27  ;;  %v6358_v23 = vmul.f32 %v2490_v4, %v7254_v0  ;;  %v7259_v28 = vld [vmem:[#allocation65_spill] sm:$0xff]  ;;  %v7263_v27 = vld [vmem:[#allocation108_spill] sm:$0xff] }
 0x412   :  { %7237 = vst [vmem:[#allocation79_spill] sm:$0xff] %v6331_v36  ;;  %7239 = vst [vmem:[#allocation76_spill] sm:$0xff] %v6334_v42  ;;  %v2512_v60 = vmul.f32 %v2495_v43, %v7256_v52  ;;  %v2617_v10 = vmul.f32 %v2495_v43, %v7257_v55  ;;  %v2682_v17 = vmul.f32 %v2495_v43, %v7258_v26  ;;  %v7260_v57 = vld [vmem:[#allocation77_spill] sm:$0xff] }
 0x413   :  { %7241 = vst [vmem:[#allocation67_spill] sm:$0xff] %v6337_v56  ;;  %7243 = vst [vmem:[#allocation140_spill] sm:$0xff] %v6340_v25  ;;  %v2747_v63 = vmul.f32 %v2495_v43, %v7259_v28  ;;  %v2812_v15 = vmul.f32 %v2495_v43, %v7260_v57 }
 0x414   :  { %7245 = vst [vmem:[#allocation51_spill] sm:$0xff] %v6343_v32  ;;  %7247 = vst [vmem:[#allocation64_spill] sm:$0xff] %v6346_v29  ;;  %v2560_v32 = vadd.f32 %v2543_v2, %v2512_v60  ;;  %v2625_v4 = vadd.f32 %v2617_v10, %v2543_v2  ;;  %v2690_v0 = vadd.f32 %v2682_v17, %v2543_v2 }
 0x415   :  { %7249 = vst [vmem:[#allocation89_spill] sm:$0xff] %v6349_v30  ;;  %7251 = vst [vmem:[#allocation138_spill] sm:$0xff] %v6352_v20  ;;  %v7261_v30 = vld [vmem:[#allocation87_spill] sm:$0xff]  ;;  %v7262_v20 = vld [vmem:[#allocation98_spill] sm:$0xff]  ;;  %v2820_v52 = vadd.f32 %v2812_v15, %v2543_v2  ;;  %v6368_v15 = vpop.permute.xlu1 %2499 }
 0x416   :  { %7253 = vst [vmem:[#allocation46_spill] sm:$0xff] %v6355_v8  ;;  %7255 = vst [vmem:[#allocation86_spill] sm:$0xff] %v6358_v23  ;;  %v2877_v50 = vmul.f32 %v2495_v43, %v7261_v30  ;;  %v2942_v29 = vmul.f32 %v2495_v43, %v7262_v20  ;;  %v3007_v8 = vmul.f32 %v2495_v43, %v7263_v27  ;;  %v2568_v26 = vmax.f32 %v2560_v32, 0.0 }
 0x417   :  { %v2755_v23 = vadd.f32 %v2747_v63, %v2543_v2  ;;  %v2633_v42 = vmax.f32 %v2625_v4, 0.0  ;;  %v2698_v28 = vmax.f32 %v2690_v0, 0.0  ;;  %v2828_v31 = vmax.f32 %v2820_v52, 0.0  ;;  %7264 = vst [vmem:[#allocation74_spill] sm:$0xff] %v6368_v15  ;;  %v7272_v0 = vld [vmem:[#allocation146_spill] sm:$0xff] }
 0x418   :  { %v2885_v25 = vadd.f32 %v2877_v50, %v2543_v2  ;;  %v2950_v55 = vadd.f32 %v2942_v29, %v2543_v2  ;;  %v3015_v56 = vadd.f32 %v3007_v8, %v2543_v2  ;;  %v3974_v40 = vpack.c.bf16 %v2568_v26, %v2568_v26  ;;  %v7270_v8 = vld [vmem:[#allocation132_spill] sm:$0xff]  ;;  %v7271_v50 = vld [vmem:[#allocation142_spill] sm:$0xff] }
 0x419   :  { %v2763_v36 = vmax.f32 %v2755_v23, 0.0  ;;  %v3982_v20 = vpack.c.bf16 %v2633_v42, %v2633_v42  ;;  %v3990_v34 = vpack.c.bf16 %v2698_v28, %v2698_v28  ;;  %v4006_v60 = vpack.c.bf16 %v2828_v31, %v2828_v31 }
 0x41a   :  { %v2893_v57 = vmax.f32 %v2885_v25, 0.0  ;;  %v2958_v11 = vmax.f32 %v2950_v55, 0.0  ;;  %v3023_v30 = vmax.f32 %v3015_v56, 0.0  ;;  %2609 = vst.msk [vmem:[%s6880_s4 + $0x14] sm:$0xf] %vm2603_vm2, %v3974_v40  ;;  %v7267_v40 = vld [vmem:[#allocation55_spill] sm:$0xff]  ;;  %v3397_v23 = vmul.f32 %v2495_v43, %v7270_v8  ;;  %v6410_v8 = vpop.permute.xlu1 %2504 }
 0x41b   :  { %v3998_v27 = vpack.c.bf16 %v2763_v36, %v2763_v36  ;;  %3742 = vst.msk [vmem:[%s6880_s4 + $0x34] sm:$0xf] %vm2603_vm2, %v3982_v20  ;;  %3758 = vst.msk [vmem:[%s6880_s4 + $0x54] sm:$0xf] %vm2603_vm2, %v3990_v34  ;;  %v7266_v36 = vld [vmem:[#allocation36_spill] sm:$0xff]  ;;  %v3202_v56 = vmul.f32 %v2495_v43, %v7267_v40  ;;  %v3462_v4 = vmul.f32 %v2495_v43, %v7271_v50 }
 0x41c   :  { %v4014_v10 = vpack.c.bf16 %v2893_v57, %v2893_v57  ;;  %v4022_v17 = vpack.c.bf16 %v2958_v11, %v2958_v11  ;;  %v4030_v63 = vpack.c.bf16 %v3023_v30, %v3023_v30  ;;  %v7265_v11 = vld [vmem:[#allocation20_spill] sm:$0xff]  ;;  %v3137_v42 = vmul.f32 %v2495_v43, %v7266_v36  ;;  %3790 = vst.msk [vmem:[%s6880_s4 + $0x94] sm:$0xf] %vm2603_vm2, %v4006_v60 }
 0x41d   :  { %3774 = vst.msk [vmem:[%s6880_s4 + $0x74] sm:$0xf] %vm2603_vm2, %v3998_v27  ;;  %v3072_v31 = vmul.f32 %v2495_v43, %v7265_v11  ;;  %v7268_v25 = vld [vmem:[#allocation116_spill] sm:$0xff]  ;;  %v3527_v52 = vmul.f32 %v2495_v43, %v7272_v0  ;;  %v3210_v28 = vadd.f32 %v3202_v56, %v2543_v2  ;;  %v3405_v20 = vadd.f32 %v3397_v23, %v2543_v2 }
 0x41e   :  { %v3267_v32 = vmul.f32 %v2495_v43, %v7268_v25  ;;  %3806 = vst.msk [vmem:[%s6880_s4 + $0xb4] sm:$0xf] %vm2603_vm2, %v4014_v10  ;;  %3822 = vst.msk [vmem:[%s6880_s4 + $0xd4] sm:$0xf] %vm2603_vm2, %v4022_v17  ;;  %v7269_v34 = vld [vmem:[#allocation124_spill] sm:$0xff]  ;;  %v3145_v26 = vadd.f32 %v3137_v42, %v2543_v2  ;;  %v3470_v27 = vadd.f32 %v3462_v4, %v2543_v2 }
 0x41f   :  { %3838 = vst.msk [vmem:[%s6880_s4 + $0xf4] sm:$0xf] %vm2603_vm2, %v4030_v63  ;;  %v3332_v29 = vmul.f32 %v2495_v43, %v7269_v34  ;;  %v3080_v55 = vadd.f32 %v3072_v31, %v2543_v2  ;;  %v3535_v60 = vadd.f32 %v3527_v52, %v2543_v2  ;;  %v3218_v11 = vmax.f32 %v3210_v28, 0.0  ;;  %v7274_v0 = vld [vmem:[#allocation32_spill] sm:$0xff]  ;;  %v7276_v28 = vld [vmem:[#allocation63_spill] sm:$0xff] }
 0x420   :  { %v3275_v57 = vadd.f32 %v3267_v32, %v2543_v2  ;;  %v3153_v17 = vmax.f32 %v3145_v26, 0.0  ;;  %v3413_v40 = vmax.f32 %v3405_v20, 0.0  ;;  %v3478_v25 = vmax.f32 %v3470_v27, 0.0  ;;  %v7277_v20 = vld [vmem:[#allocation75_spill] sm:$0xff] }
 0x421   :  { %v3340_v30 = vadd.f32 %v3332_v29, %v2543_v2  ;;  %v3088_v10 = vmax.f32 %v3080_v55, 0.0  ;;  %v3543_v34 = vmax.f32 %v3535_v60, 0.0  ;;  %v4054_v31 = vpack.c.bf16 %v3218_v11, %v3218_v11  ;;  %v7273_v2 = vld [vmem:[#allocation16_spill] sm:$0xff]  ;;  %v7275_v55 = vld [vmem:[#allocation49_spill] sm:$0xff] }
 0x422   :  { %v3283_v63 = vmax.f32 %v3275_v57, 0.0  ;;  %v4046_v43 = vpack.c.bf16 %v3153_v17, %v3153_v17  ;;  %v4078_v32 = vpack.c.bf16 %v3413_v40, %v3413_v40  ;;  %v4086_v29 = vpack.c.bf16 %v3478_v25, %v3478_v25  ;;  %v7278_v60 = vld [vmem:[#allocation85_spill] sm:$0xff] }
 0x423   :  { %v3348_v36 = vmax.f32 %v3340_v30, 0.0  ;;  %v4038_v50 = vpack.c.bf16 %v3088_v10, %v3088_v10  ;;  %v4094_v23 = vpack.c.bf16 %v3543_v34, %v3543_v34  ;;  %3886 = vst.msk [vmem:[%s6880_s4 + $0x154] sm:$0xf] %vm2603_vm2, %v4054_v31  ;;  %v2514_v4 = vmul.f32 %v7273_v2, %v6410_v8  ;;  %v2553_v30 = vpop.permute.xlu0 %2552  ;;  %v7279_v17 = vld [vmem:[#allocation97_spill] sm:$0xff] }
 0x424   :  { %v4062_v42 = vpack.c.bf16 %v3283_v63, %v3283_v63  ;;  %3870 = vst.msk [vmem:[%s6880_s4 + $0x134] sm:$0xf] %vm2603_vm2, %v4046_v43  ;;  %v2619_v52 = vmul.f32 %v7274_v0, %v6410_v8  ;;  %v2684_v26 = vmul.f32 %v7275_v55, %v6410_v8  ;;  %v2749_v57 = vmul.f32 %v7276_v28, %v6410_v8  ;;  %v7280_v63 = vld [vmem:[#allocation107_spill] sm:$0xff] }
 0x425   :  { %v4070_v56 = vpack.c.bf16 %v3348_v36, %v3348_v36  ;;  %3854 = vst.msk [vmem:[%s6880_s4 + $0x114] sm:$0xf] %vm2603_vm2, %v4038_v50  ;;  %3934 = vst.msk [vmem:[%s6880_s4 + $0x1b4] sm:$0xf] %vm2603_vm2, %v4078_v32  ;;  %v2814_v27 = vmul.f32 %v7277_v20, %v6410_v8  ;;  %v2879_v10 = vmul.f32 %v7278_v60, %v6410_v8 }
 0x426   :  { %3902 = vst.msk [vmem:[%s6880_s4 + $0x174] sm:$0xf] %vm2603_vm2, %v4062_v42  ;;  %3950 = vst.msk [vmem:[%s6880_s4 + $0x1d4] sm:$0xf] %vm2603_vm2, %v4086_v29  ;;  %v2944_v11 = vmul.f32 %v7279_v17, %v6410_v8  ;;  %v3009_v36 = vmul.f32 %v7280_v63, %v6410_v8  ;;  %v2562_v40 = vadd.f32 %v2553_v30, %v2514_v4 }
 0x427   :  { %3918 = vst.msk [vmem:[%s6880_s4 + $0x194] sm:$0xf] %vm2603_vm2, %v4070_v56  ;;  %3966 = vst.msk [vmem:[%s6880_s4 + $0x1f4] sm:$0xf] %vm2603_vm2, %v4094_v23  ;;  %v2627_v25 = vadd.f32 %v2619_v52, %v2553_v30  ;;  %v2692_v34 = vadd.f32 %v2684_v26, %v2553_v30  ;;  %v2757_v50 = vadd.f32 %v2749_v57, %v2553_v30 }
 0x428   :  { %v2822_v43 = vadd.f32 %v2814_v27, %v2553_v30  ;;  %v2887_v31 = vadd.f32 %v2879_v10, %v2553_v30  ;;  %v2952_v42 = vadd.f32 %v2944_v11, %v2553_v30  ;;  %v3017_v56 = vadd.f32 %v3009_v36, %v2553_v30  ;;  %v7281_v27 = vld [vmem:[#allocation18_spill] sm:$0xff] }
 0x429   :  { %v2570_v32 = vmax.f32 %v2562_v40, 0.0  ;;  %v2635_v29 = vmax.f32 %v2627_v25, 0.0  ;;  %v2700_v23 = vmax.f32 %v2692_v34, 0.0  ;;  %v2765_v2 = vmax.f32 %v2757_v50, 0.0  ;;  %v7282_v11 = vld [vmem:[#allocation34_spill] sm:$0xff]  ;;  %v7283_v40 = vld [vmem:[#allocation52_spill] sm:$0xff] }
 0x42a   :  { %v2830_v0 = vmax.f32 %v2822_v43, 0.0  ;;  %v2895_v55 = vmax.f32 %v2887_v31, 0.0  ;;  %v2960_v28 = vmax.f32 %v2952_v42, 0.0  ;;  %v3025_v20 = vmax.f32 %v3017_v56, 0.0  ;;  %v7284_v34 = vld [vmem:[#allocation115_spill] sm:$0xff]  ;;  %v7287_v56 = vld [vmem:[#allocation141_spill] sm:$0xff] }
 0x42b   :  { %v3976_v60 = vpack.c.bf16 %v2570_v32, %v2570_v32  ;;  %v3984_v17 = vpack.c.bf16 %v2635_v29, %v2635_v29  ;;  %v3992_v15 = vpack.c.bf16 %v2700_v23, %v2700_v23  ;;  %v4000_v63 = vpack.c.bf16 %v2765_v2, %v2765_v2  ;;  %v7286_v31 = vld [vmem:[#allocation131_spill] sm:$0xff]  ;;  %v7288_v29 = vld [vmem:[#allocation145_spill] sm:$0xff] }
 0x42c   :  { %v4008_v4 = vpack.c.bf16 %v2830_v0, %v2830_v0  ;;  %v4016_v52 = vpack.c.bf16 %v2895_v55, %v2895_v55  ;;  %v4024_v26 = vpack.c.bf16 %v2960_v28, %v2960_v28  ;;  %v4032_v57 = vpack.c.bf16 %v3025_v20, %v3025_v20 }
 0x42d   :  { %2611 = vst.msk [vmem:[%s6880_s4 + $0x1c] sm:$0xf] %vm2603_vm2, %v3976_v60  ;;  %3744 = vst.msk [vmem:[%s6880_s4 + $0x3c] sm:$0xf] %vm2603_vm2, %v3984_v17  ;;  %v3074_v10 = vmul.f32 %v7281_v27, %v6410_v8  ;;  %v3139_v36 = vmul.f32 %v7282_v11, %v6410_v8  ;;  %v3204_v25 = vmul.f32 %v7283_v40, %v6410_v8 }
 0x42e   :  { %3760 = vst.msk [vmem:[%s6880_s4 + $0x5c] sm:$0xf] %vm2603_vm2, %v3992_v15  ;;  %3776 = vst.msk [vmem:[%s6880_s4 + $0x7c] sm:$0xf] %vm2603_vm2, %v4000_v63  ;;  %v3269_v50 = vmul.f32 %v7284_v34, %v6410_v8  ;;  %v7285_v15 = vld [vmem:[#allocation123_spill] sm:$0xff]  ;;  %v3399_v42 = vmul.f32 %v7286_v31, %v6410_v8  ;;  %v3464_v32 = vmul.f32 %v7287_v56, %v6410_v8 }
 0x42f   :  { %3792 = vst.msk [vmem:[%s6880_s4 + $0x9c] sm:$0xf] %vm2603_vm2, %v4008_v4  ;;  %3808 = vst.msk [vmem:[%s6880_s4 + $0xbc] sm:$0xf] %vm2603_vm2, %v4016_v52  ;;  %v3334_v43 = vmul.f32 %v7285_v15, %v6410_v8  ;;  %v3529_v23 = vmul.f32 %v7288_v29, %v6410_v8  ;;  %v3082_v2 = vadd.f32 %v3074_v10, %v2553_v30  ;;  %v2518_v15 = vpop.permute.xlu1 %2517 }
 0x430   :  { %3824 = vst.msk [vmem:[%s6880_s4 + $0xdc] sm:$0xf] %vm2603_vm2, %v4024_v26  ;;  %3840 = vst.msk [vmem:[%s6880_s4 + $0xfc] sm:$0xf] %vm2603_vm2, %v4032_v57  ;;  %v3147_v0 = vadd.f32 %v3139_v36, %v2553_v30  ;;  %v3212_v55 = vadd.f32 %v3204_v25, %v2553_v30  ;;  %v3277_v28 = vadd.f32 %v3269_v50, %v2553_v30 }
 0x431   :  { %v3342_v20 = vadd.f32 %v3334_v43, %v2553_v30  ;;  %v3407_v60 = vadd.f32 %v3399_v42, %v2553_v30  ;;  %v3472_v17 = vadd.f32 %v3464_v32, %v2553_v30  ;;  %v3537_v63 = vadd.f32 %v3529_v23, %v2553_v30 }
 0x432   :  { %v3090_v4 = vmax.f32 %v3082_v2, 0.0  ;;  %v3155_v52 = vmax.f32 %v3147_v0, 0.0  ;;  %v3220_v26 = vmax.f32 %v3212_v55, 0.0  ;;  %v3285_v57 = vmax.f32 %v3277_v28, 0.0 }
 0x433   :  { %v3350_v27 = vmax.f32 %v3342_v20, 0.0  ;;  %v3415_v11 = vmax.f32 %v3407_v60, 0.0  ;;  %v3480_v40 = vmax.f32 %v3472_v17, 0.0  ;;  %v3545_v34 = vmax.f32 %v3537_v63, 0.0 }
 0x434   :  { %v4040_v31 = vpack.c.bf16 %v3090_v4, %v3090_v4  ;;  %v4048_v56 = vpack.c.bf16 %v3155_v52, %v3155_v52  ;;  %v4056_v8 = vpack.c.bf16 %v3220_v26, %v3220_v26  ;;  %v4064_v10 = vpack.c.bf16 %v3285_v57, %v3285_v57 }
 0x435   :  { %v4072_v36 = vpack.c.bf16 %v3350_v27, %v3350_v27  ;;  %v4080_v25 = vpack.c.bf16 %v3415_v11, %v3415_v11  ;;  %v4088_v50 = vpack.c.bf16 %v3480_v40, %v3480_v40  ;;  %v4096_v43 = vpack.c.bf16 %v3545_v34, %v3545_v34 }
 0x436   :  { %3856 = vst.msk [vmem:[%s6880_s4 + $0x11c] sm:$0xf] %vm2603_vm2, %v4040_v31  ;;  %3872 = vst.msk [vmem:[%s6880_s4 + $0x13c] sm:$0xf] %vm2603_vm2, %v4048_v56  ;;  %v2555_v30 = vadd.f32 %v2518_v15, %v6057_v12  ;;  %v2620_v42 = vadd.f32 %v6060_v61, %v2518_v15  ;;  %v2685_v32 = vadd.f32 %v6063_v49, %v2518_v15 }
 0x437   :  { %3888 = vst.msk [vmem:[%s6880_s4 + $0x15c] sm:$0xf] %vm2603_vm2, %v4056_v8  ;;  %3904 = vst.msk [vmem:[%s6880_s4 + $0x17c] sm:$0xf] %vm2603_vm2, %v4064_v10  ;;  %v2750_v29 = vadd.f32 %v6066_v13, %v2518_v15  ;;  %v2815_v12 = vadd.f32 %v6069_v3, %v2518_v15  ;;  %v2880_v61 = vadd.f32 %v6072_v21, %v2518_v15 }
 0x438   :  { %3920 = vst.msk [vmem:[%s6880_s4 + $0x19c] sm:$0xf] %vm2603_vm2, %v4072_v36  ;;  %3936 = vst.msk [vmem:[%s6880_s4 + $0x1bc] sm:$0xf] %vm2603_vm2, %v4080_v25  ;;  %v2945_v49 = vadd.f32 %v6075_v47, %v2518_v15  ;;  %v3010_v13 = vadd.f32 %v6078_v39, %v2518_v15  ;;  %v2563_v23 = vmax.f32 %v2555_v30, 0.0  ;;  %v2628_v2 = vmax.f32 %v2620_v42, 0.0 }
 0x439   :  { %3952 = vst.msk [vmem:[%s6880_s4 + $0x1dc] sm:$0xf] %vm2603_vm2, %v4088_v50  ;;  %3968 = vst.msk [vmem:[%s6880_s4 + $0x1fc] sm:$0xf] %vm2603_vm2, %v4096_v43  ;;  %v2693_v0 = vmax.f32 %v2685_v32, 0.0  ;;  %v2758_v55 = vmax.f32 %v2750_v29, 0.0  ;;  %v3075_v47 = vadd.f32 %v6081_v33, %v2518_v15  ;;  %v3140_v39 = vadd.f32 %v6084_v19, %v2518_v15  ;;  %v2528_v43 = vpop.permute.xlu1 %2527 }
 0x43a   :  { %v2823_v28 = vmax.f32 %v2815_v12, 0.0  ;;  %v2888_v20 = vmax.f32 %v2880_v61, 0.0  ;;  %v2953_v60 = vmax.f32 %v2945_v49, 0.0  ;;  %v3018_v17 = vmax.f32 %v3010_v13, 0.0 }
 0x43b   :  { %v3969_v63 = vpack.c.bf16 %v2563_v23, %v2563_v23  ;;  %v3977_v4 = vpack.c.bf16 %v2628_v2, %v2628_v2  ;;  %v3985_v52 = vpack.c.bf16 %v2693_v0, %v2693_v0  ;;  %v3993_v26 = vpack.c.bf16 %v2758_v55, %v2758_v55 }
 0x43c   :  { %v4001_v57 = vpack.c.bf16 %v2823_v28, %v2823_v28  ;;  %v4009_v3 = vpack.c.bf16 %v2888_v20, %v2888_v20  ;;  %v4017_v27 = vpack.c.bf16 %v2953_v60, %v2953_v60  ;;  %v4025_v21 = vpack.c.bf16 %v3018_v17, %v3018_v17 }
 0x43d   :  { %2604 = vst.msk [vmem:[%s6880_s4] sm:$0xf] %vm2603_vm2, %v3969_v63  ;;  %3737 = vst.msk [vmem:[%s6880_s4 + $0x20] sm:$0xf] %vm2603_vm2, %v3977_v4  ;;  %v3205_v11 = vadd.f32 %v6087_v58, %v2518_v15  ;;  %v3270_v40 = vadd.f32 %v6090_v41, %v2518_v15  ;;  %v3335_v33 = vadd.f32 %v6093_v5, %v2518_v15  ;;  %v3083_v34 = vmax.f32 %v3075_v47, 0.0 }
 0x43e   :  { %3753 = vst.msk [vmem:[%s6880_s4 + $0x40] sm:$0xf] %vm2603_vm2, %v3985_v52  ;;  %3769 = vst.msk [vmem:[%s6880_s4 + $0x60] sm:$0xf] %vm2603_vm2, %v3993_v26  ;;  %v3400_v19 = vadd.f32 %v6096_v44, %v2518_v15  ;;  %v3465_v58 = vadd.f32 %v6099_v1, %v2518_v15  ;;  %v3530_v41 = vadd.f32 %v6102_v35, %v2518_v15  ;;  %v3148_v31 = vmax.f32 %v3140_v39, 0.0 }
 0x43f   :  { %3785 = vst.msk [vmem:[%s6880_s4 + $0x80] sm:$0xf] %vm2603_vm2, %v4001_v57  ;;  %3801 = vst.msk [vmem:[%s6880_s4 + $0xa0] sm:$0xf] %vm2603_vm2, %v4009_v3  ;;  %v3213_v56 = vmax.f32 %v3205_v11, 0.0  ;;  %v3278_v8 = vmax.f32 %v3270_v40, 0.0  ;;  %v4033_v30 = vpack.c.bf16 %v3083_v34, %v3083_v34  ;;  %v2557_v1 = vadd.f32 %v2528_v43, %v6169_v37 }
 0x440   :  { %3817 = vst.msk [vmem:[%s6880_s4 + $0xc0] sm:$0xf] %vm2603_vm2, %v4017_v27  ;;  %3833 = vst.msk [vmem:[%s6880_s4 + $0xe0] sm:$0xf] %vm2603_vm2, %v4025_v21  ;;  %v3343_v10 = vmax.f32 %v3335_v33, 0.0  ;;  %v3408_v36 = vmax.f32 %v3400_v19, 0.0  ;;  %v4041_v42 = vpack.c.bf16 %v3148_v31, %v3148_v31  ;;  %v2622_v35 = vadd.f32 %v6172_v38, %v2528_v43 }
 0x441   :  { %v3473_v25 = vmax.f32 %v3465_v58, 0.0  ;;  %v3538_v50 = vmax.f32 %v3530_v41, 0.0  ;;  %v4049_v32 = vpack.c.bf16 %v3213_v56, %v3213_v56  ;;  %v4057_v29 = vpack.c.bf16 %v3278_v8, %v3278_v8  ;;  %3849 = vst.msk [vmem:[%s6880_s4 + $0x100] sm:$0xf] %vm2603_vm2, %v4033_v30  ;;  %v2538_v41 = vpop.permute.xlu1 %2537 }
 0x442   :  { %v4065_v5 = vpack.c.bf16 %v3343_v10, %v3343_v10  ;;  %v4073_v12 = vpack.c.bf16 %v3408_v36, %v3408_v36  ;;  %3865 = vst.msk [vmem:[%s6880_s4 + $0x120] sm:$0xf] %vm2603_vm2, %v4041_v42  ;;  %v2687_v15 = vadd.f32 %v6175_v18, %v2528_v43  ;;  %v2752_v49 = vadd.f32 %v6178_v54, %v2528_v43  ;;  %v7292_v42 = vld [vmem:[#allocation54_spill] sm:$0xff] }
 0x443   :  { %v4081_v44 = vpack.c.bf16 %v3473_v25, %v3473_v25  ;;  %v4089_v61 = vpack.c.bf16 %v3538_v50, %v3538_v50  ;;  %3881 = vst.msk [vmem:[%s6880_s4 + $0x140] sm:$0xf] %vm2603_vm2, %v4049_v32  ;;  %3897 = vst.msk [vmem:[%s6880_s4 + $0x160] sm:$0xf] %vm2603_vm2, %v4057_v29  ;;  %v2817_v37 = vadd.f32 %v6197_v62, %v2528_v43  ;;  %v2565_v13 = vmax.f32 %v2557_v1, 0.0  ;;  %v7289_v25 = vld [vmem:[#allocation57_spill] sm:$0xff] }
 0x444   :  { %3913 = vst.msk [vmem:[%s6880_s4 + $0x180] sm:$0xf] %vm2603_vm2, %v4065_v5  ;;  %3929 = vst.msk [vmem:[%s6880_s4 + $0x1a0] sm:$0xf] %vm2603_vm2, %v4073_v12  ;;  %v2882_v38 = vadd.f32 %v6200_v16, %v2528_v43  ;;  %v2947_v18 = vadd.f32 %v6203_v46, %v2528_v43  ;;  %v3012_v54 = vadd.f32 %v6206_v59, %v2528_v43  ;;  %v2630_v23 = vmax.f32 %v2622_v35, 0.0  ;;  %v7293_v29 = vld [vmem:[#allocation79_spill] sm:$0xff] }
 0x445   :  { %3945 = vst.msk [vmem:[%s6880_s4 + $0x1c0] sm:$0xf] %vm2603_vm2, %v4081_v44  ;;  %3961 = vst.msk [vmem:[%s6880_s4 + $0x1e0] sm:$0xf] %vm2603_vm2, %v4089_v61  ;;  %v2695_v2 = vmax.f32 %v2687_v15, 0.0  ;;  %v2760_v0 = vmax.f32 %v2752_v49, 0.0  ;;  %v3971_v17 = vpack.c.bf16 %v2565_v13, %v2565_v13  ;;  %v3077_v46 = vadd.f32 %v6209_v14, %v2528_v43 }
 0x446   :  { %v2825_v55 = vmax.f32 %v2817_v37, 0.0  ;;  %v2890_v28 = vmax.f32 %v2882_v38, 0.0  ;;  %v2955_v20 = vmax.f32 %v2947_v18, 0.0  ;;  %v3020_v60 = vmax.f32 %v3012_v54, 0.0  ;;  %v7294_v12 = vld [vmem:[#allocation76_spill] sm:$0xff] }
 0x447   :  { %v3979_v63 = vpack.c.bf16 %v2630_v23, %v2630_v23  ;;  %v3987_v4 = vpack.c.bf16 %v2695_v2, %v2695_v2  ;;  %v3995_v52 = vpack.c.bf16 %v2760_v0, %v2760_v0  ;;  %2606 = vst.msk [vmem:[%s6880_s4 + $0x8] sm:$0xf] %vm2603_vm2, %v3971_v17  ;;  %v3142_v59 = vadd.f32 %v6212_v45, %v2528_v43 }
 0x448   :  { %v4003_v26 = vpack.c.bf16 %v2825_v55, %v2825_v55  ;;  %v4011_v62 = vpack.c.bf16 %v2890_v28, %v2890_v28  ;;  %v4019_v57 = vpack.c.bf16 %v2955_v20, %v2955_v20  ;;  %v4027_v16 = vpack.c.bf16 %v3020_v60, %v3020_v60  ;;  %v7295_v60 = vld [vmem:[#allocation67_spill] sm:$0xff] }
 0x449   :  { %3739 = vst.msk [vmem:[%s6880_s4 + $0x28] sm:$0xf] %vm2603_vm2, %v3979_v63  ;;  %3755 = vst.msk [vmem:[%s6880_s4 + $0x48] sm:$0xf] %vm2603_vm2, %v3987_v4  ;;  %v3207_v3 = vadd.f32 %v6215_v9, %v2528_v43  ;;  %v3272_v27 = vadd.f32 %v6218_v51, %v2528_v43  ;;  %v3337_v14 = vadd.f32 %v6221_v48, %v2528_v43  ;;  %v3085_v21 = vmax.f32 %v3077_v46, 0.0  ;;  %v7296_v63 = vld [vmem:[#allocation140_spill] sm:$0xff] }
 0x44a   :  { %3771 = vst.msk [vmem:[%s6880_s4 + $0x68] sm:$0xf] %vm2603_vm2, %v3995_v52  ;;  %3787 = vst.msk [vmem:[%s6880_s4 + $0x88] sm:$0xf] %vm2603_vm2, %v4003_v26  ;;  %v3402_v45 = vadd.f32 %v6224_v24, %v2528_v43  ;;  %v3467_v9 = vadd.f32 %v6227_v7, %v2528_v43  ;;  %v3532_v51 = vadd.f32 %v6230_v6, %v2528_v43  ;;  %v3150_v47 = vmax.f32 %v3142_v59, 0.0  ;;  %v7290_v43 = vld [vmem:[#allocation100_spill] sm:$0xff] }
 0x44b   :  { %3803 = vst.msk [vmem:[%s6880_s4 + $0xa8] sm:$0xf] %vm2603_vm2, %v4011_v62  ;;  %3819 = vst.msk [vmem:[%s6880_s4 + $0xc8] sm:$0xf] %vm2603_vm2, %v4019_v57  ;;  %v3215_v39 = vmax.f32 %v3207_v3, 0.0  ;;  %v3280_v11 = vmax.f32 %v3272_v27, 0.0  ;;  %v4035_v34 = vpack.c.bf16 %v3085_v21, %v3085_v21  ;;  %v2559_v7 = vadd.f32 %v2538_v41, %v6297_v22 }
 0x44c   :  { %3835 = vst.msk [vmem:[%s6880_s4 + $0xe8] sm:$0xf] %vm2603_vm2, %v4027_v16  ;;  %v3345_v40 = vmax.f32 %v3337_v14, 0.0  ;;  %v3410_v33 = vmax.f32 %v3402_v45, 0.0  ;;  %v3475_v19 = vmax.f32 %v3467_v9, 0.0  ;;  %v3540_v58 = vmax.f32 %v3532_v51, 0.0 }
 0x44d   :  { %v4043_v31 = vpack.c.bf16 %v3150_v47, %v3150_v47  ;;  %v4051_v56 = vpack.c.bf16 %v3215_v39, %v3215_v39  ;;  %v4059_v8 = vpack.c.bf16 %v3280_v11, %v3280_v11  ;;  %3851 = vst.msk [vmem:[%s6880_s4 + $0x108] sm:$0xf] %vm2603_vm2, %v4035_v34  ;;  %v2624_v6 = vadd.f32 %v6300_v53, %v2538_v41  ;;  %v7291_v22 = vld [vmem:[#allocation101_spill] sm:$0xff]  ;;  %v7297_v52 = vld [vmem:[#allocation51_spill] sm:$0xff]  ;;  %v7298_v62 = vld [vmem:[#allocation64_spill] sm:$0xff] }
 0x44e   :  { %v4067_v48 = vpack.c.bf16 %v3345_v40, %v3345_v40  ;;  %v4075_v10 = vpack.c.bf16 %v3410_v33, %v3410_v33  ;;  %v4083_v24 = vpack.c.bf16 %v3475_v19, %v3475_v19  ;;  %v4091_v36 = vpack.c.bf16 %v3540_v58, %v3540_v58  ;;  %v7299_v16 = vld [vmem:[#allocation89_spill] sm:$0xff]  ;;  %v7300_v59 = vld [vmem:[#allocation138_spill] sm:$0xff] }
 0x44f   :  { %3867 = vst.msk [vmem:[%s6880_s4 + $0x128] sm:$0xf] %vm2603_vm2, %v4043_v31  ;;  %3883 = vst.msk [vmem:[%s6880_s4 + $0x148] sm:$0xf] %vm2603_vm2, %v4051_v56  ;;  %v2689_v50 = vadd.f32 %v7289_v25, %v2538_v41  ;;  %v2754_v30 = vadd.f32 %v7290_v43, %v2538_v41  ;;  %v2819_v53 = vadd.f32 %v7291_v22, %v2538_v41  ;;  %v2567_v61 = vmax.f32 %v2559_v7, 0.0  ;;  %v7301_v27 = vld [vmem:[#allocation46_spill] sm:$0xff] }
 0x450   :  { %3899 = vst.msk [vmem:[%s6880_s4 + $0x168] sm:$0xf] %vm2603_vm2, %v4059_v8  ;;  %3915 = vst.msk [vmem:[%s6880_s4 + $0x188] sm:$0xf] %vm2603_vm2, %v4067_v48  ;;  %v2884_v32 = vadd.f32 %v7292_v42, %v2538_v41  ;;  %v2949_v5 = vadd.f32 %v7293_v29, %v2538_v41  ;;  %v3014_v44 = vadd.f32 %v7294_v12, %v2538_v41  ;;  %v2632_v1 = vmax.f32 %v2624_v6, 0.0  ;;  %v7302_v45 = vld [vmem:[#allocation86_spill] sm:$0xff] }
 0x451   :  { %3931 = vst.msk [vmem:[%s6880_s4 + $0x1a8] sm:$0xf] %vm2603_vm2, %v4075_v10  ;;  %3947 = vst.msk [vmem:[%s6880_s4 + $0x1c8] sm:$0xf] %vm2603_vm2, %v4083_v24  ;;  %v2697_v35 = vmax.f32 %v2689_v50, 0.0  ;;  %v2762_v15 = vmax.f32 %v2754_v30, 0.0  ;;  %v3973_v54 = vpack.c.bf16 %v2567_v61, %v2567_v61  ;;  %v3079_v17 = vadd.f32 %v7295_v60, %v2538_v41 }
 0x452   :  { %3963 = vst.msk [vmem:[%s6880_s4 + $0x1e8] sm:$0xf] %vm2603_vm2, %v4091_v36  ;;  %v2827_v49 = vmax.f32 %v2819_v53, 0.0  ;;  %v2892_v37 = vmax.f32 %v2884_v32, 0.0  ;;  %v2957_v38 = vmax.f32 %v2949_v5, 0.0  ;;  %v3022_v18 = vmax.f32 %v3014_v44, 0.0 }
 0x453   :  { %v3981_v13 = vpack.c.bf16 %v2632_v1, %v2632_v1  ;;  %v3989_v23 = vpack.c.bf16 %v2697_v35, %v2697_v35  ;;  %v3997_v2 = vpack.c.bf16 %v2762_v15, %v2762_v15  ;;  %2608 = vst.msk [vmem:[%s6880_s4 + $0x10] sm:$0xf] %vm2603_vm2, %v3973_v54  ;;  %v3144_v4 = vadd.f32 %v7296_v63, %v2538_v41  ;;  %v7304_v36 = vld [vmem:[#allocation13_spill] sm:$0xff]  ;;  %v7308_v53 = vld [vmem:[#allocation72_spill] sm:$0xff]  ;;  %v7309_v32 = vld [vmem:[#allocation83_spill] sm:$0xff]  ;;  %v2548_v1 = vpop.permute.xlu1 %2547 }
 0x454   :  { %v4005_v0 = vpack.c.bf16 %v2827_v49, %v2827_v49  ;;  %v4013_v55 = vpack.c.bf16 %v2892_v37, %v2892_v37  ;;  %v4021_v28 = vpack.c.bf16 %v2957_v38, %v2957_v38  ;;  %v4029_v20 = vpack.c.bf16 %v3022_v18, %v3022_v18  ;;  %v7305_v6 = vld [vmem:[#allocation29_spill] sm:$0xff]  ;;  %v7310_v5 = vld [vmem:[#allocation94_spill] sm:$0xff]  ;;  %v7312_v35 = vld [vmem:[#allocation15_spill] sm:$0xff] }
 0x455   :  { %3741 = vst.msk [vmem:[%s6880_s4 + $0x30] sm:$0xf] %vm2603_vm2, %v3981_v13  ;;  %3757 = vst.msk [vmem:[%s6880_s4 + $0x50] sm:$0xf] %vm2603_vm2, %v3989_v23  ;;  %v3209_v26 = vadd.f32 %v7297_v52, %v2538_v41  ;;  %v3274_v57 = vadd.f32 %v7298_v62, %v2538_v41  ;;  %v3339_v46 = vadd.f32 %v7299_v16, %v2538_v41  ;;  %v3087_v51 = vmax.f32 %v3079_v17, 0.0  ;;  %v7306_v50 = vld [vmem:[#allocation45_spill] sm:$0xff] }
 0x456   :  { %3773 = vst.msk [vmem:[%s6880_s4 + $0x70] sm:$0xf] %vm2603_vm2, %v3997_v2  ;;  %3789 = vst.msk [vmem:[%s6880_s4 + $0x90] sm:$0xf] %vm2603_vm2, %v4005_v0  ;;  %v3404_v3 = vadd.f32 %v7300_v59, %v2538_v41  ;;  %v3469_v14 = vadd.f32 %v7301_v27, %v2538_v41  ;;  %v3534_v9 = vadd.f32 %v7302_v45, %v2538_v41  ;;  %v3152_v21 = vmax.f32 %v3144_v4, 0.0  ;;  %v7303_v41 = vld [vmem:[#allocation74_spill] sm:$0xff] }
 0x457   :  { %3805 = vst.msk [vmem:[%s6880_s4 + $0xb0] sm:$0xf] %vm2603_vm2, %v4013_v55  ;;  %3821 = vst.msk [vmem:[%s6880_s4 + $0xd0] sm:$0xf] %vm2603_vm2, %v4021_v28  ;;  %v3217_v47 = vmax.f32 %v3209_v26, 0.0  ;;  %v3282_v39 = vmax.f32 %v3274_v57, 0.0  ;;  %v4037_v58 = vpack.c.bf16 %v3087_v51, %v3087_v51  ;;  %v2513_v7 = vmul.f32 %v7304_v36, %v7303_v41 }
 0x458   :  { %3837 = vst.msk [vmem:[%s6880_s4 + $0xf0] sm:$0xf] %vm2603_vm2, %v4029_v20  ;;  %v3347_v11 = vmax.f32 %v3339_v46, 0.0  ;;  %v3412_v40 = vmax.f32 %v3404_v3, 0.0  ;;  %v3477_v33 = vmax.f32 %v3469_v14, 0.0  ;;  %v3542_v19 = vmax.f32 %v3534_v9, 0.0 }
 0x459   :  { %v4045_v34 = vpack.c.bf16 %v3152_v21, %v3152_v21  ;;  %v4053_v31 = vpack.c.bf16 %v3217_v47, %v3217_v47  ;;  %v4061_v56 = vpack.c.bf16 %v3282_v39, %v3282_v39  ;;  %3853 = vst.msk [vmem:[%s6880_s4 + $0x110] sm:$0xf] %vm2603_vm2, %v4037_v58  ;;  %v2618_v25 = vmul.f32 %v7305_v6, %v7303_v41  ;;  %v7307_v30 = vld [vmem:[#allocation61_spill] sm:$0xff]  ;;  %v7313_v49 = vld [vmem:[#allocation31_spill] sm:$0xff]  ;;  %v7314_v38 = vld [vmem:[#allocation48_spill] sm:$0xff] }
 0x45a   :  { %v4069_v8 = vpack.c.bf16 %v3347_v11, %v3347_v11  ;;  %v4077_v48 = vpack.c.bf16 %v3412_v40, %v3412_v40  ;;  %v4085_v10 = vpack.c.bf16 %v3477_v33, %v3477_v33  ;;  %v4093_v24 = vpack.c.bf16 %v3542_v19, %v3542_v19  ;;  %v7311_v44 = vld [vmem:[#allocation105_spill] sm:$0xff]  ;;  %v7319_v60 = vld [vmem:[#allocation143_spill] sm:$0xff] }
 0x45b   :  { %3869 = vst.msk [vmem:[%s6880_s4 + $0x130] sm:$0xf] %vm2603_vm2, %v4045_v34  ;;  %3885 = vst.msk [vmem:[%s6880_s4 + $0x150] sm:$0xf] %vm2603_vm2, %v4053_v31  ;;  %v2683_v43 = vmul.f32 %v7306_v50, %v7303_v41  ;;  %v2748_v22 = vmul.f32 %v7307_v30, %v7303_v41  ;;  %v2813_v42 = vmul.f32 %v7308_v53, %v7303_v41  ;;  %v7315_v54 = vld [vmem:[#allocation113_spill] sm:$0xff] }
 0x45c   :  { %3901 = vst.msk [vmem:[%s6880_s4 + $0x170] sm:$0xf] %vm2603_vm2, %v4061_v56  ;;  %3917 = vst.msk [vmem:[%s6880_s4 + $0x190] sm:$0xf] %vm2603_vm2, %v4069_v8  ;;  %v2878_v29 = vmul.f32 %v7309_v32, %v7303_v41  ;;  %v2943_v12 = vmul.f32 %v7310_v5, %v7303_v41  ;;  %v3008_v61 = vmul.f32 %v7311_v44, %v7303_v41  ;;  %v7316_v23 = vld [vmem:[#allocation121_spill] sm:$0xff] }
 0x45d   :  { %3933 = vst.msk [vmem:[%s6880_s4 + $0x1b0] sm:$0xf] %vm2603_vm2, %v4077_v48  ;;  %3949 = vst.msk [vmem:[%s6880_s4 + $0x1d0] sm:$0xf] %vm2603_vm2, %v4085_v10  ;;  %v3073_v15 = vmul.f32 %v7312_v35, %v7303_v41  ;;  %v3138_v37 = vmul.f32 %v7313_v49, %v7303_v41  ;;  %v3203_v18 = vmul.f32 %v7314_v38, %v7303_v41  ;;  %v7317_v0 = vld [vmem:[#allocation129_spill] sm:$0xff] }
 0x45e   :  { %3965 = vst.msk [vmem:[%s6880_s4 + $0x1f0] sm:$0xf] %vm2603_vm2, %v4093_v24  ;;  %v3268_v13 = vmul.f32 %v7315_v54, %v7303_v41  ;;  %v3333_v2 = vmul.f32 %v7316_v23, %v7303_v41  ;;  %v3398_v55 = vmul.f32 %v7317_v0, %v7303_v41  ;;  %v7318_v28 = vld [vmem:[#allocation137_spill] sm:$0xff]  ;;  %v3528_v17 = vmul.f32 %v7319_v60, %v7303_v41 }
 0x45f   :  { %v3463_v20 = vmul.f32 %v7318_v28, %v7303_v41  ;;  %v2561_v63 = vadd.f32 %v2548_v1, %v2513_v7  ;;  %v2626_v4 = vadd.f32 %v2618_v25, %v2548_v1  ;;  %v2691_v52 = vadd.f32 %v2683_v43, %v2548_v1 }
 0x460   :  { %v2756_v26 = vadd.f32 %v2748_v22, %v2548_v1  ;;  %v2821_v62 = vadd.f32 %v2813_v42, %v2548_v1  ;;  %v2886_v57 = vadd.f32 %v2878_v29, %v2548_v1  ;;  %v2951_v16 = vadd.f32 %v2943_v12, %v2548_v1 }
 0x461   :  { %v3016_v46 = vadd.f32 %v3008_v61, %v2548_v1  ;;  %v2569_v59 = vmax.f32 %v2561_v63, 0.0  ;;  %v2634_v3 = vmax.f32 %v2626_v4, 0.0  ;;  %v2699_v27 = vmax.f32 %v2691_v52, 0.0 }
 0x462   :  { %v2764_v14 = vmax.f32 %v2756_v26, 0.0  ;;  %v2829_v45 = vmax.f32 %v2821_v62, 0.0  ;;  %v2894_v9 = vmax.f32 %v2886_v57, 0.0  ;;  %v2959_v51 = vmax.f32 %v2951_v16, 0.0 }
 0x463   :  { %v3024_v21 = vmax.f32 %v3016_v46, 0.0  ;;  %v3975_v47 = vpack.c.bf16 %v2569_v59, %v2569_v59  ;;  %v3983_v39 = vpack.c.bf16 %v2634_v3, %v2634_v3  ;;  %v3991_v11 = vpack.c.bf16 %v2699_v27, %v2699_v27 }
 0x464   :  { %v3999_v40 = vpack.c.bf16 %v2764_v14, %v2764_v14  ;;  %v4007_v33 = vpack.c.bf16 %v2829_v45, %v2829_v45  ;;  %v4015_v19 = vpack.c.bf16 %v2894_v9, %v2894_v9  ;;  %v4023_v58 = vpack.c.bf16 %v2959_v51, %v2959_v51 }
 0x465   :  { %v4031_v34 = vpack.c.bf16 %v3024_v21, %v3024_v21  ;;  %2610 = vst.msk [vmem:[%s6880_s4 + $0x18] sm:$0xf] %vm2603_vm2, %v3975_v47  ;;  %3743 = vst.msk [vmem:[%s6880_s4 + $0x38] sm:$0xf] %vm2603_vm2, %v3983_v39  ;;  %v3081_v31 = vadd.f32 %v3073_v15, %v2548_v1  ;;  %v3146_v56 = vadd.f32 %v3138_v37, %v2548_v1 }
 0x466   :  { %3759 = vst.msk [vmem:[%s6880_s4 + $0x58] sm:$0xf] %vm2603_vm2, %v3991_v11  ;;  %3775 = vst.msk [vmem:[%s6880_s4 + $0x78] sm:$0xf] %vm2603_vm2, %v3999_v40  ;;  %v3211_v8 = vadd.f32 %v3203_v18, %v2548_v1  ;;  %v3276_v48 = vadd.f32 %v3268_v13, %v2548_v1  ;;  %v3341_v10 = vadd.f32 %v3333_v2, %v2548_v1 }
 0x467   :  { %3791 = vst.msk [vmem:[%s6880_s4 + $0x98] sm:$0xf] %vm2603_vm2, %v4007_v33  ;;  %3807 = vst.msk [vmem:[%s6880_s4 + $0xb8] sm:$0xf] %vm2603_vm2, %v4015_v19  ;;  %v3406_v24 = vadd.f32 %v3398_v55, %v2548_v1  ;;  %v3471_v41 = vadd.f32 %v3463_v20, %v2548_v1  ;;  %v3536_v36 = vadd.f32 %v3528_v17, %v2548_v1  ;;  %v3089_v7 = vmax.f32 %v3081_v31, 0.0 }
 0x468   :  { %3823 = vst.msk [vmem:[%s6880_s4 + $0xd8] sm:$0xf] %vm2603_vm2, %v4023_v58  ;;  %3839 = vst.msk [vmem:[%s6880_s4 + $0xf8] sm:$0xf] %vm2603_vm2, %v4031_v34  ;;  %v3154_v6 = vmax.f32 %v3146_v56, 0.0  ;;  %v3219_v25 = vmax.f32 %v3211_v8, 0.0 }
 0x469   :  { %v3284_v50 = vmax.f32 %v3276_v48, 0.0  ;;  %v3349_v43 = vmax.f32 %v3341_v10, 0.0  ;;  %v3414_v30 = vmax.f32 %v3406_v24, 0.0  ;;  %v3479_v22 = vmax.f32 %v3471_v41, 0.0 }
 0x46a   :  { %v3544_v53 = vmax.f32 %v3536_v36, 0.0  ;;  %v4039_v42 = vpack.c.bf16 %v3089_v7, %v3089_v7  ;;  %v4047_v32 = vpack.c.bf16 %v3154_v6, %v3154_v6  ;;  %v4055_v29 = vpack.c.bf16 %v3219_v25, %v3219_v25 }
 0x46b   :  { %v4063_v5 = vpack.c.bf16 %v3284_v50, %v3284_v50  ;;  %v4071_v12 = vpack.c.bf16 %v3349_v43, %v3349_v43  ;;  %v4079_v44 = vpack.c.bf16 %v3414_v30, %v3414_v30  ;;  %v4087_v61 = vpack.c.bf16 %v3479_v22, %v3479_v22 }
 0x46c   :  { %v4095_v35 = vpack.c.bf16 %v3544_v53, %v3544_v53  ;;  %3855 = vst.msk [vmem:[%s6880_s4 + $0x118] sm:$0xf] %vm2603_vm2, %v4039_v42  ;;  %3871 = vst.msk [vmem:[%s6880_s4 + $0x138] sm:$0xf] %vm2603_vm2, %v4047_v32 }
 0x46d   :  { %3887 = vst.msk [vmem:[%s6880_s4 + $0x158] sm:$0xf] %vm2603_vm2, %v4055_v29  ;;  %3903 = vst.msk [vmem:[%s6880_s4 + $0x178] sm:$0xf] %vm2603_vm2, %v4063_v5 }
 0x46e   :  { %3919 = vst.msk [vmem:[%s6880_s4 + $0x198] sm:$0xf] %vm2603_vm2, %v4071_v12  ;;  %3935 = vst.msk [vmem:[%s6880_s4 + $0x1b8] sm:$0xf] %vm2603_vm2, %v4079_v44 }
 0x46f   :  { %3951 = vst.msk [vmem:[%s6880_s4 + $0x1d8] sm:$0xf] %vm2603_vm2, %v4087_v61  ;;  %3967 = vst.msk [vmem:[%s6880_s4 + $0x1f8] sm:$0xf] %vm2603_vm2, %v4095_v35 }
 0x470   :  { %3591 = vsyncpa [#allocation3], 1 }

// kernel: forward.7
= control target key start
LH: loop header
LB: loop body
LE: loop exit
PB: predicated region body
PF: predicated region fallthrough
CT: control target
= control target key end

     0   :  { %vm238_vm0 = vcmask 261120   ;;  %s936_s0 = inlined_call_operand.vmem [shape: bf16[288,128], index: 0, kind: input, shape index: {}]   ;;  %s937_s1 = inlined_call_operand.vmem [shape: bf16[64,288], index: 1, kind: input, shape index: {}]   ;;  %s938_s2 = inlined_call_operand.vmem [shape: f32[16,1], index: 2, kind: input, shape index: {}]   ;;  %s939_s3 = inlined_call_operand.vmem [shape: f32[16,1], index: 3, kind: input, shape index: {}]   ;;  %s940_s4 = inlined_call_operand.vmem [shape: bf16[4,16,128], index: 4, kind: output, shape index: {}]  }
   0x1   :  { %v706_v0 = vld [vmem:[%s936_s0 + $0x78] sm:$0xff]   ;;  %v708_v2 = vld [vmem:[%s936_s0 + $0x70] sm:$0xff]   ;;  %v710_v4 = vld [vmem:[%s936_s0 + $0x68] sm:$0xff]  }
   0x2   :  { %v707_v1 = vld [vmem:[%s936_s0 + $0x38] sm:$0xff]   ;;  %629 = vmatprep.subr.bf16.mxu0 %v706_v0  ;;  %687 = vmatprep.subr.bf16.mxu1 %v706_v0  ;;  %v709_v3 = vld [vmem:[%s936_s0 + $0x30] sm:$0xff]   ;;  %v711_v5 = vld [vmem:[%s936_s0 + $0x28] sm:$0xff]  }
   0x3   :  { %630 = vmatpush3.bf16.msra.mxu0 %v707_v1  ;;  %695 = vmatpush3.bf16.msra.mxu1 %v707_v1  ;;  %v712_v6 = vld [vmem:[%s936_s0 + $0x60] sm:$0xff]   ;;  %v714_v8 = vld [vmem:[%s936_s0 + $0x58] sm:$0xff]   ;;  %v716_v10 = vld [vmem:[%s936_s0 + $0x50] sm:$0xff]  }
   0x4   :  { %631 = vmatprep.subr.bf16.mxu0 %v708_v2  ;;  %688 = vmatprep.subr.bf16.mxu1 %v708_v2  ;;  %v713_v7 = vld [vmem:[%s936_s0 + $0x20] sm:$0xff]   ;;  %v715_v9 = vld [vmem:[%s936_s0 + $0x18] sm:$0xff]   ;;  %v717_v13 = vld [vmem:[%s936_s0 + $0x10] sm:$0xff]  }
   0x5   :  { %v724_v11 = vld [vmem:[%s937_s1 + $0x4] ss:$12 sps:$4 sm:$0xff]   ;;  %v727_v12 = vld [vmem:[%s937_s1 + $0x4c] ss:$12 sps:$4 sm:$0xff]   ;;  %v725_v20 = vld [vmem:[%s937_s1 + $0x48] ss:$12 sps:$4 sm:$0xff]  }
   0x6   :  { %v718_v14 = vld [vmem:[%s936_s0 + $0x48] sm:$0xff]   ;;  %283 = vmatprep.mubr.bf16.mxu0 %v724_v11  ;;  %307 = vmatprep.mubr.bf16.mxu1 %v727_v12  ;;  %v720_v16 = vld [vmem:[%s936_s0 + $0x40] sm:$0xff]   ;;  %v738_v28 = vld [vmem:[%s937_s1 + $0x30] ss:$12 sps:$4 sm:$0xff]  }
   0x7   :  { %632 = vmatpush3.bf16.msra.mxu0 %v709_v3  ;;  %696 = vmatpush3.bf16.msra.mxu1 %v709_v3  ;;  %v719_v15 = vld [vmem:[%s936_s0 + $0x8] sm:$0xff]   ;;  %v721_v17 = vld [vmem:[%s936_s0] sm:$0xff]   ;;  %v739_v29 = vld [vmem:[%s937_s1 + $0x50] ss:$12 sps:$4 sm:$0xff]  }
   0x8   :  { %633 = vmatprep.subr.bf16.mxu0 %v710_v4  ;;  %689 = vmatprep.subr.bf16.mxu1 %v710_v4  ;;  %v728_v18 = vld [vmem:[%s936_s0 + $0x88] sm:$0xff]   ;;  %v729_v22 = vld [vmem:[%s936_s0 + $0x80] sm:$0xff]  }
   0x9   :  { %v722_v19 = vld [vmem:[%s937_s1] ss:$12 sps:$4 sm:$0xff]   ;;  %v730_v21 = vld [vmem:[%s937_s1 + $0x1c] ss:$12 sps:$4 sm:$0xff]   ;;  %v733_v24 = vld [vmem:[%s937_s1 + $0x18] ss:$12 sps:$4 sm:$0xff]  }
   0xa   :  { %v732_v23 = vld [vmem:[%s937_s1 + $0x8] ss:$12 sps:$4 sm:$0xff]   ;;  %v734_v25 = vld [vmem:[%s937_s1 + $0x20] ss:$12 sps:$4 sm:$0xff]   ;;  %v737_v27 = vld [vmem:[%s937_s1 + $0x38] ss:$12 sps:$4 sm:$0xff]  }
   0xb   :  { %634 = vmatpush3.bf16.msra.mxu0 %v711_v5  ;;  %697 = vmatpush3.bf16.msra.mxu1 %v711_v5  ;;  %v735_v26 = vld [vmem:[%s937_s1 + $0x34] ss:$12 sps:$4 sm:$0xff]  }
   0xc   :  { %635 = vmatprep.subr.bf16.mxu0 %v712_v6  ;;  %690 = vmatprep.subr.bf16.mxu1 %v712_v6 }
   0xf   :  { %636 = vmatpush3.bf16.msra.mxu0 %v713_v7  ;;  %698 = vmatpush3.bf16.msra.mxu1 %v713_v7 }
  0x10   :  { %637 = vmatprep.subr.bf16.mxu0 %v714_v8  ;;  %691 = vmatprep.subr.bf16.mxu1 %v714_v8 }
  0x13   :  { %638 = vmatpush3.bf16.msra.mxu0 %v715_v9  ;;  %699 = vmatpush3.bf16.msra.mxu1 %v715_v9 }
  0x14   :  { %639 = vmatprep.subr.bf16.mxu0 %v716_v10  ;;  %692 = vmatprep.subr.bf16.mxu1 %v716_v10 }
  0x17   :  { %640 = vmatpush3.bf16.msra.mxu0 %v717_v13  ;;  %700 = vmatpush3.bf16.msra.mxu1 %v717_v13 }
  0x18   :  { %641 = vmatprep.subr.bf16.mxu0 %v718_v14  ;;  %693 = vmatprep.subr.bf16.mxu1 %v718_v14  ;;  %v744_v14 = vmov 0  }
  0x19   :  { %704 = vset.pattern.permute.xlu0 %v744_v14  ;;  %705 = vset.pattern.permute.xlu1 %v744_v14 }
  0x1b   :  { %642 = vmatpush3.bf16.msra.mxu0 %v719_v15  ;;  %701 = vmatpush3.bf16.msra.mxu1 %v719_v15 }
  0x1c   :  { %643 = vmatprep.subr.bf16.mxu0 %v720_v16  ;;  %694 = vmatprep.subr.bf16.mxu1 %v720_v16 }
  0x1f   :  { %644 = vmatpush3.bf16.msra.mxu0 %v721_v17  ;;  %702 = vmatpush3.bf16.msra.mxu1 %v721_v17 }
  0x20   :  { %675 = vmatprep.subr.bf16.mxu1 %v728_v18 }
  0x22   :  { %284 = vmatmul.mubr.bf16.vlgmr.msra.gmra.mxu0 %v722_v19  ;;  %308 = vmatmul.mubr.bf16.vlgmr.msra.gmra.mxu1 %v725_v20 }
  0x23   :  { %676 = vmatpush3.bf16.msra.mxu1 %v728_v18  ;;  %291 = vmatprep.mubr.bf16.mxu0 %v730_v21 }
  0x24   :  { %677 = vmatprep.subr.bf16.mxu1 %v729_v22  ;;  %679 = vmatprep.mubr.msk.bf16.mxu1 %vm238_vm0, %v732_v23 }
  0x27   :  { %678 = vmatpush3.bf16.msra.mxu1 %v729_v22 }
  0x2a   :  { %292 = vmatmul.mubr.bf16.gmra.mxu0 %v733_v24  ;;  %680 = vmatmul.mubr.msk.bf16.vlgmr.msra.gmra.mxu1 %vm238_vm0, %v734_v25 }
  0x2b   :  { %299 = vmatprep.mubr.bf16.mxu0 %v735_v26  ;;  %683 = vmatprep.mubr.msk.bf16.mxu1 %vm238_vm0, %v737_v27 }
  0x32   :  { %300 = vmatmul.mubr.bf16.gmra.mxu0 %v738_v28  ;;  %684 = vmatmul.mubr.msk.bf16.gmra.mxu1 %vm238_vm0, %v739_v29 }
  0xe2   :  { %v645_v30 = vpop.f32.mrf.mxu0  ;;  %v663_v31 = vpop.f32.mrf.mxu1 }
  0xe4   :  { %v646_v32 = vpop.f32.mrf.mxu0  ;;  %v664_v33 = vpop.f32.mrf.mxu1 }
  0xe5   :  { %v647_v40 = vadd.f32 %v646_v32, %v645_v30  ;;  %v665_v62 = vadd.f32 %v664_v33, %v663_v31 }
  0xe6   :  { %v648_v34 = vpop.f32.mrf.mxu0  ;;  %v666_v35 = vpop.f32.mrf.mxu1 }
  0xe8   :  { %v649_v36 = vpop.f32.mrf.mxu0  ;;  %v667_v37 = vpop.f32.mrf.mxu1 }
  0xe9   :  { %v650_v50 = vadd.f32 %v649_v36, %v648_v34  ;;  %v668_v2 = vadd.f32 %v667_v37, %v666_v35 }
  0xea   :  { %v651_v38 = vpop.f32.mrf.mxu0  ;;  %v681_v39 = vpop.f32.mrf.mxu1 }
  0xec   :  { %v652_v41 = vpop.f32.mrf.mxu0  ;;  %v350_v42 = vpop.f32.mrf.mxu1 }
  0xed   :  { %v653_v43 = vadd.f32 %v652_v41, %v651_v38  ;;  %v864_v44 = vadd.f32 %v647_v40, %v350_v42 }
  0xee   :  { %v654_v45 = vpop.f32.mrf.mxu0  ;;  %v682_v46 = vpop.f32.mrf.mxu1 }
  0xef   :  { %v866_v47 = vadd.f32 %v681_v39, %v653_v43  ;;  %381 = vadd.xlane.f32.xlu0 %v864_v44  ;;  %v387_v52 = vmul.f32 %v864_v44, %v864_v44 }
  0xf0   :  { %v655_v48 = vpop.f32.mrf.mxu0  ;;  %v353_v49 = vpop.f32.mrf.mxu1 }
  0xf1   :  { %v656_v51 = vadd.f32 %v655_v48, %v654_v45  ;;  %395 = vadd.xlane.f32.xlu1 %v866_v47  ;;  %v874_v55 = vadd.f32 %v650_v50, %v353_v49  ;;  %v401_v61 = vmul.f32 %v866_v47, %v866_v47 }
  0xf2   :  { %v657_v53 = vpop.f32.mrf.mxu0  ;;  %v685_v56 = vpop.f32.mrf.mxu1 }
  0xf3   :  { %v872_v54 = vadd.f32 %v682_v46, %v656_v51  ;;  %389 = vadd.xlane.f32.xlu0 %v387_v52  ;;  %v388_v58 = vmul.f32 %v874_v55, %v874_v55  ;;  %v884_v3 = vadd.f32 %v685_v56, %v665_v62 }
  0xf4   :  { %v658_v57 = vpop.f32.mrf.mxu0  ;;  %v366_v59 = vpop.f32.mrf.mxu1 }
  0xf5   :  { %397 = vadd.xlane.f32.xlu1 %v872_v54  ;;  %v402_v63 = vmul.f32 %v872_v54, %v872_v54  ;;  %v659_v4 = vadd.f32 %v658_v57, %v657_v53  ;;  %v429_v12 = vmul.f32 %v884_v3, %v884_v3  ;;  %v449_v57 = vld [vmem:[%s938_s2] sm:$0xff] }
  0xf6   :  { %v660_v60 = vpop.f32.mrf.mxu0  ;;  %v686_v0 = vpop.f32.mrf.mxu1 }
  0xf7   :  { %383 = vadd.xlane.f32.xlu0 %v874_v55  ;;  %v886_v5 = vadd.f32 %v686_v0, %v668_v2  ;;  %v889_v8 = vadd.f32 %v659_v4, %v366_v59  ;;  %v450_v59 = vld [vmem:[%s938_s2 + $0x8] sm:$0xff]  ;;  %v453_v0 = vld [vmem:[%s939_s3] sm:$0xff] }
  0xf8   :  { %v661_v1 = vpop.f32.mrf.mxu0  ;;  %v369_v7 = vpop.f32.mrf.mxu1  ;;  %v454_v4 = vld [vmem:[%s939_s3 + $0x8] sm:$0xff] }
  0xf9   :  { %391 = vadd.xlane.f32.xlu1 %v388_v58  ;;  %v662_v6 = vadd.f32 %v661_v1, %v660_v60  ;;  %v415_v10 = vmul.f32 %v889_v8, %v889_v8  ;;  %v430_v13 = vmul.f32 %v886_v5, %v886_v5 }
  0xfb   :  { %403 = vadd.xlane.f32.xlu0 %v401_v61  ;;  %v892_v9 = vadd.f32 %v662_v6, %v369_v7 }
  0xfd   :  { %405 = vadd.xlane.f32.xlu1 %v402_v63  ;;  %v416_v11 = vmul.f32 %v892_v9, %v892_v9 }
  0xff   :  { %423 = vadd.xlane.f32.xlu0 %v884_v3 }
 0x101   :  { %425 = vadd.xlane.f32.xlu1 %v886_v5 }
 0x103   :  { %409 = vadd.xlane.f32.xlu0 %v889_v8 }
 0x105   :  { %411 = vadd.xlane.f32.xlu1 %v892_v9 }
 0x107   :  { %417 = vadd.xlane.f32.xlu0 %v415_v10 }
 0x109   :  { %419 = vadd.xlane.f32.xlu1 %v416_v11 }
 0x10b   :  { %431 = vadd.xlane.f32.xlu0 %v429_v12 }
 0x10d   :  { %433 = vadd.xlane.f32.xlu1 %v430_v13 }
 0x178   :  { %v382_v15 = vpop.xlane.xlu0 %381 }
 0x17a   :  { %v396_v16 = vpop.xlane.xlu1 %395 }
 0x17b   :  { %v399_v25 = vadd.f32 %v396_v16, %v382_v15 }
 0x17c   :  { %v390_v17 = vpop.xlane.xlu0 %389 }
 0x17e   :  { %v398_v18 = vpop.xlane.xlu1 %397 }
 0x180   :  { %v384_v19 = vpop.xlane.xlu0 %383 }
 0x181   :  { %v400_v27 = vadd.f32 %v398_v18, %v384_v19 }
 0x182   :  { %v392_v20 = vpop.xlane.xlu1 %391 }
 0x184   :  { %v404_v21 = vpop.xlane.xlu0 %403 }
 0x185   :  { %v407_v33 = vadd.f32 %v404_v21, %v390_v17 }
 0x186   :  { %v406_v22 = vpop.xlane.xlu1 %405 }
 0x187   :  { %v408_v36 = vadd.f32 %v406_v22, %v392_v20 }
 0x188   :  { %v424_v23 = vpop.xlane.xlu0 %423 }
 0x18a   :  { %v426_v24 = vpop.xlane.xlu1 %425 }
 0x18c   :  { %v410_v26 = vpop.xlane.xlu0 %409 }
 0x18d   :  { %v413_v28 = vadd.f32 %v410_v26, %v399_v25 }
 0x18e   :  { %v412_v29 = vpop.xlane.xlu1 %411 }
 0x18f   :  { %v427_v30 = vadd.f32 %v424_v23, %v413_v28  ;;  %v414_v31 = vadd.f32 %v412_v29, %v400_v27 }
 0x190   :  { %v418_v32 = vpop.xlane.xlu0 %417 }
 0x191   :  { %v428_v34 = vadd.f32 %v426_v24, %v414_v31  ;;  %v437_v37 = vmul.f32 0.001953125, %v427_v30  ;;  %v421_v38 = vadd.f32 %v418_v32, %v407_v33 }
 0x192   :  { %v420_v35 = vpop.xlane.xlu1 %419 }
 0x193   :  { %v438_v40 = vmul.f32 0.001953125, %v428_v34  ;;  %v422_v41 = vadd.f32 %v420_v35, %v408_v36  ;;  %v441_v45 = vmul.f32 %v437_v37, %v437_v37 }
 0x194   :  { %v432_v39 = vpop.xlane.xlu0 %431 }
 0x195   :  { %v435_v42 = vadd.f32 %v432_v39, %v421_v38  ;;  %v442_v51 = vmul.f32 %v438_v40, %v438_v40 }
 0x196   :  { %v434_v43 = vpop.xlane.xlu1 %433 }
 0x197   :  { %v439_v46 = vmul.f32 0.001953125, %v435_v42  ;;  %v436_v48 = vadd.f32 %v434_v43, %v422_v41 }
 0x199   :  { %v443_v49 = vsub.f32 %v439_v46, %v441_v45  ;;  %v440_v50 = vmul.f32 0.001953125, %v436_v48 }
 0x19b   :  { %v445_v52 = vadd.f32 1e-05, %v443_v49  ;;  %v444_v53 = vsub.f32 %v440_v50, %v442_v51 }
 0x19d   :  { %740 = vrsqrt.f32 %v445_v52  ;;  %v446_v56 = vadd.f32 1e-05, %v444_v53 }
 0x19f   :  { %742 = vrsqrt.f32 %v446_v56 }
 0x1aa   :  { %v741_v58 = vpop.eup %740 }
 0x1ab   :  { %v451_v60 = vmul.f32 %v741_v58, %v449_v57 }
 0x1ac   :  { %v743_v61 = vpop.eup %742 }
 0x1ad   :  { %461 = vperm.xlu0 %704, %v451_v60   ;;  %v452_v62 = vmul.f32 %v743_v61, %v450_v59  ;;  %v455_v63 = vmul.f32 %v451_v60, %v437_v37 }
 0x1af   :  { %466 = vperm.xlu1 %705, %v452_v62   ;;  %v457_v1 = vsub.f32 %v453_v0, %v455_v63  ;;  %v456_v2 = vmul.f32 %v452_v62, %v438_v40 }
 0x1b1   :  { %v458_v6 = vsub.f32 %v454_v4, %v456_v2 }
 0x1b3   :  { %473 = vperm.xlu1 %705, %v457_v1  }
 0x1b7   :  { %478 = vperm.xlu1 %705, %v458_v6  }
 0x228   :  { %v462_v10 = vpop.permute.xlu0 %461 }
 0x229   :  { %v469_v11 = vmul.f32 %v462_v10, %v864_v44  ;;  %v495_v12 = vmul.f32 %v462_v10, %v866_v47  ;;  %v512_v13 = vmul.f32 %v462_v10, %v889_v8  ;;  %v529_v14 = vmul.f32 %v462_v10, %v884_v3 }
 0x22a   :  { %v467_v7 = vpop.permute.xlu1 %466 }
 0x22b   :  { %v470_v20 = vmul.f32 %v467_v7, %v874_v55  ;;  %v496_v21 = vmul.f32 %v467_v7, %v872_v54  ;;  %v513_v22 = vmul.f32 %v467_v7, %v892_v9  ;;  %v530_v23 = vmul.f32 %v467_v7, %v886_v5 }
 0x22e   :  { %v474_v15 = vpop.permute.xlu1 %473 }
 0x22f   :  { %v481_v16 = vadd.f32 %v474_v15, %v469_v11  ;;  %v497_v17 = vadd.f32 %v495_v12, %v474_v15  ;;  %v514_v18 = vadd.f32 %v512_v13, %v474_v15  ;;  %v531_v19 = vadd.f32 %v529_v14, %v474_v15 }
 0x231   :  { %v483_v26 = vmax.f32 %v481_v16, 0.0  ;;  %v499_v3 = vmax.f32 %v497_v17, 0.0  ;;  %v516_v27 = vmax.f32 %v514_v18, 0.0  ;;  %v533_v28 = vmax.f32 %v531_v19, 0.0 }
 0x232   :  { %v479_v44 = vpop.permute.xlu1 %478 }
 0x233   :  { %v482_v24 = vadd.f32 %v479_v44, %v470_v20  ;;  %v498_v47 = vadd.f32 %v496_v21, %v479_v44  ;;  %v515_v25 = vadd.f32 %v513_v22, %v479_v44  ;;  %v532_v8 = vadd.f32 %v530_v23, %v479_v44 }
 0x235   :  { %v484_v29 = vmax.f32 %v482_v24, 0.0  ;;  %v500_v30 = vmax.f32 %v498_v47, 0.0  ;;  %v517_v31 = vmax.f32 %v515_v25, 0.0  ;;  %v534_v32 = vmax.f32 %v532_v8, 0.0 }
 0x237   :  { %v609_v55 = vpack.c.bf16 %v484_v29, %v483_v26  ;;  %v614_v33 = vpack.c.bf16 %v500_v30, %v499_v3  ;;  %v619_v54 = vpack.c.bf16 %v517_v31, %v516_v27  ;;  %v624_v34 = vpack.c.bf16 %v534_v32, %v533_v28 }
 0x239   :  { %610 = vst [vmem:[%s940_s4] sm:$0xff] %v609_v55   ;;  %626 = vst [vmem:[%s940_s4 + $0x8] sm:$0xff] %v614_v33  }
 0x23a   :  { %627 = vst [vmem:[%s940_s4 + $0x10] sm:$0xff] %v619_v54   ;;  %628 = vst [vmem:[%s940_s4 + $0x18] sm:$0xff] %v624_v34  }

// kernel: forward.8
= control target key start
LH: loop header
LB: loop body
LE: loop exit
PB: predicated region body
PF: predicated region fallthrough
CT: control target
= control target key end

     0   :  { %vm256_vm0 = vcmask 130048   ;;  %s988_s0 = inlined_call_operand.vmem [shape: bf16[144,512], index: 0, kind: input, shape index: {}]   ;;  %s989_s1 = inlined_call_operand.vmem [shape: bf16[32,144], index: 1, kind: input, shape index: {}]   ;;  %s990_s2 = inlined_call_operand.vmem [shape: f32[8,1], index: 2, kind: input, shape index: {}]   ;;  %s991_s3 = inlined_call_operand.vmem [shape: f32[8,1], index: 3, kind: input, shape index: {}]   ;;  %s992_s4 = inlined_call_operand.vmem [shape: bf16[4,8,512], index: 4, kind: output, shape index: {}]  }
   0x1   :  { %v650_v0 = vld [vmem:[%s988_s0 + $0xe4] ss:$16 sps:$4 sm:$0xff]   ;;  %v652_v1 = vld [vmem:[%s988_s0 + $0xec] ss:$16 sps:$4 sm:$0xff]   ;;  %v654_v2 = vld [vmem:[%s988_s0 + $0xe0] ss:$16 sps:$4 sm:$0xff]  }
   0x2   :  { %263 = vmatprep.subr.bf16.mxu0 %v650_v0  ;;  %v655_v3 = vld [vmem:[%s988_s0 + $0xe8] ss:$16 sps:$4 sm:$0xff]   ;;  %316 = vmatprep.subr.bf16.mxu1 %v652_v1  ;;  %v656_v4 = vld [vmem:[%s988_s0 + $0xc4] ss:$16 sps:$4 sm:$0xff]   ;;  %v658_v5 = vld [vmem:[%s988_s0 + $0xcc] ss:$16 sps:$4 sm:$0xff]  }
   0x3   :  { %264 = vmatpush1.bf16.msra.mxu0 %v654_v2  ;;  %317 = vmatpush1.bf16.msra.mxu1 %v655_v3  ;;  %v660_v6 = vld [vmem:[%s988_s0 + $0xc0] ss:$16 sps:$4 sm:$0xff]   ;;  %v661_v7 = vld [vmem:[%s988_s0 + $0xc8] ss:$16 sps:$4 sm:$0xff]   ;;  %v662_v8 = vld [vmem:[%s988_s0 + $0xa4] ss:$16 sps:$4 sm:$0xff]  }
   0x4   :  { %265 = vmatprep.subr.bf16.mxu0 %v656_v4  ;;  %318 = vmatprep.subr.bf16.mxu1 %v658_v5  ;;  %v664_v9 = vld [vmem:[%s988_s0 + $0xac] ss:$16 sps:$4 sm:$0xff]   ;;  %v666_v10 = vld [vmem:[%s988_s0 + $0xa0] ss:$16 sps:$4 sm:$0xff]   ;;  %v667_v11 = vld [vmem:[%s988_s0 + $0xa8] ss:$16 sps:$4 sm:$0xff]  }
   0x5   :  { %v668_v12 = vld [vmem:[%s988_s0 + $0x84] ss:$16 sps:$4 sm:$0xff]   ;;  %v670_v13 = vld [vmem:[%s988_s0 + $0x8c] ss:$16 sps:$4 sm:$0xff]   ;;  %v672_v14 = vld [vmem:[%s988_s0 + $0x80] ss:$16 sps:$4 sm:$0xff]  }
   0x6   :  { %v673_v15 = vld [vmem:[%s988_s0 + $0x88] ss:$16 sps:$4 sm:$0xff]   ;;  %v674_v16 = vld [vmem:[%s988_s0 + $0x64] ss:$16 sps:$4 sm:$0xff]   ;;  %v676_v17 = vld [vmem:[%s988_s0 + $0x6c] ss:$16 sps:$4 sm:$0xff]  }
   0x7   :  { %266 = vmatpush1.bf16.msra.mxu0 %v660_v6  ;;  %319 = vmatpush1.bf16.msra.mxu1 %v661_v7  ;;  %v678_v18 = vld [vmem:[%s988_s0 + $0x60] ss:$16 sps:$4 sm:$0xff]   ;;  %v679_v19 = vld [vmem:[%s988_s0 + $0x68] ss:$16 sps:$4 sm:$0xff]   ;;  %v680_v20 = vld [vmem:[%s988_s0 + $0x44] ss:$16 sps:$4 sm:$0xff]  }
   0x8   :  { %267 = vmatprep.subr.bf16.mxu0 %v662_v8  ;;  %320 = vmatprep.subr.bf16.mxu1 %v664_v9  ;;  %v682_v21 = vld [vmem:[%s988_s0 + $0x4c] ss:$16 sps:$4 sm:$0xff]   ;;  %v684_v22 = vld [vmem:[%s988_s0 + $0x40] ss:$16 sps:$4 sm:$0xff]   ;;  %v685_v23 = vld [vmem:[%s988_s0 + $0x48] ss:$16 sps:$4 sm:$0xff]  }
   0x9   :  { %v686_v24 = vld [vmem:[%s988_s0 + $0x24] ss:$16 sps:$4 sm:$0xff]   ;;  %v688_v25 = vld [vmem:[%s988_s0 + $0x2c] ss:$16 sps:$4 sm:$0xff]   ;;  %v690_v26 = vld [vmem:[%s988_s0 + $0x20] ss:$16 sps:$4 sm:$0xff]  }
   0xa   :  { %v691_v27 = vld [vmem:[%s988_s0 + $0x28] ss:$16 sps:$4 sm:$0xff]   ;;  %v692_v28 = vld [vmem:[%s988_s0 + $0x4] ss:$16 sps:$4 sm:$0xff]   ;;  %v694_v29 = vld [vmem:[%s988_s0 + $0xc] ss:$16 sps:$4 sm:$0xff]  }
   0xb   :  { %268 = vmatpush1.bf16.msra.mxu0 %v666_v10  ;;  %321 = vmatpush1.bf16.msra.mxu1 %v667_v11  ;;  %v706_v30 = vld [vmem:[%s989_s1 + $0x4] ss:$8 sps:$4 sm:$0xff]   ;;  %v696_v31 = vld [vmem:[%s988_s0] ss:$16 sps:$4 sm:$0xff]   ;;  %v697_v32 = vld [vmem:[%s988_s0 + $0x8] ss:$16 sps:$4 sm:$0xff]  }
   0xc   :  { %269 = vmatprep.subr.bf16.mxu0 %v668_v12  ;;  %322 = vmatprep.subr.bf16.mxu1 %v670_v13  ;;  %v698_v33 = vld [vmem:[%s988_s0 + $0x104] ss:$16 sps:$4 sm:$0xff]   ;;  %v700_v34 = vld [vmem:[%s988_s0 + $0x10c] ss:$16 sps:$4 sm:$0xff]   ;;  %v702_v35 = vld [vmem:[%s988_s0 + $0x100] ss:$16 sps:$4 sm:$0xff]  }
   0xd   :  { %621 = vmatprep.mubr.msk.bf16.mxu0 %vm256_vm0, %v706_v30  ;;  %623 = vmatprep.mubr.msk.bf16.mxu1 %vm256_vm0, %v706_v30  ;;  %v703_v36 = vld [vmem:[%s988_s0 + $0x108] ss:$16 sps:$4 sm:$0xff]   ;;  %v707_v38 = vld [vmem:[%s989_s1 + $0x14] ss:$8 sps:$4 sm:$0xff]  }
   0xe   :  { %v704_v37 = vld [vmem:[%s989_s1] ss:$8 sps:$4 sm:$0xff]   ;;  %v709_v39 = vld [vmem:[%s989_s1 + $0x10] ss:$8 sps:$4 sm:$0xff]  }
   0xf   :  { %270 = vmatpush1.bf16.msra.mxu0 %v672_v14  ;;  %323 = vmatpush1.bf16.msra.mxu1 %v673_v15 }
  0x10   :  { %271 = vmatprep.subr.bf16.mxu0 %v674_v16  ;;  %324 = vmatprep.subr.bf16.mxu1 %v676_v17 }
  0x13   :  { %272 = vmatpush1.bf16.msra.mxu0 %v678_v18  ;;  %325 = vmatpush1.bf16.msra.mxu1 %v679_v19 }
  0x14   :  { %273 = vmatprep.subr.bf16.mxu0 %v680_v20  ;;  %326 = vmatprep.subr.bf16.mxu1 %v682_v21 }
  0x17   :  { %274 = vmatpush1.bf16.msra.mxu0 %v684_v22  ;;  %327 = vmatpush1.bf16.msra.mxu1 %v685_v23 }
  0x18   :  { %275 = vmatprep.subr.bf16.mxu0 %v686_v24  ;;  %328 = vmatprep.subr.bf16.mxu1 %v688_v25 }
  0x1b   :  { %276 = vmatpush1.bf16.msra.mxu0 %v690_v26  ;;  %329 = vmatpush1.bf16.msra.mxu1 %v691_v27 }
  0x1c   :  { %277 = vmatprep.subr.bf16.mxu0 %v692_v28  ;;  %330 = vmatprep.subr.bf16.mxu1 %v694_v29 }
  0x1f   :  { %278 = vmatpush1.bf16.msra.mxu0 %v696_v31  ;;  %331 = vmatpush1.bf16.msra.mxu1 %v697_v32  ;;  %v712_v32 = vmov 0  }
  0x20   :  { %293 = vmatprep.subr.bf16.mxu0 %v698_v33  ;;  %346 = vmatprep.subr.bf16.mxu1 %v700_v34 }
  0x21   :  { %648 = vset.pattern.permute.xlu0 %v712_v32  ;;  %649 = vset.pattern.permute.xlu1 %v712_v32 }
  0x23   :  { %294 = vmatpush2.bf16.msra.mxu0 %v702_v35  ;;  %347 = vmatpush2.bf16.msra.mxu1 %v703_v36 }
  0x26   :  { %296 = vmatmul.mubr.bf16.vlgmr.msra.gmra.mxu0 %v704_v37  ;;  %349 = vmatmul.mubr.bf16.vlgmr.msra.gmra.mxu1 %v704_v37 }
  0x27   :  { %622 = vmatprep.mubr.msk.bf16.mxu0 %vm256_vm0, %v707_v38  ;;  %624 = vmatprep.mubr.msk.bf16.mxu1 %vm256_vm0, %v707_v38 }
  0x2e   :  { %306 = vmatmul.mubr.bf16.gmra.mxu0 %v709_v39  ;;  %359 = vmatmul.mubr.bf16.gmra.mxu1 %v709_v39 }
  0xe6   :  { %v862_v40 = vpop.f32.mrf.mxu0  ;;  %v864_v41 = vpop.f32.mrf.mxu1 }
  0xe7   :  { %v375_v44 = vmul.f32 %v862_v40, %v862_v40  ;;  %v377_v45 = vmul.f32 %v864_v41, %v864_v41 }
  0xe8   :  { %v866_v42 = vpop.f32.mrf.mxu0  ;;  %v868_v43 = vpop.f32.mrf.mxu1 }
  0xe9   :  { %v369_v46 = vadd.f32 %v866_v42, %v862_v40  ;;  %v376_v47 = vmul.f32 %v866_v42, %v866_v42  ;;  %v378_v54 = vmul.f32 %v868_v43, %v868_v43 }
  0xea   :  { %v878_v48 = vpop.f32.mrf.mxu0  ;;  %v880_v49 = vpop.f32.mrf.mxu1 }
  0xeb   :  { %v370_v50 = vadd.f32 %v369_v46, %v864_v41  ;;  %v379_v51 = vadd.f32 %v376_v47, %v375_v44  ;;  %v391_v59 = vmul.f32 %v878_v48, %v878_v48  ;;  %v393_v0 = vmul.f32 %v880_v49, %v880_v49 }
  0xec   :  { %v883_v52 = vpop.f32.mrf.mxu0  ;;  %v885_v53 = vpop.f32.mrf.mxu1 }
  0xed   :  { %v385_v55 = vadd.f32 %v883_v52, %v878_v48  ;;  %v392_v56 = vmul.f32 %v883_v52, %v883_v52  ;;  %v371_v57 = vadd.f32 %v370_v50, %v868_v43  ;;  %v380_v58 = vadd.f32 %v379_v51, %v377_v45 }
  0xee   :  { %v896_v60 = vpop.f32.mrf.mxu0  ;;  %v898_v61 = vpop.f32.mrf.mxu1  ;;  %v394_v11 = vmul.f32 %v885_v53, %v885_v53 }
  0xef   :  { %372 = vadd.xlane.f32.xlu0 %v371_v57  ;;  %v381_v62 = vadd.f32 %v380_v58, %v378_v54  ;;  %v386_v63 = vadd.f32 %v385_v55, %v880_v49  ;;  %v395_v3 = vadd.f32 %v392_v56, %v391_v59  ;;  %v407_v4 = vmul.f32 %v896_v60, %v896_v60 }
  0xf0   :  { %v903_v1 = vpop.f32.mrf.mxu0  ;;  %v905_v2 = vpop.f32.mrf.mxu1  ;;  %v409_v8 = vmul.f32 %v898_v61, %v898_v61 }
  0xf1   :  { %v401_v5 = vadd.f32 %v903_v1, %v896_v60  ;;  %v408_v6 = vmul.f32 %v903_v1, %v903_v1  ;;  %382 = vadd.xlane.f32.xlu1 %v381_v62  ;;  %v387_v7 = vadd.f32 %v386_v63, %v885_v53  ;;  %v396_v12 = vadd.f32 %v395_v3, %v393_v0  ;;  %v439_v62 = vld [vmem:[%s990_s2] sm:$0xff] }
  0xf2   :  { %v916_v9 = vpop.f32.mrf.mxu0  ;;  %v918_v10 = vpop.f32.mrf.mxu1  ;;  %v410_v22 = vmul.f32 %v905_v2, %v905_v2  ;;  %v441_v3 = vld [vmem:[%s991_s3] sm:$0xff] }
  0xf3   :  { %388 = vadd.xlane.f32.xlu0 %v387_v7  ;;  %v402_v13 = vadd.f32 %v401_v5, %v898_v61  ;;  %v411_v14 = vadd.f32 %v408_v6, %v407_v4  ;;  %v397_v16 = vadd.f32 %v396_v12, %v394_v11  ;;  %v423_v17 = vmul.f32 %v916_v9, %v916_v9 }
  0xf4   :  { %v923_v15 = vpop.f32.mrf.mxu0  ;;  %v932_v21 = vpop.f32.mrf.mxu1  ;;  %v425_v24 = vmul.f32 %v918_v10, %v918_v10 }
  0xf5   :  { %v417_v18 = vadd.f32 %v923_v15, %v916_v9  ;;  %v424_v19 = vmul.f32 %v923_v15, %v923_v15  ;;  %v403_v20 = vadd.f32 %v402_v13, %v905_v2  ;;  %398 = vadd.xlane.f32.xlu1 %v397_v16  ;;  %v412_v23 = vadd.f32 %v411_v14, %v409_v8 }
  0xf6   :  { %v426_v28 = vmul.f32 %v932_v21, %v932_v21 }
  0xf7   :  { %v427_v25 = vadd.f32 %v424_v19, %v423_v17  ;;  %404 = vadd.xlane.f32.xlu0 %v403_v20  ;;  %v418_v26 = vadd.f32 %v417_v18, %v918_v10  ;;  %v413_v27 = vadd.f32 %v412_v23, %v410_v22 }
  0xf9   :  { %v419_v29 = vadd.f32 %v418_v26, %v932_v21  ;;  %v428_v30 = vadd.f32 %v427_v25, %v425_v24  ;;  %414 = vadd.xlane.f32.xlu1 %v413_v27 }
  0xfb   :  { %420 = vadd.xlane.f32.xlu0 %v419_v29  ;;  %v429_v31 = vadd.f32 %v428_v30, %v426_v28 }
  0xfd   :  { %430 = vadd.xlane.f32.xlu1 %v429_v31 }
 0x178   :  { %v373_v33 = vpop.xlane.xlu0 %372 }
 0x17a   :  { %v383_v34 = vpop.xlane.xlu1 %382 }
 0x17c   :  { %v389_v35 = vpop.xlane.xlu0 %388 }
 0x17d   :  { %v390_v38 = vadd.f32 %v389_v35, %v373_v33 }
 0x17e   :  { %v399_v36 = vpop.xlane.xlu1 %398 }
 0x17f   :  { %v400_v45 = vadd.f32 %v399_v36, %v383_v34 }
 0x180   :  { %v405_v37 = vpop.xlane.xlu0 %404 }
 0x181   :  { %v406_v39 = vadd.f32 %v405_v37, %v390_v38 }
 0x182   :  { %v415_v44 = vpop.xlane.xlu1 %414 }
 0x183   :  { %v416_v50 = vadd.f32 %v415_v44, %v400_v45 }
 0x184   :  { %v421_v46 = vpop.xlane.xlu0 %420 }
 0x185   :  { %v422_v47 = vadd.f32 %v421_v46, %v406_v39 }
 0x186   :  { %v431_v54 = vpop.xlane.xlu1 %430 }
 0x187   :  { %v433_v51 = vmul.f32 0.00048828125, %v422_v47  ;;  %v432_v55 = vadd.f32 %v431_v54, %v416_v50 }
 0x189   :  { %v435_v56 = vmul.f32 %v433_v51, %v433_v51  ;;  %v434_v57 = vmul.f32 0.00048828125, %v432_v55 }
 0x18b   :  { %v436_v58 = vsub.f32 %v434_v57, %v435_v56 }
 0x18d   :  { %v437_v59 = vadd.f32 1e-05, %v436_v58 }
 0x18f   :  { %710 = vrsqrt.f32 %v437_v59 }
 0x19c   :  { %v711_v63 = vpop.eup %710 }
 0x19d   :  { %v440_v0 = vmul.f32 %v711_v63, %v439_v62 }
 0x19f   :  { %446 = vperm.xlu0 %648, %v440_v0   ;;  %v442_v4 = vmul.f32 %v440_v0, %v433_v51 }
 0x1a1   :  { %v443_v5 = vsub.f32 %v441_v3, %v442_v4 }
 0x1a3   :  { %455 = vperm.xlu1 %649, %v443_v5  }
 0x21a   :  { %v447_v6 = vpop.permute.xlu0 %446 }
 0x21b   :  { %v449_v7 = vmul.f32 %v447_v6, %v862_v40  ;;  %v450_v8 = vmul.f32 %v447_v6, %v866_v42  ;;  %v451_v11 = vmul.f32 %v447_v6, %v864_v41  ;;  %v452_v12 = vmul.f32 %v447_v6, %v868_v43 }
 0x21c   :  { %v484_v13 = vmul.f32 %v447_v6, %v878_v48  ;;  %v485_v14 = vmul.f32 %v447_v6, %v883_v52  ;;  %v486_v16 = vmul.f32 %v447_v6, %v880_v49  ;;  %v487_v17 = vmul.f32 %v447_v6, %v885_v53 }
 0x21d   :  { %v515_v18 = vmul.f32 %v447_v6, %v896_v60  ;;  %v516_v19 = vmul.f32 %v447_v6, %v903_v1  ;;  %v517_v40 = vmul.f32 %v447_v6, %v898_v61  ;;  %v518_v42 = vmul.f32 %v447_v6, %v905_v2 }
 0x21e   :  { %v546_v41 = vmul.f32 %v447_v6, %v916_v9  ;;  %v547_v43 = vmul.f32 %v447_v6, %v923_v15  ;;  %v548_v48 = vmul.f32 %v447_v6, %v918_v10  ;;  %v549_v52 = vmul.f32 %v447_v6, %v932_v21  ;;  %v456_v20 = vpop.permute.xlu1 %455 }
 0x21f   :  { %v458_v49 = vadd.f32 %v456_v20, %v449_v7  ;;  %v459_v22 = vadd.f32 %v456_v20, %v450_v8  ;;  %v460_v53 = vadd.f32 %v456_v20, %v451_v11  ;;  %v461_v23 = vadd.f32 %v456_v20, %v452_v12 }
 0x220   :  { %v488_v60 = vadd.f32 %v484_v13, %v456_v20  ;;  %v489_v24 = vadd.f32 %v485_v14, %v456_v20  ;;  %v490_v1 = vadd.f32 %v486_v16, %v456_v20  ;;  %v491_v25 = vadd.f32 %v487_v17, %v456_v20 }
 0x221   :  { %v462_v61 = vmax.f32 %v458_v49, 0.0  ;;  %v463_v26 = vmax.f32 %v459_v22, 0.0  ;;  %v464_v2 = vmax.f32 %v460_v53, 0.0  ;;  %v465_v27 = vmax.f32 %v461_v23, 0.0 }
 0x222   :  { %v492_v9 = vmax.f32 %v488_v60, 0.0  ;;  %v493_v28 = vmax.f32 %v489_v24, 0.0  ;;  %v494_v15 = vmax.f32 %v490_v1, 0.0  ;;  %v495_v29 = vmax.f32 %v491_v25, 0.0 }
 0x223   :  { %v639_v10 = vpack.c.bf16 %v463_v26, %v462_v61  ;;  %v640_v30 = vpack.c.bf16 %v465_v27, %v464_v2  ;;  %v519_v21 = vadd.f32 %v515_v18, %v456_v20  ;;  %v520_v31 = vadd.f32 %v516_v19, %v456_v20 }
 0x224   :  { %v641_v32 = vpack.c.bf16 %v493_v28, %v492_v9  ;;  %v642_v33 = vpack.c.bf16 %v495_v29, %v494_v15  ;;  %v521_v34 = vadd.f32 %v517_v40, %v456_v20  ;;  %v522_v35 = vadd.f32 %v518_v42, %v456_v20 }
 0x225   :  { %482 = vst [vmem:[%s992_s4] sm:$0xff] %v639_v10  ;;  %483 = vst [vmem:[%s992_s4 + $0x8] sm:$0xff] %v640_v30  ;;  %v523_v36 = vmax.f32 %v519_v21, 0.0  ;;  %v524_v37 = vmax.f32 %v520_v31, 0.0  ;;  %v550_v38 = vadd.f32 %v546_v41, %v456_v20  ;;  %v551_v39 = vadd.f32 %v547_v43, %v456_v20 }
 0x226   :  { %629 = vst [vmem:[%s992_s4 + $0x10] sm:$0xff] %v641_v32  ;;  %630 = vst [vmem:[%s992_s4 + $0x18] sm:$0xff] %v642_v33  ;;  %v525_v44 = vmax.f32 %v521_v34, 0.0  ;;  %v526_v45 = vmax.f32 %v522_v35, 0.0  ;;  %v552_v46 = vadd.f32 %v548_v48, %v456_v20  ;;  %v553_v47 = vadd.f32 %v549_v52, %v456_v20 }
 0x227   :  { %v643_v50 = vpack.c.bf16 %v524_v37, %v523_v36  ;;  %v554_v51 = vmax.f32 %v550_v38, 0.0  ;;  %v555_v54 = vmax.f32 %v551_v39, 0.0 }
 0x228   :  { %v644_v55 = vpack.c.bf16 %v526_v45, %v525_v44  ;;  %v556_v56 = vmax.f32 %v552_v46, 0.0  ;;  %v557_v57 = vmax.f32 %v553_v47, 0.0 }
 0x229   :  { %633 = vst [vmem:[%s992_s4 + $0x20] sm:$0xff] %v643_v50  ;;  %v645_v58 = vpack.c.bf16 %v555_v54, %v554_v51 }
 0x22a   :  { %634 = vst [vmem:[%s992_s4 + $0x28] sm:$0xff] %v644_v55  ;;  %v646_v59 = vpack.c.bf16 %v557_v57, %v556_v56 }
 0x22b   :  { %637 = vst [vmem:[%s992_s4 + $0x30] sm:$0xff] %v645_v58 }
 0x22c   :  { %638 = vst [vmem:[%s992_s4 + $0x38] sm:$0xff] %v646_v59 }

// kernel: forward.9
= control target key start
LH: loop header
LB: loop body
LE: loop exit
PB: predicated region body
PF: predicated region fallthrough
CT: control target
= control target key end

     0   :  { %vm465_vm0 = vcmask 1043456   ;;  %v1446_v3 = vmov 0   ;;  %vm458_vm1 = vcmask 588800   ;;  %s1848_s0 = inlined_call_operand.vmem [shape: bf16[72,2048], index: 0, kind: input, shape index: {}]   ;;  %s1849_s1 = inlined_call_operand.vmem [shape: bf16[32,72], index: 1, kind: input, shape index: {}]   ;;  %s1850_s2 = inlined_call_operand.vmem [shape: f32[4,3,2048], index: 2, kind: output, shape index: {}]  }
   0x1   :  { %v76_v0 = vld [vmem:[%s1848_s0 + $0x200] sm:$0xff]  ;;  %v77_v1 = vld [vmem:[%s1848_s0 + $0x208] sm:$0xff]  ;;  %546 = vmatprep.mubr.bf16.mxu0 %v1446_v3  ;;  %599 = vmatprep.mubr.bf16.mxu1 %v1446_v3  ;;  %v78_v39 = vld [vmem:[%s1848_s0 + $0x210] sm:$0xff] }
   0x2   :  { %v60_v2 = vld [vmem:[%s1848_s0 + $0x180] sm:$0xff]  ;;  %v1236_v4 = vcombine.high %v76_v0, %v76_v0  ;;  %v1238_v5 = vcombine.high %v77_v1, %v77_v1  ;;  %v1235_v6 = vcombine.low %v76_v0, %v76_v0  ;;  %v1237_v7 = vcombine.low %v77_v1, %v77_v1  ;;  %v61_v9 = vld [vmem:[%s1848_s0 + $0x188] sm:$0xff]  ;;  %v79_v40 = vld [vmem:[%s1848_s0 + $0x218] sm:$0xff] }
   0x3   :  { %v68_v8 = vld [vmem:[%s1848_s0 + $0x1c0] sm:$0xff]  ;;  %v69_v10 = vld [vmem:[%s1848_s0 + $0x1c8] sm:$0xff]  ;;  %v1240_v43 = vcombine.high %v78_v39, %v78_v39  ;;  %v1242_v44 = vcombine.high %v79_v40, %v79_v40  ;;  %v1239_v45 = vcombine.low %v78_v39, %v78_v39  ;;  %v1241_v46 = vcombine.low %v79_v40, %v79_v40  ;;  %v62_v47 = vld [vmem:[%s1848_s0 + $0x190] sm:$0xff] }
   0x4   :  { %v1220_v11 = vcombine.high %v60_v2, %v68_v8  ;;  %v1222_v12 = vcombine.high %v61_v9, %v69_v10  ;;  %v44_v13 = vld [vmem:[%s1848_s0 + $0x100] sm:$0xff]  ;;  %v45_v15 = vld [vmem:[%s1848_s0 + $0x108] sm:$0xff]  ;;  %1251 = vmatprep.subr.msk.bf16.mxu0 %vm465_vm0, %v1236_v4  ;;  %1254 = vmatprep.subr.msk.bf16.mxu1 %vm465_vm0, %v1238_v5  ;;  %v467_v16 = vsel %vm465_vm0, %v1235_v6, 0  ;;  %v473_v17 = vsel %vm465_vm0, %v1237_v7, 0  ;;  %v70_v48 = vld [vmem:[%s1848_s0 + $0x1d0] sm:$0xff] }
   0x5   :  { %v52_v14 = vld [vmem:[%s1848_s0 + $0x140] sm:$0xff]  ;;  %v53_v18 = vld [vmem:[%s1848_s0 + $0x148] sm:$0xff]  ;;  %521 = vmatpush1.bf16.msra.mxu0 %v467_v16  ;;  %574 = vmatpush1.bf16.msra.mxu1 %v473_v17  ;;  %v1219_v19 = vcombine.low %v60_v2, %v68_v8  ;;  %v1221_v20 = vcombine.low %v61_v9, %v69_v10  ;;  %v63_v49 = vld [vmem:[%s1848_s0 + $0x198] sm:$0xff]  ;;  %v479_v52 = vsel %vm465_vm0, %v1239_v45, 0  ;;  %v485_v53 = vsel %vm465_vm0, %v1241_v46, 0 }
   0x6   :  { %522 = vmatprep.subr.bf16.mxu0 %v1220_v11  ;;  %575 = vmatprep.subr.bf16.mxu1 %v1222_v12  ;;  %v1204_v21 = vcombine.high %v44_v13, %v52_v14  ;;  %v1206_v22 = vcombine.high %v45_v15, %v53_v18  ;;  %v28_v23 = vld [vmem:[%s1848_s0 + $0x80] sm:$0xff]  ;;  %v29_v25 = vld [vmem:[%s1848_s0 + $0x88] sm:$0xff]  ;;  %v1203_v27 = vcombine.low %v44_v13, %v52_v14  ;;  %v71_v50 = vld [vmem:[%s1848_s0 + $0x1d8] sm:$0xff] }
   0x7   :  { %v36_v24 = vld [vmem:[%s1848_s0 + $0xc0] sm:$0xff]  ;;  %v37_v26 = vld [vmem:[%s1848_s0 + $0xc8] sm:$0xff]  ;;  %v1205_v28 = vcombine.low %v45_v15, %v53_v18  ;;  %v1224_v54 = vcombine.high %v62_v47, %v70_v48  ;;  %v1226_v55 = vcombine.high %v63_v49, %v71_v50  ;;  %v46_v56 = vld [vmem:[%s1848_s0 + $0x110] sm:$0xff]  ;;  %v1223_v60 = vcombine.low %v62_v47, %v70_v48 }
   0x8   :  { %v1188_v29 = vcombine.high %v28_v23, %v36_v24  ;;  %v1190_v30 = vcombine.high %v29_v25, %v37_v26  ;;  %v12_v31 = vld [vmem:[%s1848_s0] sm:$0xff]  ;;  %v13_v33 = vld [vmem:[%s1848_s0 + $0x8] sm:$0xff]  ;;  %v1187_v35 = vcombine.low %v28_v23, %v36_v24  ;;  %v1189_v36 = vcombine.low %v29_v25, %v37_v26  ;;  %v54_v57 = vld [vmem:[%s1848_s0 + $0x150] sm:$0xff] }
   0x9   :  { %523 = vmatpush1.bf16.msra.mxu0 %v1219_v19  ;;  %576 = vmatpush1.bf16.msra.mxu1 %v1221_v20  ;;  %v20_v32 = vld [vmem:[%s1848_s0 + $0x40] sm:$0xff]  ;;  %v21_v34 = vld [vmem:[%s1848_s0 + $0x48] sm:$0xff]  ;;  %v47_v58 = vld [vmem:[%s1848_s0 + $0x118] sm:$0xff]  ;;  %v1225_v61 = vcombine.low %v63_v49, %v71_v50  ;;  %v1208_v62 = vcombine.high %v46_v56, %v54_v57  ;;  %v1207_v6 = vcombine.low %v46_v56, %v54_v57 }
   0xa   :  { %524 = vmatprep.subr.bf16.mxu0 %v1204_v21  ;;  %577 = vmatprep.subr.bf16.mxu1 %v1206_v22  ;;  %v1172_v37 = vcombine.high %v12_v31, %v20_v32  ;;  %v1174_v38 = vcombine.high %v13_v33, %v21_v34  ;;  %v1171_v41 = vcombine.low %v12_v31, %v20_v32  ;;  %v1543_v51 = vld [vmem:[%s1849_s1] sm:$0xff]   ;;  %v55_v59 = vld [vmem:[%s1848_s0 + $0x158] sm:$0xff]  ;;  %v30_v0 = vld [vmem:[%s1848_s0 + $0x90] sm:$0xff] }
   0xb   :  { %v1173_v42 = vcombine.low %v13_v33, %v21_v34  ;;  %v1210_v63 = vcombine.high %v47_v58, %v55_v59  ;;  %v38_v1 = vld [vmem:[%s1848_s0 + $0xd0] sm:$0xff]  ;;  %v31_v2 = vld [vmem:[%s1848_s0 + $0x98] sm:$0xff]  ;;  %v1582_v5 = vld [vmem:[%s1849_s1 + $0x8] sm:$0xff]   ;;  %v1209_v7 = vcombine.low %v47_v58, %v55_v59 }
   0xc   :  { %v39_v4 = vld [vmem:[%s1848_s0 + $0xd8] sm:$0xff]  ;;  %v1192_v8 = vcombine.high %v30_v0, %v38_v1  ;;  %v14_v10 = vld [vmem:[%s1848_s0 + $0x10] sm:$0xff]  ;;  %v1191_v14 = vcombine.low %v30_v0, %v38_v1  ;;  %v80_v18 = vld [vmem:[%s1848_s0 + $0x220] sm:$0xff] }
   0xd   :  { %525 = vmatpush1.bf16.msra.mxu0 %v1203_v27  ;;  %578 = vmatpush1.bf16.msra.mxu1 %v1205_v28  ;;  %v1194_v9 = vcombine.high %v31_v2, %v39_v4  ;;  %v22_v11 = vld [vmem:[%s1848_s0 + $0x50] sm:$0xff]  ;;  %v15_v12 = vld [vmem:[%s1848_s0 + $0x18] sm:$0xff]  ;;  %v1193_v15 = vcombine.low %v31_v2, %v39_v4  ;;  %v81_v19 = vld [vmem:[%s1848_s0 + $0x228] sm:$0xff]  ;;  %v1244_v22 = vcombine.high %v80_v18, %v80_v18 }
   0xe   :  { %526 = vmatprep.subr.bf16.mxu0 %v1188_v29  ;;  %579 = vmatprep.subr.bf16.mxu1 %v1190_v30  ;;  %v23_v13 = vld [vmem:[%s1848_s0 + $0x58] sm:$0xff]  ;;  %v1176_v16 = vcombine.high %v14_v10, %v22_v11  ;;  %v1175_v20 = vcombine.low %v14_v10, %v22_v11  ;;  %v1246_v23 = vcombine.high %v81_v19, %v81_v19  ;;  %v64_v26 = vld [vmem:[%s1848_s0 + $0x1a0] sm:$0xff]  ;;  %v65_v28 = vld [vmem:[%s1848_s0 + $0x1a8] sm:$0xff] }
   0xf   :  { %v1178_v17 = vcombine.high %v15_v12, %v23_v13  ;;  %v1177_v21 = vcombine.low %v15_v12, %v23_v13  ;;  %v1243_v24 = vcombine.low %v80_v18, %v80_v18  ;;  %v1245_v25 = vcombine.low %v81_v19, %v81_v19  ;;  %v72_v27 = vld [vmem:[%s1848_s0 + $0x1e0] sm:$0xff]  ;;  %v73_v29 = vld [vmem:[%s1848_s0 + $0x1e8] sm:$0xff]  ;;  %v82_v59 = vld [vmem:[%s1848_s0 + $0x230] sm:$0xff] }
  0x10   :  { %v1228_v32 = vcombine.high %v64_v26, %v72_v27  ;;  %v1230_v33 = vcombine.high %v65_v28, %v73_v29  ;;  %v48_v34 = vld [vmem:[%s1848_s0 + $0x120] sm:$0xff]  ;;  %v1229_v39 = vcombine.low %v65_v28, %v73_v29  ;;  %v41_v45 = vld [vmem:[%s1848_s0 + $0xe8] sm:$0xff]  ;;  %v1247_v1 = vcombine.low %v82_v59, %v82_v59  ;;  %v66_v4 = vld [vmem:[%s1848_s0 + $0x1b0] sm:$0xff] }
  0x11   :  { %527 = vmatpush1.bf16.msra.mxu0 %v1187_v35  ;;  %580 = vmatpush1.bf16.msra.mxu1 %v1189_v36  ;;  %v491_v30 = vsel %vm465_vm0, %v1243_v24, 0  ;;  %v497_v31 = vsel %vm465_vm0, %v1245_v25, 0  ;;  %v56_v35 = vld [vmem:[%s1848_s0 + $0x160] sm:$0xff]  ;;  %v49_v36 = vld [vmem:[%s1848_s0 + $0x128] sm:$0xff]  ;;  %v50_v13 = vld [vmem:[%s1848_s0 + $0x130] sm:$0xff] }
  0x12   :  { %528 = vmatprep.subr.bf16.mxu0 %v1172_v37  ;;  %581 = vmatprep.subr.bf16.mxu1 %v1174_v38  ;;  %v57_v37 = vld [vmem:[%s1848_s0 + $0x168] sm:$0xff]  ;;  %v1227_v38 = vcombine.low %v64_v26, %v72_v27  ;;  %v1212_v40 = vcombine.high %v48_v34, %v56_v35  ;;  %v1211_v46 = vcombine.low %v48_v34, %v56_v35  ;;  %v16_v50 = vld [vmem:[%s1848_s0 + $0x20] sm:$0xff]  ;;  %v43_v24 = vld [vmem:[%s1848_s0 + $0xf8] sm:$0xff] }
  0x13   :  { %v1213_v47 = vcombine.low %v49_v36, %v57_v37  ;;  %v18_v29 = vld [vmem:[%s1848_s0 + $0x30] sm:$0xff] }
  0x15   :  { %529 = vmatpush1.bf16.msra.mxu0 %v1171_v41  ;;  %582 = vmatpush1.bf16.msra.mxu1 %v1173_v42  ;;  %v1214_v41 = vcombine.high %v49_v36, %v57_v37  ;;  %v32_v42 = vld [vmem:[%s1848_s0 + $0xa0] sm:$0xff] }
  0x16   :  { %1257 = vmatprep.subr.msk.bf16.mxu0 %vm465_vm0, %v1240_v43  ;;  %1260 = vmatprep.subr.msk.bf16.mxu1 %vm465_vm0, %v1242_v44  ;;  %v40_v43 = vld [vmem:[%s1848_s0 + $0xe0] sm:$0xff]  ;;  %v33_v44 = vld [vmem:[%s1848_s0 + $0xa8] sm:$0xff] }
  0x17   :  { %v1196_v48 = vcombine.high %v32_v42, %v40_v43  ;;  %v1198_v49 = vcombine.high %v33_v44, %v41_v45  ;;  %v1197_v56 = vcombine.low %v33_v44, %v41_v45 }
  0x18   :  { %1252 = vmatmul.mubr.msk.bf16.vlgmr.msra.gmra.mxu0 %vm458_vm1, %v1543_v51  ;;  %1255 = vmatmul.mubr.msk.bf16.vlgmr.msra.gmra.mxu1 %vm458_vm1, %v1543_v51 }
  0x19   :  { %627 = vmatpush1.bf16.msra.mxu0 %v479_v52  ;;  %680 = vmatpush1.bf16.msra.mxu1 %v485_v53  ;;  %v24_v52 = vld [vmem:[%s1848_s0 + $0x60] sm:$0xff]  ;;  %v17_v53 = vld [vmem:[%s1848_s0 + $0x28] sm:$0xff] }
  0x1a   :  { %628 = vmatprep.subr.bf16.mxu0 %v1224_v54  ;;  %681 = vmatprep.subr.bf16.mxu1 %v1226_v55  ;;  %v25_v54 = vld [vmem:[%s1848_s0 + $0x68] sm:$0xff]  ;;  %v1195_v55 = vcombine.low %v32_v42, %v40_v43  ;;  %v1180_v57 = vcombine.high %v16_v50, %v24_v52 }
  0x1b   :  { %556 = vmatprep.mubr.bf16.mxu0 %v1446_v3  ;;  %609 = vmatprep.mubr.bf16.mxu1 %v1446_v3  ;;  %v1182_v58 = vcombine.high %v17_v53, %v25_v54 }
  0x1d   :  { %629 = vmatpush1.bf16.msra.mxu0 %v1223_v60  ;;  %682 = vmatpush1.bf16.msra.mxu1 %v1225_v61  ;;  %v83_v60 = vld [vmem:[%s1848_s0 + $0x238] sm:$0xff]  ;;  %v1179_v61 = vcombine.low %v16_v50, %v24_v52 }
  0x1e   :  { %630 = vmatprep.subr.bf16.mxu0 %v1208_v62  ;;  %683 = vmatprep.subr.bf16.mxu1 %v1210_v63  ;;  %v1181_v62 = vcombine.low %v17_v53, %v25_v54  ;;  %v1248_v63 = vcombine.high %v82_v59, %v82_v59  ;;  %v1250_v0 = vcombine.high %v83_v60, %v83_v60 }
  0x1f   :  { %v1249_v2 = vcombine.low %v83_v60, %v83_v60 }
  0x20   :  { %1253 = vmatmul.mubr.msk.bf16.gmra.mxu0 %vm458_vm1, %v1582_v5  ;;  %1256 = vmatmul.mubr.msk.bf16.gmra.mxu1 %vm458_vm1, %v1582_v5 }
  0x21   :  { %631 = vmatpush1.bf16.msra.mxu0 %v1207_v6  ;;  %684 = vmatpush1.bf16.msra.mxu1 %v1209_v7  ;;  %v74_v6 = vld [vmem:[%s1848_s0 + $0x1f0] sm:$0xff]  ;;  %v67_v7 = vld [vmem:[%s1848_s0 + $0x1b8] sm:$0xff]  ;;  %v509_v10 = vsel %vm465_vm0, %v1249_v2, 0 }
  0x22   :  { %632 = vmatprep.subr.bf16.mxu0 %v1192_v8  ;;  %685 = vmatprep.subr.bf16.mxu1 %v1194_v9  ;;  %v75_v8 = vld [vmem:[%s1848_s0 + $0x1f8] sm:$0xff]  ;;  %v503_v9 = vsel %vm465_vm0, %v1247_v1, 0  ;;  %v1232_v11 = vcombine.high %v66_v4, %v74_v6 }
  0x23   :  { %652 = vmatprep.mubr.bf16.mxu0 %v1446_v3  ;;  %705 = vmatprep.mubr.bf16.mxu1 %v1446_v3  ;;  %v1234_v12 = vcombine.high %v67_v7, %v75_v8  ;;  %v1233_v18 = vcombine.low %v67_v7, %v75_v8 }
  0x25   :  { %633 = vmatpush1.bf16.msra.mxu0 %v1191_v14  ;;  %686 = vmatpush1.bf16.msra.mxu1 %v1193_v15  ;;  %v58_v14 = vld [vmem:[%s1848_s0 + $0x170] sm:$0xff]  ;;  %v51_v15 = vld [vmem:[%s1848_s0 + $0x138] sm:$0xff] }
  0x26   :  { %634 = vmatprep.subr.bf16.mxu0 %v1176_v16  ;;  %687 = vmatprep.subr.bf16.mxu1 %v1178_v17  ;;  %v59_v16 = vld [vmem:[%s1848_s0 + $0x178] sm:$0xff]  ;;  %v1231_v17 = vcombine.low %v66_v4, %v74_v6  ;;  %v1216_v19 = vcombine.high %v50_v13, %v58_v14  ;;  %v1215_v25 = vcombine.low %v50_v13, %v58_v14 }
  0x27   :  { %v1217_v26 = vcombine.low %v51_v15, %v59_v16 }
  0x29   :  { %635 = vmatpush1.bf16.msra.mxu0 %v1175_v20  ;;  %688 = vmatpush1.bf16.msra.mxu1 %v1177_v21  ;;  %v1218_v20 = vcombine.high %v51_v15, %v59_v16  ;;  %v34_v21 = vld [vmem:[%s1848_s0 + $0xb0] sm:$0xff] }
  0x2a   :  { %1263 = vmatprep.subr.msk.bf16.mxu0 %vm465_vm0, %v1244_v22  ;;  %1266 = vmatprep.subr.msk.bf16.mxu1 %vm465_vm0, %v1246_v23  ;;  %v42_v22 = vld [vmem:[%s1848_s0 + $0xf0] sm:$0xff]  ;;  %v35_v23 = vld [vmem:[%s1848_s0 + $0xb8] sm:$0xff] }
  0x2b   :  { %v1200_v27 = vcombine.high %v34_v21, %v42_v22  ;;  %v1202_v28 = vcombine.high %v35_v23, %v43_v24  ;;  %v1201_v34 = vcombine.low %v35_v23, %v43_v24 }
  0x2c   :  { %1258 = vmatmul.mubr.msk.bf16.vlgmr.msra.gmra.mxu0 %vm458_vm1, %v1543_v51  ;;  %1261 = vmatmul.mubr.msk.bf16.vlgmr.msra.gmra.mxu1 %vm458_vm1, %v1543_v51 }
  0x2d   :  { %733 = vmatpush1.bf16.msra.mxu0 %v491_v30  ;;  %786 = vmatpush1.bf16.msra.mxu1 %v497_v31  ;;  %v26_v30 = vld [vmem:[%s1848_s0 + $0x70] sm:$0xff]  ;;  %v19_v31 = vld [vmem:[%s1848_s0 + $0x38] sm:$0xff] }
  0x2e   :  { %734 = vmatprep.subr.bf16.mxu0 %v1228_v32  ;;  %787 = vmatprep.subr.bf16.mxu1 %v1230_v33  ;;  %v27_v32 = vld [vmem:[%s1848_s0 + $0x78] sm:$0xff]  ;;  %v1199_v33 = vcombine.low %v34_v21, %v42_v22  ;;  %v1184_v35 = vcombine.high %v18_v29, %v26_v30  ;;  %v1183_v37 = vcombine.low %v18_v29, %v26_v30 }
  0x2f   :  { %662 = vmatprep.mubr.bf16.mxu0 %v1446_v3  ;;  %715 = vmatprep.mubr.bf16.mxu1 %v1446_v3  ;;  %v1186_v36 = vcombine.high %v19_v31, %v27_v32 }
  0x31   :  { %735 = vmatpush1.bf16.msra.mxu0 %v1227_v38  ;;  %788 = vmatpush1.bf16.msra.mxu1 %v1229_v39  ;;  %v1185_v38 = vcombine.low %v19_v31, %v27_v32 }
  0x32   :  { %736 = vmatprep.subr.bf16.mxu0 %v1212_v40  ;;  %789 = vmatprep.subr.bf16.mxu1 %v1214_v41 }
  0x34   :  { %1259 = vmatmul.mubr.msk.bf16.gmra.mxu0 %vm458_vm1, %v1582_v5  ;;  %1262 = vmatmul.mubr.msk.bf16.gmra.mxu1 %vm458_vm1, %v1582_v5 }
  0x35   :  { %737 = vmatpush1.bf16.msra.mxu0 %v1211_v46  ;;  %790 = vmatpush1.bf16.msra.mxu1 %v1213_v47 }
  0x36   :  { %738 = vmatprep.subr.bf16.mxu0 %v1196_v48  ;;  %791 = vmatprep.subr.bf16.mxu1 %v1198_v49 }
  0x37   :  { %758 = vmatprep.mubr.bf16.mxu0 %v1446_v3  ;;  %811 = vmatprep.mubr.bf16.mxu1 %v1446_v3 }
  0x39   :  { %739 = vmatpush1.bf16.msra.mxu0 %v1195_v55  ;;  %792 = vmatpush1.bf16.msra.mxu1 %v1197_v56 }
  0x3a   :  { %740 = vmatprep.subr.bf16.mxu0 %v1180_v57  ;;  %793 = vmatprep.subr.bf16.mxu1 %v1182_v58 }
  0x3d   :  { %741 = vmatpush1.bf16.msra.mxu0 %v1179_v61  ;;  %794 = vmatpush1.bf16.msra.mxu1 %v1181_v62 }
  0x3e   :  { %1269 = vmatprep.subr.msk.bf16.mxu0 %vm465_vm0, %v1248_v63  ;;  %1272 = vmatprep.subr.msk.bf16.mxu1 %vm465_vm0, %v1250_v0 }
  0x40   :  { %1264 = vmatmul.mubr.msk.bf16.vlgmr.msra.gmra.mxu0 %vm458_vm1, %v1543_v51  ;;  %1267 = vmatmul.mubr.msk.bf16.vlgmr.msra.gmra.mxu1 %vm458_vm1, %v1543_v51 }
  0x41   :  { %839 = vmatpush1.bf16.msra.mxu0 %v503_v9  ;;  %892 = vmatpush1.bf16.msra.mxu1 %v509_v10 }
  0x42   :  { %840 = vmatprep.subr.bf16.mxu0 %v1232_v11  ;;  %893 = vmatprep.subr.bf16.mxu1 %v1234_v12 }
  0x43   :  { %768 = vmatprep.mubr.bf16.mxu0 %v1446_v3  ;;  %821 = vmatprep.mubr.bf16.mxu1 %v1446_v3 }
  0x45   :  { %841 = vmatpush1.bf16.msra.mxu0 %v1231_v17  ;;  %894 = vmatpush1.bf16.msra.mxu1 %v1233_v18 }
  0x46   :  { %842 = vmatprep.subr.bf16.mxu0 %v1216_v19  ;;  %895 = vmatprep.subr.bf16.mxu1 %v1218_v20 }
  0x48   :  { %1265 = vmatmul.mubr.msk.bf16.gmra.mxu0 %vm458_vm1, %v1582_v5  ;;  %1268 = vmatmul.mubr.msk.bf16.gmra.mxu1 %vm458_vm1, %v1582_v5 }
  0x49   :  { %843 = vmatpush1.bf16.msra.mxu0 %v1215_v25  ;;  %896 = vmatpush1.bf16.msra.mxu1 %v1217_v26 }
  0x4a   :  { %844 = vmatprep.subr.bf16.mxu0 %v1200_v27  ;;  %897 = vmatprep.subr.bf16.mxu1 %v1202_v28 }
  0x4b   :  { %864 = vmatprep.mubr.bf16.mxu0 %v1446_v3  ;;  %917 = vmatprep.mubr.bf16.mxu1 %v1446_v3 }
  0x4d   :  { %845 = vmatpush1.bf16.msra.mxu0 %v1199_v33  ;;  %898 = vmatpush1.bf16.msra.mxu1 %v1201_v34 }
  0x4e   :  { %846 = vmatprep.subr.bf16.mxu0 %v1184_v35  ;;  %899 = vmatprep.subr.bf16.mxu1 %v1186_v36 }
  0x51   :  { %847 = vmatpush1.bf16.msra.mxu0 %v1183_v37  ;;  %900 = vmatpush1.bf16.msra.mxu1 %v1185_v38 }
  0x54   :  { %1270 = vmatmul.mubr.msk.bf16.vlgmr.msra.gmra.mxu0 %vm458_vm1, %v1543_v51  ;;  %1273 = vmatmul.mubr.msk.bf16.vlgmr.msra.gmra.mxu1 %vm458_vm1, %v1543_v51 }
  0x55   :  { %874 = vmatprep.mubr.bf16.mxu0 %v1446_v3  ;;  %927 = vmatprep.mubr.bf16.mxu1 %v1446_v3 }
  0x5c   :  { %1271 = vmatmul.mubr.msk.bf16.gmra.mxu0 %vm458_vm1, %v1582_v5  ;;  %1274 = vmatmul.mubr.msk.bf16.gmra.mxu1 %vm458_vm1, %v1582_v5 }
  0xd8   :  { %v548_v39 = vpop.f32.mrf.mxu0  ;;  %v601_v40 = vpop.f32.mrf.mxu1 }
  0xd9   :  { %1318 = vtanh.f32 %v548_v39 }
  0xda   :  { %1320 = vtanh.f32 %v601_v40  ;;  %v550_v41 = vpop.f32.mrf.mxu0  ;;  %v603_v42 = vpop.f32.mrf.mxu1 }
  0xdb   :  { %1322 = vtanh.f32 %v550_v41 }
  0xdc   :  { %1324 = vtanh.f32 %v603_v42  ;;  %v552_v43 = vpop.f32.mrf.mxu0  ;;  %v605_v51 = vpop.f32.mrf.mxu1 }
  0xdd   :  { %1326 = vtanh.f32 %v552_v43 }
  0xde   :  { %1328 = vtanh.f32 %v605_v51  ;;  %v554_v44 = vpop.f32.mrf.mxu0  ;;  %v607_v3 = vpop.f32.mrf.mxu1 }
  0xdf   :  { %1330 = vtanh.f32 %v554_v44 }
  0xe0   :  { %1332 = vtanh.f32 %v607_v3  ;;  %v558_v45 = vpop.f32.mrf.mxu0  ;;  %v611_v46 = vpop.f32.mrf.mxu1 }
  0xe1   :  { %1334 = vtanh.f32 %v558_v45 }
  0xe2   :  { %1336 = vtanh.f32 %v611_v46  ;;  %v560_v5 = vpop.f32.mrf.mxu0  ;;  %v613_v47 = vpop.f32.mrf.mxu1 }
  0xe3   :  { %1338 = vtanh.f32 %v560_v5 }
  0xe4   :  { %1340 = vtanh.f32 %v613_v47  ;;  %v562_v48 = vpop.f32.mrf.mxu0  ;;  %v615_v49 = vpop.f32.mrf.mxu1 }
  0xe5   :  { %1342 = vtanh.f32 %v562_v48 }
  0xe6   :  { %v1319_v50 = vpop.eup %1318  ;;  %1344 = vtanh.f32 %v615_v49  ;;  %v564_v52 = vpop.f32.mrf.mxu0 }
  0xe7   :  { %v617_v53 = vpop.f32.mrf.mxu1  ;;  %v1321_v54 = vpop.eup %1320  ;;  %1346 = vtanh.f32 %v564_v52 }
  0xe8   :  { %v1323_v55 = vpop.eup %1322  ;;  %1348 = vtanh.f32 %v617_v53 }
  0xe9   :  { %v1325_v56 = vpop.eup %1324  ;;  %v970_v57 = vcombine.low %v1319_v50, %v1323_v55 }
  0xea   :  { %v1327_v58 = vpop.eup %1326  ;;  %v971_v59 = vcombine.low %v1321_v54, %v1325_v56 }
  0xeb   :  { %v1329_v60 = vpop.eup %1328  ;;  %986 = vst [vmem:[%s1850_s2] sm:$0x77] %v970_v57 }
  0xec   :  { %v1331_v61 = vpop.eup %1330  ;;  %987 = vst [vmem:[%s1850_s2 + $0x8] sm:$0x77] %v971_v59  ;;  %v654_v62 = vpop.f32.mrf.mxu0 }
  0xed   :  { %v707_v63 = vpop.f32.mrf.mxu1  ;;  %v1333_v0 = vpop.eup %1332  ;;  %v1026_v1 = vcombine.low %v1327_v58, %v1331_v61  ;;  %1350 = vtanh.f32 %v654_v62 }
  0xee   :  { %v1335_v2 = vpop.eup %1334  ;;  %v1027_v4 = vcombine.low %v1329_v60, %v1333_v0  ;;  %1352 = vtanh.f32 %v707_v63  ;;  %v656_v6 = vpop.f32.mrf.mxu0 }
  0xef   :  { %v709_v7 = vpop.f32.mrf.mxu1  ;;  %v1337_v8 = vpop.eup %1336  ;;  %1275 = vst [vmem:[%s1850_s2 + $0x40] sm:$0x77] %v1026_v1  ;;  %1354 = vtanh.f32 %v656_v6 }
  0xf0   :  { %v1339_v9 = vpop.eup %1338  ;;  %1276 = vst [vmem:[%s1850_s2 + $0x48] sm:$0x77] %v1027_v4  ;;  %1356 = vtanh.f32 %v709_v7  ;;  %v658_v10 = vpop.f32.mrf.mxu0 }
  0xf1   :  { %v711_v11 = vpop.f32.mrf.mxu1  ;;  %v1341_v12 = vpop.eup %1340  ;;  %v1083_v13 = vcombine.low %v1335_v2, %v1339_v9  ;;  %1358 = vtanh.f32 %v658_v10 }
  0xf2   :  { %v1343_v14 = vpop.eup %1342  ;;  %v1084_v15 = vcombine.low %v1337_v8, %v1341_v12  ;;  %1360 = vtanh.f32 %v711_v11  ;;  %v660_v16 = vpop.f32.mrf.mxu0 }
  0xf3   :  { %v713_v17 = vpop.f32.mrf.mxu1  ;;  %v1345_v18 = vpop.eup %1344  ;;  %1283 = vst [vmem:[%s1850_s2 + $0x80] sm:$0x77] %v1083_v13  ;;  %1362 = vtanh.f32 %v660_v16 }
  0xf4   :  { %v1347_v19 = vpop.eup %1346  ;;  %1284 = vst [vmem:[%s1850_s2 + $0x88] sm:$0x77] %v1084_v15  ;;  %1364 = vtanh.f32 %v713_v17  ;;  %v664_v20 = vpop.f32.mrf.mxu0 }
  0xf5   :  { %v717_v21 = vpop.f32.mrf.mxu1  ;;  %v1349_v22 = vpop.eup %1348  ;;  %v1140_v23 = vcombine.low %v1343_v14, %v1347_v19  ;;  %1366 = vtanh.f32 %v664_v20 }
  0xf6   :  { %v1141_v24 = vcombine.low %v1345_v18, %v1349_v22  ;;  %1368 = vtanh.f32 %v717_v21  ;;  %v666_v25 = vpop.f32.mrf.mxu0 }
  0xf7   :  { %v719_v26 = vpop.f32.mrf.mxu1  ;;  %1291 = vst [vmem:[%s1850_s2 + $0xc0] sm:$0x77] %v1140_v23  ;;  %1370 = vtanh.f32 %v666_v25 }
  0xf8   :  { %1292 = vst [vmem:[%s1850_s2 + $0xc8] sm:$0x77] %v1141_v24  ;;  %1372 = vtanh.f32 %v719_v26  ;;  %v668_v27 = vpop.f32.mrf.mxu0 }
  0xf9   :  { %v721_v28 = vpop.f32.mrf.mxu1  ;;  %1374 = vtanh.f32 %v668_v27 }
  0xfa   :  { %v1351_v29 = vpop.eup %1350  ;;  %1376 = vtanh.f32 %v721_v28  ;;  %v670_v30 = vpop.f32.mrf.mxu0 }
  0xfb   :  { %v723_v31 = vpop.f32.mrf.mxu1  ;;  %v1353_v32 = vpop.eup %1352  ;;  %1378 = vtanh.f32 %v670_v30 }
  0xfc   :  { %v1355_v33 = vpop.eup %1354  ;;  %1380 = vtanh.f32 %v723_v31 }
  0xfd   :  { %v1357_v34 = vpop.eup %1356  ;;  %v972_v35 = vcombine.low %v1351_v29, %v1355_v33 }
  0xfe   :  { %v1359_v36 = vpop.eup %1358  ;;  %v973_v37 = vcombine.low %v1353_v32, %v1357_v34 }
  0xff   :  { %v1361_v38 = vpop.eup %1360  ;;  %988 = vst [vmem:[%s1850_s2 + $0x10] sm:$0x77] %v972_v35 }
 0x100   :  { %v1363_v39 = vpop.eup %1362  ;;  %989 = vst [vmem:[%s1850_s2 + $0x18] sm:$0x77] %v973_v37  ;;  %v760_v40 = vpop.f32.mrf.mxu0 }
 0x101   :  { %v813_v41 = vpop.f32.mrf.mxu1  ;;  %v1365_v42 = vpop.eup %1364  ;;  %v1028_v43 = vcombine.low %v1359_v36, %v1363_v39  ;;  %1382 = vtanh.f32 %v760_v40 }
 0x102   :  { %v1367_v51 = vpop.eup %1366  ;;  %v1029_v44 = vcombine.low %v1361_v38, %v1365_v42  ;;  %1384 = vtanh.f32 %v813_v41  ;;  %v762_v3 = vpop.f32.mrf.mxu0 }
 0x103   :  { %v815_v45 = vpop.f32.mrf.mxu1  ;;  %v1369_v46 = vpop.eup %1368  ;;  %1277 = vst [vmem:[%s1850_s2 + $0x50] sm:$0x77] %v1028_v43  ;;  %1386 = vtanh.f32 %v762_v3 }
 0x104   :  { %v1371_v5 = vpop.eup %1370  ;;  %1278 = vst [vmem:[%s1850_s2 + $0x58] sm:$0x77] %v1029_v44  ;;  %1388 = vtanh.f32 %v815_v45  ;;  %v764_v47 = vpop.f32.mrf.mxu0 }
 0x105   :  { %v817_v48 = vpop.f32.mrf.mxu1  ;;  %v1373_v49 = vpop.eup %1372  ;;  %v1085_v50 = vcombine.low %v1367_v51, %v1371_v5  ;;  %1390 = vtanh.f32 %v764_v47 }
 0x106   :  { %v1375_v52 = vpop.eup %1374  ;;  %v1086_v53 = vcombine.low %v1369_v46, %v1373_v49  ;;  %1392 = vtanh.f32 %v817_v48  ;;  %v766_v54 = vpop.f32.mrf.mxu0 }
 0x107   :  { %v819_v55 = vpop.f32.mrf.mxu1  ;;  %v1377_v56 = vpop.eup %1376  ;;  %1285 = vst [vmem:[%s1850_s2 + $0x90] sm:$0x77] %v1085_v50  ;;  %1394 = vtanh.f32 %v766_v54 }
 0x108   :  { %v1379_v57 = vpop.eup %1378  ;;  %1286 = vst [vmem:[%s1850_s2 + $0x98] sm:$0x77] %v1086_v53  ;;  %1396 = vtanh.f32 %v819_v55  ;;  %v770_v58 = vpop.f32.mrf.mxu0 }
 0x109   :  { %v823_v59 = vpop.f32.mrf.mxu1  ;;  %v1381_v60 = vpop.eup %1380  ;;  %v1142_v61 = vcombine.low %v1375_v52, %v1379_v57  ;;  %1398 = vtanh.f32 %v770_v58 }
 0x10a   :  { %v1143_v62 = vcombine.low %v1377_v56, %v1381_v60  ;;  %1400 = vtanh.f32 %v823_v59  ;;  %v772_v63 = vpop.f32.mrf.mxu0 }
 0x10b   :  { %v825_v0 = vpop.f32.mrf.mxu1  ;;  %1293 = vst [vmem:[%s1850_s2 + $0xd0] sm:$0x77] %v1142_v61  ;;  %1402 = vtanh.f32 %v772_v63 }
 0x10c   :  { %1294 = vst [vmem:[%s1850_s2 + $0xd8] sm:$0x77] %v1143_v62  ;;  %1404 = vtanh.f32 %v825_v0  ;;  %v774_v1 = vpop.f32.mrf.mxu0 }
 0x10d   :  { %v827_v2 = vpop.f32.mrf.mxu1  ;;  %1406 = vtanh.f32 %v774_v1 }
 0x10e   :  { %v1383_v4 = vpop.eup %1382  ;;  %1408 = vtanh.f32 %v827_v2  ;;  %v776_v6 = vpop.f32.mrf.mxu0 }
 0x10f   :  { %v829_v7 = vpop.f32.mrf.mxu1  ;;  %v1385_v8 = vpop.eup %1384  ;;  %1410 = vtanh.f32 %v776_v6 }
 0x110   :  { %v1387_v9 = vpop.eup %1386  ;;  %1412 = vtanh.f32 %v829_v7 }
 0x111   :  { %v1389_v10 = vpop.eup %1388  ;;  %v974_v11 = vcombine.low %v1383_v4, %v1387_v9 }
 0x112   :  { %v1391_v12 = vpop.eup %1390  ;;  %v975_v13 = vcombine.low %v1385_v8, %v1389_v10 }
 0x113   :  { %v1393_v14 = vpop.eup %1392  ;;  %990 = vst [vmem:[%s1850_s2 + $0x20] sm:$0x77] %v974_v11 }
 0x114   :  { %v1395_v15 = vpop.eup %1394  ;;  %991 = vst [vmem:[%s1850_s2 + $0x28] sm:$0x77] %v975_v13  ;;  %v866_v16 = vpop.f32.mrf.mxu0 }
 0x115   :  { %v919_v17 = vpop.f32.mrf.mxu1  ;;  %v1397_v18 = vpop.eup %1396  ;;  %v1030_v19 = vcombine.low %v1391_v12, %v1395_v15  ;;  %1414 = vtanh.f32 %v866_v16 }
 0x116   :  { %v1399_v20 = vpop.eup %1398  ;;  %v1031_v21 = vcombine.low %v1393_v14, %v1397_v18  ;;  %1416 = vtanh.f32 %v919_v17  ;;  %v868_v22 = vpop.f32.mrf.mxu0 }
 0x117   :  { %v921_v23 = vpop.f32.mrf.mxu1  ;;  %v1401_v24 = vpop.eup %1400  ;;  %1279 = vst [vmem:[%s1850_s2 + $0x60] sm:$0x77] %v1030_v19  ;;  %1418 = vtanh.f32 %v868_v22 }
 0x118   :  { %v1403_v25 = vpop.eup %1402  ;;  %1280 = vst [vmem:[%s1850_s2 + $0x68] sm:$0x77] %v1031_v21  ;;  %1420 = vtanh.f32 %v921_v23  ;;  %v870_v26 = vpop.f32.mrf.mxu0 }
 0x119   :  { %v923_v27 = vpop.f32.mrf.mxu1  ;;  %v1405_v28 = vpop.eup %1404  ;;  %v1087_v29 = vcombine.low %v1399_v20, %v1403_v25  ;;  %1422 = vtanh.f32 %v870_v26 }
 0x11a   :  { %v1407_v30 = vpop.eup %1406  ;;  %v1088_v31 = vcombine.low %v1401_v24, %v1405_v28  ;;  %1424 = vtanh.f32 %v923_v27  ;;  %v872_v32 = vpop.f32.mrf.mxu0 }
 0x11b   :  { %v925_v33 = vpop.f32.mrf.mxu1  ;;  %v1409_v34 = vpop.eup %1408  ;;  %1287 = vst [vmem:[%s1850_s2 + $0xa0] sm:$0x77] %v1087_v29  ;;  %1426 = vtanh.f32 %v872_v32 }
 0x11c   :  { %v1411_v35 = vpop.eup %1410  ;;  %1288 = vst [vmem:[%s1850_s2 + $0xa8] sm:$0x77] %v1088_v31  ;;  %1428 = vtanh.f32 %v925_v33  ;;  %v876_v36 = vpop.f32.mrf.mxu0 }
 0x11d   :  { %v929_v37 = vpop.f32.mrf.mxu1  ;;  %v1413_v38 = vpop.eup %1412  ;;  %v1144_v39 = vcombine.low %v1407_v30, %v1411_v35  ;;  %1430 = vtanh.f32 %v876_v36 }
 0x11e   :  { %v1145_v40 = vcombine.low %v1409_v34, %v1413_v38  ;;  %1432 = vtanh.f32 %v929_v37  ;;  %v878_v41 = vpop.f32.mrf.mxu0 }
 0x11f   :  { %v931_v42 = vpop.f32.mrf.mxu1  ;;  %1295 = vst [vmem:[%s1850_s2 + $0xe0] sm:$0x77] %v1144_v39  ;;  %1434 = vtanh.f32 %v878_v41 }
 0x120   :  { %1296 = vst [vmem:[%s1850_s2 + $0xe8] sm:$0x77] %v1145_v40  ;;  %1436 = vtanh.f32 %v931_v42  ;;  %v880_v43 = vpop.f32.mrf.mxu0 }
 0x121   :  { %v933_v51 = vpop.f32.mrf.mxu1  ;;  %1438 = vtanh.f32 %v880_v43 }
 0x122   :  { %v1415_v44 = vpop.eup %1414  ;;  %1440 = vtanh.f32 %v933_v51  ;;  %v882_v3 = vpop.f32.mrf.mxu0 }
 0x123   :  { %v935_v45 = vpop.f32.mrf.mxu1  ;;  %v1417_v46 = vpop.eup %1416  ;;  %1442 = vtanh.f32 %v882_v3 }
 0x124   :  { %v1419_v5 = vpop.eup %1418  ;;  %1444 = vtanh.f32 %v935_v45 }
 0x125   :  { %v1421_v47 = vpop.eup %1420  ;;  %v976_v48 = vcombine.low %v1415_v44, %v1419_v5 }
 0x126   :  { %v1423_v49 = vpop.eup %1422  ;;  %v977_v50 = vcombine.low %v1417_v46, %v1421_v47 }
 0x127   :  { %v1425_v52 = vpop.eup %1424  ;;  %992 = vst [vmem:[%s1850_s2 + $0x30] sm:$0x77] %v976_v48 }
 0x128   :  { %v1427_v53 = vpop.eup %1426  ;;  %993 = vst [vmem:[%s1850_s2 + $0x38] sm:$0x77] %v977_v50 }
 0x129   :  { %v1429_v54 = vpop.eup %1428  ;;  %v1032_v55 = vcombine.low %v1423_v49, %v1427_v53 }
 0x12a   :  { %v1431_v56 = vpop.eup %1430  ;;  %v1033_v57 = vcombine.low %v1425_v52, %v1429_v54 }
 0x12b   :  { %v1433_v58 = vpop.eup %1432  ;;  %1281 = vst [vmem:[%s1850_s2 + $0x70] sm:$0x77] %v1032_v55 }
 0x12c   :  { %v1435_v59 = vpop.eup %1434  ;;  %1282 = vst [vmem:[%s1850_s2 + $0x78] sm:$0x77] %v1033_v57 }
 0x12d   :  { %v1437_v60 = vpop.eup %1436  ;;  %v1089_v61 = vcombine.low %v1431_v56, %v1435_v59 }
 0x12e   :  { %v1439_v62 = vpop.eup %1438  ;;  %v1090_v63 = vcombine.low %v1433_v58, %v1437_v60 }
 0x12f   :  { %v1441_v0 = vpop.eup %1440  ;;  %1289 = vst [vmem:[%s1850_s2 + $0xb0] sm:$0x77] %v1089_v61 }
 0x130   :  { %v1443_v1 = vpop.eup %1442  ;;  %1290 = vst [vmem:[%s1850_s2 + $0xb8] sm:$0x77] %v1090_v63 }
 0x131   :  { %v1445_v2 = vpop.eup %1444  ;;  %v1146_v4 = vcombine.low %v1439_v62, %v1443_v1 }
 0x132   :  { %v1147_v6 = vcombine.low %v1441_v0, %v1445_v2 }
 0x133   :  { %1297 = vst [vmem:[%s1850_s2 + $0xf0] sm:$0x77] %v1146_v4 }
 0x134   :  { %1298 = vst [vmem:[%s1850_s2 + $0xf8] sm:$0x77] %v1147_v6 }

</bundles_post_ra>
